<compile_context>
chip_gen: v5e
topology: v5e:2x2
jax: 0.10.0
libtpu: 0.0.40
codegen_flags: <defaults>
</compile_context>

<pallas_src>
import functools

import jax
import jax.numpy as jnp
from jax import lax
from jax.experimental import pallas as pl
from jax.experimental.pallas import tpu as pltpu


# ------------------------------ Pallas kernel ------------------------------

def _dw_taps(xp_ref, w_ref, wp, nrows):
    """Whole-plane 3x3 depthwise conv over a flat (rows, C) padded slab.

    xp_ref holds the zero-padded input on a (H+2) x wp grid flattened on the
    sublane axis; tap (dy, dx) is the contiguous slice starting at dy*wp+dx.
    w_ref is (9, C) with BN1 scale already folded in.
    """
    w = w_ref[...]                                          # (9, C) f32
    acc = None
    for dy in range(3):
        for dx in range(3):
            k = dy * 3 + dx
            tap = xp_ref[pl.ds(dy * wp + dx, nrows), :]     # (nrows, C) f32
            t = tap * w[k:k + 1, :]
            acc = t if acc is None else acc + t
    return acc


def _fused_kernel(patches_ref, w1_ref, selp_ref, m13_ref, m7_ref,
                  d1w_ref, d1b_ref, d1pw_ref, d1c_ref,
                  d2w_ref, d2b_ref, seld_ref, d2pw_ref, d2c_ref,
                  d3w_ref, d3b_ref, d3pw_ref, d3c_ref,
                  clsw_ref, clsb_ref,
                  o_ref, xp1, xp2, xp3):
    f32 = jnp.float32
    bf16 = jnp.bfloat16

    # ---- Conv2d(3,32,5) as an im2col matmul (MXU, bf16) + ReLU ----
    y = jnp.dot(patches_ref[0], w1_ref[...], preferred_element_type=f32)
    y = jnp.maximum(y, 0.0)                                 # (784, 32) = 28x28x32

    # ---- MaxPool2d(3, stride=2), whole-plane on the flat (28*28, 32) slab ----
    # column 3-max (offsets +0,+1,+2 within a row), then row 3-max (+0,+28,+56)
    wm = jnp.maximum(jnp.maximum(y[0:782], y[1:783]), y[2:784])          # (782, 32)
    hm = jnp.maximum(jnp.maximum(wm[0:726], wm[28:754]), wm[56:782])     # (726, 32)
    # Exact 0/1 selection matmul picks the 13x13 stride-2 grid and emits it
    # directly on dw1's padded-width (15) grid (zero rows where the halo goes).
    pooled = jnp.dot(selp_ref[...], hm, preferred_element_type=f32)      # (195, 32)

    # ---- DWBlock(32, 64), stride 1 ----
    xp1[...] = jnp.zeros_like(xp1)                   # halos stay exactly zero
    xp1[pl.ds(16, 195), :] = pooled                  # interior at (i+1,j+1)
    a1 = _dw_taps(xp1, d1w_ref, 15, 195)             # depthwise 3x3 (whole plane)
    y1 = jnp.maximum(a1 + d1b_ref[...], 0.0)         # BN1 (folded) + ReLU
    z1 = jnp.dot(y1.astype(bf16), d1pw_ref[...], preferred_element_type=f32)
    z1 = jnp.maximum(z1 + d1c_ref[...], 0.0)         # pointwise + BN2 + ReLU
    z1 = z1 * m13_ref[...]                           # zero the padded-grid columns

    # ---- DWBlock(64, 128), stride 2 ----
    xp2[...] = jnp.zeros_like(xp2)
    xp2[pl.ds(16, 195), :] = z1
    a2 = _dw_taps(xp2, d2w_ref, 15, 195)
    y2 = jnp.maximum(a2 + d2b_ref[...], 0.0)                              # (195, 64)
    y2 = jnp.dot(seld_ref[...], y2, preferred_element_type=f32)           # (63, 64)
    z2 = jnp.dot(y2.astype(bf16), d2pw_ref[...], preferred_element_type=f32)
    z2 = jnp.maximum(z2 + d2c_ref[...], 0.0)
    z2 = z2 * m7_ref[...]

    # ---- DWBlock(128, 128), stride 1 ----
    xp3[...] = jnp.zeros_like(xp3)
    xp3[pl.ds(10, 63), :] = z2
    a3 = _dw_taps(xp3, d3w_ref, 9, 63)
    y3 = jnp.maximum(a3 + d3b_ref[...], 0.0)
    z3 = jnp.dot(y3.astype(bf16), d3pw_ref[...], preferred_element_type=f32)
    z3 = jnp.maximum(z3 + d3c_ref[...], 0.0)                              # (63, 128)

    # ---- AdaptiveAvgPool2d(1) over the 49 valid positions + Linear head ----
    feat = jnp.sum(z3 * m7_ref[...], axis=0, keepdims=True) * (1.0 / 49.0)  # (1, 128)
    o_ref[0] = (jnp.dot(feat, clsw_ref[...], preferred_element_type=f32)
                + clsb_ref[...])                                          # (1, 128)


# -------------------------------- wrapper -----------------------------------

def _const_spec(shape):
    ndim = len(shape)
    return pl.BlockSpec(shape, lambda b, _n=ndim: (0,) * _n)


def forward(params, x_nchw):
    """Full BaselineModel forward (eval mode). x_nchw: (N, 3, 32, 32) f32."""
    x = jnp.transpose(x_nchw, (0, 2, 3, 1)).astype(jnp.float32)  # NCHW -> NHWC
    n, h, w, cin = x.shape
    assert (h, w, cin) == (32, 32, 3), "kernel is specialized to 3x32x32 inputs"
    nc = params["cls"]["w"].shape[1]

    # im2col for the 5x5 valid conv (28x28 output), bf16 MXU operand.
    views = [x[:, dy:dy + 28, dx:dx + 28, :] for dy in range(5) for dx in range(5)]
    patches = jnp.stack(views, axis=3).reshape(n, 784, 75).astype(jnp.bfloat16)
    w1 = params["conv1_w"].reshape(75, 32).astype(jnp.bfloat16)

    # Static 0/1 selection matrices / masks (flat padded-width grids).
    r15 = jnp.arange(195)
    i15, j15 = r15 // 15, r15 % 15
    selp = ((jnp.arange(726)[None, :] == (56 * i15 + 2 * j15)[:, None])
            & (j15 < 13)[:, None]).astype(jnp.float32)            # (195, 726)
    r9 = jnp.arange(63)
    i9, j9 = r9 // 9, r9 % 9
    seld = ((jnp.arange(195)[None, :] == (30 * i9 + 2 * j9)[:, None])
            & (j9 < 7)[:, None]).astype(jnp.float32)              # (63, 195)
    m13 = (j15 < 13).astype(jnp.float32)[:, None]                 # (195, 1)
    m7 = (j9 < 7).astype(jnp.float32)[:, None]                    # (63, 1)

    def fold(p):
        cin_ = p["dw_w"].shape[-1]
        dw = (p["dw_w"].reshape(9, cin_) * p["bn1_scale"][None, :]).astype(jnp.float32)
        db = p["bn1_bias"].reshape(1, cin_).astype(jnp.float32)
        pw = (p["pw_w"] * p["bn2_scale"][None, :]).astype(jnp.bfloat16)
        pc = p["bn2_bias"].reshape(1, -1).astype(jnp.float32)
        return dw, db, pw, pc

    d1w, d1b, d1pw, d1c = fold(params["dw1"])
    d2w, d2b, d2pw, d2c = fold(params["dw2"])
    d3w, d3b, d3pw, d3c = fold(params["dw3"])

    # Classifier padded to 128 lanes -> lane-dense output store; sliced below.
    clsw = jnp.zeros((128, 128), jnp.float32).at[:, :nc].set(params["cls"]["w"])
    clsb = jnp.zeros((1, 128), jnp.float32).at[0, :nc].set(params["cls"]["b"])

    inputs = (patches, w1, selp, m13, m7,
              d1w, d1b, d1pw, d1c,
              d2w, d2b, seld, d2pw, d2c,
              d3w, d3b, d3pw, d3c,
              clsw, clsb)

    in_specs = [
        pl.BlockSpec((1, 784, 75), lambda b: (b, 0, 0)),
        _const_spec((75, 32)), _const_spec((195, 726)),
        _const_spec((195, 1)), _const_spec((63, 1)),
        _const_spec((9, 32)), _const_spec((1, 32)),
        _const_spec((32, 64)), _const_spec((1, 64)),
        _const_spec((9, 64)), _const_spec((1, 64)),
        _const_spec((63, 195)), _const_spec((64, 128)), _const_spec((1, 128)),
        _const_spec((9, 128)), _const_spec((1, 128)),
        _const_spec((128, 128)), _const_spec((1, 128)),
        _const_spec((128, 128)), _const_spec((1, 128)),
    ]

    out = pl.pallas_call(
        _fused_kernel,
        out_shape=jax.ShapeDtypeStruct((n, 1, 128), jnp.float32),
        grid=(n,),
        in_specs=in_specs,
        out_specs=pl.BlockSpec((1, 1, 128), lambda b: (b, 0, 0)),
        scratch_shapes=[
            pltpu.VMEM((232, 32), jnp.float32),    # padded slab for DWBlock1
            pltpu.VMEM((232, 64), jnp.float32),    # padded slab for DWBlock2
            pltpu.VMEM((88, 128), jnp.float32),    # padded slab for DWBlock3
        ],
        compiler_params=pltpu.CompilerParams(
            dimension_semantics=("parallel",)),
    )(*inputs)

    return out.reshape(n, 128)[:, :nc]


# ------------------------------ parameters ---------------------------------

def _bn_fold(key, c):
    """Eval-mode BatchNorm2d folded to per-channel scale/bias (eps=1e-5)."""
    k1, k2, k3, k4 = jax.random.split(key, 4)
    gamma = jax.random.uniform(k1, (c,), minval=0.5, maxval=1.5)
    beta = jax.random.normal(k2, (c,)) * 0.1
    mean = jax.random.normal(k3, (c,)) * 0.1
    var = jax.random.uniform(k4, (c,), minval=0.5, maxval=1.5)
    scale = gamma / jnp.sqrt(var + 1e-5)
    return scale.astype(jnp.float32), (beta - mean * scale).astype(jnp.float32)


def _dw_params(key, cin, cout):
    ks = jax.random.split(key, 4)
    s1, b1 = _bn_fold(ks[2], cin)
    s2, b2 = _bn_fold(ks[3], cout)
    return {
        "dw_w": (jax.random.normal(ks[0], (3, 3, cin)) * 0.1).astype(jnp.float32),
        "bn1_scale": s1, "bn1_bias": b1,
        "pw_w": (jax.random.normal(ks[1], (cin, cout)) * 0.1).astype(jnp.float32),
        "bn2_scale": s2, "bn2_bias": b2,
    }


def init_params(key, num_classes=25):
    ks = jax.random.split(key, 6)
    return {
        "conv1_w": (jax.random.normal(ks[0], (5, 5, 3, 32)) * 0.1).astype(jnp.float32),
        "dw1": _dw_params(ks[1], 32, 64),
        "dw2": _dw_params(ks[2], 64, 128),
        "dw3": _dw_params(ks[3], 128, 128),
        "cls": {
            "w": (jax.random.normal(ks[4], (128, num_classes)) * 0.1).astype(jnp.float32),
            "b": (jax.random.normal(ks[5], (num_classes,)) * 0.1).astype(jnp.float32),
        },
    }


# ------------------------------- reference ----------------------------------

def reference_forward(params, x_nchw):
    """Pure-XLA reference of the same eval-mode forward pass."""
    dn = ("NHWC", "HWIO", "NHWC")
    y = jnp.transpose(x_nchw, (0, 2, 3, 1))
    y = lax.conv_general_dilated(y, params["conv1_w"], (1, 1), "VALID",
                                 dimension_numbers=dn)
    y = jnp.maximum(y, 0.0)
    y = lax.reduce_window(y, -jnp.inf, lax.max,
                          (1, 3, 3, 1), (1, 2, 2, 1), "VALID")
    for name, stride in (("dw1", 1), ("dw2", 2), ("dw3", 1)):
        p = params[name]
        cin = p["dw_w"].shape[-1]
        y = lax.conv_general_dilated(
            y, p["dw_w"].reshape(3, 3, 1, cin), (stride, stride),
            [(1, 1), (1, 1)], dimension_numbers=dn, feature_group_count=cin)
        y = jnp.maximum(y * p["bn1_scale"] + p["bn1_bias"], 0.0)
        y = jnp.einsum("nhwc,cd->nhwd", y, p["pw_w"])
        y = jnp.maximum(y * p["bn2_scale"] + p["bn2_bias"], 0.0)
    feat = jnp.mean(y, axis=(1, 2))
    # Dropout(0.2) is identity at inference.
    return feat @ params["cls"]["w"] + params["cls"]["b"]


if __name__ == "__main__":
    num_classes = 25
    x = jax.random.normal(jax.random.PRNGKey(0), (2, 3, 32, 32), jnp.float32)
    params = init_params(jax.random.PRNGKey(1), num_classes)

    fwd = jax.jit(functools.partial(forward, params))
    out = fwd(x)
    jax.block_until_ready(out)

    assert out.shape == (2, num_classes), out.shape
    assert bool(jnp.all(jnp.isfinite(out)))

    # sanity check vs pure-XLA reference (loose tol: bf16 MXU operands)
    ref = jax.jit(functools.partial(reference_forward, params))(x)
    err = float(jnp.max(jnp.abs(out - ref)))
    scale = float(jnp.max(jnp.abs(ref)))
    assert err <= 0.1 * scale + 1e-2, (err, scale)

    print("KERNEL_OK")
</pallas_src>

<mosaic_0001>
module attributes {stable_mosaic.version = 11 : i64} {
  func.func @_fused_kernel(%arg0: i32, %arg1: memref<1x784x75xbf16, #tpu.memory_space<vmem>>, %arg2: memref<75x32xbf16, #tpu.memory_space<vmem>>, %arg3: memref<195x726xf32, #tpu.memory_space<vmem>>, %arg4: memref<195x1xf32, #tpu.memory_space<vmem>>, %arg5: memref<63x1xf32, #tpu.memory_space<vmem>>, %arg6: memref<9x32xf32, #tpu.memory_space<vmem>>, %arg7: memref<1x32xf32, #tpu.memory_space<vmem>>, %arg8: memref<32x64xbf16, #tpu.memory_space<vmem>>, %arg9: memref<1x64xf32, #tpu.memory_space<vmem>>, %arg10: memref<9x64xf32, #tpu.memory_space<vmem>>, %arg11: memref<1x64xf32, #tpu.memory_space<vmem>>, %arg12: memref<63x195xf32, #tpu.memory_space<vmem>>, %arg13: memref<64x128xbf16, #tpu.memory_space<vmem>>, %arg14: memref<1x128xf32, #tpu.memory_space<vmem>>, %arg15: memref<9x128xf32, #tpu.memory_space<vmem>>, %arg16: memref<1x128xf32, #tpu.memory_space<vmem>>, %arg17: memref<128x128xbf16, #tpu.memory_space<vmem>>, %arg18: memref<1x128xf32, #tpu.memory_space<vmem>>, %arg19: memref<128x128xf32, #tpu.memory_space<vmem>>, %arg20: memref<1x128xf32, #tpu.memory_space<vmem>>, %arg21: memref<1x1x128xf32, #tpu.memory_space<vmem>>, %arg22: memref<232x32xf32, #tpu.memory_space<vmem>>, %arg23: memref<232x64xf32, #tpu.memory_space<vmem>>, %arg24: memref<88x128xf32, #tpu.memory_space<vmem>>) attributes {dimension_semantics = [#tpu.dimension_semantics<parallel>], iteration_bounds = array<i64: 2>, scalar_prefetch = 0 : i64, scratch_operands = 3 : i64, tpu.core_type = #tpu.core_type<tc>, window_params = [{transform_indices = @transform_0, window_bounds = array<i64: 1, 784, 75>}, {pipeline_mode = #tpu.pipeline_mode<synchronous>, transform_indices = @transform_1, window_bounds = array<i64: 75, 32>}, {pipeline_mode = #tpu.pipeline_mode<synchronous>, transform_indices = @transform_2, window_bounds = array<i64: 195, 726>}, {pipeline_mode = #tpu.pipeline_mode<synchronous>, transform_indices = @transform_3, window_bounds = array<i64: 195, 1>}, {pipeline_mode = #tpu.pipeline_mode<synchronous>, transform_indices = @transform_4, window_bounds = array<i64: 63, 1>}, {pipeline_mode = #tpu.pipeline_mode<synchronous>, transform_indices = @transform_5, window_bounds = array<i64: 9, 32>}, {pipeline_mode = #tpu.pipeline_mode<synchronous>, transform_indices = @transform_6, window_bounds = array<i64: 1, 32>}, {pipeline_mode = #tpu.pipeline_mode<synchronous>, transform_indices = @transform_7, window_bounds = array<i64: 32, 64>}, {pipeline_mode = #tpu.pipeline_mode<synchronous>, transform_indices = @transform_8, window_bounds = array<i64: 1, 64>}, {pipeline_mode = #tpu.pipeline_mode<synchronous>, transform_indices = @transform_9, window_bounds = array<i64: 9, 64>}, {pipeline_mode = #tpu.pipeline_mode<synchronous>, transform_indices = @transform_10, window_bounds = array<i64: 1, 64>}, {pipeline_mode = #tpu.pipeline_mode<synchronous>, transform_indices = @transform_11, window_bounds = array<i64: 63, 195>}, {pipeline_mode = #tpu.pipeline_mode<synchronous>, transform_indices = @transform_12, window_bounds = array<i64: 64, 128>}, {pipeline_mode = #tpu.pipeline_mode<synchronous>, transform_indices = @transform_13, window_bounds = array<i64: 1, 128>}, {pipeline_mode = #tpu.pipeline_mode<synchronous>, transform_indices = @transform_14, window_bounds = array<i64: 9, 128>}, {pipeline_mode = #tpu.pipeline_mode<synchronous>, transform_indices = @transform_15, window_bounds = array<i64: 1, 128>}, {pipeline_mode = #tpu.pipeline_mode<synchronous>, transform_indices = @transform_16, window_bounds = array<i64: 128, 128>}, {pipeline_mode = #tpu.pipeline_mode<synchronous>, transform_indices = @transform_17, window_bounds = array<i64: 1, 128>}, {pipeline_mode = #tpu.pipeline_mode<synchronous>, transform_indices = @transform_18, window_bounds = array<i64: 128, 128>}, {pipeline_mode = #tpu.pipeline_mode<synchronous>, transform_indices = @transform_19, window_bounds = array<i64: 1, 128>}, {transform_indices = @transform_20, window_bounds = array<i64: 1, 1, 128>}]} {
    %c0 = arith.constant 0 : index
    %c0_0 = arith.constant 0 : index
    %c0_1 = arith.constant 0 : index
    %0 = vector.load %arg1[%c0, %c0_0, %c0_1] : memref<1x784x75xbf16, #tpu.memory_space<vmem>>, vector<1x784x75xbf16>
    %1 = vector.shape_cast %0 : vector<1x784x75xbf16> to vector<784x75xbf16>
    %c0_2 = arith.constant 0 : index
    %c0_3 = arith.constant 0 : index
    %2 = vector.load %arg2[%c0_2, %c0_3] : memref<75x32xbf16, #tpu.memory_space<vmem>>, vector<75x32xbf16>
    %cst = arith.constant dense<0.000000e+00> : vector<784x32xf32>
    %3 = tpu.matmul %1, %2, %cst {dimension_numbers = #tpu.dot_dimension_numbers<[1], [0], [0], [1], [0, 0, 1, 1], [], []>} : vector<784x75xbf16>, vector<75x32xbf16>, vector<784x32xf32> -> vector<784x32xf32>
    %cst_4 = arith.constant 0.000000e+00 : f32
    %4 = vector.broadcast %cst_4 : f32 to vector<784x32xf32>
    %5 = arith.maximumf %3, %4 : vector<784x32xf32>
    %6 = vector.extract_strided_slice %5 {offsets = [0, 0], sizes = [782, 32], strides = [1, 1]} : vector<784x32xf32> to vector<782x32xf32>
    %7 = vector.extract_strided_slice %5 {offsets = [1, 0], sizes = [782, 32], strides = [1, 1]} : vector<784x32xf32> to vector<782x32xf32>
    %8 = arith.maximumf %6, %7 : vector<782x32xf32>
    %9 = vector.extract_strided_slice %5 {offsets = [2, 0], sizes = [782, 32], strides = [1, 1]} : vector<784x32xf32> to vector<782x32xf32>
    %10 = arith.maximumf %8, %9 : vector<782x32xf32>
    %11 = vector.extract_strided_slice %10 {offsets = [0, 0], sizes = [726, 32], strides = [1, 1]} : vector<782x32xf32> to vector<726x32xf32>
    %12 = vector.extract_strided_slice %10 {offsets = [28, 0], sizes = [726, 32], strides = [1, 1]} : vector<782x32xf32> to vector<726x32xf32>
    %13 = arith.maximumf %11, %12 : vector<726x32xf32>
    %14 = vector.extract_strided_slice %10 {offsets = [56, 0], sizes = [726, 32], strides = [1, 1]} : vector<782x32xf32> to vector<726x32xf32>
    %15 = arith.maximumf %13, %14 : vector<726x32xf32>
    %c0_5 = arith.constant 0 : index
    %c0_6 = arith.constant 0 : index
    %16 = vector.load %arg3[%c0_5, %c0_6] : memref<195x726xf32, #tpu.memory_space<vmem>>, vector<195x726xf32>
    %cst_7 = arith.constant dense<0.000000e+00> : vector<195x32xf32>
    %17 = tpu.matmul %16, %15, %cst_7 {dimension_numbers = #tpu.dot_dimension_numbers<[1], [0], [0], [1], [0, 0, 1, 1], [], []>} : vector<195x726xf32>, vector<726x32xf32>, vector<195x32xf32> -> vector<195x32xf32>
    %cst_8 = arith.constant 0.000000e+00 : f32
    %18 = vector.broadcast %cst_8 : f32 to vector<232x32xf32>
    %c0_9 = arith.constant 0 : index
    %c0_10 = arith.constant 0 : index
    %19 = vector.load %arg22[%c0_9, %c0_10] : memref<232x32xf32, #tpu.memory_space<vmem>>, vector<232x32xf32>
    tpu.vector_store %arg22[%c0_9, %c0_10], %18 {strides = array<i32>} : memref<232x32xf32, #tpu.memory_space<vmem>>, vector<232x32xf32>,
    %c16 = arith.constant 16 : index
    %c0_11 = arith.constant 0 : index
    %20 = vector.load %arg22[%c16, %c0_11] : memref<232x32xf32, #tpu.memory_space<vmem>>, vector<195x32xf32>
    tpu.vector_store %arg22[%c16, %c0_11], %17 {strides = array<i32>} : memref<232x32xf32, #tpu.memory_space<vmem>>, vector<195x32xf32>,
    %c0_12 = arith.constant 0 : index
    %c0_13 = arith.constant 0 : index
    %21 = vector.load %arg6[%c0_12, %c0_13] : memref<9x32xf32, #tpu.memory_space<vmem>>, vector<9x32xf32>
    %c0_14 = arith.constant 0 : index
    %c0_15 = arith.constant 0 : index
    %22 = vector.load %arg22[%c0_14, %c0_15] : memref<232x32xf32, #tpu.memory_space<vmem>>, vector<195x32xf32>
    %23 = vector.extract_strided_slice %21 {offsets = [0, 0], sizes = [1, 32], strides = [1, 1]} : vector<9x32xf32> to vector<1x32xf32>
    %24 = vector.broadcast %23 : vector<1x32xf32> to vector<195x32xf32>
    %25 = arith.mulf %22, %24 : vector<195x32xf32>
    %c1 = arith.constant 1 : index
    %c0_16 = arith.constant 0 : index
    %26 = vector.load %arg22[%c1, %c0_16] : memref<232x32xf32, #tpu.memory_space<vmem>>, vector<195x32xf32>
    %27 = vector.extract_strided_slice %21 {offsets = [1, 0], sizes = [1, 32], strides = [1, 1]} : vector<9x32xf32> to vector<1x32xf32>
    %28 = vector.broadcast %27 : vector<1x32xf32> to vector<195x32xf32>
    %29 = arith.mulf %26, %28 : vector<195x32xf32>
    %30 = arith.addf %25, %29 : vector<195x32xf32>
    %c2 = arith.constant 2 : index
    %c0_17 = arith.constant 0 : index
    %31 = vector.load %arg22[%c2, %c0_17] : memref<232x32xf32, #tpu.memory_space<vmem>>, vector<195x32xf32>
    %32 = vector.extract_strided_slice %21 {offsets = [2, 0], sizes = [1, 32], strides = [1, 1]} : vector<9x32xf32> to vector<1x32xf32>
    %33 = vector.broadcast %32 : vector<1x32xf32> to vector<195x32xf32>
    %34 = arith.mulf %31, %33 : vector<195x32xf32>
    %35 = arith.addf %30, %34 : vector<195x32xf32>
    %c15 = arith.constant 15 : index
    %c0_18 = arith.constant 0 : index
    %36 = vector.load %arg22[%c15, %c0_18] : memref<232x32xf32, #tpu.memory_space<vmem>>, vector<195x32xf32>
    %37 = vector.extract_strided_slice %21 {offsets = [3, 0], sizes = [1, 32], strides = [1, 1]} : vector<9x32xf32> to vector<1x32xf32>
    %38 = vector.broadcast %37 : vector<1x32xf32> to vector<195x32xf32>
    %39 = arith.mulf %36, %38 : vector<195x32xf32>
    %40 = arith.addf %35, %39 : vector<195x32xf32>
    %c16_19 = arith.constant 16 : index
    %c0_20 = arith.constant 0 : index
    %41 = vector.load %arg22[%c16_19, %c0_20] : memref<232x32xf32, #tpu.memory_space<vmem>>, vector<195x32xf32>
    %42 = vector.extract_strided_slice %21 {offsets = [4, 0], sizes = [1, 32], strides = [1, 1]} : vector<9x32xf32> to vector<1x32xf32>
    %43 = vector.broadcast %42 : vector<1x32xf32> to vector<195x32xf32>
    %44 = arith.mulf %41, %43 : vector<195x32xf32>
    %45 = arith.addf %40, %44 : vector<195x32xf32>
    %c17 = arith.constant 17 : index
    %c0_21 = arith.constant 0 : index
    %46 = vector.load %arg22[%c17, %c0_21] : memref<232x32xf32, #tpu.memory_space<vmem>>, vector<195x32xf32>
    %47 = vector.extract_strided_slice %21 {offsets = [5, 0], sizes = [1, 32], strides = [1, 1]} : vector<9x32xf32> to vector<1x32xf32>
    %48 = vector.broadcast %47 : vector<1x32xf32> to vector<195x32xf32>
    %49 = arith.mulf %46, %48 : vector<195x32xf32>
    %50 = arith.addf %45, %49 : vector<195x32xf32>
    %c30 = arith.constant 30 : index
    %c0_22 = arith.constant 0 : index
    %51 = vector.load %arg22[%c30, %c0_22] : memref<232x32xf32, #tpu.memory_space<vmem>>, vector<195x32xf32>
    %52 = vector.extract_strided_slice %21 {offsets = [6, 0], sizes = [1, 32], strides = [1, 1]} : vector<9x32xf32> to vector<1x32xf32>
    %53 = vector.broadcast %52 : vector<1x32xf32> to vector<195x32xf32>
    %54 = arith.mulf %51, %53 : vector<195x32xf32>
    %55 = arith.addf %50, %54 : vector<195x32xf32>
    %c31 = arith.constant 31 : index
    %c0_23 = arith.constant 0 : index
    %56 = vector.load %arg22[%c31, %c0_23] : memref<232x32xf32, #tpu.memory_space<vmem>>, vector<195x32xf32>
    %57 = vector.extract_strided_slice %21 {offsets = [7, 0], sizes = [1, 32], strides = [1, 1]} : vector<9x32xf32> to vector<1x32xf32>
    %58 = vector.broadcast %57 : vector<1x32xf32> to vector<195x32xf32>
    %59 = arith.mulf %56, %58 : vector<195x32xf32>
    %60 = arith.addf %55, %59 : vector<195x32xf32>
    %c32 = arith.constant 32 : index
    %c0_24 = arith.constant 0 : index
    %61 = vector.load %arg22[%c32, %c0_24] : memref<232x32xf32, #tpu.memory_space<vmem>>, vector<195x32xf32>
    %62 = vector.extract_strided_slice %21 {offsets = [8, 0], sizes = [1, 32], strides = [1, 1]} : vector<9x32xf32> to vector<1x32xf32>
    %63 = vector.broadcast %62 : vector<1x32xf32> to vector<195x32xf32>
    %64 = arith.mulf %61, %63 : vector<195x32xf32>
    %65 = arith.addf %60, %64 : vector<195x32xf32>
    %c0_25 = arith.constant 0 : index
    %c0_26 = arith.constant 0 : index
    %66 = vector.load %arg7[%c0_25, %c0_26] : memref<1x32xf32, #tpu.memory_space<vmem>>, vector<1x32xf32>
    %67 = vector.broadcast %66 : vector<1x32xf32> to vector<195x32xf32>
    %68 = arith.addf %65, %67 : vector<195x32xf32>
    %cst_27 = arith.constant 0.000000e+00 : f32
    %69 = vector.broadcast %cst_27 : f32 to vector<195x32xf32>
    %70 = arith.maximumf %68, %69 : vector<195x32xf32>
    %71 = arith.truncf %70 : vector<195x32xf32> to vector<195x32xbf16>
    %c0_28 = arith.constant 0 : index
    %c0_29 = arith.constant 0 : index
    %72 = vector.load %arg8[%c0_28, %c0_29] : memref<32x64xbf16, #tpu.memory_space<vmem>>, vector<32x64xbf16>
    %cst_30 = arith.constant dense<0.000000e+00> : vector<195x64xf32>
    %73 = tpu.matmul %71, %72, %cst_30 {dimension_numbers = #tpu.dot_dimension_numbers<[1], [0], [0], [1], [0, 0, 1, 1], [], []>} : vector<195x32xbf16>, vector<32x64xbf16>, vector<195x64xf32> -> vector<195x64xf32>
    %c0_31 = arith.constant 0 : index
    %c0_32 = arith.constant 0 : index
    %74 = vector.load %arg9[%c0_31, %c0_32] : memref<1x64xf32, #tpu.memory_space<vmem>>, vector<1x64xf32>
    %75 = vector.broadcast %74 : vector<1x64xf32> to vector<195x64xf32>
    %76 = arith.addf %73, %75 : vector<195x64xf32>
    %cst_33 = arith.constant 0.000000e+00 : f32
    %77 = vector.broadcast %cst_33 : f32 to vector<195x64xf32>
    %78 = arith.maximumf %76, %77 : vector<195x64xf32>
    %c0_34 = arith.constant 0 : index
    %c0_35 = arith.constant 0 : index
    %79 = vector.load %arg4[%c0_34, %c0_35] : memref<195x1xf32, #tpu.memory_space<vmem>>, vector<195x1xf32>
    %80 = vector.broadcast %79 : vector<195x1xf32> to vector<195x64xf32>
    %81 = arith.mulf %78, %80 : vector<195x64xf32>
    %cst_36 = arith.constant 0.000000e+00 : f32
    %82 = vector.broadcast %cst_36 : f32 to vector<232x64xf32>
    %c0_37 = arith.constant 0 : index
    %c0_38 = arith.constant 0 : index
    %83 = vector.load %arg23[%c0_37, %c0_38] : memref<232x64xf32, #tpu.memory_space<vmem>>, vector<232x64xf32>
    tpu.vector_store %arg23[%c0_37, %c0_38], %82 {strides = array<i32>} : memref<232x64xf32, #tpu.memory_space<vmem>>, vector<232x64xf32>,
    %c16_39 = arith.constant 16 : index
    %c0_40 = arith.constant 0 : index
    %84 = vector.load %arg23[%c16_39, %c0_40] : memref<232x64xf32, #tpu.memory_space<vmem>>, vector<195x64xf32>
    tpu.vector_store %arg23[%c16_39, %c0_40], %81 {strides = array<i32>} : memref<232x64xf32, #tpu.memory_space<vmem>>, vector<195x64xf32>,
    %c0_41 = arith.constant 0 : index
    %c0_42 = arith.constant 0 : index
    %85 = vector.load %arg10[%c0_41, %c0_42] : memref<9x64xf32, #tpu.memory_space<vmem>>, vector<9x64xf32>
    %c0_43 = arith.constant 0 : index
    %c0_44 = arith.constant 0 : index
    %86 = vector.load %arg23[%c0_43, %c0_44] : memref<232x64xf32, #tpu.memory_space<vmem>>, vector<195x64xf32>
    %87 = vector.extract_strided_slice %85 {offsets = [0, 0], sizes = [1, 64], strides = [1, 1]} : vector<9x64xf32> to vector<1x64xf32>
    %88 = vector.broadcast %87 : vector<1x64xf32> to vector<195x64xf32>
    %89 = arith.mulf %86, %88 : vector<195x64xf32>
    %c1_45 = arith.constant 1 : index
    %c0_46 = arith.constant 0 : index
    %90 = vector.load %arg23[%c1_45, %c0_46] : memref<232x64xf32, #tpu.memory_space<vmem>>, vector<195x64xf32>
    %91 = vector.extract_strided_slice %85 {offsets = [1, 0], sizes = [1, 64], strides = [1, 1]} : vector<9x64xf32> to vector<1x64xf32>
    %92 = vector.broadcast %91 : vector<1x64xf32> to vector<195x64xf32>
    %93 = arith.mulf %90, %92 : vector<195x64xf32>
    %94 = arith.addf %89, %93 : vector<195x64xf32>
    %c2_47 = arith.constant 2 : index
    %c0_48 = arith.constant 0 : index
    %95 = vector.load %arg23[%c2_47, %c0_48] : memref<232x64xf32, #tpu.memory_space<vmem>>, vector<195x64xf32>
    %96 = vector.extract_strided_slice %85 {offsets = [2, 0], sizes = [1, 64], strides = [1, 1]} : vector<9x64xf32> to vector<1x64xf32>
    %97 = vector.broadcast %96 : vector<1x64xf32> to vector<195x64xf32>
    %98 = arith.mulf %95, %97 : vector<195x64xf32>
    %99 = arith.addf %94, %98 : vector<195x64xf32>
    %c15_49 = arith.constant 15 : index
    %c0_50 = arith.constant 0 : index
    %100 = vector.load %arg23[%c15_49, %c0_50] : memref<232x64xf32, #tpu.memory_space<vmem>>, vector<195x64xf32>
    %101 = vector.extract_strided_slice %85 {offsets = [3, 0], sizes = [1, 64], strides = [1, 1]} : vector<9x64xf32> to vector<1x64xf32>
    %102 = vector.broadcast %101 : vector<1x64xf32> to vector<195x64xf32>
    %103 = arith.mulf %100, %102 : vector<195x64xf32>
    %104 = arith.addf %99, %103 : vector<195x64xf32>
    %c16_51 = arith.constant 16 : index
    %c0_52 = arith.constant 0 : index
    %105 = vector.load %arg23[%c16_51, %c0_52] : memref<232x64xf32, #tpu.memory_space<vmem>>, vector<195x64xf32>
    %106 = vector.extract_strided_slice %85 {offsets = [4, 0], sizes = [1, 64], strides = [1, 1]} : vector<9x64xf32> to vector<1x64xf32>
    %107 = vector.broadcast %106 : vector<1x64xf32> to vector<195x64xf32>
    %108 = arith.mulf %105, %107 : vector<195x64xf32>
    %109 = arith.addf %104, %108 : vector<195x64xf32>
    %c17_53 = arith.constant 17 : index
    %c0_54 = arith.constant 0 : index
    %110 = vector.load %arg23[%c17_53, %c0_54] : memref<232x64xf32, #tpu.memory_space<vmem>>, vector<195x64xf32>
    %111 = vector.extract_strided_slice %85 {offsets = [5, 0], sizes = [1, 64], strides = [1, 1]} : vector<9x64xf32> to vector<1x64xf32>
    %112 = vector.broadcast %111 : vector<1x64xf32> to vector<195x64xf32>
    %113 = arith.mulf %110, %112 : vector<195x64xf32>
    %114 = arith.addf %109, %113 : vector<195x64xf32>
    %c30_55 = arith.constant 30 : index
    %c0_56 = arith.constant 0 : index
    %115 = vector.load %arg23[%c30_55, %c0_56] : memref<232x64xf32, #tpu.memory_space<vmem>>, vector<195x64xf32>
    %116 = vector.extract_strided_slice %85 {offsets = [6, 0], sizes = [1, 64], strides = [1, 1]} : vector<9x64xf32> to vector<1x64xf32>
    %117 = vector.broadcast %116 : vector<1x64xf32> to vector<195x64xf32>
    %118 = arith.mulf %115, %117 : vector<195x64xf32>
    %119 = arith.addf %114, %118 : vector<195x64xf32>
    %c31_57 = arith.constant 31 : index
    %c0_58 = arith.constant 0 : index
    %120 = vector.load %arg23[%c31_57, %c0_58] : memref<232x64xf32, #tpu.memory_space<vmem>>, vector<195x64xf32>
    %121 = vector.extract_strided_slice %85 {offsets = [7, 0], sizes = [1, 64], strides = [1, 1]} : vector<9x64xf32> to vector<1x64xf32>
    %122 = vector.broadcast %121 : vector<1x64xf32> to vector<195x64xf32>
    %123 = arith.mulf %120, %122 : vector<195x64xf32>
    %124 = arith.addf %119, %123 : vector<195x64xf32>
    %c32_59 = arith.constant 32 : index
    %c0_60 = arith.constant 0 : index
    %125 = vector.load %arg23[%c32_59, %c0_60] : memref<232x64xf32, #tpu.memory_space<vmem>>, vector<195x64xf32>
    %126 = vector.extract_strided_slice %85 {offsets = [8, 0], sizes = [1, 64], strides = [1, 1]} : vector<9x64xf32> to vector<1x64xf32>
    %127 = vector.broadcast %126 : vector<1x64xf32> to vector<195x64xf32>
    %128 = arith.mulf %125, %127 : vector<195x64xf32>
    %129 = arith.addf %124, %128 : vector<195x64xf32>
    %c0_61 = arith.constant 0 : index
    %c0_62 = arith.constant 0 : index
    %130 = vector.load %arg11[%c0_61, %c0_62] : memref<1x64xf32, #tpu.memory_space<vmem>>, vector<1x64xf32>
    %131 = vector.broadcast %130 : vector<1x64xf32> to vector<195x64xf32>
    %132 = arith.addf %129, %131 : vector<195x64xf32>
    %cst_63 = arith.constant 0.000000e+00 : f32
    %133 = vector.broadcast %cst_63 : f32 to vector<195x64xf32>
    %134 = arith.maximumf %132, %133 : vector<195x64xf32>
    %c0_64 = arith.constant 0 : index
    %c0_65 = arith.constant 0 : index
    %135 = vector.load %arg12[%c0_64, %c0_65] : memref<63x195xf32, #tpu.memory_space<vmem>>, vector<63x195xf32>
    %cst_66 = arith.constant dense<0.000000e+00> : vector<63x64xf32>
    %136 = tpu.matmul %135, %134, %cst_66 {dimension_numbers = #tpu.dot_dimension_numbers<[1], [0], [0], [1], [0, 0, 1, 1], [], []>} : vector<63x195xf32>, vector<195x64xf32>, vector<63x64xf32> -> vector<63x64xf32>
    %137 = arith.truncf %136 : vector<63x64xf32> to vector<63x64xbf16>
    %c0_67 = arith.constant 0 : index
    %c0_68 = arith.constant 0 : index
    %138 = vector.load %arg13[%c0_67, %c0_68] : memref<64x128xbf16, #tpu.memory_space<vmem>>, vector<64x128xbf16>
    %cst_69 = arith.constant dense<0.000000e+00> : vector<63x128xf32>
    %139 = tpu.matmul %137, %138, %cst_69 {dimension_numbers = #tpu.dot_dimension_numbers<[1], [0], [0], [1], [0, 0, 1, 1], [], []>} : vector<63x64xbf16>, vector<64x128xbf16>, vector<63x128xf32> -> vector<63x128xf32>
    %c0_70 = arith.constant 0 : index
    %c0_71 = arith.constant 0 : index
    %140 = vector.load %arg14[%c0_70, %c0_71] : memref<1x128xf32, #tpu.memory_space<vmem>>, vector<1x128xf32>
    %141 = vector.broadcast %140 : vector<1x128xf32> to vector<63x128xf32>
    %142 = arith.addf %139, %141 : vector<63x128xf32>
    %cst_72 = arith.constant 0.000000e+00 : f32
    %143 = vector.broadcast %cst_72 : f32 to vector<63x128xf32>
    %144 = arith.maximumf %142, %143 : vector<63x128xf32>
    %c0_73 = arith.constant 0 : index
    %c0_74 = arith.constant 0 : index
    %145 = vector.load %arg5[%c0_73, %c0_74] : memref<63x1xf32, #tpu.memory_space<vmem>>, vector<63x1xf32>
    %146 = vector.broadcast %145 : vector<63x1xf32> to vector<63x128xf32>
    %147 = arith.mulf %144, %146 : vector<63x128xf32>
    %cst_75 = arith.constant 0.000000e+00 : f32
    %148 = vector.broadcast %cst_75 : f32 to vector<88x128xf32>
    %c0_76 = arith.constant 0 : index
    %c0_77 = arith.constant 0 : index
    %149 = vector.load %arg24[%c0_76, %c0_77] : memref<88x128xf32, #tpu.memory_space<vmem>>, vector<88x128xf32>
    tpu.vector_store %arg24[%c0_76, %c0_77], %148 {strides = array<i32>} : memref<88x128xf32, #tpu.memory_space<vmem>>, vector<88x128xf32>,
    %c10 = arith.constant 10 : index
    %c0_78 = arith.constant 0 : index
    %150 = vector.load %arg24[%c10, %c0_78] : memref<88x128xf32, #tpu.memory_space<vmem>>, vector<63x128xf32>
    tpu.vector_store %arg24[%c10, %c0_78], %147 {strides = array<i32>} : memref<88x128xf32, #tpu.memory_space<vmem>>, vector<63x128xf32>,
    %c0_79 = arith.constant 0 : index
    %c0_80 = arith.constant 0 : index
    %151 = vector.load %arg15[%c0_79, %c0_80] : memref<9x128xf32, #tpu.memory_space<vmem>>, vector<9x128xf32>
    %c0_81 = arith.constant 0 : index
    %c0_82 = arith.constant 0 : index
    %152 = vector.load %arg24[%c0_81, %c0_82] : memref<88x128xf32, #tpu.memory_space<vmem>>, vector<63x128xf32>
    %153 = vector.extract_strided_slice %151 {offsets = [0, 0], sizes = [1, 128], strides = [1, 1]} : vector<9x128xf32> to vector<1x128xf32>
    %154 = vector.broadcast %153 : vector<1x128xf32> to vector<63x128xf32>
    %155 = arith.mulf %152, %154 : vector<63x128xf32>
    %c1_83 = arith.constant 1 : index
    %c0_84 = arith.constant 0 : index
    %156 = vector.load %arg24[%c1_83, %c0_84] : memref<88x128xf32, #tpu.memory_space<vmem>>, vector<63x128xf32>
    %157 = vector.extract_strided_slice %151 {offsets = [1, 0], sizes = [1, 128], strides = [1, 1]} : vector<9x128xf32> to vector<1x128xf32>
    %158 = vector.broadcast %157 : vector<1x128xf32> to vector<63x128xf32>
    %159 = arith.mulf %156, %158 : vector<63x128xf32>
    %160 = arith.addf %155, %159 : vector<63x128xf32>
    %c2_85 = arith.constant 2 : index
    %c0_86 = arith.constant 0 : index
    %161 = vector.load %arg24[%c2_85, %c0_86] : memref<88x128xf32, #tpu.memory_space<vmem>>, vector<63x128xf32>
    %162 = vector.extract_strided_slice %151 {offsets = [2, 0], sizes = [1, 128], strides = [1, 1]} : vector<9x128xf32> to vector<1x128xf32>
    %163 = vector.broadcast %162 : vector<1x128xf32> to vector<63x128xf32>
    %164 = arith.mulf %161, %163 : vector<63x128xf32>
    %165 = arith.addf %160, %164 : vector<63x128xf32>
    %c9 = arith.constant 9 : index
    %c0_87 = arith.constant 0 : index
    %166 = vector.load %arg24[%c9, %c0_87] : memref<88x128xf32, #tpu.memory_space<vmem>>, vector<63x128xf32>
    %167 = vector.extract_strided_slice %151 {offsets = [3, 0], sizes = [1, 128], strides = [1, 1]} : vector<9x128xf32> to vector<1x128xf32>
    %168 = vector.broadcast %167 : vector<1x128xf32> to vector<63x128xf32>
    %169 = arith.mulf %166, %168 : vector<63x128xf32>
    %170 = arith.addf %165, %169 : vector<63x128xf32>
    %c10_88 = arith.constant 10 : index
    %c0_89 = arith.constant 0 : index
    %171 = vector.load %arg24[%c10_88, %c0_89] : memref<88x128xf32, #tpu.memory_space<vmem>>, vector<63x128xf32>
    %172 = vector.extract_strided_slice %151 {offsets = [4, 0], sizes = [1, 128], strides = [1, 1]} : vector<9x128xf32> to vector<1x128xf32>
    %173 = vector.broadcast %172 : vector<1x128xf32> to vector<63x128xf32>
    %174 = arith.mulf %171, %173 : vector<63x128xf32>
    %175 = arith.addf %170, %174 : vector<63x128xf32>
    %c11 = arith.constant 11 : index
    %c0_90 = arith.constant 0 : index
    %176 = vector.load %arg24[%c11, %c0_90] : memref<88x128xf32, #tpu.memory_space<vmem>>, vector<63x128xf32>
    %177 = vector.extract_strided_slice %151 {offsets = [5, 0], sizes = [1, 128], strides = [1, 1]} : vector<9x128xf32> to vector<1x128xf32>
    %178 = vector.broadcast %177 : vector<1x128xf32> to vector<63x128xf32>
    %179 = arith.mulf %176, %178 : vector<63x128xf32>
    %180 = arith.addf %175, %179 : vector<63x128xf32>
    %c18 = arith.constant 18 : index
    %c0_91 = arith.constant 0 : index
    %181 = vector.load %arg24[%c18, %c0_91] : memref<88x128xf32, #tpu.memory_space<vmem>>, vector<63x128xf32>
    %182 = vector.extract_strided_slice %151 {offsets = [6, 0], sizes = [1, 128], strides = [1, 1]} : vector<9x128xf32> to vector<1x128xf32>
    %183 = vector.broadcast %182 : vector<1x128xf32> to vector<63x128xf32>
    %184 = arith.mulf %181, %183 : vector<63x128xf32>
    %185 = arith.addf %180, %184 : vector<63x128xf32>
    %c19 = arith.constant 19 : index
    %c0_92 = arith.constant 0 : index
    %186 = vector.load %arg24[%c19, %c0_92] : memref<88x128xf32, #tpu.memory_space<vmem>>, vector<63x128xf32>
    %187 = vector.extract_strided_slice %151 {offsets = [7, 0], sizes = [1, 128], strides = [1, 1]} : vector<9x128xf32> to vector<1x128xf32>
    %188 = vector.broadcast %187 : vector<1x128xf32> to vector<63x128xf32>
    %189 = arith.mulf %186, %188 : vector<63x128xf32>
    %190 = arith.addf %185, %189 : vector<63x128xf32>
    %c20 = arith.constant 20 : index
    %c0_93 = arith.constant 0 : index
    %191 = vector.load %arg24[%c20, %c0_93] : memref<88x128xf32, #tpu.memory_space<vmem>>, vector<63x128xf32>
    %192 = vector.extract_strided_slice %151 {offsets = [8, 0], sizes = [1, 128], strides = [1, 1]} : vector<9x128xf32> to vector<1x128xf32>
    %193 = vector.broadcast %192 : vector<1x128xf32> to vector<63x128xf32>
    %194 = arith.mulf %191, %193 : vector<63x128xf32>
    %195 = arith.addf %190, %194 : vector<63x128xf32>
    %c0_94 = arith.constant 0 : index
    %c0_95 = arith.constant 0 : index
    %196 = vector.load %arg16[%c0_94, %c0_95] : memref<1x128xf32, #tpu.memory_space<vmem>>, vector<1x128xf32>
    %197 = vector.broadcast %196 : vector<1x128xf32> to vector<63x128xf32>
    %198 = arith.addf %195, %197 : vector<63x128xf32>
    %cst_96 = arith.constant 0.000000e+00 : f32
    %199 = vector.broadcast %cst_96 : f32 to vector<63x128xf32>
    %200 = arith.maximumf %198, %199 : vector<63x128xf32>
    %201 = arith.truncf %200 : vector<63x128xf32> to vector<63x128xbf16>
    %c0_97 = arith.constant 0 : index
    %c0_98 = arith.constant 0 : index
    %202 = vector.load %arg17[%c0_97, %c0_98] : memref<128x128xbf16, #tpu.memory_space<vmem>>, vector<128x128xbf16>
    %cst_99 = arith.constant dense<0.000000e+00> : vector<63x128xf32>
    %203 = tpu.matmul %201, %202, %cst_99 {dimension_numbers = #tpu.dot_dimension_numbers<[1], [0], [0], [1], [0, 0, 1, 1], [], []>} : vector<63x128xbf16>, vector<128x128xbf16>, vector<63x128xf32> -> vector<63x128xf32>
    %c0_100 = arith.constant 0 : index
    %c0_101 = arith.constant 0 : index
    %204 = vector.load %arg18[%c0_100, %c0_101] : memref<1x128xf32, #tpu.memory_space<vmem>>, vector<1x128xf32>
    %205 = vector.broadcast %204 : vector<1x128xf32> to vector<63x128xf32>
    %206 = arith.addf %203, %205 : vector<63x128xf32>
    %cst_102 = arith.constant 0.000000e+00 : f32
    %207 = vector.broadcast %cst_102 : f32 to vector<63x128xf32>
    %208 = arith.maximumf %206, %207 : vector<63x128xf32>
    %c0_103 = arith.constant 0 : index
    %c0_104 = arith.constant 0 : index
    %209 = vector.load %arg5[%c0_103, %c0_104] : memref<63x1xf32, #tpu.memory_space<vmem>>, vector<63x1xf32>
    %210 = vector.broadcast %209 : vector<63x1xf32> to vector<63x128xf32>
    %211 = arith.mulf %208, %210 : vector<63x128xf32>
    %cst_105 = arith.constant dense<0.000000e+00> : vector<128xf32>
    %212 = vector.multi_reduction <add>, %211, %cst_105 [0] : vector<63x128xf32> to vector<128xf32>
    %213 = vector.shape_cast %212 : vector<128xf32> to vector<1x128xf32>
    %cst_106 = arith.constant 0.0204081628 : f32
    %214 = vector.broadcast %cst_106 : f32 to vector<1x128xf32>
    %215 = arith.mulf %213, %214 : vector<1x128xf32>
    %c0_107 = arith.constant 0 : index
    %c0_108 = arith.constant 0 : index
    %216 = vector.load %arg19[%c0_107, %c0_108] : memref<128x128xf32, #tpu.memory_space<vmem>>, vector<128x128xf32>
    %cst_109 = arith.constant dense<0.000000e+00> : vector<1x128xf32>
    %217 = tpu.matmul %215, %216, %cst_109 {dimension_numbers = #tpu.dot_dimension_numbers<[1], [0], [0], [1], [0, 0, 1, 1], [], []>} : vector<1x128xf32>, vector<128x128xf32>, vector<1x128xf32> -> vector<1x128xf32>
    %c0_110 = arith.constant 0 : index
    %c0_111 = arith.constant 0 : index
    %218 = vector.load %arg20[%c0_110, %c0_111] : memref<1x128xf32, #tpu.memory_space<vmem>>, vector<1x128xf32>
    %219 = arith.addf %217, %218 : vector<1x128xf32>
    %c0_112 = arith.constant 0 : index
    %c0_113 = arith.constant 0 : index
    %c0_114 = arith.constant 0 : index
    %220 = vector.load %arg21[%c0_112, %c0_113, %c0_114] : memref<1x1x128xf32, #tpu.memory_space<vmem>>, vector<1x1x128xf32>
    %221 = vector.shape_cast %220 : vector<1x1x128xf32> to vector<1x128xf32>
    %222 = vector.shape_cast %219 : vector<1x128xf32> to vector<1x1x128xf32>
    tpu.vector_store %arg21[%c0_112, %c0_113, %c0_114], %222 {strides = array<i32>} : memref<1x1x128xf32, #tpu.memory_space<vmem>>, vector<1x1x128xf32>,
    return
  }
  func.func @transform_0(%arg0: i32) -> (i32, i32, i32) {
    %c0_i32 = arith.constant 0 : i32
    %c0_i32_0 = arith.constant 0 : i32
    %c0_i32_1 = arith.constant 0 : i32
    return %arg0, %c0_i32, %c0_i32_0 : i32, i32, i32
  }
  func.func @transform_1(%arg0: i32) -> (i32, i32) {
    %c0_i32 = arith.constant 0 : i32
    %c0_i32_0 = arith.constant 0 : i32
    %c0_i32_1 = arith.constant 0 : i32
    return %c0_i32, %c0_i32_0 : i32, i32
  }
  func.func @transform_2(%arg0: i32) -> (i32, i32) {
    %c0_i32 = arith.constant 0 : i32
    %c0_i32_0 = arith.constant 0 : i32
    %c0_i32_1 = arith.constant 0 : i32
    return %c0_i32, %c0_i32_0 : i32, i32
  }
  func.func @transform_3(%arg0: i32) -> (i32, i32) {
    %c0_i32 = arith.constant 0 : i32
    %c0_i32_0 = arith.constant 0 : i32
    %c0_i32_1 = arith.constant 0 : i32
    return %c0_i32, %c0_i32_0 : i32, i32
  }
  func.func @transform_4(%arg0: i32) -> (i32, i32) {
    %c0_i32 = arith.constant 0 : i32
    %c0_i32_0 = arith.constant 0 : i32
    %c0_i32_1 = arith.constant 0 : i32
    return %c0_i32, %c0_i32_0 : i32, i32
  }
  func.func @transform_5(%arg0: i32) -> (i32, i32) {
    %c0_i32 = arith.constant 0 : i32
    %c0_i32_0 = arith.constant 0 : i32
    %c0_i32_1 = arith.constant 0 : i32
    return %c0_i32, %c0_i32_0 : i32, i32
  }
  func.func @transform_6(%arg0: i32) -> (i32, i32) {
    %c0_i32 = arith.constant 0 : i32
    %c0_i32_0 = arith.constant 0 : i32
    %c0_i32_1 = arith.constant 0 : i32
    return %c0_i32, %c0_i32_0 : i32, i32
  }
  func.func @transform_7(%arg0: i32) -> (i32, i32) {
    %c0_i32 = arith.constant 0 : i32
    %c0_i32_0 = arith.constant 0 : i32
    %c0_i32_1 = arith.constant 0 : i32
    return %c0_i32, %c0_i32_0 : i32, i32
  }
  func.func @transform_8(%arg0: i32) -> (i32, i32) {
    %c0_i32 = arith.constant 0 : i32
    %c0_i32_0 = arith.constant 0 : i32
    %c0_i32_1 = arith.constant 0 : i32
    return %c0_i32, %c0_i32_0 : i32, i32
  }
  func.func @transform_9(%arg0: i32) -> (i32, i32) {
    %c0_i32 = arith.constant 0 : i32
    %c0_i32_0 = arith.constant 0 : i32
    %c0_i32_1 = arith.constant 0 : i32
    return %c0_i32, %c0_i32_0 : i32, i32
  }
  func.func @transform_10(%arg0: i32) -> (i32, i32) {
    %c0_i32 = arith.constant 0 : i32
    %c0_i32_0 = arith.constant 0 : i32
    %c0_i32_1 = arith.constant 0 : i32
    return %c0_i32, %c0_i32_0 : i32, i32
  }
  func.func @transform_11(%arg0: i32) -> (i32, i32) {
    %c0_i32 = arith.constant 0 : i32
    %c0_i32_0 = arith.constant 0 : i32
    %c0_i32_1 = arith.constant 0 : i32
    return %c0_i32, %c0_i32_0 : i32, i32
  }
  func.func @transform_12(%arg0: i32) -> (i32, i32) {
    %c0_i32 = arith.constant 0 : i32
    %c0_i32_0 = arith.constant 0 : i32
    %c0_i32_1 = arith.constant 0 : i32
    return %c0_i32, %c0_i32_0 : i32, i32
  }
  func.func @transform_13(%arg0: i32) -> (i32, i32) {
    %c0_i32 = arith.constant 0 : i32
    %c0_i32_0 = arith.constant 0 : i32
    %c0_i32_1 = arith.constant 0 : i32
    return %c0_i32, %c0_i32_0 : i32, i32
  }
  func.func @transform_14(%arg0: i32) -> (i32, i32) {
    %c0_i32 = arith.constant 0 : i32
    %c0_i32_0 = arith.constant 0 : i32
    %c0_i32_1 = arith.constant 0 : i32
    return %c0_i32, %c0_i32_0 : i32, i32
  }
  func.func @transform_15(%arg0: i32) -> (i32, i32) {
    %c0_i32 = arith.constant 0 : i32
    %c0_i32_0 = arith.constant 0 : i32
    %c0_i32_1 = arith.constant 0 : i32
    return %c0_i32, %c0_i32_0 : i32, i32
  }
  func.func @transform_16(%arg0: i32) -> (i32, i32) {
    %c0_i32 = arith.constant 0 : i32
    %c0_i32_0 = arith.constant 0 : i32
    %c0_i32_1 = arith.constant 0 : i32
    return %c0_i32, %c0_i32_0 : i32, i32
  }
  func.func @transform_17(%arg0: i32) -> (i32, i32) {
    %c0_i32 = arith.constant 0 : i32
    %c0_i32_0 = arith.constant 0 : i32
    %c0_i32_1 = arith.constant 0 : i32
    return %c0_i32, %c0_i32_0 : i32, i32
  }
  func.func @transform_18(%arg0: i32) -> (i32, i32) {
    %c0_i32 = arith.constant 0 : i32
    %c0_i32_0 = arith.constant 0 : i32
    %c0_i32_1 = arith.constant 0 : i32
    return %c0_i32, %c0_i32_0 : i32, i32
  }
  func.func @transform_19(%arg0: i32) -> (i32, i32) {
    %c0_i32 = arith.constant 0 : i32
    %c0_i32_0 = arith.constant 0 : i32
    %c0_i32_1 = arith.constant 0 : i32
    return %c0_i32, %c0_i32_0 : i32, i32
  }
  func.func @transform_20(%arg0: i32) -> (i32, i32, i32) {
    %c0_i32 = arith.constant 0 : i32
    %c0_i32_0 = arith.constant 0 : i32
    %c0_i32_1 = arith.constant 0 : i32
    return %arg0, %c0_i32, %c0_i32_0 : i32, i32, i32
  }
}

</mosaic_0001>

<bundles_post_ra>
// kernel: forward.1
= control target key start
LH: loop header
LB: loop body
LE: loop exit
PB: predicated region body
PF: predicated region fallthrough
CT: control target
= control target key end

     0   :  { %s11040_s0 = inlined_call_operand.vmem [shape: bf16[2,784,75], index: 0, kind: input, shape index: {}]   ;;  %s11041_s1 = inlined_call_operand.vmem [shape: bf16[75,32], index: 1, kind: input, shape index: {}]   ;;  %s11042_s2 = inlined_call_operand.vmem [shape: f32[195,726], index: 2, kind: input, shape index: {}]   ;;  %s11043_s3 = inlined_call_operand.vmem [shape: f32[195,1], index: 3, kind: input, shape index: {}]   ;;  %s11044_s4 = inlined_call_operand.vmem [shape: f32[63,1], index: 4, kind: input, shape index: {}]   ;;  %s11045_s5 = inlined_call_operand.vmem [shape: f32[9,32], index: 5, kind: input, shape index: {}]   ;;  %s11046_s6 = inlined_call_operand.vmem [shape: f32[1,32], index: 6, kind: input, shape index: {}]   ;;  %s11047_s7 = inlined_call_operand.vmem [shape: bf16[32,64], index: 7, kind: input, shape index: {}]   ;;  %s11048_s8 = inlined_call_operand.vmem [shape: f32[1,64], index: 8, kind: input, shape index: {}]   ;;  %s11049_s9 = inlined_call_operand.vmem [shape: f32[9,64], index: 9, kind: input, shape index: {}]   ;;  %s11050_s10 = inlined_call_operand.vmem [shape: f32[1,64], index: 10, kind: input, shape index: {}]   ;;  %s11051_s11 = inlined_call_operand.vmem [shape: f32[63,195], index: 11, kind: input, shape index: {}]   ;;  %s11052_s12 = inlined_call_operand.vmem [shape: bf16[64,128], index: 12, kind: input, shape index: {}]   ;;  %s11053_s13 = inlined_call_operand.vmem [shape: f32[1,128], index: 13, kind: input, shape index: {}]   ;;  %s11054_s14 = inlined_call_operand.vmem [shape: f32[9,128], index: 14, kind: input, shape index: {}]   ;;  %s11055_s15 = inlined_call_operand.vmem [shape: f32[1,128], index: 15, kind: input, shape index: {}]   ;;  %s11056_s16 = inlined_call_operand.vmem [shape: bf16[128,128], index: 16, kind: input, shape index: {}]   ;;  %s11057_s17 = inlined_call_operand.vmem [shape: f32[1,128], index: 17, kind: input, shape index: {}]   ;;  %s11058_s18 = inlined_call_operand.vmem [shape: f32[128,128], index: 18, kind: input, shape index: {}]   ;;  %s11059_s19 = inlined_call_operand.vmem [shape: f32[1,128], index: 19, kind: input, shape index: {}]   ;;  %s11060_s20 = inlined_call_operand.hbm [shape: f32[2,1,128], index: 20, kind: output, shape index: {}]  }
   0x1   :  { %11109 = sst [smem:[#allocation51_spill]] %s11040_s0 }
   0x2   :  { %11110 = sst [smem:[#allocation52_spill]] %s11041_s1 }
   0x3   :  { %11111 = sst [smem:[#allocation53_spill]] %s11042_s2 }
   0x4   :  { %11112 = sst [smem:[#allocation54_spill]] %s11043_s3 }
   0x5   :  { %11113 = sst [smem:[#allocation55_spill]] %s11044_s4 }
   0x6   :  { %11114 = sst [smem:[#allocation56_spill]] %s11045_s5 }
   0x7   :  { %11115 = sst [smem:[#allocation57_spill]] %s11046_s6 }
   0x8   :  { %11116 = sst [smem:[#allocation58_spill]] %s11047_s7 }
   0x9   :  { %11117 = sst [smem:[#allocation59_spill]] %s11048_s8 }
   0xa   :  { %25 = vsyncpa [#allocation6], 0 }
   0xb   :  { %27 = vsyncpa [#allocation6 + $0x1], 0  ;;  %s6921_s1 = smov 0   ;;  %s6923_s22 = smov 0  }
   0xc   :  { %s6925_s23 = smov 0   ;;  %s6927_s24 = smov 0  }
   0xd LB: > { %11118 = sst [smem:[#allocation8_spill]] %s6799_s1  ;;  %s6942_s2 = sadd.s32 4294967295, %s6811_s24   ;;  %s6811_s24 = sphi %s6927_s24, %s11363_s24   ;;  %s6807_s23 = sphi %s6925_s23, %s11365_s23   ;;  %s6803_s22 = sphi %s6923_s22, %s11367_s22   ;;  %s6799_s1 = sphi %s6921_s1, %s11366_s1  }
   0xe   : > { %11119 = sst [smem:[#allocation9_spill]] %s6807_s23  ;;  %s6231_s25 = sadd.s32 4294967294, %s6811_s24  }
   0xf   : > { %s6946_s3 = sadd.s32 1, %s6811_s24   ;;  %s465_s26 = sadd.s32 1, %s6807_s23 }
  0x10   : > { %11120 = sst [smem:[#allocation10_spill]] %s6946_s3  ;;  %s462_s27 = ssub.s32 %s6811_s24, %s6946_s3 }
  0x11   : > { %p475_p0 = scmp.ne.s32.totalorder %s6807_s23, %s6803_s22  ;;  %p463_p1 = scmp.eq.s32.totalorder %s462_s27, 0 }
  0x12   : > { %p476_p2 = scmp.eq.s32.totalorder %s6942_s2, 1  ;;  %p481_p3 = scmp.ne.s32.totalorder %s6803_s22, %s6799_s1 }
  0x13   : > { %p482_p4 = scmp.eq.s32.totalorder %s6231_s25, 1  ;;  %p6234_p7 = scmp.ge.s32.totalorder %s6811_s24, 1 }
  0x14   : > { %s6957_s28 = scalar_select %p463_p1, %s6807_s23, %s465_s26  }
  0x15   : > { %p6959_p5 = por %p476_p2, %p475_p0  ;;  %p6963_p6 = por %p482_p4, %p481_p3 }
  0x16   : > { %11121 = sst [smem:[#allocation11_spill]] %s6957_s28  ;;  %p565_p8 = scmp.lt.s32.totalorder %s6811_s24, 3 }
  0x17   : > { %s11123_s29 = scalar_select %p6963_p6, 1, 0 }
  0x18   : > { %p566_p9 = pnand %p6234_p7, %p565_p8 }
  0x19   : > { %11124 = sst [smem:[#allocation12_spill]] %s11123_s29 }
  0x1a   : > { %569 = sbr.rel (%p566_p9) target bundleno = 2092 (0x82c), region = 100 }
  0x1f   : > { %s11125_s21 = sld [smem:[#allocation52_spill]]  ;;  %vm1158_vm0 = vcmask 1044480   ;;  %vm1159_vm1 = vcmask 1045504   ;;  %v6813_v3 = vmov 65535   ;;  %p622_p10 = scmp.lt.s32.totalorder %s6942_s2, 1  ;;  %vm1010_vm2 = vcmask 613376  }
  0x20   : > { %v1160_v4 = vsel %vm1158_vm0, 4294967295, %v6813_v3  ;;  %s11126_s30 = sld [smem:[#allocation51_spill]]  ;;  %vm1615_vm3 = vcmask 1046528   ;;  %vm2490_vm4 = vcmask 1043456   ;;  %vm3097_vm5 = vcmask 703488   ;;  %s620_s23 = sand.u32 1, %s6803_s22  }
  0x21   : > { %v1161_v5 = vsel %vm1159_vm1, %v1160_v4, 0  ;;  %s623_s25 = scalar_select %p622_p10, %s6942_s2, 1  ;;  %vm3728_vm6 = vcmask 261120   ;;  %vm4756_vm7 = vcmask 523264   ;;  %vm3782_vm8 = vcmask 256000  }
  0x22   : > { %s11236_s27 = sld [smem:[#allocation54_spill]]  ;;  %vm4810_vm9 = vcmask 518144   ;;  %vm5480_vm10 = vcmask 1042432   ;;  %vm5455_vm11 = vcmask 547840   ;;  %s6172_s28 = scalar_lea.hbm %s11060_s20, %s6942_s2 }
  0x23   : > { %s6689_s3 = smul.u32 392, %s623_s25  ;;  %s11241_s7 = sld [smem:[#allocation58_spill]] }
  0x24   : > { %s11242_s5 = sld [smem:[#allocation56_spill]]  ;;  %s6769_s26 = scalar_lea.hbm %s11060_s20, 2 }
  0x25   : > { %v6450_v0 = vld [vmem:[%s11125_s21 + $0x20] sm:$0xf]  ;;  %v6664_v1 = vld [vmem:[%s11125_s21 + $0x20] sm:$0x30]  ;;  %v6663_v7 = vld [vmem:[%s11125_s21 + $0x18] sm:$0xff]  ;;  %s11243_s6 = sld [smem:[#allocation57_spill]] }
  0x26   : > { %v6451_v2 = vor.u32 %v6664_v1, %v6450_v0  ;;  %v6662_v8 = vld [vmem:[%s11125_s21 + $0x10] sm:$0xff]  ;;  %v6661_v9 = vld [vmem:[%s11125_s21 + $0x8] sm:$0xff]  ;;  %v6660_v10 = vld [vmem:[%s11125_s21] sm:$0xff]  ;;  %s6993_s0 = scalar_lea.vmem %s11126_s30, %s6689_s3  ;;  %s11129_s3 = sld [smem:[#allocation53_spill]] }
  0x27   : > { %v6611_v11 = vld [vmem:[%s6993_s0] sm:$0xff]  ;;  %v6612_v12 = vld [vmem:[%s6993_s0 + $0x8] sm:$0xff]  ;;  %v6613_v13 = vld [vmem:[%s6993_s0 + $0x10] sm:$0xff]  ;;  %s11269_s1 = sld [smem:[#allocation55_spill]] }
  0x28   : > { %v1163_v6 = vand.u32 %v6451_v2, %v1161_v5  ;;  %v6614_v14 = vld [vmem:[%s6993_s0 + $0x18] sm:$0xff]  ;;  %v6615_v15 = vld [vmem:[%s6993_s0 + $0x20] sm:$0xff]  ;;  %v6616_v16 = vld [vmem:[%s6993_s0 + $0x28] sm:$0xff]  ;;  %s11284_s8 = sld [smem:[#allocation59_spill]] }
  0x29   : > { %v6617_v17 = vld [vmem:[%s6993_s0 + $0x30] sm:$0xff]  ;;  %v6618_v18 = vld [vmem:[%s6993_s0 + $0x38] sm:$0xff]  ;;  %v6619_v19 = vld [vmem:[%s6993_s0 + $0x40] sm:$0xff] }
  0x2a   : > { %1168 = vmatpush.bf16.msra.mxu0 %v1163_v6  ;;  %6680 = vmatpush.bf16.msra.mxu3 %v1163_v6  ;;  %v6620_v31 = vld [vmem:[%s6993_s0 + $0x48] sm:$0xff]  ;;  %v6621_v48 = vld [vmem:[%s6993_s0 + $0x50] sm:$0xff]  ;;  %v6622_v1 = vld [vmem:[%s6993_s0 + $0x58] sm:$0xff] }
  0x2b   : > { %6679 = vmatpush.bf16.msra.mxu2 %v1163_v6 }
  0x2d   : > { %s11270_s29 = smov %s11269_s1 }
  0x2e   : > { %1169 = vmatpush.bf16.msra.mxu0 %v6663_v7  ;;  %6682 = vmatpush.bf16.msra.mxu3 %v6663_v7 }
  0x2f   : > { %6681 = vmatpush.bf16.msra.mxu2 %v6663_v7 }
  0x32   : > { %1170 = vmatpush.bf16.msra.mxu0 %v6662_v8  ;;  %6684 = vmatpush.bf16.msra.mxu3 %v6662_v8 }
  0x33   : > { %6683 = vmatpush.bf16.msra.mxu2 %v6662_v8 }
  0x36   : > { %1171 = vmatpush.bf16.msra.mxu0 %v6661_v9  ;;  %6686 = vmatpush.bf16.msra.mxu3 %v6661_v9 }
  0x37   : > { %6685 = vmatpush.bf16.msra.mxu2 %v6661_v9 }
  0x3a   : > { %1172 = vmatpush.bf16.msra.mxu0 %v6660_v10  ;;  %6688 = vmatpush.bf16.msra.mxu3 %v6660_v10 }
  0x3b   : > { %6687 = vmatpush.bf16.msra.mxu2 %v6660_v10 }
  0x3d   : > { %6452 = vmatmul.msk.bf16.vlgmr.msra.gmra.mxu0 %vm1010_vm2, %v6611_v11 }
  0x4d   : > { %6453 = vmatmul.msk.bf16.gmra.mxu0 %vm1010_vm2, %v6612_v12 }
  0x5d   : > { %6454 = vmatmul.msk.bf16.gmra.mxu0 %vm1010_vm2, %v6613_v13 }
  0x6d   : > { %6455 = vmatmul.msk.bf16.gmra.mxu0 %vm1010_vm2, %v6614_v14 }
  0x7d   : > { %6456 = vmatmul.msk.bf16.gmra.mxu0 %vm1010_vm2, %v6615_v15 }
  0x8d   : > { %6457 = vmatmul.msk.bf16.gmra.mxu0 %vm1010_vm2, %v6616_v16 }
  0x9d   : > { %6458 = vmatmul.msk.bf16.gmra.mxu0 %vm1010_vm2, %v6617_v17 }
  0xad   : > { %6459 = vmatmul.msk.bf16.gmra.mxu0 %vm1010_vm2, %v6618_v18 }
  0xba   : > { %v1174_v20 = vpop.f32.mrf.mxu0 }
  0xbb   : > { %v1419_v21 = vmax.f32 %v1174_v20, 0.0 }
  0xbd   : > { %6460 = vmatmul.msk.bf16.gmra.mxu0 %vm1010_vm2, %v6619_v19  ;;  %v1616_v24 = vrot.slane %v1419_v21, 1  ;;  %v2007_v25 = vrot.slane %v1419_v21, 2 }
  0xc2   : > { %v1176_v22 = vpop.f32.mrf.mxu0 }
  0xc3   : > { %v1420_v23 = vmax.f32 %v1176_v22, 0.0 }
  0xc5   : > { %v1617_v26 = vrot.slane %v1420_v23, 1  ;;  %v2008_v27 = vrot.slane %v1420_v23, 2 }
  0xc7   : > { %v1618_v28 = vsel %vm1615_vm3, %v1616_v24, %v1617_v26  ;;  %v2009_v29 = vsel %vm1159_vm1, %v2007_v25, %v2008_v27  ;;  %v6623_v25 = vld [vmem:[%s6993_s0 + $0x60] sm:$0xff] }
  0xc8   : > { %v1909_v30 = vmax.f32 %v1419_v21, %v1618_v28 }
  0xca   : > { %v1179_v32 = vpop.f32.mrf.mxu0  ;;  %v7016_v33 = vmax.f32 %v1909_v30, %v2009_v29 }
  0xcb   : > { %v1421_v34 = vmax.f32 %v1179_v32, 0.0 }
  0xcd   : > { %v1619_v35 = vrot.slane %v1421_v34, 1  ;;  %v2010_v36 = vrot.slane %v1421_v34, 2  ;;  %6461 = vmatmul.msk.bf16.gmra.mxu0 %vm1010_vm2, %v6620_v31 }
  0xcf   : > { %v1620_v37 = vsel %vm1615_vm3, %v1617_v26, %v1619_v35  ;;  %v2011_v38 = vsel %vm1159_vm1, %v2008_v27, %v2010_v36 }
  0xd0   : > { %v1910_v39 = vmax.f32 %v1420_v23, %v1620_v37 }
  0xd2   : > { %v1181_v40 = vpop.f32.mrf.mxu0  ;;  %v7021_v41 = vmax.f32 %v1910_v39, %v2011_v38 }
  0xd3   : > { %v1422_v42 = vmax.f32 %v1181_v40, 0.0 }
  0xd5   : > { %v1621_v43 = vrot.slane %v1422_v42, 1  ;;  %v2012_v44 = vrot.slane %v1422_v42, 2 }
  0xd7   : > { %v1622_v45 = vsel %vm1615_vm3, %v1619_v35, %v1621_v43  ;;  %v2013_v46 = vsel %vm1159_vm1, %v2010_v36, %v2012_v44 }
  0xd8   : > { %v1911_v47 = vmax.f32 %v1421_v34, %v1622_v45 }
  0xda   : > { %v1184_v49 = vpop.f32.mrf.mxu0  ;;  %v7026_v50 = vmax.f32 %v1911_v47, %v2013_v46 }
  0xdb   : > { %v1423_v51 = vmax.f32 %v1184_v49, 0.0  ;;  %v6624_v49 = vld [vmem:[%s6993_s0 + $0x68] sm:$0xff] }
  0xdd   : > { %v1623_v52 = vrot.slane %v1423_v51, 1  ;;  %v2014_v53 = vrot.slane %v1423_v51, 2  ;;  %6462 = vmatmul.msk.bf16.gmra.mxu0 %vm1010_vm2, %v6621_v48 }
  0xdf   : > { %v1624_v54 = vsel %vm1615_vm3, %v1621_v43, %v1623_v52  ;;  %v2015_v55 = vsel %vm1159_vm1, %v2012_v44, %v2014_v53 }
  0xe0   : > { %v1912_v56 = vmax.f32 %v1422_v42, %v1624_v54 }
  0xe2   : > { %v1186_v57 = vpop.f32.mrf.mxu0  ;;  %v7031_v58 = vmax.f32 %v1912_v56, %v2015_v55 }
  0xe3   : > { %v1424_v59 = vmax.f32 %v1186_v57, 0.0 }
  0xe4   : > { %v2491_v6 = vrot.slane %v7031_v58, 4 }
  0xe5   : > { %v1625_v60 = vrot.slane %v1424_v59, 1  ;;  %v2016_v61 = vrot.slane %v1424_v59, 2 }
  0xe7   : > { %v1626_v62 = vsel %vm1615_vm3, %v1623_v52, %v1625_v60  ;;  %v2017_v63 = vsel %vm1159_vm1, %v2014_v53, %v2016_v61 }
  0xe8   : > { %v1913_v0 = vmax.f32 %v1423_v51, %v1626_v62 }
  0xea   : > { %v1189_v2 = vpop.f32.mrf.mxu0  ;;  %v7036_v3 = vmax.f32 %v1913_v0, %v2017_v63 }
  0xeb   : > { %v1425_v4 = vmax.f32 %v1189_v2, 0.0 }
  0xec   : > { %v2492_v5 = vrot.slane %v7036_v3, 4 }
  0xed   : > { %v1627_v7 = vrot.slane %v1425_v4, 1  ;;  %v2018_v8 = vrot.slane %v1425_v4, 2  ;;  %6463 = vmatmul.msk.bf16.gmra.mxu0 %vm1010_vm2, %v6622_v1 }
  0xee   : > { %v2493_v9 = vsel %vm2490_vm4, %v2491_v6, %v2492_v5 }
  0xef   : > { %v1628_v10 = vsel %vm1615_vm3, %v1625_v60, %v1627_v7  ;;  %v2019_v11 = vsel %vm1159_vm1, %v2016_v61, %v2018_v8  ;;  %v2765_v12 = vmax.f32 %v7016_v33, %v2493_v9 }
  0xf0   : > { %v1914_v13 = vmax.f32 %v1424_v59, %v1628_v10  ;;  %v6625_v10 = vld [vmem:[%s6993_s0 + $0x70] sm:$0xff] }
  0xf2   : > { %v1191_v14 = vpop.f32.mrf.mxu0  ;;  %v7045_v15 = vmax.f32 %v1914_v13, %v2019_v11 }
  0xf3   : > { %v1426_v16 = vmax.f32 %v1191_v14, 0.0 }
  0xf4   : > { %v2494_v17 = vrot.slane %v7045_v15, 4 }
  0xf5   : > { %v1629_v18 = vrot.slane %v1426_v16, 1  ;;  %v2020_v19 = vrot.slane %v1426_v16, 2 }
  0xf6   : > { %v2495_v20 = vsel %vm2490_vm4, %v2492_v5, %v2494_v17 }
  0xf7   : > { %v1630_v21 = vsel %vm1615_vm3, %v1627_v7, %v1629_v18  ;;  %v2021_v22 = vsel %vm1159_vm1, %v2018_v8, %v2020_v19  ;;  %v2766_v23 = vmax.f32 %v7021_v41, %v2495_v20 }
  0xf8   : > { %v1915_v24 = vmax.f32 %v1425_v4, %v1630_v21 }
  0xfa   : > { %v1194_v26 = vpop.f32.mrf.mxu0  ;;  %v7053_v27 = vmax.f32 %v1915_v24, %v2021_v22 }
  0xfb   : > { %v1427_v28 = vmax.f32 %v1194_v26, 0.0 }
  0xfc   : > { %v2496_v29 = vrot.slane %v7053_v27, 4 }
  0xfd   : > { %v1631_v30 = vrot.slane %v1427_v28, 1  ;;  %v2022_v31 = vrot.slane %v1427_v28, 2  ;;  %6464 = vmatmul.msk.bf16.gmra.mxu0 %vm1010_vm2, %v6623_v25 }
  0xfe   : > { %v2497_v32 = vsel %vm2490_vm4, %v2494_v17, %v2496_v29 }
  0xff   : > { %v1632_v33 = vsel %vm1615_vm3, %v1629_v18, %v1631_v30  ;;  %v2023_v34 = vsel %vm1159_vm1, %v2020_v19, %v2022_v31  ;;  %v2767_v35 = vmax.f32 %v7026_v50, %v2497_v32 }
 0x100   : > { %v1916_v36 = vmax.f32 %v1426_v16, %v1632_v33 }
 0x102   : > { %v1196_v37 = vpop.f32.mrf.mxu0  ;;  %v7061_v38 = vmax.f32 %v1916_v36, %v2023_v34 }
 0x103   : > { %v1428_v39 = vmax.f32 %v1196_v37, 0.0 }
 0x104   : > { %v2498_v40 = vrot.slane %v7061_v38, 4  ;;  %v7065_v41 = vmax.f32 %v2765_v12, %v7061_v38 }
 0x105   : > { %v1633_v42 = vrot.slane %v1428_v39, 1  ;;  %v2024_v43 = vrot.slane %v1428_v39, 2 }
 0x106   : > { %v2499_v44 = vsel %vm2490_vm4, %v2496_v29, %v2498_v40 }
 0x107   : > { %v1634_v45 = vsel %vm1615_vm3, %v1631_v30, %v1633_v42  ;;  %v2025_v46 = vsel %vm1159_vm1, %v2022_v31, %v2024_v43  ;;  %v2768_v47 = vmax.f32 %v7031_v58, %v2499_v44 }
 0x108   : > { %v1917_v48 = vmax.f32 %v1427_v28, %v1634_v45 }
 0x10a   : > { %v1199_v50 = vpop.f32.mrf.mxu0  ;;  %v7072_v51 = vmax.f32 %v1917_v48, %v2025_v46 }
 0x10b   : > { %v1429_v52 = vmax.f32 %v1199_v50, 0.0 }
 0x10c   : > { %v2500_v53 = vrot.slane %v7072_v51, 4  ;;  %v7076_v54 = vmax.f32 %v2766_v23, %v7072_v51 }
 0x10d   : > { %v1635_v55 = vrot.slane %v1429_v52, 1  ;;  %v2026_v56 = vrot.slane %v1429_v52, 2  ;;  %6465 = vmatmul.msk.bf16.gmra.mxu0 %vm1010_vm2, %v6624_v49 }
 0x10e   : > { %v2501_v57 = vsel %vm2490_vm4, %v2498_v40, %v2500_v53 }
 0x10f   : > { %v1636_v59 = vsel %vm1615_vm3, %v1633_v42, %v1635_v55  ;;  %v2027_v58 = vsel %vm1159_vm1, %v2024_v43, %v2026_v56  ;;  %v2769_v60 = vmax.f32 %v7036_v3, %v2501_v57 }
 0x110   : > { %v1918_v61 = vmax.f32 %v1428_v39, %v1636_v59 }
 0x112   : > { %v1201_v62 = vpop.f32.mrf.mxu0  ;;  %v7083_v63 = vmax.f32 %v1918_v61, %v2027_v58 }
 0x113   : > { %v1430_v0 = vmax.f32 %v1201_v62, 0.0  ;;  %v6627_v62 = vld [vmem:[%s6993_s0 + $0x80] sm:$0xff] }
 0x114   : > { %v2502_v1 = vrot.slane %v7083_v63, 4  ;;  %v7087_v2 = vmax.f32 %v2767_v35, %v7083_v63  ;;  %v6626_v35 = vld [vmem:[%s6993_s0 + $0x78] sm:$0xff] }
 0x115   : > { %v1637_v4 = vrot.slane %v1430_v0, 1  ;;  %v2028_v5 = vrot.slane %v1430_v0, 2 }
 0x116   : > { %v2503_v6 = vsel %vm2490_vm4, %v2500_v53, %v2502_v1 }
 0x117   : > { %v1638_v7 = vsel %vm1615_vm3, %v1635_v55, %v1637_v4  ;;  %v2029_v8 = vsel %vm1159_vm1, %v2026_v56, %v2028_v5  ;;  %v2770_v3 = vmax.f32 %v7045_v15, %v2503_v6 }
 0x118   : > { %v1919_v9 = vmax.f32 %v1429_v52, %v1638_v7 }
 0x11a   : > { %v1204_v11 = vpop.f32.mrf.mxu0  ;;  %v7094_v12 = vmax.f32 %v1919_v9, %v2029_v8 }
 0x11b   : > { %v1431_v13 = vmax.f32 %v1204_v11, 0.0 }
 0x11c   : > { %v2504_v14 = vrot.slane %v7094_v12, 4  ;;  %v7098_v16 = vmax.f32 %v2768_v47, %v7094_v12 }
 0x11d   : > { %v1639_v17 = vrot.slane %v1431_v13, 1  ;;  %v2030_v18 = vrot.slane %v1431_v13, 2  ;;  %6466 = vmatmul.msk.bf16.gmra.mxu0 %vm1010_vm2, %v6625_v10 }
 0x11e   : > { %v2505_v19 = vsel %vm2490_vm4, %v2502_v1, %v2504_v14 }
 0x11f   : > { %v1640_v20 = vsel %vm1615_vm3, %v1637_v4, %v1639_v17  ;;  %v2031_v15 = vsel %vm1159_vm1, %v2028_v5, %v2030_v18  ;;  %v2771_v21 = vmax.f32 %v7053_v27, %v2505_v19 }
 0x120   : > { %v1920_v22 = vmax.f32 %v1430_v0, %v1640_v20 }
 0x122   : > { %v1206_v23 = vpop.f32.mrf.mxu0  ;;  %v7105_v24 = vmax.f32 %v1920_v22, %v2031_v15 }
 0x123   : > { %v1432_v25 = vmax.f32 %v1206_v23, 0.0 }
 0x124   : > { %v2506_v26 = vrot.slane %v7105_v24, 4  ;;  %v7109_v28 = vmax.f32 %v2769_v60, %v7105_v24 }
 0x125   : > { %v1641_v29 = vrot.slane %v1432_v25, 1  ;;  %v2032_v30 = vrot.slane %v1432_v25, 2 }
 0x126   : > { %v2507_v31 = vsel %vm2490_vm4, %v2504_v14, %v2506_v26 }
 0x127   : > { %v1642_v32 = vsel %vm1615_vm3, %v1639_v17, %v1641_v29  ;;  %v2033_v33 = vsel %vm1159_vm1, %v2030_v18, %v2032_v30  ;;  %v2772_v27 = vmax.f32 %v7061_v38, %v2507_v31 }
 0x128   : > { %v1921_v34 = vmax.f32 %v1431_v13, %v1642_v32 }
 0x12a   : > { %v1209_v36 = vpop.f32.mrf.mxu0  ;;  %v7116_v37 = vmax.f32 %v1921_v34, %v2033_v33 }
 0x12b   : > { %v1433_v39 = vmax.f32 %v1209_v36, 0.0 }
 0x12c   : > { %v2508_v40 = vrot.slane %v7116_v37, 4  ;;  %v7120_v42 = vmax.f32 %v2770_v3, %v7116_v37 }
 0x12d   : > { %v1643_v43 = vrot.slane %v1433_v39, 1  ;;  %v2034_v44 = vrot.slane %v1433_v39, 2  ;;  %6467 = vmatmul.msk.bf16.gmra.mxu0 %vm1010_vm2, %v6626_v35 }
 0x12e   : > { %v7124_v45 = vsel %vm2490_vm4, %v2506_v26, %v2508_v40 }
 0x12f   : > { %v1644_v38 = vsel %vm1615_vm3, %v1641_v29, %v1643_v43  ;;  %v2035_v46 = vsel %vm1159_vm1, %v2032_v30, %v2034_v44  ;;  %v2773_v47 = vmax.f32 %v7072_v51, %v7124_v45 }
 0x130   : > { %v1922_v48 = vmax.f32 %v1432_v25, %v1644_v38  ;;  %v6629_v25 = vld [vmem:[%s6993_s0 + $0x90] sm:$0xff] }
 0x132   : > { %v1211_v49 = vpop.f32.mrf.mxu0  ;;  %v7130_v50 = vmax.f32 %v1922_v48, %v2035_v46 }
 0x133   : > { %v1434_v52 = vmax.f32 %v1211_v49, 0.0 }
 0x134   : > { %v2510_v53 = vrot.slane %v7130_v50, 4  ;;  %v7134_v55 = vmax.f32 %v2771_v21, %v7130_v50  ;;  %v6628_v21 = vld [vmem:[%s6993_s0 + $0x88] sm:$0xff] }
 0x135   : > { %v1645_v56 = vrot.slane %v1434_v52, 1  ;;  %v2036_v57 = vrot.slane %v1434_v52, 2 }
 0x136   : > { %v7137_v59 = vsel %vm2490_vm4, %v2508_v40, %v2510_v53 }
 0x137   : > { %v1646_v58 = vsel %vm1615_vm3, %v1643_v43, %v1645_v56  ;;  %v2774_v60 = vmax.f32 %v7083_v63, %v7137_v59  ;;  %v2037_v0 = vsel %vm1159_vm1, %v2034_v44, %v2036_v57 }
 0x138   : > { %v1923_v61 = vmax.f32 %v1433_v39, %v1646_v58 }
 0x13a   : > { %v1214_v1 = vpop.f32.mrf.mxu0  ;;  %v7144_v4 = vmax.f32 %v1923_v61, %v2037_v0 }
 0x13b   : > { %v1435_v5 = vmax.f32 %v1214_v1, 0.0 }
 0x13c   : > { %v2512_v6 = vrot.slane %v7144_v4, 4  ;;  %v7148_v7 = vmax.f32 %v2772_v27, %v7144_v4 }
 0x13d   : > { %v1647_v8 = vrot.slane %v1435_v5, 1  ;;  %v2038_v3 = vrot.slane %v1435_v5, 2  ;;  %6468 = vmatmul.msk.bf16.gmra.mxu0 %vm1010_vm2, %v6627_v62  ;;  %v6630_v62 = vld [vmem:[%s6993_s0 + $0x98] sm:$0xff] }
 0x13e   : > { %v7152_v9 = vsel %vm2490_vm4, %v2510_v53, %v2512_v6 }
 0x13f   : > { %v1648_v10 = vsel %vm1615_vm3, %v1645_v56, %v1647_v8  ;;  %v2775_v11 = vmax.f32 %v7094_v12, %v7152_v9  ;;  %v2039_v14 = vsel %vm1159_vm1, %v2036_v57, %v2038_v3 }
 0x140   : > { %v1924_v13 = vmax.f32 %v1434_v52, %v1648_v10 }
 0x142   : > { %v1216_v17 = vpop.f32.mrf.mxu0  ;;  %v7158_v18 = vmax.f32 %v1924_v13, %v2039_v14 }
 0x143   : > { %v1436_v32 = vmax.f32 %v1216_v17, 0.0 }
 0x144   : > { %v2514_v19 = vrot.slane %v7158_v18, 4  ;;  %v2864_v12 = vmax.f32 %v2773_v47, %v7158_v18 }
 0x145   : > { %v1649_v34 = vrot.slane %v1436_v32, 1  ;;  %v2040_v53 = vrot.slane %v1436_v32, 2 }
 0x146   : > { %v7164_v20 = vsel %vm2490_vm4, %v2512_v6, %v2514_v19 }
 0x147   : > { %v2776_v15 = vmax.f32 %v7105_v24, %v7164_v20  ;;  %v1650_v48 = vsel %vm1615_vm3, %v1647_v8, %v1649_v34  ;;  %v2041_v8 = vsel %vm1159_vm1, %v2038_v3, %v2040_v53 }
 0x148   : > { %v1925_v61 = vmax.f32 %v1435_v5, %v1650_v48 }
 0x14a   : > { %v1219_v22 = vpop.f32.mrf.mxu0 }
 0x14b   : > { %v1437_v40 = vmax.f32 %v1219_v22, 0.0  ;;  %v7187_v22 = vmax.f32 %v1925_v61, %v2041_v8 }
 0x14d   : > { %6469 = vmatmul.msk.bf16.gmra.mxu0 %vm1010_vm2, %v6628_v21  ;;  %v1651_v56 = vrot.slane %v1437_v40, 1 }
 0x14f   : > { %v1652_v14 = vsel %vm1615_vm3, %v1649_v34, %v1651_v56 }
 0x152   : > { %v1221_v23 = vpop.f32.mrf.mxu0 }
 0x153   : > { %v1438_v29 = vmax.f32 %v1221_v23, 0.0 }
 0x155   : > { %v1653_v33 = vrot.slane %v1438_v29, 1  ;;  %v2044_v44 = vrot.slane %v1438_v29, 2 }
 0x157   : > { %v1654_v1 = vsel %vm1615_vm3, %v1651_v56, %v1653_v33 }
 0x158   : > { %v1927_v5 = vmax.f32 %v1437_v40, %v1654_v1 }
 0x15a   : > { %v1224_v26 = vpop.f32.mrf.mxu0 }
 0x15b   : > { %v1439_v30 = vmax.f32 %v1224_v26, 0.0  ;;  %v2042_v26 = vrot.slane %v1437_v40, 2 }
 0x15d   : > { %v1655_v31 = vrot.slane %v1439_v30, 1  ;;  %6470 = vmatmul.msk.bf16.gmra.mxu0 %vm1010_vm2, %v6629_v25  ;;  %v2046_v36 = vrot.slane %v1439_v30, 2 }
 0x15f   : > { %v1656_v27 = vsel %vm1615_vm3, %v1653_v33, %v1655_v31  ;;  %v2047_v49 = vsel %vm1159_vm1, %v2044_v44, %v2046_v36  ;;  %v2045_v33 = vsel %vm1159_vm1, %v2042_v26, %v2044_v44 }
 0x160   : > { %v1928_v43 = vmax.f32 %v1438_v29, %v1656_v27  ;;  %v7194_v34 = vmax.f32 %v1927_v5, %v2045_v33 }
 0x162   : > { %v1226_v35 = vpop.f32.mrf.mxu0  ;;  %v7176_v57 = vmax.f32 %v1928_v43, %v2047_v49  ;;  %v2520_v44 = vrot.slane %v7194_v34, 4 }
 0x163   : > { %v1440_v39 = vmax.f32 %v1226_v35, 0.0 }
 0x164   : > { %v2522_v17 = vrot.slane %v7176_v57, 4 }
 0x165   : > { %v1657_v38 = vrot.slane %v1440_v39, 1  ;;  %v2048_v46 = vrot.slane %v1440_v39, 2 }
 0x167   : > { %v1658_v52 = vsel %vm1615_vm3, %v1655_v31, %v1657_v38  ;;  %v2049_v0 = vsel %vm1159_vm1, %v2046_v36, %v2048_v46  ;;  %v2043_v36 = vsel %vm1159_vm1, %v2040_v53, %v2042_v26 }
 0x168   : > { %v1929_v58 = vmax.f32 %v1439_v30, %v1658_v52  ;;  %v1926_v30 = vmax.f32 %v1436_v32, %v1652_v14 }
 0x16a   : > { %v1229_v6 = vpop.f32.mrf.mxu0  ;;  %v7181_v10 = vmax.f32 %v1929_v58, %v2049_v0  ;;  %v7200_v40 = vmax.f32 %v1926_v30, %v2043_v36 }
 0x16b   : > { %v1441_v13 = vmax.f32 %v1229_v6, 0.0  ;;  %v2516_v6 = vrot.slane %v7187_v22, 4 }
 0x16c   : > { %v2524_v21 = vrot.slane %v7181_v10, 4  ;;  %v2518_v53 = vrot.slane %v7200_v40, 4 }
 0x16d   : > { %v1659_v23 = vrot.slane %v1441_v13, 1  ;;  %v2050_v25 = vrot.slane %v1441_v13, 2  ;;  %6471 = vmatmul.msk.bf16.gmra.mxu0 %vm1010_vm2, %v6630_v62  ;;  %v6631_v62 = vld [vmem:[%s6993_s0 + $0xa0] sm:$0xff]  ;;  %v2517_v30 = vsel %vm2490_vm4, %v2514_v19, %v2516_v6 }
 0x16e   : > { %v2525_v29 = vsel %vm2490_vm4, %v2522_v17, %v2524_v21  ;;  %v2521_v1 = vsel %vm2490_vm4, %v2518_v53, %v2520_v44 }
 0x16f   : > { %v1660_v31 = vsel %vm1615_vm3, %v1657_v38, %v1659_v23  ;;  %v2781_v3 = vmax.f32 %v7187_v22, %v2525_v29  ;;  %v2051_v35 = vsel %vm1159_vm1, %v2048_v46, %v2050_v25  ;;  %v2523_v46 = vsel %vm2490_vm4, %v2520_v44, %v2522_v17 }
 0x170   : > { %v1930_v27 = vmax.f32 %v1440_v39, %v1660_v31  ;;  %v2519_v17 = vsel %vm2490_vm4, %v2516_v6, %v2518_v53  ;;  %v2779_v26 = vmax.f32 %v7144_v4, %v2521_v1  ;;  %v2777_v44 = vmax.f32 %v7116_v37, %v2517_v30 }
 0x171   : > { %v2778_v33 = vmax.f32 %v7130_v50, %v2519_v17  ;;  %v2866_v53 = vmax.f32 %v2775_v11, %v7200_v40  ;;  %v6633_v17 = vld [vmem:[%s6993_s0 + $0xb0] sm:$0xff] }
 0x172   : > { %v1231_v43 = vpop.f32.mrf.mxu0  ;;  %v7198_v48 = vmax.f32 %v1930_v27, %v2051_v35 }
 0x173   : > { %v1442_v32 = vmax.f32 %v1231_v43, 0.0  ;;  %v2869_v43 = vmax.f32 %v2778_v33, %v7181_v10 }
 0x174   : > { %v2526_v38 = vrot.slane %v7198_v48, 4  ;;  %v2870_v31 = vmax.f32 %v2779_v26, %v7198_v48 }
 0x175   : > { %v1661_v49 = vrot.slane %v1442_v32, 1  ;;  %v2052_v52 = vrot.slane %v1442_v32, 2 }
 0x176   : > { %v2527_v39 = vsel %vm2490_vm4, %v2524_v21, %v2526_v38  ;;  %v2780_v21 = vmax.f32 %v7158_v18, %v2523_v46 }
 0x177   : > { %v1662_v56 = vsel %vm1615_vm3, %v1659_v23, %v1661_v49  ;;  %v2782_v58 = vmax.f32 %v7200_v40, %v2527_v39  ;;  %v2053_v0 = vsel %vm1159_vm1, %v2050_v25, %v2052_v52 }
 0x178   : > { %v1931_v61 = vmax.f32 %v1441_v13, %v1662_v56  ;;  %v2868_v56 = vmax.f32 %v2777_v44, %v7176_v57 }
 0x17a   : > { %v1234_v8 = vpop.f32.mrf.mxu0  ;;  %v7213_v14 = vmax.f32 %v1931_v61, %v2053_v0 }
 0x17b   : > { %v1443_v5 = vmax.f32 %v1234_v8, 0.0 }
 0x17c   : > { %v2871_v23 = vmax.f32 %v2780_v21, %v7213_v14  ;;  %v2528_v13 = vrot.slane %v7213_v14, 4 }
 0x17d   : > { %v1663_v29 = vrot.slane %v1443_v5, 1  ;;  %v2054_v25 = vrot.slane %v1443_v5, 2  ;;  %6472 = vmatmul.msk.bf16.gmra.mxu0 %vm1010_vm2, %v6631_v62 }
 0x17e   : > { %3176 = vmatpush.msra.mxu1 %v2871_v23  ;;  %v2529_v27 = vsel %vm2490_vm4, %v2526_v38, %v2528_v13  ;;  %v2867_v38 = vmax.f32 %v2776_v15, %v7194_v34  ;;  %v2865_v15 = vmax.f32 %v2774_v60, %v7187_v22 }
 0x17f   : > { %v1664_v35 = vsel %vm1615_vm3, %v1661_v49, %v1663_v29  ;;  %v2055_v4 = vsel %vm1159_vm1, %v2052_v52, %v2054_v25  ;;  %v2783_v36 = vmax.f32 %v7194_v34, %v2529_v27  ;;  %v6632_v34 = vld [vmem:[%s6993_s0 + $0xa8] sm:$0xff] }
 0x180   : > { %3177 = vmatpush.msra.mxu1 %v2870_v31  ;;  %v1932_v39 = vmax.f32 %v1442_v32, %v1664_v35 }
 0x182   : > { %v1236_v19 = vpop.f32.mrf.mxu0  ;;  %3178 = vmatpush.msra.mxu1 %v2869_v43  ;;  %v7233_v46 = vmax.f32 %v1932_v39, %v2055_v4 }
 0x183   : > { %v1444_v50 = vmax.f32 %v1236_v19, 0.0 }
 0x184   : > { %3179 = vmatpush.msra.mxu1 %v2868_v56  ;;  %v2530_v49 = vrot.slane %v7233_v46, 4  ;;  %v7241_v52 = vmax.f32 %v2781_v3, %v7233_v46 }
 0x185   : > { %v1665_v37 = vrot.slane %v1444_v50, 1  ;;  %v2056_v32 = vrot.slane %v1444_v50, 2 }
 0x186   : > { %3180 = vmatpush.msra.mxu1 %v2867_v38  ;;  %v2531_v61 = vsel %vm2490_vm4, %v2528_v13, %v2530_v49  ;;  %v6634_v38 = vld [vmem:[%s6993_s0 + $0xb8] sm:$0xff] }
 0x187   : > { %v1666_v62 = vsel %vm1615_vm3, %v1663_v29, %v1665_v37  ;;  %v2057_v24 = vsel %vm1159_vm1, %v2054_v25, %v2056_v32  ;;  %v2784_v20 = vmax.f32 %v7176_v57, %v2531_v61 }
 0x188   : > { %3181 = vmatpush.msra.mxu1 %v2866_v53  ;;  %v1933_v3 = vmax.f32 %v1443_v5, %v1666_v62 }
 0x18a   : > { %v1239_v0 = vpop.f32.mrf.mxu0  ;;  %3182 = vmatpush.msra.mxu1 %v2865_v15  ;;  %v7260_v9 = vmax.f32 %v1933_v3, %v2057_v24 }
 0x18b   : > { %v1445_v11 = vmax.f32 %v1239_v0, 0.0 }
 0x18c   : > { %3183 = vmatpush.msra.mxu1 %v2864_v12  ;;  %v2532_v57 = vrot.slane %v7260_v9, 4  ;;  %v7264_v40 = vmax.f32 %v2782_v58, %v7260_v9 }
 0x18d   : > { %v1667_v63 = vrot.slane %v1445_v11, 1  ;;  %v2058_v59 = vrot.slane %v1445_v11, 2  ;;  %6473 = vmatmul.msk.bf16.gmra.mxu0 %vm1010_vm2, %v6632_v34 }
 0x18e   : > { %3184 = vmatpush.msra.mxu1 %v7148_v7  ;;  %v2533_v60 = vsel %vm2490_vm4, %v2530_v49, %v2532_v57 }
 0x18f   : > { %v1668_v51 = vsel %vm1615_vm3, %v1665_v37, %v1667_v63  ;;  %v2059_v45 = vsel %vm1159_vm1, %v2056_v32, %v2058_v59  ;;  %v2785_v47 = vmax.f32 %v7181_v10, %v2533_v60 }
 0x190   : > { %3185 = vmatpush.msra.mxu1 %v7134_v55  ;;  %v1934_v18 = vmax.f32 %v1444_v50, %v1668_v51 }
 0x192   : > { %v1241_v22 = vpop.f32.mrf.mxu0  ;;  %3186 = vmatpush.msra.mxu1 %v7120_v42  ;;  %v7274_v58 = vmax.f32 %v1934_v18, %v2059_v45 }
 0x193   : > { %v1446_v1 = vmax.f32 %v1241_v22, 0.0 }
 0x194   : > { %3187 = vmatpush.msra.mxu1 %v7109_v28  ;;  %v2534_v7 = vrot.slane %v7274_v58, 4  ;;  %v7279_v6 = vmax.f32 %v2783_v36, %v7274_v58 }
 0x195   : > { %v1669_v8 = vrot.slane %v1446_v1, 1  ;;  %v2060_v21 = vrot.slane %v1446_v1, 2 }
 0x196   : > { %3188 = vmatpush.msra.mxu1 %v7098_v16  ;;  %v2535_v55 = vsel %vm2490_vm4, %v2532_v57, %v2534_v7 }
 0x197   : > { %v1670_v10 = vsel %vm1615_vm3, %v1667_v63, %v1669_v8  ;;  %v2061_v42 = vsel %vm1159_vm1, %v2058_v59, %v2060_v21  ;;  %v2786_v5 = vmax.f32 %v7198_v48, %v2535_v55 }
 0x198   : > { %3189 = vmatpush.msra.mxu1 %v7087_v2  ;;  %v1935_v28 = vmax.f32 %v1445_v11, %v1670_v10 }
 0x19a   : > { %v1244_v23 = vpop.f32.mrf.mxu0  ;;  %3190 = vmatpush.msra.mxu1 %v7076_v54  ;;  %v7289_v26 = vmax.f32 %v1935_v28, %v2061_v42 }
 0x19b   : > { %v1447_v13 = vmax.f32 %v1244_v23, 0.0 }
 0x19c   : > { %3191 = vmatpush.msra.mxu1 %v7065_v41  ;;  %v2536_v16 = vrot.slane %v7289_v26, 4  ;;  %v7294_v29 = vmax.f32 %v2784_v20, %v7289_v26  ;;  %v6654_v20 = vld [vmem:[%s6993_s0 + $0x158] sm:$0xff] }
 0x19d   : > { %v1671_v25 = vrot.slane %v1447_v13, 1  ;;  %v2062_v30 = vrot.slane %v1447_v13, 2  ;;  %6474 = vmatmul.msk.bf16.gmra.mxu0 %vm1010_vm2, %v6633_v17  ;;  %6495 = vmatmul.msk.bf16.vlgmr.msra.gmra.mxu3 %vm1010_vm2, %v6654_v20  ;;  %v6655_v17 = vld [vmem:[%s6993_s0 + $0x160] sm:$0xff] }
 0x19e   : > { %v2537_v2 = vsel %vm2490_vm4, %v2534_v7, %v2536_v16 }
 0x19f   : > { %v1672_v48 = vsel %vm1615_vm3, %v1669_v8, %v1671_v25  ;;  %v2063_v54 = vsel %vm1159_vm1, %v2060_v21, %v2062_v30  ;;  %v2787_v31 = vmax.f32 %v7213_v14, %v2537_v2 }
 0x1a0   : > { %v1936_v33 = vmax.f32 %v1446_v1, %v1672_v48  ;;  %v6635_v1 = vld [vmem:[%s6993_s0 + $0xc0] sm:$0xff] }
 0x1a2   : > { %v1246_v41 = vpop.f32.mrf.mxu0  ;;  %v7301_v27 = vmax.f32 %v1936_v33, %v2063_v54 }
 0x1a3   : > { %v1448_v35 = vmax.f32 %v1246_v41, 0.0  ;;  %v6636_v41 = vld [vmem:[%s6993_s0 + $0xc8] sm:$0xff] }
 0x1a4   : > { %v2538_v4 = vrot.slane %v7301_v27, 4  ;;  %v7305_v36 = vmax.f32 %v2785_v47, %v7301_v27 }
 0x1a5   : > { %v1673_v43 = vrot.slane %v1448_v35, 1  ;;  %v2064_v44 = vrot.slane %v1448_v35, 2 }
 0x1a6   : > { %v2539_v39 = vsel %vm2490_vm4, %v2536_v16, %v2538_v4 }
 0x1a7   : > { %v1674_v19 = vsel %vm1615_vm3, %v1671_v25, %v1673_v43  ;;  %v2065_v56 = vsel %vm1159_vm1, %v2062_v30, %v2064_v44  ;;  %v2788_v14 = vmax.f32 %v7233_v46, %v2539_v39  ;;  %v6637_v39 = vld [vmem:[%s6993_s0 + $0xd0] sm:$0xff] }
 0x1a8   : > { %v1937_v50 = vmax.f32 %v1447_v13, %v1674_v19 }
 0x1aa   : > { %v1249_v49 = vpop.f32.mrf.mxu0  ;;  %v7312_v37 = vmax.f32 %v1937_v50, %v2065_v56 }
 0x1ab   : > { %v1449_v32 = vmax.f32 %v1249_v49, 0.0 }
 0x1ac   : > { %v2540_v53 = vrot.slane %v7312_v37, 4  ;;  %v7316_v61 = vmax.f32 %v2786_v5, %v7312_v37 }
 0x1ad   : > { %v1675_v62 = vrot.slane %v1449_v32, 1  ;;  %v2066_v24 = vrot.slane %v1449_v32, 2  ;;  %6475 = vmatmul.msk.bf16.gmra.mxu0 %vm1010_vm2, %v6634_v38  ;;  %6496 = vmatmul.msk.bf16.gmra.mxu3 %vm1010_vm2, %v6655_v17  ;;  %v6657_v38 = vld [vmem:[%s6993_s0 + $0x170] sm:$0xff] }
 0x1ae   : > { %v7321_v15 = vsel %vm2490_vm4, %v2538_v4, %v2540_v53  ;;  %v6656_v4 = vld [vmem:[%s6993_s0 + $0x168] sm:$0xff] }
 0x1af   : > { %v1676_v46 = vsel %vm1615_vm3, %v1673_v43, %v1675_v62  ;;  %v2067_v3 = vsel %vm1159_vm1, %v2064_v44, %v2066_v24  ;;  %v2789_v34 = vmax.f32 %v7260_v9, %v7321_v15  ;;  %v6650_v44 = vld [vmem:[%s6993_s0 + $0x138] sm:$0xff] }
 0x1b0   : > { %v1938_v0 = vmax.f32 %v1448_v35, %v1676_v46  ;;  %6491 = vmatmul.msk.bf16.vlgmr.msra.gmra.mxu2 %vm1010_vm2, %v6650_v44 }
 0x1b2   : > { %v1251_v12 = vpop.f32.mrf.mxu0  ;;  %v7328_v11 = vmax.f32 %v1938_v0, %v2067_v3 }
 0x1b3   : > { %v1450_v57 = vmax.f32 %v1251_v12, 0.0  ;;  %v6651_v12 = vld [vmem:[%s6993_s0 + $0x140] sm:$0xff] }
 0x1b4   : > { %v2542_v63 = vrot.slane %v7328_v11, 4  ;;  %v7332_v59 = vmax.f32 %v2787_v31, %v7328_v11 }
 0x1b5   : > { %v1677_v60 = vrot.slane %v1450_v57, 1  ;;  %v2068_v51 = vrot.slane %v1450_v57, 2 }
 0x1b6   : > { %v7335_v45 = vsel %vm2490_vm4, %v2540_v53, %v2542_v63 }
 0x1b7   : > { %v1678_v47 = vsel %vm1615_vm3, %v1675_v62, %v1677_v60  ;;  %v2790_v18 = vmax.f32 %v7274_v58, %v7335_v45  ;;  %v2069_v7 = vsel %vm1159_vm1, %v2066_v24, %v2068_v51 }
 0x1b8   : > { %v1939_v22 = vmax.f32 %v1449_v32, %v1678_v47 }
 0x1ba   : > { %v1254_v8 = vpop.f32.mrf.mxu0  ;;  %v7342_v21 = vmax.f32 %v1939_v22, %v2069_v7 }
 0x1bb   : > { %v7344_v55 = vmax.f32 %v1254_v8, 0.0 }
 0x1bc   : > { %v2544_v10 = vrot.slane %v7342_v21, 4  ;;  %v7348_v42 = vmax.f32 %v2788_v14, %v7342_v21 }
 0x1bd   : > { %v1679_v5 = vrot.slane %v7344_v55, 1  ;;  %v2070_v28 = vrot.slane %v7344_v55, 2  ;;  %6476 = vmatmul.msk.bf16.gmra.mxu0 %vm1010_vm2, %v6635_v1  ;;  %6497 = vmatmul.msk.bf16.gmra.mxu3 %vm1010_vm2, %v6656_v4 }
 0x1be   : > { %v7355_v23 = vsel %vm2490_vm4, %v2542_v63, %v2544_v10 }
 0x1bf   : > { %v1680_v13 = vsel %vm1615_vm3, %v1677_v60, %v1679_v5  ;;  %v2791_v16 = vmax.f32 %v7289_v26, %v7355_v23  ;;  %v2071_v30 = vsel %vm1159_vm1, %v2068_v51, %v2070_v28 }
 0x1c0   : > { %v1940_v25 = vmax.f32 %v1450_v57, %v1680_v13  ;;  %6492 = vmatmul.msk.bf16.gmra.mxu2 %vm1010_vm2, %v6651_v12  ;;  %v6638_v13 = vld [vmem:[%s6993_s0 + $0xd8] sm:$0xff] }
 0x1c2   : > { %v1256_v2 = vpop.f32.mrf.mxu0  ;;  %v7362_v48 = vmax.f32 %v1940_v25, %v2071_v30 }
 0x1c3   : > { %v1452_v49 = vmax.f32 %v1256_v2, 0.0 }
 0x1c4   : > { %v2546_v54 = vrot.slane %v7362_v48, 4  ;;  %v2880_v23 = vmax.f32 %v2789_v34, %v7362_v48 }
 0x1c5   : > { %v1681_v62 = vrot.slane %v1452_v49, 1  ;;  %v2072_v1 = vrot.slane %v1452_v49, 2 }
 0x1c6   : > { %v7368_v31 = vsel %vm2490_vm4, %v2544_v10, %v2546_v54 }
 0x1c7   : > { %v2792_v33 = vmax.f32 %v7301_v27, %v7368_v31  ;;  %v1682_v51 = vsel %vm1615_vm3, %v1679_v5, %v1681_v62 }
 0x1c8   : > { %v1941_v17 = vmax.f32 %v7344_v55, %v1682_v51 }
 0x1ca   : > { %v1259_v35 = vpop.f32.mrf.mxu0 }
 0x1cb   : > { %v1453_v3 = vmax.f32 %v1259_v35, 0.0  ;;  %v2073_v35 = vsel %vm1159_vm1, %v2070_v28, %v2072_v1 }
 0x1cd   : > { %6477 = vmatmul.msk.bf16.gmra.mxu0 %vm1010_vm2, %v6636_v41  ;;  %6498 = vmatmul.msk.bf16.gmra.mxu3 %vm1010_vm2, %v6657_v38  ;;  %v1683_v7 = vrot.slane %v1453_v3, 1 }
 0x1cf   : > { %v1684_v4 = vsel %vm1615_vm3, %v1681_v62, %v1683_v7 }
 0x1d0   : > { %v1942_v28 = vmax.f32 %v1452_v49, %v1684_v4 }
 0x1d2   : > { %v1261_v43 = vpop.f32.mrf.mxu0 }
 0x1d3   : > { %v1454_v56 = vmax.f32 %v1261_v43, 0.0 }
 0x1d5   : > { %v1685_v32 = vrot.slane %v1454_v56, 1  ;;  %v2076_v57 = vrot.slane %v1454_v56, 2 }
 0x1d7   : > { %v1686_v30 = vsel %vm1615_vm3, %v1683_v7, %v1685_v32 }
 0x1d8   : > { %v1943_v55 = vmax.f32 %v1453_v3, %v1686_v30  ;;  %v6639_v30 = vld [vmem:[%s6993_s0 + $0xe0] sm:$0xff] }
 0x1da   : > { %v1264_v19 = vpop.f32.mrf.mxu0 }
 0x1db   : > { %v1455_v14 = vmax.f32 %v1264_v19, 0.0 }
 0x1dd   : > { %v1687_v50 = vrot.slane %v1455_v14, 1  ;;  %6478 = vmatmul.msk.bf16.gmra.mxu0 %vm1010_vm2, %v6637_v39  ;;  %v2078_v20 = vrot.slane %v1455_v14, 2  ;;  %v7400_v39 = vmax.f32 %v1941_v17, %v2073_v35 }
 0x1df   : > { %v1688_v53 = vsel %vm1615_vm3, %v1685_v32, %v1687_v50  ;;  %v2079_v47 = vsel %vm1159_vm1, %v2076_v57, %v2078_v20  ;;  %v2548_v4 = vrot.slane %v7400_v39, 4 }
 0x1e0   : > { %v1944_v0 = vmax.f32 %v1454_v56, %v1688_v53 }
 0x1e2   : > { %v1266_v24 = vpop.f32.mrf.mxu0  ;;  %v7388_v8 = vmax.f32 %v1944_v0, %v2079_v47  ;;  %v6652_v47 = vld [vmem:[%s6993_s0 + $0x148] sm:$0xff] }
 0x1e3   : > { %v1456_v46 = vmax.f32 %v1266_v24, 0.0  ;;  %6493 = vmatmul.msk.bf16.gmra.mxu2 %vm1010_vm2, %v6652_v47 }
 0x1e4   : > { %v2554_v43 = vrot.slane %v7388_v8, 4 }
 0x1e5   : > { %v1689_v63 = vrot.slane %v1456_v46, 1  ;;  %v2080_v60 = vrot.slane %v1456_v46, 2 }
 0x1e7   : > { %v1690_v22 = vsel %vm1615_vm3, %v1687_v50, %v1689_v63  ;;  %v2081_v25 = vsel %vm1159_vm1, %v2078_v20, %v2080_v60  ;;  %v2074_v50 = vrot.slane %v1453_v3, 2 }
 0x1e8   : > { %v1945_v10 = vmax.f32 %v1455_v14, %v1690_v22  ;;  %v6658_v14 = vld [vmem:[%s6993_s0 + $0x178] sm:$0xff] }
 0x1e9   : > { %6499 = vmatmul.msk.bf16.gmra.mxu3 %vm1010_vm2, %v6658_v14  ;;  %v2077_v62 = vsel %vm1159_vm1, %v2074_v50, %v2076_v57  ;;  %v2075_v3 = vsel %vm1159_vm1, %v2072_v1, %v2074_v50 }
 0x1ea   : > { %v1269_v5 = vpop.f32.mrf.mxu0  ;;  %v7394_v2 = vmax.f32 %v1945_v10, %v2081_v25  ;;  %v7412_v20 = vmax.f32 %v1943_v55, %v2077_v62  ;;  %v7418_v49 = vmax.f32 %v1942_v28, %v2075_v3  ;;  %v6659_v62 = vld [vmem:[%s6993_s0 + $0x180] sm:$0xff] }
 0x1eb   : > { %v1457_v41 = vmax.f32 %v1269_v5, 0.0 }
 0x1ec   : > { %v2556_v44 = vrot.slane %v7394_v2, 4  ;;  %v2550_v17 = vrot.slane %v7418_v49, 4 }
 0x1ed   : > { %v1691_v19 = vrot.slane %v1457_v41, 1  ;;  %v2082_v56 = vrot.slane %v1457_v41, 2  ;;  %6479 = vmatmul.msk.bf16.gmra.mxu0 %vm1010_vm2, %v6638_v13 }
 0x1ee   : > { %v7405_v38 = vsel %vm2490_vm4, %v2554_v43, %v2556_v44  ;;  %v2551_v14 = vsel %vm2490_vm4, %v2548_v4, %v2550_v17 }
 0x1ef   : > { %v1692_v32 = vsel %vm1615_vm3, %v1689_v63, %v1691_v19  ;;  %v2797_v53 = vmax.f32 %v7400_v39, %v7405_v38  ;;  %v2083_v0 = vsel %vm1159_vm1, %v2080_v60, %v2082_v56 }
 0x1f0   : > { %v1946_v24 = vmax.f32 %v1456_v46, %v1692_v32  ;;  %v2552_v46 = vrot.slane %v7412_v20, 4  ;;  %v2549_v32 = vsel %vm2490_vm4, %v2546_v54, %v2548_v4 }
 0x1f2   : > { %v1271_v12 = vpop.f32.mrf.mxu0  ;;  %v7416_v51 = vmax.f32 %v1946_v24, %v2083_v0  ;;  %v2555_v1 = vsel %vm2490_vm4, %v2552_v46, %v2554_v43  ;;  %v2553_v35 = vsel %vm2490_vm4, %v2550_v17, %v2552_v46  ;;  %v2794_v0 = vmax.f32 %v7328_v11, %v2551_v14 }
 0x1f3   : > { %v1458_v63 = vmax.f32 %v1271_v12, 0.0  ;;  %v2793_v46 = vmax.f32 %v7312_v37, %v2549_v32 }
 0x1f4   : > { %v2558_v22 = vrot.slane %v7416_v51, 4  ;;  %v2885_v54 = vmax.f32 %v2794_v0, %v7394_v2 }
 0x1f5   : > { %v1693_v7 = vrot.slane %v1458_v63, 1  ;;  %v2084_v10 = vrot.slane %v1458_v63, 2  ;;  %v2884_v11 = vmax.f32 %v2793_v46, %v7388_v8 }
 0x1f6   : > { %v7425_v57 = vsel %vm2490_vm4, %v2556_v44, %v2558_v22 }
 0x1f7   : > { %v1694_v60 = vsel %vm1615_vm3, %v1691_v19, %v1693_v7  ;;  %v2798_v13 = vmax.f32 %v7418_v49, %v7425_v57  ;;  %v2085_v5 = vsel %vm1159_vm1, %v2082_v56, %v2084_v10  ;;  %v2796_v19 = vmax.f32 %v7362_v48, %v2555_v1 }
 0x1f8   : > { %v1947_v25 = vmax.f32 %v1457_v41, %v1694_v60  ;;  %v2795_v41 = vmax.f32 %v7342_v21, %v2553_v35  ;;  %v6640_v35 = vld [vmem:[%s6993_s0 + $0xe8] sm:$0xff] }
 0x1f9   : > { %6500 = vmatmul.msk.bf16.gmra.mxu3 %vm1010_vm2, %v6659_v62 }
 0x1fa   : > { %v1274_v44 = vpop.f32.mrf.mxu0  ;;  %v7436_v55 = vmax.f32 %v1947_v25, %v2085_v5  ;;  %v2886_v24 = vmax.f32 %v2795_v41, %v7416_v51  ;;  %v6641_v41 = vld [vmem:[%s6993_s0 + $0xf0] sm:$0xff] }
 0x1fb   : > { %v1459_v43 = vmax.f32 %v1274_v44, 0.0 }
 0x1fc   : > { %v2887_v50 = vmax.f32 %v2796_v19, %v7436_v55  ;;  %v2560_v38 = vrot.slane %v7436_v55, 4 }
 0x1fd   : > { %v1695_v28 = vrot.slane %v1459_v43, 1  ;;  %v2086_v56 = vrot.slane %v1459_v43, 2  ;;  %6480 = vmatmul.msk.bf16.gmra.mxu0 %vm1010_vm2, %v6639_v30  ;;  %v2882_v30 = vmax.f32 %v2791_v16, %v7418_v49 }
 0x1fe   : > { %3268 = vmatpush.msrb.mxu2 %v2887_v50  ;;  %v2561_v3 = vsel %vm2490_vm4, %v2558_v22, %v2560_v38 }
 0x1ff   : > { %v1696_v21 = vsel %vm1615_vm3, %v1693_v7, %v1695_v28  ;;  %v2087_v12 = vsel %vm1159_vm1, %v2084_v10, %v2086_v56  ;;  %v2799_v47 = vmax.f32 %v7412_v20, %v2561_v3  ;;  %v2883_v7 = vmax.f32 %v2792_v33, %v7412_v20  ;;  %v6653_v10 = vld [vmem:[%s6993_s0 + $0x150] sm:$0xff] }
 0x200   : > { %3269 = vmatpush.msrb.mxu2 %v2886_v24  ;;  %v1948_v57 = vmax.f32 %v1458_v63, %v1696_v21 }
 0x201   : > { %6494 = vmatmul.msk.bf16.gmra.mxu2 %vm1010_vm2, %v6653_v10  ;;  %v6642_v10 = vld [vmem:[%s6993_s0 + $0xf8] sm:$0xff] }
 0x202   : > { %v1276_v60 = vpop.f32.mrf.mxu0  ;;  %3270 = vmatpush.msrb.mxu2 %v2885_v54  ;;  %v7458_v22 = vmax.f32 %v1948_v57, %v2087_v12 }
 0x203   : > { %v1460_v1 = vmax.f32 %v1276_v60, 0.0 }
 0x204   : > { %3271 = vmatpush.msrb.mxu2 %v2884_v11  ;;  %v2562_v17 = vrot.slane %v7458_v22, 4  ;;  %v7467_v37 = vmax.f32 %v2797_v53, %v7458_v22  ;;  %v2881_v53 = vmax.f32 %v2790_v18, %v7400_v39 }
 0x205   : > { %v1697_v63 = vrot.slane %v1460_v1, 1  ;;  %v2088_v25 = vrot.slane %v1460_v1, 2 }
 0x206   : > { %11127 = vst [vmem:[#allocation13_spill] sm:$0xff] %v7467_v37  ;;  %3272 = vmatpush.msrb.mxu2 %v2883_v7  ;;  %v2563_v5 = vsel %vm2490_vm4, %v2560_v38, %v2562_v17 }
 0x207   : > { %v1698_v27 = vsel %vm1615_vm3, %v1695_v28, %v1697_v63  ;;  %v2089_v31 = vsel %vm1159_vm1, %v2086_v56, %v2088_v25  ;;  %v2800_v33 = vmax.f32 %v7388_v8, %v2563_v5 }
 0x208   : > { %3273 = vmatpush.msrb.mxu2 %v2882_v30  ;;  %v1949_v20 = vmax.f32 %v1459_v43, %v1698_v27 }
 0x20a   : > { %v1279_v26 = vpop.f32.mrf.mxu0  ;;  %3274 = vmatpush.msrb.mxu2 %v2881_v53  ;;  %v7487_v16 = vmax.f32 %v1949_v20, %v2089_v31 }
 0x20b   : > { %v1461_v49 = vmax.f32 %v1279_v26, 0.0 }
 0x20c   : > { %3275 = vmatpush.msrb.mxu2 %v2880_v23  ;;  %v2564_v8 = vrot.slane %v7487_v16, 4  ;;  %v7491_v4 = vmax.f32 %v2798_v13, %v7487_v16 }
 0x20d   : > { %v1699_v58 = vrot.slane %v1461_v49, 1  ;;  %v2090_v45 = vrot.slane %v1461_v49, 2  ;;  %6481 = vmatmul.msk.bf16.gmra.mxu0 %vm1010_vm2, %v6640_v35 }
 0x20e   : > { %11128 = vst [vmem:[#allocation14_spill] sm:$0xff] %v7491_v4  ;;  %3276 = vmatpush.msrb.mxu2 %v7348_v42  ;;  %v2565_v18 = vsel %vm2490_vm4, %v2562_v17, %v2564_v8 }
 0x20f   : > { %v1700_v9 = vsel %vm1615_vm3, %v1697_v63, %v1699_v58  ;;  %v2091_v15 = vsel %vm1159_vm1, %v2088_v25, %v2090_v45  ;;  %v2801_v34 = vmax.f32 %v7394_v2, %v2565_v18 }
 0x210   : > { %3277 = vmatpush.msrb.mxu2 %v7332_v59  ;;  %v1950_v48 = vmax.f32 %v1460_v1, %v1700_v9 }
 0x212   : > { %v1281_v39 = vpop.f32.mrf.mxu0  ;;  %3278 = vmatpush.msrb.mxu2 %v7316_v61  ;;  %v7501_v13 = vmax.f32 %v1950_v48, %v2091_v15 }
 0x213   : > { %v1462_v44 = vmax.f32 %v1281_v39, 0.0 }
 0x214   : > { %3279 = vmatpush.msrb.mxu2 %v7305_v36  ;;  %v2566_v42 = vrot.slane %v7501_v13, 4  ;;  %v7506_v19 = vmax.f32 %v2799_v47, %v7501_v13 }
 0x215   : > { %v1701_v43 = vrot.slane %v1462_v44, 1  ;;  %v2092_v14 = vrot.slane %v1462_v44, 2 }
 0x216   : > { %3280 = vmatpush.msrb.mxu2 %v7294_v29  ;;  %v2567_v59 = vsel %vm2490_vm4, %v2564_v8, %v2566_v42 }
 0x217   : > { %v1702_v2 = vsel %vm1615_vm3, %v1699_v58, %v1701_v43  ;;  %v2093_v61 = vsel %vm1159_vm1, %v2090_v45, %v2092_v14  ;;  %v2802_v50 = vmax.f32 %v7416_v51, %v2567_v59  ;;  %v2947_v58 = vld [vmem:[%s11129_s3] sm:$0xff] }
 0x218   : > { %3281 = vmatpush.msrb.mxu2 %v7279_v6  ;;  %v1951_v36 = vmax.f32 %v1461_v49, %v1702_v2  ;;  %3192 = vmatmul.f32.vlgmr.msra.gmra.mxu1 %v2947_v58 }
 0x21a   : > { %v1284_v38 = vpop.f32.mrf.mxu0  ;;  %3282 = vmatpush.msrb.mxu2 %v7264_v40  ;;  %v7516_v28 = vmax.f32 %v1951_v36, %v2093_v61 }
 0x21b   : > { %v1463_v56 = vmax.f32 %v1284_v38, 0.0 }
 0x21c   : > { %3283 = vmatpush.msrb.mxu2 %v7241_v52  ;;  %v2568_v29 = vrot.slane %v7516_v28, 4  ;;  %v7521_v32 = vmax.f32 %v2800_v33, %v7516_v28 }
 0x21d   : > { %v1703_v62 = vrot.slane %v1463_v56, 1  ;;  %v2094_v24 = vrot.slane %v1463_v56, 2  ;;  %6482 = vmatmul.msk.bf16.gmra.mxu0 %vm1010_vm2, %v6641_v41 }
 0x21e   : > { %v2569_v6 = vsel %vm2490_vm4, %v2566_v42, %v2568_v29  ;;  %v6643_v42 = vld [vmem:[%s6993_s0 + $0x100] sm:$0xff] }
 0x21f   : > { %v1704_v51 = vsel %vm1615_vm3, %v1701_v43, %v1703_v62  ;;  %v2095_v40 = vsel %vm1159_vm1, %v2092_v14, %v2094_v24  ;;  %v2803_v0 = vmax.f32 %v7436_v55, %v2569_v6 }
 0x220   : > { %v1952_v3 = vmax.f32 %v1462_v44, %v1704_v51  ;;  %v1389_v23 = vpop.f32.mrf.mxu3 }
 0x222   : > { %v1286_v52 = vpop.f32.mrf.mxu0  ;;  %v7528_v21 = vmax.f32 %v1952_v3, %v2095_v40 }
 0x223   : > { %v1464_v12 = vmax.f32 %v1286_v52, 0.0  ;;  %v2959_v52 = vld [vmem:[%s11129_s3 + $0x60] sm:$0xff] }
 0x224   : > { %v2570_v47 = vrot.slane %v7528_v21, 4  ;;  %v7532_v54 = vmax.f32 %v2801_v34, %v7528_v21 }
 0x225   : > { %v1705_v46 = vrot.slane %v1464_v12, 1  ;;  %v2096_v57 = vrot.slane %v1464_v12, 2 }
 0x226   : > { %v2571_v60 = vsel %vm2490_vm4, %v2568_v29, %v2570_v47 }
 0x227   : > { %v1706_v11 = vsel %vm1615_vm3, %v1703_v62, %v1705_v46  ;;  %v2097_v1 = vsel %vm1159_vm1, %v2094_v24, %v2096_v57  ;;  %v2804_v55 = vmax.f32 %v7458_v22, %v2571_v60 }
 0x228   : > { %v1953_v7 = vmax.f32 %v1463_v56, %v1706_v11  ;;  %v1391_v59 = vpop.f32.mrf.mxu3 }
 0x22a   : > { %v1289_v17 = vpop.f32.mrf.mxu0  ;;  %v7539_v63 = vmax.f32 %v1953_v7, %v2097_v1  ;;  %v2965_v1 = vld [vmem:[%s11129_s3 + $0x90] sm:$0xff] }
 0x22b   : > { %v1465_v25 = vmax.f32 %v1289_v17, 0.0 }
 0x22c   : > { %v2572_v30 = vrot.slane %v7539_v63, 4  ;;  %v7543_v5 = vmax.f32 %v2802_v50, %v7539_v63  ;;  %v2953_v50 = vld [vmem:[%s11129_s3 + $0x30] sm:$0xff] }
 0x22d   : > { %v1707_v27 = vrot.slane %v1465_v25, 1  ;;  %v2098_v31 = vrot.slane %v1465_v25, 2  ;;  %6483 = vmatmul.msk.bf16.gmra.mxu0 %vm1010_vm2, %v6642_v10  ;;  %3195 = vmatmul.f32.gmra.mxu1 %v2953_v50 }
 0x22e   : > { %v7547_v33 = vsel %vm2490_vm4, %v2570_v47, %v2572_v30 }
 0x22f   : > { %v1708_v22 = vsel %vm1615_vm3, %v1705_v46, %v1707_v27  ;;  %v2099_v53 = vsel %vm1159_vm1, %v2096_v57, %v2098_v31  ;;  %v2805_v20 = vmax.f32 %v7487_v16, %v7547_v33  ;;  %v6644_v57 = vld [vmem:[%s6993_s0 + $0x108] sm:$0xff] }
 0x230   : > { %v1954_v35 = vmax.f32 %v1464_v12, %v1708_v22 }
 0x232   : > { %v1291_v26 = vpop.f32.mrf.mxu0  ;;  %v7553_v49 = vmax.f32 %v1954_v35, %v2099_v53  ;;  %v7616_v35 = vmax.f32 %v1389_v23, 0.0  ;;  %v2977_v23 = vld [vmem:[%s11129_s3 + $0xf0] sm:$0xff] }
 0x233   : > { %v1466_v8 = vmax.f32 %v1291_v26, 0.0  ;;  %v7618_v26 = vmax.f32 %v1391_v59, 0.0  ;;  %v7621_v58 = vpop.f32.mrf.mxu2 }
 0x234   : > { %v2574_v45 = vrot.slane %v7553_v49, 4  ;;  %v7560_v18 = vmax.f32 %v2803_v0, %v7553_v49  ;;  %v1394_v0 = vpop.f32.mrf.mxu3 }
 0x235   : > { %v1709_v9 = vrot.slane %v1466_v8, 1  ;;  %v2100_v15 = vrot.slane %v1466_v8, 2  ;;  %3198 = vmatmul.f32.gmra.mxu1 %v2959_v52  ;;  %11130 = vst [vmem:[#allocation15_spill] sm:$0xff] %v7618_v26 }
 0x236   : > { %v7563_v34 = vsel %vm2490_vm4, %v2572_v30, %v2574_v45  ;;  %v2971_v30 = vld [vmem:[%s11129_s3 + $0xc0] sm:$0xff] }
 0x237   : > { %v1710_v48 = vsel %vm1615_vm3, %v1707_v27, %v1709_v9  ;;  %v2806_v39 = vmax.f32 %v7501_v13, %v7563_v34  ;;  %v2101_v43 = vsel %vm1159_vm1, %v2098_v31, %v2100_v15 }
 0x238   : > { %v1955_v44 = vmax.f32 %v1465_v25, %v1710_v48 }
 0x23a   : > { %v1294_v14 = vpop.f32.mrf.mxu0  ;;  %v7570_v2 = vmax.f32 %v1955_v44, %v2101_v43 }
 0x23b   : > { %v1467_v61 = vmax.f32 %v1294_v14, 0.0 }
 0x23c   : > { %v2576_v36 = vrot.slane %v7570_v2, 4  ;;  %v7577_v41 = vmax.f32 %v2804_v55, %v7570_v2  ;;  %v1396_v11 = vpop.f32.mrf.mxu3 }
 0x23d   : > { %v1711_v38 = vrot.slane %v1467_v61, 1  ;;  %v2102_v56 = vrot.slane %v1467_v61, 2  ;;  %6484 = vmatmul.msk.bf16.gmra.mxu0 %vm1010_vm2, %v6643_v42  ;;  %3201 = vmatmul.f32.gmra.mxu1 %v2965_v1  ;;  %v7626_v42 = vmax.f32 %v1394_v0, 0.0 }
 0x23e   : > { %v7581_v29 = vsel %vm2490_vm4, %v2574_v45, %v2576_v36 }
 0x23f   : > { %v1712_v62 = vsel %vm1615_vm3, %v1709_v9, %v1711_v38  ;;  %v2807_v24 = vmax.f32 %v7516_v28, %v7581_v29  ;;  %v2103_v51 = vsel %vm1159_vm1, %v2100_v15, %v2102_v56 }
 0x240   : > { %v1956_v6 = vmax.f32 %v1466_v8, %v1712_v62  ;;  %v6645_v8 = vld [vmem:[%s6993_s0 + $0x110] sm:$0xff] }
 0x242   : > { %v1296_v40 = vpop.f32.mrf.mxu0  ;;  %v7587_v3 = vmax.f32 %v1956_v6, %v2103_v51  ;;  %v1791_v6 = vrot.slane %v7626_v42, 1 }
 0x243   : > { %v1468_v55 = vmax.f32 %v1296_v40, 0.0 }
 0x244   : > { %v2578_v12 = vrot.slane %v7587_v3, 4  ;;  %v7607_v17 = vpop.f32.mrf.mxu3 }
 0x245   : > { %v1713_v25 = vrot.slane %v1468_v55, 1  ;;  %3204 = vmatmul.f32.gmra.mxu1 %v2971_v30  ;;  %v2104_v53 = vrot.slane %v1468_v55, 2 }
 0x246   : > { %v7596_v47 = vsel %vm2490_vm4, %v2576_v36, %v2578_v12  ;;  %v1789_v36 = vrot.slane %v7618_v26, 1 }
 0x247   : > { %v1714_v31 = vsel %vm1615_vm3, %v1711_v38, %v1713_v25  ;;  %v2105_v59 = vsel %vm1159_vm1, %v2102_v56, %v2104_v53  ;;  %v11070_v56 = vrot.slane %v7616_v35, 2 }
 0x248   : > { %v1957_v45 = vmax.f32 %v1467_v61, %v1714_v31  ;;  %v11071_v61 = vrot.slane %v7616_v35, 1 }
 0x24a   : > { %v1299_v60 = vpop.f32.mrf.mxu0  ;;  %v7637_v38 = vmax.f32 %v1957_v45, %v2105_v59  ;;  %v7649_v52 = vsel %vm1615_vm3, %v11071_v61, %v1789_v36  ;;  %v2948_v45 = vld [vmem:[%s11129_s3 + $0x8] sm:$0xff]  ;;  %v2983_v59 = vld [vmem:[%s11129_s3 + $0x120] sm:$0xff] }
 0x24b   : > { %v7605_v7 = vmax.f32 %v1299_v60, 0.0  ;;  %11131 = vst [vmem:[#allocation16_spill] sm:$0xff] %v7649_v52  ;;  %v7654_v60 = vpop.f32.mrf.mxu2  ;;  %3284 = vmatmul.f32.vlgmr.msrb.gmra.mxu2 %v2948_v45  ;;  %v7702_v45 = vmax.f32 %v7607_v17, 0.0 }
 0x24c   : > { %v1401_v48 = vpop.f32.mrf.mxu3  ;;  %v7782_v46 = vmax.f32 %v7654_v60, 0.0 }
 0x24d   : > { %6485 = vmatmul.msk.bf16.gmra.mxu0 %vm1010_vm2, %v6644_v57  ;;  %v1715_v27 = vrot.slane %v7605_v7, 1  ;;  %v2106_v43 = vrot.slane %v7605_v7, 2  ;;  %3207 = vmatmul.f32.gmra.mxu1 %v2977_v23  ;;  %v7652_v57 = vsel %vm1615_vm3, %v1789_v36, %v1791_v6 }
 0x24e   : > { %11132 = vst [vmem:[#allocation17_spill] sm:$0xff] %v7652_v57 }
 0x24f   : > { %v1716_v9 = vsel %vm1615_vm3, %v1713_v25, %v1715_v27  ;;  %v2107_v51 = vsel %vm1159_vm1, %v2104_v53, %v2106_v43  ;;  %v7658_v25 = vmax.f32 %v1396_v11, 0.0  ;;  %v7704_v11 = vmax.f32 %v1401_v48, 0.0 }
 0x250   : > { %v1958_v50 = vmax.f32 %v1468_v55, %v1716_v9  ;;  %v2180_v55 = vrot.slane %v7618_v26, 2  ;;  %v7672_v9 = vmax.f32 %v2805_v20, %v7587_v3 }
 0x252   : > { %v1301_v10 = vpop.f32.mrf.mxu0  ;;  %v7644_v0 = vmax.f32 %v1958_v50, %v2107_v51  ;;  %v1793_v51 = vrot.slane %v7658_v25, 1 }
 0x253   : > { %v7614_v22 = vmax.f32 %v1301_v10, 0.0 }
 0x254   : > { %v1404_v30 = vpop.f32.mrf.mxu3  ;;  %v2582_v20 = vrot.slane %v7644_v0, 4  ;;  %v7720_v48 = vsel %vm1615_vm3, %v1791_v6, %v1793_v51  ;;  %v1795_v6 = vrot.slane %v7702_v45, 1 }
 0x255   : > { %v1717_v14 = vrot.slane %v7614_v22, 1  ;;  %v2108_v1 = vrot.slane %v7614_v22, 2  ;;  %3210 = vmatmul.f32.gmra.mxu1 %v2983_v59  ;;  %v1374_v59 = vpop.f32.mrf.mxu2 }
 0x256   : > { %v7766_v28 = vsel %vm1615_vm3, %v1793_v51, %v1795_v6 }
 0x257   : > { %v1718_v40 = vsel %vm1615_vm3, %v1715_v27, %v1717_v14  ;;  %v2580_v27 = vrot.slane %v7637_v38, 4  ;;  %v2109_v50 = vsel %vm1159_vm1, %v2106_v43, %v2108_v1 }
 0x258   : > { %v1959_v31 = vmax.f32 %v7605_v7, %v1718_v40  ;;  %v7679_v7 = vsel %vm1159_vm1, %v11070_v56, %v2180_v55 }
 0x259   : > { %11133 = vst [vmem:[#allocation18_spill] sm:$0xff] %v7679_v7  ;;  %v7697_v40 = vsel %vm2490_vm4, %v2578_v12, %v2580_v27  ;;  %v7716_v12 = vmax.f32 %v2806_v39, %v7637_v38 }
 0x25a   : > { %v1304_v15 = vpop.f32.mrf.mxu0  ;;  %v2809_v34 = vmax.f32 %v7539_v63, %v7697_v40  ;;  %v7753_v40 = vmax.f32 %v2807_v24, %v7644_v0 }
 0x25b   : > { %v7624_v44 = vmax.f32 %v1304_v15, 0.0 }
 0x25d   : > { %6486 = vmatmul.msk.bf16.gmra.mxu0 %vm1010_vm2, %v6645_v8  ;;  %v1719_v62 = vrot.slane %v7624_v44, 1  ;;  %v2110_v23 = vrot.slane %v7624_v44, 2  ;;  %v7793_v37 = vpop.f32.mrf.mxu2 }
 0x25f   : > { %v1720_v53 = vsel %vm1615_vm3, %v1717_v14, %v1719_v62  ;;  %v2182_v14 = vrot.slane %v7626_v42, 2  ;;  %v2111_v17 = vsel %vm1159_vm1, %v2108_v1, %v2110_v23  ;;  %v1797_v1 = vrot.slane %v7704_v11, 1 }
 0x260   : > { %v1960_v36 = vmax.f32 %v7614_v22, %v1720_v53  ;;  %v2184_v22 = vrot.slane %v7658_v25, 2 }
 0x261   : > { %v7708_v43 = vsel %vm1159_vm1, %v2180_v55, %v2182_v14  ;;  %v7725_v55 = vsel %vm2490_vm4, %v2580_v27, %v2582_v20 }
 0x262   : > { %v1306_v10 = vpop.f32.mrf.mxu0  ;;  %11134 = vst [vmem:[#allocation19_spill] sm:$0xff] %v7708_v43 }
 0x263   : > { %v7663_v8 = vmax.f32 %v1306_v10, 0.0  ;;  %v7699_v10 = vmax.f32 %v1959_v31, %v2109_v50  ;;  %v6646_v31 = vld [vmem:[%s6993_s0 + $0x118] sm:$0xff]  ;;  %v7727_v50 = vmax.f32 %v1960_v36, %v2111_v17 }
 0x264   : > { %v2954_v36 = vld [vmem:[%s11129_s3 + $0x38] sm:$0xff] }
 0x265   : > { %v1721_v16 = vrot.slane %v7663_v8, 1  ;;  %v2112_v33 = vrot.slane %v7663_v8, 2  ;;  %11135 = vst [vmem:[#allocation20_spill] sm:$0xff] %v7727_v50  ;;  %v2584_v27 = vrot.slane %v7699_v10, 4  ;;  %3287 = vmatmul.f32.gmra.mxu2 %v2954_v36  ;;  %v2586_v24 = vrot.slane %v7727_v50, 4 }
 0x266   : > { %v7772_v36 = vmax.f32 %v1404_v30, 0.0 }
 0x267   : > { %v1722_v15 = vsel %vm1615_vm3, %v1719_v62, %v1721_v16  ;;  %v2113_v62 = vsel %vm1159_vm1, %v2110_v23, %v2112_v33  ;;  %v1406_v23 = vpop.f32.mrf.mxu3  ;;  %v7778_v63 = vsel %vm2490_vm4, %v2582_v20, %v2584_v27 }
 0x268   : > { %v1961_v53 = vmax.f32 %v7624_v44, %v1722_v15  ;;  %v7730_v15 = vsel %vm1159_vm1, %v2182_v14, %v2184_v22  ;;  %v2989_v14 = vld [vmem:[%s11129_s3 + $0x150] sm:$0xff]  ;;  %v1799_v52 = vrot.slane %v7772_v36, 1 }
 0x269   : > { %3213 = vmatmul.f32.gmra.mxu1 %v2989_v14 }
 0x26a   : > { %v1309_v44 = vpop.f32.mrf.mxu0  ;;  %v7732_v13 = vmax.f32 %v1961_v53, %v2113_v62  ;;  %v2186_v53 = vrot.slane %v7702_v45, 2 }
 0x26b   : > { %v7736_v39 = vmax.f32 %v1309_v44, 0.0  ;;  %v7759_v44 = vmax.f32 %v7621_v58, 0.0  ;;  %v1798_v58 = vsel %vm1615_vm3, %v1795_v6, %v1797_v1 }
 0x26c   : > { %11136 = vst [vmem:[#allocation21_spill] sm:$0xff] %v7732_v13  ;;  %v2588_v56 = vrot.slane %v7732_v13, 4  ;;  %v7769_v29 = vsel %vm1159_vm1, %v2184_v22, %v2186_v53  ;;  %v7784_v22 = vmax.f32 %v1374_v59, 0.0  ;;  %v1999_v20 = vmax.f32 %v7702_v45, %v1798_v58  ;;  %v2960_v45 = vld [vmem:[%s11129_s3 + $0x68] sm:$0xff] }
 0x26d   : > { %v1723_v17 = vrot.slane %v7736_v39, 1  ;;  %v2114_v62 = vrot.slane %v7736_v39, 2  ;;  %6487 = vmatmul.msk.bf16.gmra.mxu0 %vm1010_vm2, %v6646_v31  ;;  %v2188_v31 = vrot.slane %v7704_v11, 2  ;;  %v1773_v58 = vrot.slane %v7782_v46, 1  ;;  %3290 = vmatmul.f32.gmra.mxu2 %v2960_v45 }
 0x26e   : > { %v7787_v30 = vsel %vm2490_vm4, %v2586_v24, %v2588_v56  ;;  %v7833_v45 = vmax.f32 %v2809_v34, %v7727_v50  ;;  %v11138_v4 = vrot.slane %v7759_v44, 1 }
 0x26f   : > { %v1724_v61 = vsel %vm1615_vm3, %v1721_v16, %v1723_v17  ;;  %v2115_v16 = vsel %vm1159_vm1, %v2112_v33, %v2114_v62  ;;  %v2189_v6 = vsel %vm1159_vm1, %v2186_v53, %v2188_v31  ;;  %v2811_v33 = vmax.f32 %v7570_v2, %v7778_v63  ;;  %v1409_v60 = vpop.f32.mrf.mxu3  ;;  %v2995_v63 = vld [vmem:[%s11129_s3 + $0x180] sm:$0xff] }
 0x270   : > { %v1962_v51 = vmax.f32 %v7663_v8, %v1724_v61  ;;  %v11137_v61 = vmax.f32 %v7528_v21, %v7596_v47  ;;  %v2190_v53 = vrot.slane %v7772_v36, 2  ;;  %v7822_v47 = vmax.f32 %v1406_v23, 0.0 }
 0x271   : > { %3216 = vmatmul.f32.gmra.mxu1 %v2995_v63  ;;  %v7839_v57 = vsel %vm1615_vm3, %v11138_v4, %v1773_v58  ;;  %v7842_v43 = vmax.f32 %v1409_v60, 0.0  ;;  %v11140_v63 = vrot.slane %v7784_v22, 1  ;;  %v1379_v60 = vpop.f32.mrf.mxu2 }
 0x272   : > { %v1311_v8 = vpop.f32.mrf.mxu0  ;;  %v7799_v59 = vmax.f32 %v1962_v51, %v2115_v16  ;;  %v7811_v14 = vmax.f32 %v11137_v61, %v7699_v10  ;;  %v1800_v51 = vsel %vm1615_vm3, %v1797_v1, %v1799_v52  ;;  %v2587_v1 = vsel %vm2490_vm4, %v2584_v27, %v2586_v24  ;;  %11139 = vst [vmem:[#allocation22_spill] sm:$0xff] %v7839_v57 }
 0x273   : > { %v7802_v7 = vmax.f32 %v1311_v8, 0.0  ;;  %v7828_v8 = vmax.f32 %v1999_v20, %v2189_v6  ;;  %v2164_v16 = vrot.slane %v7782_v46, 2  ;;  %v2191_v26 = vsel %vm1159_vm1, %v2188_v31, %v2190_v53  ;;  %v6647_v20 = vld [vmem:[%s6993_s0 + $0x120] sm:$0xff] }
 0x274   : > { %v2590_v61 = vrot.slane %v7799_v59, 4  ;;  %v2000_v27 = vmax.f32 %v7704_v11, %v1800_v51  ;;  %v1776_v4 = vsel %vm1615_vm3, %v1773_v58, %v11140_v63  ;;  %v1801_v31 = vrot.slane %v7822_v47, 1 }
 0x275   : > { %v1725_v2 = vrot.slane %v7802_v7, 1  ;;  %v2116_v21 = vrot.slane %v7802_v7, 2  ;;  %v2812_v51 = vmax.f32 %v7587_v3, %v2587_v1  ;;  %v11143_v63 = vmax.f32 %v7553_v49, %v7725_v55  ;;  %v2966_v1 = vld [vmem:[%s11129_s3 + $0x98] sm:$0xff] }
 0x276   : > { %v7848_v34 = vsel %vm2490_vm4, %v2588_v56, %v2590_v61  ;;  %v11144_v57 = vrot.slane %v7784_v22, 2  ;;  %3293 = vmatmul.f32.gmra.mxu2 %v2966_v1 }
 0x277   : > { %v1726_v23 = vsel %vm1615_vm3, %v1723_v17, %v1725_v2  ;;  %v2117_v17 = vsel %vm1159_vm1, %v2114_v62, %v2116_v21  ;;  %v11142_v62 = vrot.slane %v7759_v44, 2  ;;  %v1411_v3 = vpop.f32.mrf.mxu3 }
 0x278   : > { %v1963_v6 = vmax.f32 %v7736_v39, %v1726_v23  ;;  %v2901_v39 = vmax.f32 %v11143_v63, %v7732_v13  ;;  %v2167_v49 = vsel %vm1159_vm1, %v2164_v16, %v11144_v57  ;;  %v2192_v63 = vrot.slane %v7822_v47, 2 }
 0x279   : > { %v7866_v24 = vsel %vm1159_vm1, %v11142_v62, %v2164_v16  ;;  %v7880_v62 = vmax.f32 %v2000_v27, %v2191_v26  ;;  %v3001_v26 = vld [vmem:[%s11129_s3 + $0x1b0] sm:$0xff]  ;;  %v7897_v16 = vmax.f32 %v7793_v37, 0.0  ;;  %v7902_v1 = vmax.f32 %v1411_v3, 0.0  ;;  %v1381_v3 = vpop.f32.mrf.mxu2 }
 0x27a   : > { %v1314_v23 = vpop.f32.mrf.mxu0  ;;  %v7858_v11 = vmax.f32 %v1963_v6, %v2117_v17  ;;  %v1802_v6 = vsel %vm1615_vm3, %v1799_v52, %v1801_v31  ;;  %v1803_v17 = vrot.slane %v7842_v43, 1  ;;  %3219 = vmatmul.f32.gmra.mxu1 %v3001_v26 }
 0x27b   : > { %v7868_v58 = vmax.f32 %v1314_v23, 0.0  ;;  %v1988_v23 = vmax.f32 %v7782_v46, %v1776_v4  ;;  %v2902_v46 = vmax.f32 %v2811_v33, %v7799_v59  ;;  %v2001_v57 = vmax.f32 %v7772_v36, %v1802_v6 }
 0x27c   : > { %11141 = vst [vmem:[#allocation23_spill] sm:$0xff] %v7858_v11  ;;  %v2903_v56 = vmax.f32 %v2812_v51, %v7858_v11  ;;  %v2592_v27 = vrot.slane %v7858_v11, 4  ;;  %v2194_v4 = vrot.slane %v7842_v43, 2  ;;  %v1804_v51 = vsel %vm1615_vm3, %v1801_v31, %v1803_v17 }
 0x27d   : > { %v1727_v52 = vrot.slane %v7868_v58, 1  ;;  %v2118_v55 = vrot.slane %v7868_v58, 2  ;;  %6488 = vmatmul.msk.bf16.gmra.mxu0 %vm1010_vm2, %v6647_v20  ;;  %v2193_v33 = vsel %vm1159_vm1, %v2190_v53, %v2192_v63  ;;  %v7912_v6 = vmax.f32 %v1379_v60, 0.0 }
 0x27e   : > { %3360 = vmatpush.msrb.mxu3 %v2903_v56  ;;  %v7905_v56 = vmax.f32 %v1988_v23, %v2167_v49  ;;  %v7910_v37 = vsel %vm2490_vm4, %v2590_v61, %v2592_v27  ;;  %v11077_v31 = vrot.slane %v7902_v1, 2  ;;  %v1777_v23 = vrot.slane %v7897_v16, 1 }
 0x27f   : > { %v1728_v20 = vsel %vm1615_vm3, %v1725_v2, %v1727_v52  ;;  %v2119_v13 = vsel %vm1159_vm1, %v2116_v21, %v2118_v55  ;;  %v11078_v2 = vrot.slane %v7902_v1, 1  ;;  %v2168_v53 = vrot.slane %v7897_v16, 2  ;;  %v1414_v21 = vpop.f32.mrf.mxu3 }
 0x280   : > { %3361 = vmatpush.msrb.mxu3 %v2902_v46  ;;  %v1964_v36 = vmax.f32 %v7802_v7, %v1728_v20  ;;  %v2002_v7 = vmax.f32 %v7822_v47, %v1804_v51  ;;  %v7925_v49 = vmax.f32 %v2001_v57, %v2193_v33  ;;  %v2195_v46 = vsel %vm1159_vm1, %v2192_v63, %v2194_v4 }
 0x281   : > { %v1806_v20 = vsel %vm1615_vm3, %v1803_v17, %v11078_v2  ;;  %v2197_v47 = vsel %vm1159_vm1, %v2194_v4, %v11077_v31  ;;  %v7939_v57 = vmax.f32 %v1381_v3, 0.0  ;;  %v1779_v33 = vrot.slane %v7912_v6, 1 }
 0x282   : > { %v1316_v26 = vpop.f32.mrf.mxu0  ;;  %3362 = vmatpush.msrb.mxu3 %v2901_v39  ;;  %v7921_v61 = vmax.f32 %v1964_v36, %v2119_v13  ;;  %v2972_v39 = vld [vmem:[%s11129_s3 + $0xc8] sm:$0xff]  ;;  %v2003_v13 = vmax.f32 %v7842_v43, %v1806_v20  ;;  %v11146_v43 = vmax.f32 %v7637_v38, %v7787_v30  ;;  %v11148_v36 = vrot.slane %v7784_v22, 1 }
 0x283   : > { %v7923_v60 = vmax.f32 %v1316_v26, 0.0  ;;  %3296 = vmatmul.f32.gmra.mxu2 %v2972_v39  ;;  %v11149_v26 = vrot.slane %v7784_v22, 2  ;;  %v7965_v39 = vmax.f32 %v2002_v7, %v2195_v46  ;;  %v2170_v31 = vrot.slane %v7912_v6, 2 }
 0x284   : > { %11145 = vst [vmem:[#allocation24_spill] sm:$0xff] %v7921_v61  ;;  %3363 = vmatpush.msrb.mxu3 %v7833_v45  ;;  %v2594_v63 = vrot.slane %v7921_v61, 4  ;;  %v3007_v45 = vld [vmem:[%s11129_s3 + $0x1e0] sm:$0xff]  ;;  %v7952_v4 = vmax.f32 %v11146_v43, %v7921_v61  ;;  %v7958_v3 = vsel %vm1615_vm3, %v11148_v36, %v1777_v23  ;;  %v7970_v30 = vsel %vm1615_vm3, %v1777_v23, %v1779_v33 }
 0x285   : > { %v1729_v17 = vrot.slane %v7923_v60, 1  ;;  %v11079_v51 = vrot.slane %v7923_v60, 2  ;;  %v7963_v20 = vsel %vm1159_vm1, %v11149_v26, %v2168_v53  ;;  %3222 = vmatmul.f32.gmra.mxu1 %v3007_v45  ;;  %v1781_v36 = vrot.slane %v7939_v57, 1  ;;  %v1384_v26 = vpop.f32.mrf.mxu2 }
 0x286   : > { %11147 = vst [vmem:[#allocation25_spill] sm:$0xff] %v7952_v4  ;;  %3364 = vmatpush.msrb.mxu3 %v7811_v14  ;;  %v7972_v14 = vmax.f32 %v2003_v13, %v2197_v47  ;;  %v7979_v7 = vmax.f32 %v1414_v21, 0.0  ;;  %v7983_v45 = vsel %vm2490_vm4, %v2592_v27, %v2594_v63  ;;  %v7989_v13 = vsel %vm1159_vm1, %v2168_v53, %v2170_v31  ;;  %v2978_v27 = vld [vmem:[%s11129_s3 + $0xf8] sm:$0xff] }
 0x287   : > { %v1730_v38 = vsel %vm1615_vm3, %v1727_v52, %v1729_v17  ;;  %v2121_v43 = vsel %vm1159_vm1, %v2118_v55, %v11079_v51  ;;  %11150 = vst [vmem:[#allocation26_spill] sm:$0xff] %v7983_v45  ;;  %v6648_v52 = vld [vmem:[%s6993_s0 + $0x128] sm:$0xff]  ;;  %v2172_v55 = vrot.slane %v7939_v57, 2  ;;  %v7999_v21 = vsel %vm1615_vm3, %v1779_v33, %v1781_v36 }
 0x288   : > { %3365 = vmatpush.msrb.mxu3 %v7753_v40  ;;  %v1965_v46 = vmax.f32 %v7868_v58, %v1730_v38  ;;  %v2670_v58 = vrot.slane %v7965_v39, 4  ;;  %v2672_v23 = vrot.slane %v7972_v14, 4  ;;  %v8009_v2 = vmax.f32 %v1384_v26, 0.0 }
 0x289   : > { %v8007_v40 = vsel %vm1159_vm1, %v2170_v31, %v2172_v55  ;;  %v1807_v33 = vrot.slane %v7979_v7, 1  ;;  %v11151_v31 = vmax.f32 %v7644_v0, %v7848_v34  ;;  %v2198_v34 = vrot.slane %v7979_v7, 2 }
 0x28a   : > { %v1319_v47 = vpop.f32.mrf.mxu0  ;;  %3366 = vmatpush.msrb.mxu3 %v7716_v12  ;;  %v8001_v38 = vmax.f32 %v1965_v46, %v2121_v43  ;;  %v1416_v12 = vpop.f32.mrf.mxu3  ;;  %v2174_v4 = vrot.slane %v8009_v2, 2  ;;  %v2673_v11 = vsel %vm2490_vm4, %v2670_v58, %v2672_v23  ;;  %v11154_v61 = vrot.slane %v7923_v60, 2 }
 0x28b   : > { %v8003_v53 = vmax.f32 %v1319_v47, 0.0  ;;  %v1516_v43 = vmax.f32 %v1416_v12, 0.0  ;;  %3299 = vmatmul.f32.gmra.mxu2 %v2978_v27  ;;  %v3013_v27 = vld [vmem:[%s11129_s3 + $0x210] sm:$0xff] }
 0x28c   : > { %3367 = vmatpush.msrb.mxu3 %v7672_v9  ;;  %v11081_v46 = vrot.slane %v8001_v38, 4  ;;  %v8021_v47 = vmax.f32 %v11151_v31, %v8001_v38  ;;  %v1783_v9 = vrot.slane %v8009_v2, 1 }
 0x28d   : > { %v1731_v26 = vrot.slane %v8003_v53, 1  ;;  %6489 = vmatmul.msk.bf16.gmra.mxu0 %vm1010_vm2, %v6648_v52  ;;  %v1809_v12 = vrot.slane %v1516_v43, 1  ;;  %3225 = vmatmul.f32.gmra.mxu1 %v3013_v27  ;;  %v1386_v0 = vpop.f32.mrf.mxu2 }
 0x28e   : > { %11152 = vst [vmem:[#allocation27_spill] sm:$0xff] %v8021_v47  ;;  %3368 = vmatpush.msrb.mxu3 %v7577_v41  ;;  %v8038_v52 = vsel %vm2490_vm4, %v2594_v63, %v11081_v46  ;;  %v8042_v51 = vsel %vm1615_vm3, %v1781_v36, %v1783_v9  ;;  %v8045_v47 = vsel %vm1159_vm1, %v2172_v55, %v2174_v4  ;;  %v2200_v41 = vrot.slane %v1516_v43, 2 }
 0x28f   : > { %v1732_v31 = vsel %vm1615_vm3, %v1729_v17, %v1731_v26  ;;  %v2006_v27 = vmax.f32 %v1516_v43, %v1809_v12  ;;  %v2855_v46 = vmax.f32 %v7828_v8, %v2673_v11  ;;  %v1810_v17 = vsel %vm1615_vm3, %v1807_v33, %v1809_v12 }
 0x290   : > { %3369 = vmatpush.msrb.mxu3 %v7560_v18  ;;  %v1966_v63 = vmax.f32 %v7923_v60, %v1732_v31  ;;  %v2668_v36 = vrot.slane %v7925_v49, 4  ;;  %v11153_v55 = vrot.slane %v8003_v53, 2  ;;  %v2005_v23 = vmax.f32 %v7979_v7, %v1810_v17 }
 0x291   : > { %v2397_v43 = vmax.f32 %v2006_v27, %v2200_v41  ;;  %v11155_v11 = vmax.f32 %v7658_v25, %v7766_v28  ;;  %v1504_v60 = vmax.f32 %v1386_v0, 0.0 }
 0x292   : > { %v2123_v18 = vsel %vm1159_vm1, %v11154_v61, %v11153_v55  ;;  %v1321_v45 = vpop.f32.mrf.mxu0  ;;  %3370 = vmatpush.msrb.mxu3 %v7543_v5  ;;  %v2984_v61 = vld [vmem:[%s11129_s3 + $0x128] sm:$0xff]  ;;  %v2201_v5 = vsel %vm1159_vm1, %v2198_v34, %v2200_v41  ;;  %v2671_v27 = vsel %vm2490_vm4, %v2668_v36, %v2670_v58  ;;  %v3019_v41 = vld [vmem:[%s11129_s3 + $0x240] sm:$0xff]  ;;  %v11156_v58 = vrot.slane %v7902_v1, 1 }
 0x293   : > { %v8066_v12 = vmax.f32 %v11155_v11, %v7769_v29  ;;  %v8068_v31 = vmax.f32 %v1966_v63, %v2123_v18  ;;  %v8070_v50 = vmax.f32 %v1321_v45, 0.0  ;;  %v2946_v7 = vmax.f32 %v2855_v46, %v2397_v43  ;;  %3302 = vmatmul.f32.gmra.mxu2 %v2984_v61 }
 0x294   : > { %3371 = vmatpush.msrb.mxu3 %v7532_v54  ;;  %v2396_v25 = vmax.f32 %v2005_v23, %v2201_v5  ;;  %v2666_v29 = vrot.slane %v7880_v62, 4  ;;  %v1785_v63 = vrot.slane %v1504_v60, 1  ;;  %v2176_v17 = vrot.slane %v1504_v60, 2 }
 0x295   : > { %v2854_v28 = vmax.f32 %v8066_v12, %v2671_v27  ;;  %v1733_v45 = vrot.slane %v8070_v50, 1  ;;  %v2124_v0 = vrot.slane %v8070_v50, 2  ;;  %3228 = vmatmul.f32.gmra.mxu1 %v3019_v41  ;;  %v1808_v46 = vsel %vm1615_vm3, %v11156_v58, %v1807_v33  ;;  %v11163_v58 = vld [vmem:[#allocation17_spill] sm:$0xff] }
 0x296   : > { %3372 = vmatpush.msrb.mxu3 %v7521_v32  ;;  %v11157_v55 = vrot.slane %v7902_v1, 2  ;;  %v2664_v43 = vrot.slane %v7828_v8, 4  ;;  %v1786_v11 = vsel %vm1615_vm3, %v1783_v9, %v1785_v63  ;;  %v11158_v61 = vrot.slane %v7616_v35, 1 }
 0x297   : > { %v2945_v54 = vmax.f32 %v2854_v28, %v2396_v25  ;;  %v8094_v23 = vsel %vm1615_vm3, %v1731_v26, %v1733_v45  ;;  %v2177_v5 = vsel %vm1159_vm1, %v2174_v4, %v2176_v17  ;;  %v1993_v33 = vmax.f32 %v8009_v2, %v1786_v11  ;;  %v6649_v28 = vld [vmem:[%s6993_s0 + $0x130] sm:$0xff]  ;;  %s621_s0 = scalar_lea.vmem [#allocation5], %s620_s23 }
 0x298   : > { %v2199_v18 = vsel %vm1159_vm1, %v11157_v55, %v2198_v34  ;;  %v1788_v32 = vsel %vm1615_vm3, %v1785_v63, %v11158_v61  ;;  %3373 = vmatpush.msrb.mxu3 %v7506_v19  ;;  %v11159_v34 = vrot.slane %v7616_v35, 2  ;;  %v2004_v26 = vmax.f32 %v7902_v1, %v1808_v46  ;;  %v11161_v63 = vld [vmem:[#allocation19_spill] sm:$0xff]  ;;  %v11165_v11 = vld [vmem:[#allocation14_spill] sm:$0xff] }
 0x299   : > { %v1994_v27 = vmax.f32 %v1504_v60, %v1788_v32  ;;  %v11160_v9 = vmax.f32 %v7626_v42, %v7720_v48  ;;  %v2669_v4 = vsel %vm2490_vm4, %v2666_v29, %v2668_v36  ;;  %v11162_v19 = vld [vmem:[#allocation15_spill] sm:$0xff]  ;;  %v2667_v55 = vsel %vm2490_vm4, %v2664_v43, %v2666_v29  ;;  %v2949_v1 = vld [vmem:[%s11129_s3 + $0x10] sm:$0xff]  ;;  %v11167_v36 = vld [vmem:[#allocation16_spill] sm:$0xff] }
 0x29a   : > { %v2179_v25 = vsel %vm1159_vm1, %v2176_v17, %v11159_v34  ;;  %v11164_v2 = vmax.f32 %v11162_v19, %v11163_v58  ;;  %v1324_v17 = vpop.f32.mrf.mxu0  ;;  %3374 = vmatpush.msrb.mxu3 %v11165_v11  ;;  %v2395_v48 = vmax.f32 %v2004_v26, %v2199_v18  ;;  %v11168_v46 = vmax.f32 %v7616_v35, %v11167_v36 }
 0x29b   : > { %v8112_v41 = vmax.f32 %v11160_v9, %v7730_v15  ;;  %v8126_v42 = vmax.f32 %v1994_v27, %v2179_v25  ;;  %v11166_v15 = vld [vmem:[#allocation18_spill] sm:$0xff]  ;;  %v2662_v32 = vrot.slane %v8066_v12, 4  ;;  %v8135_v34 = vmax.f32 %v1324_v17, 0.0  ;;  %v11169_v25 = vld [vmem:[#allocation13_spill] sm:$0xff] }
 0x29c   : > { %v8119_v60 = vmax.f32 %v11164_v2, %v11161_v63  ;;  %v8132_v61 = vmax.f32 %v11168_v46, %v11166_v15  ;;  %v2990_v9 = vld [vmem:[%s11129_s3 + $0x158] sm:$0xff]  ;;  %3375 = vmatpush.msrb.mxu3 %v11169_v25  ;;  %v8145_v26 = vmax.f32 %v1993_v33, %v2177_v5 }
 0x29d   : > { %v2853_v29 = vmax.f32 %v8112_v41, %v2669_v4  ;;  %v2660_v18 = vrot.slane %v8112_v41, 4  ;;  %3305 = vmatmul.f32.gmra.mxu2 %v2990_v9  ;;  %v2665_v35 = vsel %vm2490_vm4, %v2662_v32, %v2664_v43  ;;  %v1967_v4 = vmax.f32 %v8003_v53, %v8094_v23  ;;  %6490 = vmatmul.msk.bf16.gmra.mxu0 %vm1010_vm2, %v6649_v28  ;;  %v3025_v43 = vld [vmem:[%s11129_s3 + $0x270] sm:$0xff] }
 0x29e   : > { %v2852_v27 = vmax.f32 %v8119_v60, %v2667_v55  ;;  %v2658_v63 = vrot.slane %v8119_v60, 4  ;;  %v1735_v19 = vrot.slane %v8135_v34, 1  ;;  %v2126_v58 = vrot.slane %v8135_v34, 2  ;;  %3376 = vmatmul.f32.vlgmr.msrb.gmra.mxu3 %v2949_v1  ;;  %3231 = vmatmul.f32.gmra.mxu1 %v3025_v43 }
 0x29f   : > { %v2944_v2 = vmax.f32 %v2853_v29, %v2395_v48  ;;  %6501 = vmatpush.msk.msra.mxu3 %vm1159_vm1, %v2946_v7  ;;  %v2851_v5 = vmax.f32 %v8132_v61, %v2665_v35  ;;  %v2663_v33 = vsel %vm2490_vm4, %v2660_v18, %v2662_v32  ;;  %v2656_v11 = vrot.slane %v8132_v61, 4 }
 0x2a0   : > { %v2943_v55 = vmax.f32 %v2852_v27, %v7972_v14  ;;  %v2661_v17 = vsel %vm2490_vm4, %v2658_v63, %v2660_v18  ;;  %v8163_v28 = vsel %vm1615_vm3, %v1733_v45, %v1735_v19  ;;  %v2850_v14 = vmax.f32 %v8126_v42, %v2663_v33  ;;  %v2996_v27 = vld [vmem:[%s11129_s3 + $0x188] sm:$0xff] }
 0x2a1   : > { %v2849_v1 = vmax.f32 %v8145_v26, %v2661_v17  ;;  %v11170_v7 = vmax.f32 %v7939_v57, %v8042_v51  ;;  %3642 = vmatpush.msra.mxu3 %v2945_v54  ;;  %v2942_v15 = vmax.f32 %v2851_v5, %v7965_v39  ;;  %v2659_v36 = vsel %vm2490_vm4, %v2656_v11, %v2658_v63  ;;  %v2955_v39 = vld [vmem:[%s11129_s3 + $0x40] sm:$0xff] }
 0x2a2   : > { %v11171_v45 = vmax.f32 %v7912_v6, %v7999_v21  ;;  %v2654_v32 = vrot.slane %v8126_v42, 4  ;;  %v2941_v29 = vmax.f32 %v2850_v14, %v7925_v49  ;;  %v2652_v51 = vrot.slane %v8145_v26, 4 }
 0x2a3   : > { %v8171_v48 = vmax.f32 %v11170_v7, %v8045_v47  ;;  %v2940_v9 = vmax.f32 %v2849_v1, %v7880_v62  ;;  %v1326_v47 = vpop.f32.mrf.mxu0  ;;  %3643 = vmatpush.msra.mxu3 %v2944_v2  ;;  %v2598_v14 = vrot.slane %v8068_v31, 4 }
 0x2a4   : > { %v8179_v46 = vmax.f32 %v11171_v45, %v8007_v40  ;;  %v2657_v6 = vsel %vm2490_vm4, %v2654_v32, %v2656_v11  ;;  %v11172_v40 = vmax.f32 %v7897_v16, %v7970_v30  ;;  %v8198_v54 = vmax.f32 %v1326_v47, 0.0 }
 0x2a5   : > { %v2848_v57 = vmax.f32 %v8171_v48, %v2659_v36  ;;  %v2650_v49 = vrot.slane %v8171_v48, 4  ;;  %v2655_v35 = vsel %vm2490_vm4, %v2652_v51, %v2654_v32  ;;  %3644 = vmatpush.msra.mxu3 %v2943_v55  ;;  %3308 = vmatmul.f32.gmra.mxu2 %v2996_v27  ;;  %v3031_v55 = vld [vmem:[%s11129_s3 + $0x2a0] sm:$0xff]  ;;  %v2127_v45 = vsel %vm1159_vm1, %v2124_v0, %v2126_v58 }
 0x2a6   : > { %v8194_v21 = vmax.f32 %v11172_v40, %v7989_v13  ;;  %v2648_v62 = vrot.slane %v8179_v46, 4  ;;  %v2847_v25 = vmax.f32 %v8179_v46, %v2657_v6  ;;  %v11173_v13 = vmax.f32 %v7784_v22, %v7958_v3  ;;  %3379 = vmatmul.f32.gmra.mxu3 %v2955_v39  ;;  %3234 = vmatmul.f32.gmra.mxu1 %v3031_v55  ;;  %v3002_v39 = vld [vmem:[%s11129_s3 + $0x1b8] sm:$0xff] }
 0x2a7   : > { %v2939_v18 = vmax.f32 %v2848_v57, %v7828_v8  ;;  %v1737_v8 = vrot.slane %v8198_v54, 1  ;;  %v2128_v43 = vrot.slane %v8198_v54, 2  ;;  %3645 = vmatpush.msra.mxu3 %v2942_v15  ;;  %v2653_v3 = vsel %vm2490_vm4, %v2650_v49, %v2652_v51 }
 0x2a8   : > { %v2846_v16 = vmax.f32 %v8194_v21, %v2655_v35  ;;  %v2651_v30 = vsel %vm2490_vm4, %v2648_v62, %v2650_v49  ;;  %v8212_v63 = vmax.f32 %v11173_v13, %v7963_v20  ;;  %v11085_v2 = vrot.slane %v8194_v21, 4  ;;  %v11174_v20 = vld [vmem:[#allocation22_spill] sm:$0xff]  ;;  %v11180_v49 = vld [vmem:[#allocation20_spill] sm:$0xff] }
 0x2a9   : > { %v2938_v5 = vmax.f32 %v2847_v25, %v8066_v12  ;;  %v2844_v33 = vmax.f32 %v7905_v56, %v2651_v30  ;;  %v11175_v17 = vmax.f32 %v7759_v44, %v11174_v20  ;;  %v1738_v1 = vsel %vm1615_vm3, %v1735_v19, %v1737_v8  ;;  %3646 = vmatpush.msra.mxu3 %v2941_v29  ;;  %v11183_v20 = vld [vmem:[#allocation24_spill] sm:$0xff] }
 0x2aa   : > { %v2937_v22 = vmax.f32 %v2846_v16, %v8112_v41  ;;  %v2845_v7 = vmax.f32 %v8212_v63, %v2653_v3  ;;  %v2649_v41 = vsel %vm2490_vm4, %v11085_v2, %v2648_v62  ;;  %v1969_v36 = vmax.f32 %v8135_v34, %v1738_v1  ;;  %v11184_v1 = vld [vmem:[#allocation23_spill] sm:$0xff] }
 0x2ab   : > { %v8228_v11 = vmax.f32 %v11175_v17, %v7866_v24  ;;  %v2935_v12 = vmax.f32 %v2844_v33, %v8132_v61  ;;  %v2129_v24 = vsel %vm1159_vm1, %v2126_v58, %v2128_v43  ;;  %v1968_v19 = vmax.f32 %v8070_v50, %v8163_v28  ;;  %v1329_v28 = vpop.f32.mrf.mxu0  ;;  %3647 = vmatpush.msra.mxu3 %v2940_v9  ;;  %v11178_v9 = vld [vmem:[#allocation21_spill] sm:$0xff] }
 0x2ac   : > { %v2936_v61 = vmax.f32 %v2845_v7, %v8119_v60  ;;  %v11176_v32 = vrot.slane %v8003_v53, 2  ;;  %v11177_v57 = vrot.slane %v8001_v38, 4  ;;  %v2961_v60 = vld [vmem:[%s11129_s3 + $0x70] sm:$0xff]  ;;  %v8262_v47 = vmax.f32 %v1969_v36, %v2129_v24 }
 0x2ad   : > { %v2843_v15 = vmax.f32 %v8228_v11, %v2649_v41  ;;  %3544 = vmatpush.msra.mxu2 %v2935_v12  ;;  %v8264_v58 = vmax.f32 %v1968_v19, %v2127_v45  ;;  %v2817_v40 = vmax.f32 %v11178_v9, %v8038_v52  ;;  %3648 = vmatpush.msra.mxu3 %v2939_v18  ;;  %v2967_v41 = vld [vmem:[%s11129_s3 + $0xa0] sm:$0xff] }
 0x2ae   : > { %v2125_v29 = vsel %vm1159_vm1, %v11176_v32, %v2124_v0  ;;  %v2599_v51 = vsel %vm2490_vm4, %v11177_v57, %v2598_v14  ;;  %v1481_v0 = vmax.f32 %v1329_v28, 0.0  ;;  %v2604_v53 = vrot.slane %v8262_v47, 4  ;;  %3382 = vmatmul.f32.gmra.mxu3 %v2961_v60  ;;  %3311 = vmatmul.f32.gmra.mxu2 %v3002_v39  ;;  %v3043_v19 = vld [vmem:[%s11129_s3 + $0x300] sm:$0xff]  ;;  %v2973_v28 = vld [vmem:[%s11129_s3 + $0xd0] sm:$0xff] }
 0x2af   : > { %v2934_v34 = vmax.f32 %v2843_v15, %v8126_v42  ;;  %v8269_v50 = vmax.f32 %v1967_v4, %v2125_v29  ;;  %v2818_v6 = vmax.f32 %v7799_v59, %v2599_v51  ;;  %v11179_v42 = vmax.f32 %v7699_v10, %v7910_v37  ;;  %v11181_v59 = vld [vmem:[#allocation26_spill] sm:$0xff]  ;;  %3649 = vmatpush.msra.mxu3 %v2938_v5  ;;  %v3008_v15 = vld [vmem:[%s11129_s3 + $0x1e8] sm:$0xff] }
 0x2b0   : > { %v2602_v23 = vrot.slane %v8264_v58, 4  ;;  %v11182_v27 = vmax.f32 %v11180_v49, %v11181_v59  ;;  %v1739_v52 = vrot.slane %v1481_v0, 1  ;;  %v2130_v35 = vrot.slane %v1481_v0, 2  ;;  %v3037_v10 = vld [vmem:[%s11129_s3 + $0x2d0] sm:$0xff] }
 0x2b1   : > { %v8281_v62 = vmax.f32 %v11179_v42, %v8068_v31  ;;  %3545 = vmatpush.msra.mxu2 %v2934_v34  ;;  %v2600_v4 = vrot.slane %v8269_v50, 4  ;;  %v8296_v37 = vmax.f32 %v2818_v6, %v8262_v47  ;;  %v8299_v18 = vmax.f32 %v2817_v40, %v8264_v58  ;;  %3237 = vmatmul.f32.gmra.mxu1 %v3037_v10  ;;  %v3014_v6 = vld [vmem:[%s11129_s3 + $0x218] sm:$0xff] }
 0x2b2   : > { %v8290_v25 = vmax.f32 %v11182_v27, %v8269_v50  ;;  %v8302_v16 = vsel %vm2490_vm4, %v2602_v23, %v2604_v53  ;;  %v1740_v55 = vsel %vm1615_vm3, %v1737_v8, %v1739_v52  ;;  %v2131_v33 = vsel %vm1159_vm1, %v2128_v43, %v2130_v35  ;;  %3650 = vmatpush.msra.mxu3 %v2937_v22  ;;  %v8318_v43 = vpop.f32.mrf.mxu1 }
 0x2b3   : > { %v2603_v30 = vsel %vm2490_vm4, %v2600_v4, %v2602_v23  ;;  %v2601_v13 = vsel %vm2490_vm4, %v2598_v14, %v2600_v4  ;;  %v1970_v5 = vmax.f32 %v8198_v54, %v1740_v55  ;;  %v1331_v7 = vpop.f32.mrf.mxu0 }
 0x2b4   : > { %v2820_v17 = vmax.f32 %v11183_v20, %v2603_v30  ;;  %v2819_v12 = vmax.f32 %v11184_v1, %v2601_v13  ;;  %3651 = vmatpush.msra.mxu3 %v2936_v61  ;;  %v1482_v8 = vmax.f32 %v1331_v7, 0.0  ;;  %v3020_v13 = vld [vmem:[%s11129_s3 + $0x248] sm:$0xff]  ;;  %v2985_v1 = vld [vmem:[%s11129_s3 + $0x130] sm:$0xff]  ;;  %v3026_v7 = vld [vmem:[%s11129_s3 + $0x278] sm:$0xff] }
 0x2b5   : > { %v8316_v14 = vmax.f32 %v1970_v5, %v2131_v33  ;;  %v3055_v33 = vld [vmem:[%s11129_s3 + $0x360] sm:$0xff] }
 0x2b6   : > { %v1741_v36 = vrot.slane %v1482_v8, 1  ;;  %v2132_v24 = vrot.slane %v1482_v8, 2  ;;  %3385 = vmatmul.f32.gmra.mxu3 %v2967_v41  ;;  %3314 = vmatmul.f32.gmra.mxu2 %v3008_v15  ;;  %v3061_v41 = vld [vmem:[%s11129_s3 + $0x390] sm:$0xff]  ;;  %v2991_v15 = vld [vmem:[%s11129_s3 + $0x160] sm:$0xff] }
 0x2b7   : > { %v2606_v22 = vrot.slane %v8316_v14, 4  ;;  %v8325_v54 = vmax.f32 %v2819_v12, %v8316_v14 }
 0x2b8   : > { %v1742_v45 = vsel %vm1615_vm3, %v1739_v52, %v1741_v36  ;;  %v2133_v32 = vsel %vm1159_vm1, %v2130_v35, %v2132_v24  ;;  %v2979_v35 = vld [vmem:[%s11129_s3 + $0x100] sm:$0xff] }
 0x2b9   : > { %3240 = vmatmul.f32.gmra.mxu1 %v3043_v19  ;;  %v8331_v61 = vsel %vm2490_vm4, %v2604_v53, %v2606_v22  ;;  %v1971_v57 = vmax.f32 %v1481_v0, %v1742_v45  ;;  %v3049_v53 = vld [vmem:[%s11129_s3 + $0x330] sm:$0xff] }
 0x2ba   : > { %v8344_v39 = vpop.f32.mrf.mxu1  ;;  %v2997_v45 = vld [vmem:[%s11129_s3 + $0x190] sm:$0xff] }
 0x2bb   : > { %v1334_v51 = vpop.f32.mrf.mxu0  ;;  %v8340_v60 = vmax.f32 %v1971_v57, %v2133_v32 }
 0x2bc   : > { %v8342_v34 = vmax.f32 %v1334_v51, 0.0  ;;  %v3038_v51 = vld [vmem:[%s11129_s3 + $0x2d8] sm:$0xff] }
 0x2bd   : > { %v2608_v9 = vrot.slane %v8340_v60, 4  ;;  %v8351_v40 = vmax.f32 %v2820_v17, %v8340_v60 }
 0x2be   : > { %v1743_v0 = vrot.slane %v8342_v34, 1  ;;  %v2134_v42 = vrot.slane %v8342_v34, 2  ;;  %3388 = vmatmul.f32.gmra.mxu3 %v2973_v28  ;;  %3317 = vmatmul.f32.gmra.mxu2 %v3014_v6 }
 0x2bf   : > { %v8359_v23 = vsel %vm2490_vm4, %v2606_v22, %v2608_v9 }
 0x2c0   : > { %v1744_v4 = vsel %vm1615_vm3, %v1741_v36, %v1743_v0  ;;  %v2135_v49 = vsel %vm1159_vm1, %v2132_v24, %v2134_v42  ;;  %v3032_v36 = vld [vmem:[%s11129_s3 + $0x2a8] sm:$0xff]  ;;  %v3067_v24 = vld [vmem:[%s11129_s3 + $0x3c0] sm:$0xff] }
 0x2c1   : > { %3243 = vmatmul.f32.gmra.mxu1 %v3049_v53  ;;  %v1972_v27 = vmax.f32 %v1482_v8, %v1744_v4 }
 0x2c2   : > { %v8374_v30 = vpop.f32.mrf.mxu1 }
 0x2c3   : > { %v1336_v52 = vpop.f32.mrf.mxu0  ;;  %v8372_v10 = vmax.f32 %v1972_v27, %v2135_v49 }
 0x2c4   : > { %v1484_v53 = vmax.f32 %v1336_v52, 0.0 }
 0x2c5   : > { %v11086_v55 = vrot.slane %v8372_v10, 4 }
 0x2c6   : > { %3391 = vmatmul.f32.gmra.mxu3 %v2979_v35  ;;  %3320 = vmatmul.f32.gmra.mxu2 %v3020_v13  ;;  %v1745_v35 = vrot.slane %v1484_v53, 1 }
 0x2c7   : > { %v8386_v20 = vsel %vm2490_vm4, %v2608_v9, %v11086_v55  ;;  %v3073_v9 = vld [vmem:[%s11129_s3 + $0x3f0] sm:$0xff] }
 0x2c9   : > { %3246 = vmatmul.f32.gmra.mxu1 %v3055_v33  ;;  %v3003_v33 = vld [vmem:[%s11129_s3 + $0x1c0] sm:$0xff] }
 0x2ca   : > { %v8393_v12 = vpop.f32.mrf.mxu1 }
 0x2cb   : > { %v1339_v5 = vpop.f32.mrf.mxu0 }
 0x2ce   : > { %3394 = vmatmul.f32.gmra.mxu3 %v2985_v1  ;;  %3323 = vmatmul.f32.gmra.mxu2 %v3026_v7  ;;  %v1485_v1 = vmax.f32 %v1339_v5, 0.0  ;;  %v1746_v5 = vsel %vm1615_vm3, %v1743_v0, %v1745_v35 }
 0x2cf   : > { %v1973_v2 = vmax.f32 %v8342_v34, %v1746_v5 }
 0x2d1   : > { %3249 = vmatmul.f32.gmra.mxu1 %v3061_v41 }
 0x2d2   : > { %v8404_v22 = vpop.f32.mrf.mxu1 }
 0x2d3   : > { %v1341_v8 = vpop.f32.mrf.mxu0 }
 0x2d4   : > { %v1486_v32 = vmax.f32 %v1341_v8, 0.0  ;;  %v3044_v8 = vld [vmem:[%s11129_s3 + $0x308] sm:$0xff] }
 0x2d6   : > { %3397 = vmatmul.f32.gmra.mxu3 %v2991_v15  ;;  %3326 = vmatmul.f32.gmra.mxu2 %v3032_v36  ;;  %v1749_v4 = vrot.slane %v1486_v32, 1  ;;  %v2140_v7 = vrot.slane %v1486_v32, 2 }
 0x2d9   : > { %3252 = vmatmul.f32.gmra.mxu1 %v3067_v24 }
 0x2da   : > { %v8418_v28 = vpop.f32.mrf.mxu1 }
 0x2db   : > { %v1344_v19 = vpop.f32.mrf.mxu0 }
 0x2dc   : > { %v1487_v57 = vmax.f32 %v1344_v19, 0.0  ;;  %v3079_v19 = vld [vmem:[%s11129_s3 + $0x420] sm:$0xff] }
 0x2de   : > { %v1751_v6 = vrot.slane %v1487_v57, 1  ;;  %3400 = vmatmul.f32.gmra.mxu3 %v2997_v45  ;;  %3329 = vmatmul.f32.gmra.mxu2 %v3038_v51  ;;  %v2142_v27 = vrot.slane %v1487_v57, 2  ;;  %v2136_v45 = vrot.slane %v1484_v53, 2 }
 0x2e0   : > { %v1752_v49 = vsel %vm1615_vm3, %v1749_v4, %v1751_v6  ;;  %v2143_v52 = vsel %vm1159_vm1, %v2140_v7, %v2142_v27  ;;  %v2137_v0 = vsel %vm1159_vm1, %v2134_v42, %v2136_v45 }
 0x2e1   : > { %3255 = vmatmul.f32.gmra.mxu1 %v3073_v9  ;;  %v1976_v15 = vmax.f32 %v1486_v32, %v1752_v49  ;;  %v1747_v9 = vrot.slane %v1485_v1, 1  ;;  %v8458_v34 = vmax.f32 %v1973_v2, %v2137_v0 }
 0x2e2   : > { %v8437_v51 = vpop.f32.mrf.mxu1 }
 0x2e3   : > { %v1346_v13 = vpop.f32.mrf.mxu0  ;;  %11185 = vst [vmem:[#allocation19_spill] sm:$0xff] %v8437_v51  ;;  %v1750_v3 = vsel %vm1615_vm3, %v1747_v9, %v1749_v4 }
 0x2e4   : > { %v1488_v41 = vmax.f32 %v1346_v13, 0.0  ;;  %v8441_v13 = vpop.f32.mrf.mxu2  ;;  %v1975_v42 = vmax.f32 %v1485_v1, %v1750_v3 }
 0x2e6   : > { %v1753_v36 = vrot.slane %v1488_v41, 1  ;;  %v2144_v24 = vrot.slane %v1488_v41, 2  ;;  %3403 = vmatmul.f32.gmra.mxu3 %v3003_v33  ;;  %3332 = vmatmul.f32.gmra.mxu2 %v3044_v8  ;;  %v8443_v33 = vmax.f32 %v1976_v15, %v2143_v52  ;;  %v2138_v15 = vrot.slane %v1485_v1, 2  ;;  %v3085_v1 = vld [vmem:[%s11129_s3 + $0x450] sm:$0xff] }
 0x2e8   : > { %v1754_v32 = vsel %vm1615_vm3, %v1751_v6, %v1753_v36  ;;  %v2145_v49 = vsel %vm1159_vm1, %v2142_v27, %v2144_v24  ;;  %v3009_v6 = vld [vmem:[%s11129_s3 + $0x1f0] sm:$0xff]  ;;  %v1748_v27 = vsel %vm1615_vm3, %v1745_v35, %v1747_v9  ;;  %v2141_v17 = vsel %vm1159_vm1, %v2138_v15, %v2140_v7 }
 0x2e9   : > { %3258 = vmatmul.f32.gmra.mxu1 %v3079_v19  ;;  %v1977_v8 = vmax.f32 %v1487_v57, %v1754_v32  ;;  %v2618_v57 = vrot.slane %v8443_v33, 4  ;;  %v1974_v59 = vmax.f32 %v1484_v53, %v1748_v27  ;;  %v2139_v35 = vsel %vm1159_vm1, %v2136_v45, %v2138_v15  ;;  %v3050_v53 = vld [vmem:[%s11129_s3 + $0x338] sm:$0xff] }
 0x2ea   : > { %v8469_v3 = vpop.f32.mrf.mxu1  ;;  %v8479_v45 = vmax.f32 %v1975_v42, %v2141_v17 }
 0x2eb   : > { %v1349_v29 = vpop.f32.mrf.mxu0  ;;  %v8453_v19 = vmax.f32 %v1977_v8, %v2145_v49  ;;  %11186 = vst [vmem:[#allocation15_spill] sm:$0xff] %v8469_v3 }
 0x2ec   : > { %v1489_v52 = vmax.f32 %v1349_v29, 0.0  ;;  %v8477_v7 = vpop.f32.mrf.mxu2  ;;  %v2616_v17 = vrot.slane %v8479_v45, 4 }
 0x2ed   : > { %v2620_v5 = vrot.slane %v8453_v19, 4 }
 0x2ee   : > { %v1755_v32 = vrot.slane %v1489_v52, 1  ;;  %v2146_v4 = vrot.slane %v1489_v52, 2  ;;  %3406 = vmatmul.f32.gmra.mxu3 %v3009_v6  ;;  %3335 = vmatmul.f32.gmra.mxu2 %v3050_v53 }
 0x2ef   : > { %v8462_v49 = vsel %vm2490_vm4, %v2618_v57, %v2620_v5 }
 0x2f0   : > { %v1756_v29 = vsel %vm1615_vm3, %v1753_v36, %v1755_v32  ;;  %v2147_v9 = vsel %vm1159_vm1, %v2144_v24, %v2146_v4  ;;  %v8481_v36 = vmax.f32 %v1974_v59, %v2139_v35 }
 0x2f1   : > { %v1978_v8 = vmax.f32 %v1488_v41, %v1756_v29  ;;  %3261 = vmatmul.f32.gmra.mxu1 %v3085_v1  ;;  %v3015_v41 = vld [vmem:[%s11129_s3 + $0x220] sm:$0xff] }
 0x2f2   : > { %v2614_v42 = vrot.slane %v8481_v36, 4 }
 0x2f3   : > { %v1351_v24 = vpop.f32.mrf.mxu0  ;;  %v8486_v0 = vmax.f32 %v1978_v8, %v2147_v9  ;;  %v2619_v9 = vsel %vm2490_vm4, %v2616_v17, %v2618_v57  ;;  %v2612_v57 = vrot.slane %v8458_v34, 4 }
 0x2f4   : > { %v1490_v6 = vmax.f32 %v1351_v24, 0.0  ;;  %v8499_v24 = vpop.f32.mrf.mxu1  ;;  %v8507_v2 = vpop.f32.mrf.mxu2  ;;  %v2828_v8 = vmax.f32 %v8372_v10, %v2619_v9 }
 0x2f5   : > { %v2622_v27 = vrot.slane %v8486_v0, 4  ;;  %11187 = vst [vmem:[#allocation17_spill] sm:$0xff] %v8499_v24  ;;  %v2615_v24 = vsel %vm2490_vm4, %v2612_v57, %v2614_v42 }
 0x2f6   : > { %v1757_v15 = vrot.slane %v1490_v6, 1  ;;  %v2148_v29 = vrot.slane %v1490_v6, 2  ;;  %3409 = vmatmul.f32.gmra.mxu3 %v3015_v41  ;;  %v3056_v41 = vld [vmem:[%s11129_s3 + $0x368] sm:$0xff] }
 0x2f7   : > { %v8492_v59 = vsel %vm2490_vm4, %v2620_v5, %v2622_v27  ;;  %v3091_v5 = vld [vmem:[%s11129_s3 + $0x480] sm:$0x7]  ;;  %3338 = vmatmul.f32.gmra.mxu2 %v3056_v41 }
 0x2f8   : > { %v1758_v35 = vsel %vm1615_vm3, %v1755_v32, %v1757_v15  ;;  %v2149_v53 = vsel %vm1159_vm1, %v2146_v4, %v2148_v29  ;;  %v2617_v32 = vsel %vm2490_vm4, %v2614_v42, %v2616_v17  ;;  %v2826_v42 = vmax.f32 %v8316_v14, %v2615_v24 }
 0x2f9   : > { %v1979_v1 = vmax.f32 %v1489_v52, %v1758_v35  ;;  %3264 = vmatmul.f32.gmra.mxu1 %v3091_v5  ;;  %v3021_v52 = vld [vmem:[%s11129_s3 + $0x250] sm:$0xff]  ;;  %v2827_v41 = vmax.f32 %v8340_v60, %v2617_v32 }
 0x2fb   : > { %v1354_v4 = vpop.f32.mrf.mxu0  ;;  %v8514_v35 = vmax.f32 %v1979_v1, %v2149_v53  ;;  %v11188_v53 = vrot.slane %v8372_v10, 4  ;;  %v2918_v9 = vmax.f32 %v2827_v41, %v8486_v0 }
 0x2fc   : > { %v8517_v55 = vmax.f32 %v1354_v4, 0.0  ;;  %v8546_v24 = vpop.f32.mrf.mxu1 }
 0x2fd   : > { %v2624_v3 = vrot.slane %v8514_v35, 4  ;;  %v2919_v17 = vmax.f32 %v2828_v8, %v8514_v35  ;;  %v2613_v1 = vsel %vm2490_vm4, %v11188_v53, %v2612_v57 }
 0x2fe   : > { %v11089_v5 = vrot.slane %v8517_v55, 1  ;;  %v11088_v51 = vrot.slane %v8517_v55, 2  ;;  %3412 = vmatmul.f32.gmra.mxu3 %v3021_v52  ;;  %v2917_v52 = vmax.f32 %v2826_v42, %v8453_v19  ;;  %v2825_v14 = vmax.f32 %v8262_v47, %v2613_v1 }
 0x2ff   : > { %3452 = vmatpush.msrb.mxu1 %v2919_v17  ;;  %v8531_v4 = vsel %vm2490_vm4, %v2622_v27, %v2624_v3  ;;  %v3062_v27 = vld [vmem:[%s11129_s3 + $0x398] sm:$0xff]  ;;  %v8552_v17 = vpop.f32.mrf.mxu2  ;;  %v11189_v47 = vmax.f32 %v8264_v58, %v8386_v20 }
 0x300   : > { %v1760_v60 = vsel %vm1615_vm3, %v1757_v15, %v11089_v5  ;;  %v2151_v8 = vsel %vm1159_vm1, %v2148_v29, %v11088_v51  ;;  %3341 = vmatmul.f32.gmra.mxu2 %v3062_v27  ;;  %v2916_v29 = vmax.f32 %v2825_v14, %v8443_v33  ;;  %v3068_v27 = vld [vmem:[%s11129_s3 + $0x3c8] sm:$0xff] }
 0x301   : > { %v1980_v57 = vmax.f32 %v1490_v6, %v1760_v60  ;;  %3453 = vmatpush.msrb.mxu1 %v2918_v9  ;;  %v3027_v6 = vld [vmem:[%s11129_s3 + $0x280] sm:$0xff]  ;;  %v2915_v53 = vmax.f32 %v11189_v47, %v8479_v45  ;;  %v11190_v9 = vmax.f32 %v8458_v34, %v8462_v49  ;;  %v11191_v60 = vmax.f32 %v8269_v50, %v8359_v23  ;;  %v11196_v47 = vld [vmem:[#allocation25_spill] sm:$0xff] }
 0x302   : > { %v11192_v49 = vmax.f32 %v8068_v31, %v8331_v61  ;;  %v11193_v50 = vmax.f32 %v8001_v38, %v8302_v16  ;;  %v3039_v16 = vld [vmem:[%s11129_s3 + $0x2e0] sm:$0xff]  ;;  %v3074_v61 = vld [vmem:[%s11129_s3 + $0x3f8] sm:$0xff] }
 0x303   : > { %v1356_v15 = vpop.f32.mrf.mxu0  ;;  %3454 = vmatpush.msrb.mxu1 %v2917_v52  ;;  %v8554_v41 = vmax.f32 %v1980_v57, %v2151_v8  ;;  %v2914_v8 = vmax.f32 %v11191_v60, %v8481_v36 }
 0x304   : > { %v2913_v57 = vmax.f32 %v11192_v49, %v8458_v34  ;;  %v2912_v23 = vmax.f32 %v11193_v50, %v8372_v10  ;;  %v8589_v14 = vpop.f32.mrf.mxu1 }
 0x305   : > { %3455 = vmatpush.msrb.mxu1 %v2916_v29  ;;  %v11087_v1 = vrot.slane %v8554_v41, 4  ;;  %v8565_v42 = vmax.f32 %v11190_v9, %v8554_v41  ;;  %v3286_v9 = vadd.f32 %v8441_v13, %v8318_v43 }
 0x306   : > { %3415 = vmatmul.f32.gmra.mxu3 %v3027_v6  ;;  %v3080_v6 = vld [vmem:[%s11129_s3 + $0x428] sm:$0xff] }
 0x307   : > { %3456 = vmatpush.msrb.mxu1 %v2915_v53  ;;  %v8574_v58 = vsel %vm2490_vm4, %v2624_v3, %v11087_v1  ;;  %v3033_v3 = vld [vmem:[%s11129_s3 + $0x2b0] sm:$0xff]  ;;  %v8594_v31 = vpop.f32.mrf.mxu2  ;;  %v11199_v1 = vrot.slane %v7759_v44, 1 }
 0x308   : > { %3344 = vmatmul.f32.gmra.mxu2 %v3068_v27  ;;  %v3051_v27 = vld [vmem:[%s11129_s3 + $0x340] sm:$0xff] }
 0x309   : > { %3457 = vmatpush.msrb.mxu1 %v2914_v8 }
 0x30b   : > { %v1359_v52 = vpop.f32.mrf.mxu0  ;;  %3458 = vmatpush.msrb.mxu1 %v2913_v57 }
 0x30c   : > { %v8606_v10 = vpop.f32.mrf.mxu1  ;;  %v1493_v8 = vmax.f32 %v1359_v52, 0.0  ;;  %v3086_v52 = vld [vmem:[%s11129_s3 + $0x458] sm:$0xff] }
 0x30d   : > { %3459 = vmatpush.msrb.mxu1 %v2912_v23  ;;  %11194 = vst [vmem:[#allocation14_spill] sm:$0xff] %v8606_v10  ;;  %v8631_v23 = vmax.f32 %v1356_v15, 0.0  ;;  %v2644_v15 = vrot.slane %v8212_v63, 4 }
 0x30e   : > { %3418 = vmatmul.f32.gmra.mxu3 %v3033_v3  ;;  %v2154_v5 = vrot.slane %v1493_v8, 2 }
 0x30f   : > { %3460 = vmatpush.msrb.mxu1 %v8351_v40  ;;  %v8608_v34 = vpop.f32.mrf.mxu2  ;;  %v3045_v40 = vld [vmem:[%s11129_s3 + $0x310] sm:$0xff] }
 0x310   : > { %3347 = vmatmul.f32.gmra.mxu2 %v3074_v61  ;;  %v1763_v61 = vrot.slane %v1493_v8, 1 }
 0x311   : > { %3461 = vmatpush.msrb.mxu1 %v8325_v54  ;;  %v11195_v54 = vld [vmem:[#allocation27_spill] sm:$0xff] }
 0x313   : > { %v1361_v38 = vpop.f32.mrf.mxu0  ;;  %3462 = vmatpush.msrb.mxu1 %v8296_v37 }
 0x314   : > { %v1494_v53 = vmax.f32 %v1361_v38, 0.0  ;;  %v2956_v38 = vld [vmem:[%s11129_s3 + $0x48] sm:$0xff] }
 0x315   : > { %3463 = vmatpush.msrb.mxu1 %v8299_v18  ;;  %v2950_v18 = vld [vmem:[%s11129_s3 + $0x18] sm:$0xff] }
 0x316   : > { %3421 = vmatmul.f32.gmra.mxu3 %v3039_v16  ;;  %v1765_v57 = vrot.slane %v1494_v53, 1 }
 0x317   : > { %3464 = vmatpush.msrb.mxu1 %v8290_v25  ;;  %v8623_v25 = vpop.f32.mrf.mxu1 }
 0x318   : > { %11197 = vst [vmem:[#allocation18_spill] sm:$0xff] %v8623_v25  ;;  %3350 = vmatmul.f32.gmra.mxu2 %v3080_v6  ;;  %v2642_v6 = vrot.slane %v7905_v56, 4 }
 0x319   : > { %3465 = vmatpush.msrb.mxu1 %v8281_v62  ;;  %v8625_v62 = vpop.f32.mrf.mxu2 }
 0x31b   : > { %v1364_v37 = vpop.f32.mrf.mxu0  ;;  %3466 = vmatpush.msrb.mxu1 %v11195_v54  ;;  %v2156_v54 = vrot.slane %v1494_v53, 2 }
 0x31c   : > { %v1495_v29 = vmax.f32 %v1364_v37, 0.0 }
 0x31d   : > { %3467 = vmatpush.msrb.mxu1 %v11196_v47 }
 0x31e   : > { %3424 = vmatmul.f32.gmra.mxu3 %v3045_v40  ;;  %3468 = vmatmul.f32.vlgmr.msrb.gmra.mxu1 %v2950_v18  ;;  %v1767_v60 = vrot.slane %v1495_v29, 1  ;;  %v2158_v43 = vrot.slane %v1495_v29, 2 }
 0x31f   : > { %v8647_v47 = vpop.f32.mrf.mxu1 }
 0x320   : > { %v1768_v16 = vsel %vm1615_vm3, %v1765_v57, %v1767_v60  ;;  %11198 = vst [vmem:[#allocation16_spill] sm:$0xff] %v8647_v47  ;;  %3353 = vmatmul.f32.gmra.mxu2 %v3086_v52  ;;  %v2159_v32 = vsel %vm1159_vm1, %v2156_v54, %v2158_v43  ;;  %v2640_v52 = vrot.slane %v8228_v11, 4 }
 0x321   : > { %v3377_v49 = vpop.f32.mrf.mxu3  ;;  %v8644_v37 = vpop.f32.mrf.mxu2 }
 0x322   : > { %v8629_v50 = vadd.f32 %v3377_v49, %v3286_v9  ;;  %v1761_v9 = vrot.slane %v8631_v23, 1  ;;  %v1766_v49 = vsel %vm1615_vm3, %v1763_v61, %v1765_v57 }
 0x323   : > { %v1366_v3 = vpop.f32.mrf.mxu0  ;;  %v1983_v57 = vmax.f32 %v1493_v8, %v1766_v49 }
 0x324   : > { %v1496_v13 = vmax.f32 %v1366_v3, 0.0  ;;  %v1984_v3 = vmax.f32 %v1494_v53, %v1768_v16  ;;  %v11200_v53 = vrot.slane %v7759_v44, 2  ;;  %v2962_v44 = vld [vmem:[%s11129_s3 + $0x78] sm:$0xff] }
 0x326   : > { %v1769_v40 = vrot.slane %v1496_v13, 1  ;;  %v2160_v18 = vrot.slane %v1496_v13, 2  ;;  %3427 = vmatmul.f32.gmra.mxu3 %v3051_v27  ;;  %3471 = vmatmul.f32.gmra.mxu1 %v2956_v38  ;;  %v1764_v38 = vsel %vm1615_vm3, %v1761_v9, %v1763_v61 }
 0x327   : > { %v1982_v61 = vmax.f32 %v8631_v23, %v1764_v38 }
 0x328   : > { %v1770_v20 = vsel %vm1615_vm3, %v1767_v60, %v1769_v40  ;;  %v1772_v51 = vsel %vm1615_vm3, %v1769_v40, %v11199_v1  ;;  %v2161_v27 = vsel %vm1159_vm1, %v2158_v43, %v2160_v18  ;;  %v2163_v16 = vsel %vm1159_vm1, %v2160_v18, %v11200_v53  ;;  %v3092_v18 = vld [vmem:[%s11129_s3 + $0x488] sm:$0x7] }
 0x329   : > { %v1985_v47 = vmax.f32 %v1495_v29, %v1770_v20  ;;  %v1986_v25 = vmax.f32 %v1496_v13, %v1772_v51  ;;  %v8658_v10 = vpop.f32.mrf.mxu3  ;;  %v2645_v60 = vsel %vm2490_vm4, %v2642_v6, %v2644_v15  ;;  %v2157_v1 = vsel %vm1159_vm1, %v2154_v5, %v2156_v54  ;;  %v3057_v51 = vld [vmem:[%s11129_s3 + $0x370] sm:$0xff]  ;;  %3356 = vmatmul.f32.gmra.mxu2 %v3092_v18 }
 0x32a   : > { %v8676_v20 = vmax.f32 %v1984_v3, %v2159_v32  ;;  %v11201_v29 = vrot.slane %v8517_v55, 1  ;;  %v2152_v13 = vrot.slane %v8631_v23, 2  ;;  %v8693_v3 = vpop.f32.mrf.mxu2 }
 0x32b   : > { %v8666_v40 = vmax.f32 %v1985_v47, %v2161_v27  ;;  %v8668_v43 = vmax.f32 %v1986_v25, %v2163_v16  ;;  %v11202_v25 = vrot.slane %v8194_v21, 4  ;;  %v2374_v27 = vmax.f32 %v1983_v57, %v2157_v1 }
 0x32c   : > { %v1762_v8 = vsel %vm1615_vm3, %v11201_v29, %v1761_v9  ;;  %v2155_v23 = vsel %vm1159_vm1, %v2152_v13, %v2154_v5 }
 0x32d   : > { %v2647_v54 = vsel %vm2490_vm4, %v2644_v15, %v11202_v25  ;;  %v2638_v47 = vrot.slane %v8668_v43, 4  ;;  %v2841_v49 = vmax.f32 %v8666_v40, %v2645_v60  ;;  %v2636_v9 = vrot.slane %v8666_v40, 4 }
 0x32e   : > { %v2842_v32 = vmax.f32 %v8668_v43, %v2647_v54  ;;  %3430 = vmatmul.f32.gmra.mxu3 %v3057_v51  ;;  %3474 = vmatmul.f32.gmra.mxu1 %v2962_v44  ;;  %v2643_v15 = vsel %vm2490_vm4, %v2640_v52, %v2642_v6  ;;  %v1981_v38 = vmax.f32 %v8517_v55, %v1762_v8  ;;  %v11203_v60 = vrot.slane %v8517_v55, 2  ;;  %v8706_v44 = vpop.f32.mrf.mxu1  ;;  %v2968_v54 = vld [vmem:[%s11129_s3 + $0xa8] sm:$0xff] }
 0x32f   : > { %v2840_v16 = vmax.f32 %v8676_v20, %v2643_v15  ;;  %v2641_v29 = vsel %vm2490_vm4, %v2638_v47, %v2640_v52  ;;  %v2639_v5 = vsel %vm2490_vm4, %v2636_v9, %v2638_v47  ;;  %v2634_v51 = vrot.slane %v8676_v20, 4  ;;  %11204 = vst [vmem:[#allocation13_spill] sm:$0xff] %v8706_v44 }
 0x330   : > { %v2933_v53 = vmax.f32 %v2842_v32, %v8145_v26  ;;  %v2153_v25 = vsel %vm1159_vm1, %v11203_v60, %v2152_v13  ;;  %v2932_v26 = vmax.f32 %v2841_v49, %v8171_v48  ;;  %v2839_v57 = vmax.f32 %v2374_v27, %v2641_v29  ;;  %v3063_v13 = vld [vmem:[%s11129_s3 + $0x3a0] sm:$0xff] }
 0x331   : > { %v8708_v6 = vpop.f32.mrf.mxu3  ;;  %v2373_v1 = vmax.f32 %v1982_v61, %v2155_v23  ;;  %v2637_v52 = vsel %vm2490_vm4, %v2634_v51, %v2636_v9  ;;  %v2632_v8 = vrot.slane %v2374_v27, 4  ;;  %v2931_v55 = vmax.f32 %v2840_v16, %v8179_v46 }
 0x332   : > { %3546 = vmatpush.msra.mxu2 %v2933_v53  ;;  %v2372_v47 = vmax.f32 %v1981_v38, %v2153_v25  ;;  %v2930_v61 = vmax.f32 %v2839_v57, %v8194_v21  ;;  %v8721_v49 = vpop.f32.mrf.mxu2  ;;  %v2974_v25 = vld [vmem:[%s11129_s3 + $0xd8] sm:$0xff] }
 0x333   : > { %v2838_v18 = vmax.f32 %v2373_v1, %v2639_v5  ;;  %v2635_v48 = vsel %vm2490_vm4, %v2632_v8, %v2634_v51  ;;  %v2630_v46 = vrot.slane %v2373_v1, 4  ;;  %v11206_v51 = vrot.slane %v8554_v41, 4 }
 0x334   : > { %3547 = vmatpush.msra.mxu2 %v2932_v26  ;;  %v2837_v32 = vmax.f32 %v2372_v47, %v2637_v52  ;;  %v2836_v23 = vmax.f32 %v8554_v41, %v2635_v48  ;;  %v2628_v53 = vrot.slane %v2372_v47, 4  ;;  %v11207_v41 = vmax.f32 %v8443_v33, %v8574_v58  ;;  %v2992_v48 = vld [vmem:[%s11129_s3 + $0x168] sm:$0xff] }
 0x335   : > { %v2929_v9 = vmax.f32 %v2838_v18, %v8212_v63  ;;  %v2633_v15 = vsel %vm2490_vm4, %v2630_v46, %v2632_v8  ;;  %v3069_v63 = vld [vmem:[%s11129_s3 + $0x3d0] sm:$0xff]  ;;  %v11210_v33 = vmax.f32 %v8481_v36, %v8492_v59  ;;  %v2951_v18 = vld [vmem:[%s11129_s3 + $0x20] sm:$0xff] }
 0x336   : > { %3548 = vmatpush.msra.mxu2 %v2931_v55  ;;  %3433 = vmatmul.f32.gmra.mxu3 %v3063_v13  ;;  %v2928_v16 = vmax.f32 %v2837_v32, %v7905_v56  ;;  %v2631_v21 = vsel %vm2490_vm4, %v2628_v53, %v2630_v46  ;;  %v8730_v29 = vpop.f32.mrf.mxu1  ;;  %v2927_v60 = vmax.f32 %v2836_v23, %v8228_v11  ;;  %v3093_v23 = vld [vmem:[%s11129_s3 + $0x490] sm:$0x7] }
 0x337   : > { %3477 = vmatmul.f32.gmra.mxu1 %v2968_v54  ;;  %11205 = vst [vmem:[#allocation22_spill] sm:$0xff] %v8730_v29  ;;  %v2835_v5 = vmax.f32 %v8514_v35, %v2633_v15  ;;  %v2629_v56 = vsel %vm2490_vm4, %v11206_v51, %v2628_v53  ;;  %v2834_v57 = vmax.f32 %v8486_v0, %v2631_v21  ;;  %v3075_v0 = vld [vmem:[%s11129_s3 + $0x400] sm:$0xff]  ;;  %v2998_v15 = vld [vmem:[%s11129_s3 + $0x198] sm:$0xff] }
 0x338   : > { %3549 = vmatpush.msra.mxu2 %v2930_v61  ;;  %v2833_v8 = vmax.f32 %v8453_v19, %v2629_v56  ;;  %v11209_v19 = vmax.f32 %v8479_v45, %v8531_v4  ;;  %v2921_v58 = vmax.f32 %v11210_v33, %v2372_v47  ;;  %v3081_v45 = vld [vmem:[%s11129_s3 + $0x430] sm:$0xff]  ;;  %v2986_v4 = vld [vmem:[%s11129_s3 + $0x138] sm:$0xff]  ;;  %v3087_v47 = vld [vmem:[%s11129_s3 + $0x460] sm:$0xff] }
 0x339   : > { %v8726_v38 = vpop.f32.mrf.mxu3  ;;  %v2926_v26 = vmax.f32 %v2835_v5, %v8668_v43  ;;  %v2925_v52 = vmax.f32 %v2834_v57, %v8666_v40  ;;  %v2923_v43 = vmax.f32 %v11207_v41, %v2374_v27  ;;  %v2980_v40 = vld [vmem:[%s11129_s3 + $0x108] sm:$0xff]  ;;  %v2975_v51 = vld [vmem:[%s11129_s3 + $0xe0] sm:$0xff]  ;;  %v3010_v56 = vld [vmem:[%s11129_s3 + $0x1f8] sm:$0xff] }
 0x33a   : > { %3550 = vmatpush.msra.mxu2 %v2929_v9  ;;  %v8745_v11 = vpop.f32.mrf.mxu2  ;;  %v2924_v35 = vmax.f32 %v2833_v8, %v8676_v20  ;;  %v2922_v20 = vmax.f32 %v11209_v19, %v2373_v1  ;;  %v2963_v9 = vld [vmem:[%s11129_s3 + $0x80] sm:$0xff]  ;;  %v3016_v41 = vld [vmem:[%s11129_s3 + $0x228] sm:$0xff]  ;;  %v3022_v33 = vld [vmem:[%s11129_s3 + $0x258] sm:$0xff] }
 0x33c   : > { %3551 = vmatpush.msra.mxu2 %v2928_v16  ;;  %v2969_v16 = vld [vmem:[%s11129_s3 + $0xb0] sm:$0xff] }
 0x33e   : > { %3552 = vmatpush.msra.mxu2 %v2927_v60  ;;  %3436 = vmatmul.f32.gmra.mxu3 %v3069_v63  ;;  %v8761_v13 = vpop.f32.mrf.mxu1  ;;  %v3004_v63 = vld [vmem:[%s11129_s3 + $0x1c8] sm:$0xff] }
 0x33f   : > { %3480 = vmatmul.f32.gmra.mxu1 %v2974_v25  ;;  %11208 = vst [vmem:[#allocation21_spill] sm:$0xff] %v8761_v13  ;;  %v2952_v25 = vld [vmem:[%s11129_s3 + $0x28] sm:$0xff] }
 0x340   : > { %3553 = vmatpush.msra.mxu2 %v2926_v26  ;;  %v2958_v26 = vld [vmem:[%s11129_s3 + $0x58] sm:$0xff] }
 0x341   : > { %v8749_v55 = vpop.f32.mrf.mxu3 }
 0x342   : > { %3554 = vmatpush.msra.mxu2 %v2925_v52  ;;  %v8766_v54 = vpop.f32.mrf.mxu2 }
 0x344   : > { %3555 = vmatpush.msra.mxu2 %v2924_v35  ;;  %v2981_v35 = vld [vmem:[%s11129_s3 + $0x110] sm:$0xff] }
 0x346   : > { %3556 = vmatpush.msra.mxu2 %v2923_v43  ;;  %3439 = vmatmul.f32.gmra.mxu3 %v3075_v0  ;;  %v8785_v59 = vpop.f32.mrf.mxu1  ;;  %v2964_v43 = vld [vmem:[%s11129_s3 + $0x88] sm:$0xff] }
 0x347   : > { %3483 = vmatmul.f32.gmra.mxu1 %v2980_v40  ;;  %11211 = vst [vmem:[#allocation20_spill] sm:$0xff] %v8785_v59  ;;  %v3060_v59 = vld [vmem:[%s11129_s3 + $0x388] sm:$0xff] }
 0x348   : > { %3557 = vmatpush.msra.mxu2 %v2922_v20  ;;  %v2987_v20 = vld [vmem:[%s11129_s3 + $0x140] sm:$0xff] }
 0x349   : > { %v8771_v27 = vpop.f32.mrf.mxu3 }
 0x34a   : > { %3558 = vmatpush.msra.mxu2 %v2921_v58  ;;  %v8783_v36 = vpop.f32.mrf.mxu2  ;;  %v2970_v58 = vld [vmem:[%s11129_s3 + $0xb8] sm:$0xff] }
 0x34c   : > { %3559 = vmatpush.msra.mxu2 %v8565_v42  ;;  %v2957_v42 = vld [vmem:[%s11129_s3 + $0x50] sm:$0xff] }
 0x34d   : > { %3560 = vmatmul.f32.vlgmr.msra.gmra.mxu2 %v2951_v18 }
 0x34e   : > { %3442 = vmatmul.f32.gmra.mxu3 %v3081_v45  ;;  %v8800_v32 = vpop.f32.mrf.mxu1 }
 0x34f   : > { %3486 = vmatmul.f32.gmra.mxu1 %v2986_v4  ;;  %11212 = vst [vmem:[#allocation26_spill] sm:$0xff] %v8800_v32 }
 0x351   : > { %v8787_v1 = vpop.f32.mrf.mxu3 }
 0x352   : > { %v8798_v61 = vpop.f32.mrf.mxu2 }
 0x355   : > { %3563 = vmatmul.f32.gmra.mxu2 %v2957_v42  ;;  %v2993_v42 = vld [vmem:[%s11129_s3 + $0x170] sm:$0xff] }
 0x356   : > { %3445 = vmatmul.f32.gmra.mxu3 %v3087_v47  ;;  %v8820_v60 = vpop.f32.mrf.mxu1  ;;  %v3028_v47 = vld [vmem:[%s11129_s3 + $0x288] sm:$0xff] }
 0x357   : > { %3489 = vmatmul.f32.gmra.mxu1 %v2992_v48  ;;  %11214 = vst [vmem:[#allocation23_spill] sm:$0xff] %v8820_v60  ;;  %v2976_v48 = vld [vmem:[%s11129_s3 + $0xe8] sm:$0xff] }
 0x359   : > { %v8802_v46 = vpop.f32.mrf.mxu3 }
 0x35a   : > { %v8818_v21 = vpop.f32.mrf.mxu2 }
 0x35b   : > { %11213 = vst [vmem:[#allocation24_spill] sm:$0xff] %v8818_v21 }
 0x35d   : > { %3566 = vmatmul.f32.gmra.mxu2 %v2963_v9 }
 0x35e   : > { %3448 = vmatmul.f32.gmra.mxu3 %v3093_v23  ;;  %v8842_v52 = vpop.f32.mrf.mxu1  ;;  %v2999_v23 = vld [vmem:[%s11129_s3 + $0x1a0] sm:$0xff] }
 0x35f   : > { %3492 = vmatmul.f32.gmra.mxu1 %v2998_v15  ;;  %11216 = vst [vmem:[#allocation25_spill] sm:$0xff] %v8842_v52  ;;  %v3076_v52 = vld [vmem:[%s11129_s3 + $0x408] sm:$0xff] }
 0x361   : > { %v8813_v53 = vpop.f32.mrf.mxu3 }
 0x362   : > { %v8840_v57 = vpop.f32.mrf.mxu2 }
 0x363   : > { %11215 = vst [vmem:[#allocation27_spill] sm:$0xff] %v8840_v57 }
 0x365   : > { %3569 = vmatmul.f32.gmra.mxu2 %v2969_v16 }
 0x366   : > { %6502 = vmatmul.msk.f32.vlgmr.msra.gmra.mxu3 %vm3097_vm5, %v2952_v25  ;;  %v8859_v40 = vpop.f32.mrf.mxu1  ;;  %v2982_v25 = vld [vmem:[%s11129_s3 + $0x118] sm:$0xff] }
 0x367   : > { %3495 = vmatmul.f32.gmra.mxu1 %v3004_v63  ;;  %11218 = vst [vmem:[#allocation29_spill] sm:$0xff] %v8859_v40  ;;  %v3034_v63 = vld [vmem:[%s11129_s3 + $0x2b8] sm:$0xff] }
 0x368   : > { %v3018_v40 = vld [vmem:[%s11129_s3 + $0x238] sm:$0xff] }
 0x369   : > { %v8829_v5 = vpop.f32.mrf.mxu3 }
 0x36a   : > { %v8856_v0 = vpop.f32.mrf.mxu2 }
 0x36b   : > { %11217 = vst [vmem:[#allocation28_spill] sm:$0xff] %v8856_v0 }
 0x36d   : > { %3572 = vmatmul.f32.gmra.mxu2 %v2975_v51 }
 0x36e   : > { %6503 = vmatmul.msk.f32.gmra.mxu3 %vm3097_vm5, %v2958_v26  ;;  %v8875_v45 = vpop.f32.mrf.mxu1  ;;  %v3040_v26 = vld [vmem:[%s11129_s3 + $0x2e8] sm:$0xff] }
 0x36f   : > { %3498 = vmatmul.f32.gmra.mxu1 %v3010_v56  ;;  %11220 = vst [vmem:[#allocation31_spill] sm:$0xff] %v8875_v45  ;;  %v3005_v56 = vld [vmem:[%s11129_s3 + $0x1d0] sm:$0xff] }
 0x371   : > { %v8845_v8 = vpop.f32.mrf.mxu3 }
 0x372   : > { %v8873_v18 = vpop.f32.mrf.mxu2 }
 0x373   : > { %11219 = vst [vmem:[#allocation30_spill] sm:$0xff] %v8873_v18 }
 0x375   : > { %3575 = vmatmul.f32.gmra.mxu2 %v2981_v35  ;;  %v2988_v35 = vld [vmem:[%s11129_s3 + $0x148] sm:$0xff] }
 0x376   : > { %6504 = vmatmul.msk.f32.gmra.mxu3 %vm3097_vm5, %v2964_v43  ;;  %v8896_v16 = vpop.f32.mrf.mxu1 }
 0x377   : > { %3501 = vmatmul.f32.gmra.mxu1 %v3016_v41  ;;  %11223 = vst [vmem:[#allocation34_spill] sm:$0xff] %v8896_v16 }
 0x379   : > { %v8861_v19 = vpop.f32.mrf.mxu3 }
 0x37a   : > { %v8894_v15 = vpop.f32.mrf.mxu2 }
 0x37b   : > { %11222 = vst [vmem:[#allocation33_spill] sm:$0xff] %v8894_v15 }
 0x37d   : > { %3578 = vmatmul.f32.gmra.mxu2 %v2987_v20 }
 0x37e   : > { %6505 = vmatmul.msk.f32.gmra.mxu3 %vm3097_vm5, %v2970_v58  ;;  %v8918_v43 = vpop.f32.mrf.mxu1  ;;  %v3046_v58 = vld [vmem:[%s11129_s3 + $0x318] sm:$0xff] }
 0x37f   : > { %3504 = vmatmul.f32.gmra.mxu1 %v3022_v33  ;;  %v3011_v33 = vld [vmem:[%s11129_s3 + $0x200] sm:$0xff] }
 0x381   : > { %v8877_v4 = vpop.f32.mrf.mxu3 }
 0x383   : > { %v8916_v41 = vpop.f32.mrf.mxu2 }
 0x384   : > { %11225 = vst [vmem:[#allocation36_spill] sm:$0xff] %v8916_v41  ;;  %v6814_v41 = vmov 0  }
 0x385   : > { %3581 = vmatmul.f32.gmra.mxu2 %v2993_v42  ;;  %v2994_v42 = vld [vmem:[%s11129_s3 + $0x178] sm:$0xff]  ;;  %6732 = vset.pattern.permute.xlu0 %v6814_v41 }
 0x386   : > { %6506 = vmatmul.msk.f32.gmra.mxu3 %vm3097_vm5, %v2976_v48  ;;  %6734 = vset.pattern.permute.xlu2 %v6814_v41 }
 0x387   : > { %3507 = vmatmul.f32.gmra.mxu1 %v3028_v47  ;;  %6733 = vset.pattern.permute.xlu1 %v6814_v41 }
 0x389   : > { %v8889_v9 = vpop.f32.mrf.mxu3 }
 0x38a   : > { %11221 = vst [vmem:[#allocation32_spill] sm:$0xff] %v8889_v9 }
 0x38b   : > { %v8932_v47 = vpop.f32.mrf.mxu2 }
 0x38c   : > { %11227 = vst [vmem:[#allocation38_spill] sm:$0xff] %v8932_v47 }
 0x38d   : > { %3584 = vmatmul.f32.gmra.mxu2 %v2999_v23 }
 0x38e   : > { %6507 = vmatmul.msk.f32.gmra.mxu3 %vm3097_vm5, %v2982_v25  ;;  %v3052_v25 = vld [vmem:[%s11129_s3 + $0x348] sm:$0xff] }
 0x38f   : > { %3510 = vmatmul.f32.gmra.mxu1 %v3034_v63  ;;  %v3017_v63 = vld [vmem:[%s11129_s3 + $0x230] sm:$0xff] }
 0x391   : > { %v8905_v51 = vpop.f32.mrf.mxu3 }
 0x392   : > { %11224 = vst [vmem:[#allocation35_spill] sm:$0xff] %v8905_v51 }
 0x395   : > { %3587 = vmatmul.f32.gmra.mxu2 %v3005_v56  ;;  %v3000_v56 = vld [vmem:[%s11129_s3 + $0x1a8] sm:$0xff] }
 0x396   : > { %6508 = vmatmul.msk.f32.gmra.mxu3 %vm3097_vm5, %v2988_v35 }
 0x397   : > { %3513 = vmatmul.f32.gmra.mxu1 %v3040_v26  ;;  %v8949_v26 = vpop.f32.mrf.mxu2 }
 0x398   : > { %11229 = vst [vmem:[#allocation40_spill] sm:$0xff] %v8949_v26  ;;  %v3064_v26 = vld [vmem:[%s11129_s3 + $0x3a8] sm:$0xff] }
 0x399   : > { %v8921_v20 = vpop.f32.mrf.mxu3 }
 0x39a   : > { %11226 = vst [vmem:[#allocation37_spill] sm:$0xff] %v8921_v20 }
 0x39b   : > { %v8934_v48 = vpop.f32.mrf.mxu1 }
 0x39d   : > { %3590 = vmatmul.f32.gmra.mxu2 %v3011_v33 }
 0x39e   : > { %6509 = vmatmul.msk.f32.gmra.mxu3 %vm3097_vm5, %v2994_v42  ;;  %v3058_v42 = vld [vmem:[%s11129_s3 + $0x378] sm:$0xff] }
 0x39f   : > { %3516 = vmatmul.f32.gmra.mxu1 %v3046_v58  ;;  %v3023_v58 = vld [vmem:[%s11129_s3 + $0x260] sm:$0xff]  ;;  %v8970_v16 = vpop.f32.mrf.mxu2 }
 0x3a0   : > { %11232 = vst [vmem:[#allocation43_spill] sm:$0xff] %v8970_v16  ;;  %v3070_v16 = vld [vmem:[%s11129_s3 + $0x3d8] sm:$0xff] }
 0x3a1   : > { %v8937_v23 = vpop.f32.mrf.mxu3 }
 0x3a2   : > { %11228 = vst [vmem:[#allocation39_spill] sm:$0xff] %v8937_v23 }
 0x3a3   : > { %v8951_v35 = vpop.f32.mrf.mxu1 }
 0x3a5   : > { %3593 = vmatmul.f32.gmra.mxu2 %v3017_v63  ;;  %v3006_v63 = vld [vmem:[%s11129_s3 + $0x1d8] sm:$0xff] }
 0x3a6   : > { %6510 = vmatmul.msk.f32.gmra.mxu3 %vm3097_vm5, %v3000_v56  ;;  %v3029_v56 = vld [vmem:[%s11129_s3 + $0x290] sm:$0xff] }
 0x3a7   : > { %3519 = vmatmul.f32.gmra.mxu1 %v3052_v25  ;;  %v8992_v47 = vpop.f32.mrf.mxu2 }
 0x3a8   : > { %11234 = vst [vmem:[#allocation45_spill] sm:$0xff] %v8992_v47  ;;  %v3024_v47 = vld [vmem:[%s11129_s3 + $0x268] sm:$0xff] }
 0x3a9   : > { %v8953_v33 = vpop.f32.mrf.mxu3 }
 0x3aa   : > { %11230 = vst [vmem:[#allocation41_spill] sm:$0xff] %v8953_v33  ;;  %v6666_v33 = vld [vmem:[%s11241_s7 + $0x8] sm:$0xff] }
 0x3ab   : > { %v8972_v45 = vpop.f32.mrf.mxu1  ;;  %4489 = vmatpush.bf16.msra.mxu1 %v6666_v33  ;;  %v4593_v33 = vld [vmem:[%s11236_s27 + $0x60] sm:$0xff] }
 0x3ac   : > { %4668 = vperm.xlu1 %6733, %v4593_v33  }
 0x3ad   : > { %3596 = vmatmul.f32.gmra.mxu2 %v3023_v58  ;;  %v3012_v58 = vld [vmem:[%s11129_s3 + $0x208] sm:$0xff] }
 0x3ae   : > { %6511 = vmatmul.msk.f32.gmra.mxu3 %vm3097_vm5, %v3006_v63  ;;  %v3035_v63 = vld [vmem:[%s11129_s3 + $0x2c0] sm:$0xff] }
 0x3af   : > { %3522 = vmatmul.f32.gmra.mxu1 %v3058_v42 }
 0x3b1   : > { %v8965_v25 = vpop.f32.mrf.mxu3 }
 0x3b2   : > { %11231 = vst [vmem:[#allocation42_spill] sm:$0xff] %v8965_v25  ;;  %v3042_v25 = vld [vmem:[%s11129_s3 + $0x2f8] sm:$0xff] }
 0x3b5   : > { %3599 = vmatmul.f32.gmra.mxu2 %v3029_v56  ;;  %v8994_v56 = vpop.f32.mrf.mxu1 }
 0x3b6   : > { %6512 = vmatmul.msk.f32.gmra.mxu3 %vm3097_vm5, %v3012_v58  ;;  %v3041_v58 = vld [vmem:[%s11129_s3 + $0x2f0] sm:$0xff] }
 0x3b7   : > { %3525 = vmatmul.f32.gmra.mxu1 %v3064_v26 }
 0x3b9   : > { %v8981_v42 = vpop.f32.mrf.mxu3 }
 0x3ba   : > { %11233 = vst [vmem:[#allocation44_spill] sm:$0xff] %v8981_v42  ;;  %v9008_v42 = vpop.f32.mrf.mxu2 }
 0x3bd   : > { %3602 = vmatmul.f32.gmra.mxu2 %v3035_v63 }
 0x3be   : > { %6513 = vmatmul.msk.f32.gmra.mxu3 %vm3097_vm5, %v3018_v40  ;;  %v4594_v40 = vld [vmem:[%s11236_s27 + $0x68] sm:$0xff] }
 0x3bf   : > { %3528 = vmatmul.f32.gmra.mxu1 %v3070_v16  ;;  %v9010_v16 = vpop.f32.mrf.mxu1  ;;  %4673 = vperm.xlu0 %6732, %v4594_v40  }
 0x3c1   : > { %v8997_v26 = vpop.f32.mrf.mxu3 }
 0x3c2   : > { %11235 = vst [vmem:[#allocation46_spill] sm:$0xff] %v8997_v26  ;;  %v3047_v26 = vld [vmem:[%s11129_s3 + $0x320] sm:$0xff] }
 0x3c5   : > { %3605 = vmatmul.f32.gmra.mxu2 %v3041_v58  ;;  %v6815_v58 = vmov 0.0  }
 0x3c6   : > { %6514 = vmatmul.msk.f32.gmra.mxu3 %vm3097_vm5, %v3024_v47  ;;  %v3030_v47 = vld [vmem:[%s11129_s3 + $0x298] sm:$0xff]  ;;  %3730 = vst.msk [vmem:[#allocation2 + $0x8] sm:$0xff] %vm3728_vm6, %v6815_v58 }
 0x3c7   : > { %3531 = vmatmul.f32.gmra.mxu1 %v3076_v52  ;;  %v3082_v52 = vld [vmem:[%s11129_s3 + $0x438] sm:$0xff]  ;;  %3731 = vst.msk [vmem:[#allocation2 + $0x10] sm:$0xff] %vm3728_vm6, %v6815_v58  ;;  %v9038_v40 = vpop.f32.mrf.mxu1 }
 0x3c8   : > { %3729 = vst.msk [vmem:[#allocation2] sm:$0xff] %vm3728_vm6, %v6815_v58 }
 0x3c9   : > { %v9016_v63 = vpop.f32.mrf.mxu3  ;;  %3732 = vst.msk [vmem:[#allocation2 + $0x18] sm:$0xff] %vm3728_vm6, %v6815_v58 }
 0x3ca   : > { %11237 = vst [vmem:[#allocation47_spill] sm:$0xff] %v9016_v63  ;;  %v3036_v63 = vld [vmem:[%s11129_s3 + $0x2c8] sm:$0xff] }
 0x3cb   : > { %3733 = vst.msk [vmem:[#allocation2 + $0x20] sm:$0xff] %vm3728_vm6, %v6815_v58 }
 0x3cc   : > { %3734 = vst.msk [vmem:[#allocation2 + $0x28] sm:$0xff] %vm3728_vm6, %v6815_v58 }
 0x3cd   : > { %3608 = vmatmul.f32.gmra.mxu2 %v3047_v26  ;;  %3735 = vst.msk [vmem:[#allocation2 + $0x30] sm:$0xff] %vm3728_vm6, %v6815_v58 }
 0x3ce   : > { %6515 = vmatmul.msk.f32.gmra.mxu3 %vm3097_vm5, %v3030_v47  ;;  %3736 = vst.msk [vmem:[#allocation2 + $0x38] sm:$0xff] %vm3728_vm6, %v6815_v58  ;;  %v3088_v47 = vld [vmem:[%s11129_s3 + $0x468] sm:$0xff] }
 0x3cf   : > { %3534 = vmatmul.f32.gmra.mxu1 %v3082_v52  ;;  %v3053_v52 = vld [vmem:[%s11129_s3 + $0x350] sm:$0xff]  ;;  %3737 = vst.msk [vmem:[#allocation2 + $0x40] sm:$0xff] %vm3728_vm6, %v6815_v58 }
 0x3d0   : > { %v3561_v41 = vpop.f32.mrf.mxu2  ;;  %3738 = vst.msk [vmem:[#allocation2 + $0x48] sm:$0xff] %vm3728_vm6, %v6815_v58 }
 0x3d1   : > { %v9042_v26 = vpop.f32.mrf.mxu3  ;;  %3739 = vst.msk [vmem:[#allocation2 + $0x50] sm:$0xff] %vm3728_vm6, %v6815_v58 }
 0x3d2   : > { %11238 = vst [vmem:[#allocation48_spill] sm:$0xff] %v9042_v26  ;;  %v4595_v26 = vld [vmem:[%s11236_s27 + $0x70] sm:$0xff] }
 0x3d3   : > { %4678 = vperm.xlu0 %6732, %v4595_v26   ;;  %3740 = vst.msk [vmem:[#allocation2 + $0x58] sm:$0xff] %vm3728_vm6, %v6815_v58  ;;  %v3059_v26 = vld [vmem:[%s11129_s3 + $0x380] sm:$0xff] }
 0x3d4   : > { %3741 = vst.msk [vmem:[#allocation2 + $0x60] sm:$0xff] %vm3728_vm6, %v6815_v58 }
 0x3d5   : > { %3611 = vmatmul.f32.gmra.mxu2 %v3053_v52  ;;  %3742 = vst.msk [vmem:[#allocation2 + $0x68] sm:$0xff] %vm3728_vm6, %v6815_v58 }
 0x3d6   : > { %6516 = vmatmul.msk.f32.gmra.mxu3 %vm3097_vm5, %v3036_v63  ;;  %3743 = vst.msk [vmem:[#allocation2 + $0x70] sm:$0xff] %vm3728_vm6, %v6815_v58  ;;  %v4590_v63 = vld [vmem:[%s11236_s27 + $0x48] sm:$0xff] }
 0x3d7   : > { %3537 = vmatmul.f32.gmra.mxu1 %v3088_v47  ;;  %v9085_v47 = vpop.f32.mrf.mxu1  ;;  %3744 = vst.msk [vmem:[#allocation2 + $0x78] sm:$0xff] %vm3728_vm6, %v6815_v58 }
 0x3d8   : > { %v9069_v60 = vpop.f32.mrf.mxu2  ;;  %3745 = vst.msk [vmem:[#allocation2 + $0x80] sm:$0xff] %vm3728_vm6, %v6815_v58 }
 0x3d9   : > { %v9075_v52 = vpop.f32.mrf.mxu3  ;;  %3746 = vst.msk [vmem:[#allocation2 + $0x88] sm:$0xff] %vm3728_vm6, %v6815_v58 }
 0x3da   : > { %11239 = vst [vmem:[#allocation49_spill] sm:$0xff] %v9075_v52  ;;  %v3094_v52 = vld [vmem:[%s11129_s3 + $0x498] sm:$0x7] }
 0x3db   : > { %4653 = vperm.xlu0 %6732, %v4590_v63   ;;  %3747 = vst.msk [vmem:[#allocation2 + $0x90] sm:$0xff] %vm3728_vm6, %v6815_v58 }
 0x3dc   : > { %3748 = vst.msk [vmem:[#allocation2 + $0x98] sm:$0xff] %vm3728_vm6, %v6815_v58 }
 0x3dd   : > { %3614 = vmatmul.f32.gmra.mxu2 %v3059_v26  ;;  %3749 = vst.msk [vmem:[#allocation2 + $0xa0] sm:$0xff] %vm3728_vm6, %v6815_v58  ;;  %v3358_v26 = vadd.f32 %v9008_v42, %v8918_v43  ;;  %v3048_v43 = vld [vmem:[%s11129_s3 + $0x328] sm:$0xff] }
 0x3de   : > { %6517 = vmatmul.msk.f32.gmra.mxu3 %vm3097_vm5, %v3042_v25  ;;  %3750 = vst.msk [vmem:[#allocation2 + $0xa8] sm:$0xff] %vm3728_vm6, %v6815_v58  ;;  %v4598_v25 = vld [vmem:[%s11236_s27 + $0x88] sm:$0xff] }
 0x3df   : > { %3540 = vmatmul.f32.gmra.mxu1 %v3094_v52  ;;  %v3065_v52 = vld [vmem:[%s11129_s3 + $0x3b0] sm:$0xff]  ;;  %3751 = vst.msk [vmem:[#allocation2 + $0xb0] sm:$0xff] %vm3728_vm6, %v6815_v58  ;;  %v9129_v42 = vpop.f32.mrf.mxu1 }
 0x3e0   : > { %v9104_v15 = vpop.f32.mrf.mxu2  ;;  %3752 = vst.msk [vmem:[#allocation2 + $0xb8] sm:$0xff] %vm3728_vm6, %v6815_v58 }
 0x3e1   : > { %v3449_v63 = vpop.f32.mrf.mxu3  ;;  %3753 = vst.msk [vmem:[#allocation2 + $0xc0] sm:$0xff] %vm3728_vm6, %v6815_v58 }
 0x3e2   : > { %v9120_v32 = vadd.f32 %v3449_v63, %v3358_v26  ;;  %3754 = vst.msk [vmem:[#allocation2 + $0xc8] sm:$0xff] %vm3728_vm6, %v6815_v58  ;;  %v3470_v26 = vadd.f32 %v8934_v48, %v8629_v50  ;;  %v3071_v50 = vld [vmem:[%s11129_s3 + $0x3e0] sm:$0xff]  ;;  %v4603_v48 = vld [vmem:[%s11236_s27 + $0xb0] sm:$0xff] }
 0x3e3   : > { %4693 = vperm.xlu0 %6732, %v4598_v25   ;;  %3755 = vst.msk [vmem:[#allocation2 + $0xd0] sm:$0xff] %vm3728_vm6, %v6815_v58 }
 0x3e4   : > { %11240 = vst [vmem:[#allocation50_spill] sm:$0xff] %v9120_v32 }
 0x3e5   : > { %3617 = vmatmul.f32.gmra.mxu2 %v3065_v52  ;;  %3756 = vst.msk [vmem:[#allocation2 + $0xd8] sm:$0xff] %vm3728_vm6, %v6815_v58  ;;  %v3562_v52 = vadd.f32 %v3561_v41, %v3470_v26  ;;  %v3054_v41 = vld [vmem:[%s11129_s3 + $0x358] sm:$0xff] }
 0x3e6   : > { %6518 = vmatmul.msk.f32.gmra.mxu3 %vm3097_vm5, %v3048_v43  ;;  %3757 = vst.msk [vmem:[#allocation2 + $0xe0] sm:$0xff] %vm3728_vm6, %v6815_v58  ;;  %v3289_v43 = vadd.f32 %v8477_v7, %v8344_v39  ;;  %v9167_v39 = vld [vmem:[%s11242_s5] sm:$0xff] }
 0x3e7   : > { %5711 = vst [vmem:[#allocation4] sm:$0xff] %v6815_v58  ;;  %v9209_v33 = vperm.slane %v9167_v39, 2  ;;  %v9289_v51 = vperm.slane %v9167_v39, 7 }
 0x3e8   : > { %v9140_v63 = vpop.f32.mrf.mxu2  ;;  %5712 = vst [vmem:[#allocation4 + $0x8] sm:$0xff] %v6815_v58  ;;  %v3381_v26 = vadd.f32 %v8658_v10, %v3289_v43  ;;  %v3837_v43 = vld [vmem:[#allocation2 + $0x1] sm:$0xff] }
 0x3e9   : > { %v3653_v25 = vpop.f32.mrf.mxu3  ;;  %5713 = vst [vmem:[#allocation4 + $0x10] sm:$0xff] %v6815_v58 }
 0x3ea   : > { %v3654_v32 = vadd.f32 %v3653_v25, %v3562_v52  ;;  %5714 = vst [vmem:[#allocation4 + $0x18] sm:$0xff] %v6815_v58  ;;  %v3473_v7 = vadd.f32 %v8951_v35, %v3381_v26  ;;  %v9171_v52 = vpop.f32.mrf.mxu1  ;;  %v9179_v25 = vperm.slane %v9167_v39, 0  ;;  %v3077_v26 = vld [vmem:[%s11129_s3 + $0x410] sm:$0xff] }
 0x3eb   : > { %4718 = vperm.xlu0 %6732, %v4603_v48   ;;  %5715 = vst [vmem:[#allocation4 + $0x20] sm:$0xff] %v6815_v58  ;;  %v4596_v48 = vld [vmem:[%s11236_s27 + $0x78] sm:$0xff] }
 0x3ec   : > { %3758 = vst.msk [vmem:[#allocation2 + $0x10] sm:$0xff] %vm3728_vm6, %v3654_v32  ;;  %v3786_v32 = vld [vmem:[#allocation2] sm:$0xff]  ;;  %v3565_v35 = vadd.f32 %v9069_v60, %v3473_v7  ;;  %4683 = vperm.xlu2 %6734, %v4596_v48   ;;  %v3292_v7 = vadd.f32 %v8507_v2, %v8374_v30 }
 0x3ed   : > { %3620 = vmatmul.f32.gmra.mxu2 %v3071_v50  ;;  %5716 = vst [vmem:[#allocation4 + $0x28] sm:$0xff] %v6815_v58  ;;  %v9182_v50 = vperm.slane %v9167_v39, 1  ;;  %v4585_v60 = vld [vmem:[%s11236_s27 + $0x20] sm:$0xff]  ;;  %v3812_v23 = vmul.f32 %v9179_v25, %v3786_v32 }
 0x3ee   : > { %6519 = vmatmul.msk.f32.gmra.mxu3 %vm3097_vm5, %v3054_v41  ;;  %5717 = vst [vmem:[#allocation4 + $0x30] sm:$0xff] %v6815_v58  ;;  %v3384_v0 = vadd.f32 %v8708_v6, %v3292_v7  ;;  %v3913_v30 = vld [vmem:[#allocation2 + $0x2] sm:$0xff]  ;;  %v9222_v6 = vperm.slane %v9167_v39, 3 }
 0x3ef   : > { %5718 = vst [vmem:[#allocation4 + $0x38] sm:$0xff] %v6815_v58  ;;  %v3863_v48 = vmul.f32 %v9182_v50, %v3837_v43  ;;  %v3083_v32 = vld [vmem:[%s11129_s3 + $0x440] sm:$0xff]  ;;  %v3939_v43 = vmul.f32 %v9209_v33, %v3913_v30  ;;  %v3787_v7 = vld [vmem:[#allocation2 + $0x8] sm:$0xff] }
 0x3f0   : > { %v9176_v10 = vpop.f32.mrf.mxu2  ;;  %5719 = vst [vmem:[#allocation4 + $0x40] sm:$0xff] %v6815_v58  ;;  %v3476_v2 = vadd.f32 %v8972_v45, %v3384_v0  ;;  %v4592_v0 = vld [vmem:[%s11236_s27 + $0x58] sm:$0xff]  ;;  %v4591_v45 = vld [vmem:[%s11236_s27 + $0x50] sm:$0xff] }
 0x3f1   : > { %v3656_v41 = vpop.f32.mrf.mxu3  ;;  %5720 = vst [vmem:[#allocation4 + $0x48] sm:$0xff] %v6815_v58  ;;  %4663 = vperm.xlu1 %6733, %v4592_v0  }
 0x3f2   : > { %v3657_v18 = vadd.f32 %v3656_v41, %v3565_v35  ;;  %5721 = vst [vmem:[#allocation4 + $0x50] sm:$0xff] %v6815_v58  ;;  %v3888_v35 = vadd.f32 %v3863_v48, %v3812_v23  ;;  %v3295_v48 = vadd.f32 %v8552_v17, %v8393_v12  ;;  %v9250_v12 = vperm.slane %v9167_v39, 4 }
 0x3f3   : > { %4628 = vperm.xlu0 %6732, %v4585_v60   ;;  %v3989_v41 = vld [vmem:[#allocation2 + $0xf] sm:$0xff]  ;;  %v9253_v17 = vperm.slane %v9167_v39, 5 }
 0x3f4   : > { %3759 = vst.msk [vmem:[#allocation2 + $0x18] sm:$0xff] %vm3728_vm6, %v3657_v18  ;;  %v3568_v18 = vadd.f32 %v9104_v15, %v3476_v2  ;;  %v3838_v23 = vld [vmem:[#allocation2 + $0x9] sm:$0xff]  ;;  %4658 = vperm.xlu2 %6734, %v4591_v45   ;;  %v4605_v15 = vld [vmem:[%s11236_s27 + $0xc0] sm:$0x7]  ;;  %v3066_v2 = vld [vmem:[%s11129_s3 + $0x3b8] sm:$0xff]  ;;  %v3964_v13 = vadd.f32 %v3939_v43, %v3888_v35  ;;  %v4015_v20 = vmul.f32 %v9222_v6, %v3989_v41 }
 0x3f5   : > { %3623 = vmatmul.f32.gmra.mxu2 %v3077_v26  ;;  %v9225_v26 = vpop.f32.mrf.mxu1  ;;  %v3387_v0 = vadd.f32 %v8726_v38, %v3295_v48  ;;  %v3813_v45 = vmul.f32 %v9179_v25, %v3787_v7  ;;  %v3864_v57 = vmul.f32 %v9182_v50, %v3838_v23  ;;  %v3788_v43 = vld [vmem:[#allocation2 + $0x10] sm:$0xff]  ;;  %v3298_v7 = vadd.f32 %v8594_v31, %v8404_v22 }
 0x3f6   : > { %6520 = vmatmul.msk.f32.gmra.mxu3 %vm3097_vm5, %v3060_v59  ;;  %v6665_v59 = vld [vmem:[%s11241_s7] sm:$0xff] }
 0x3f7   : > { %4490 = vmatpush.bf16.msra.mxu1 %v6665_v59  ;;  %v3479_v35 = vadd.f32 %v8994_v56, %v3387_v0  ;;  %v4040_v59 = vadd.f32 %v4015_v20, %v3964_v13  ;;  %v3889_v23 = vadd.f32 %v3864_v57, %v3813_v45  ;;  %v4589_v56 = vld [vmem:[%s11236_s27 + $0x40] sm:$0xff]  ;;  %v4069_v13 = vmul.f32 %v9250_v12, %v3788_v43 }
 0x3f8   : > { %v9215_v58 = vpop.f32.mrf.mxu2  ;;  %v9274_v20 = vperm.slane %v9167_v39, 6  ;;  %v3390_v45 = vadd.f32 %v8749_v55, %v3298_v7 }
 0x3f9   : > { %v3659_v60 = vpop.f32.mrf.mxu3  ;;  %v4094_v29 = vadd.f32 %v4069_v13, %v4040_v59 }
 0x3fa   : > { %v3660_v30 = vadd.f32 %v3659_v60, %v3568_v18  ;;  %v3571_v60 = vadd.f32 %v9140_v63, %v3479_v35  ;;  %v4583_v63 = vld [vmem:[%s11236_s27 + $0x10] sm:$0xff]  ;;  %v3072_v35 = vld [vmem:[%s11129_s3 + $0x3e8] sm:$0xff] }
 0x3fb   : > { %4728 = vperm.xlu0 %6732, %v4605_v15   ;;  %v3839_v38 = vld [vmem:[#allocation2 + $0x11] sm:$0xff]  ;;  %v4597_v15 = vld [vmem:[%s11236_s27 + $0x80] sm:$0xff] }
 0x3fc   : > { %3760 = vst.msk [vmem:[#allocation2 + $0x20] sm:$0xff] %vm3728_vm6, %v3660_v30  ;;  %v3990_v18 = vld [vmem:[#allocation2 + $0x17] sm:$0xff]  ;;  %v4123_v57 = vmul.f32 %v9253_v17, %v3839_v38  ;;  %4688 = vperm.xlu1 %6733, %v4597_v15   ;;  %4648 = vperm.xlu2 %6734, %v4589_v56   ;;  %v3865_v13 = vmul.f32 %v9182_v50, %v3839_v38 }
 0x3fd   : > { %3626 = vmatmul.f32.gmra.mxu2 %v3083_v32  ;;  %v3914_v32 = vld [vmem:[#allocation2 + $0xa] sm:$0xff]  ;;  %v4016_v0 = vmul.f32 %v9222_v6, %v3990_v18 }
 0x3fe   : > { %6521 = vmatmul.msk.f32.gmra.mxu3 %vm3097_vm5, %v3066_v2  ;;  %v3089_v30 = vld [vmem:[%s11129_s3 + $0x470] sm:$0xff]  ;;  %v9279_v2 = vpop.f32.mrf.mxu1  ;;  %v3940_v31 = vmul.f32 %v9209_v33, %v3914_v32  ;;  %v3482_v32 = vadd.f32 %v9010_v16, %v3390_v45  ;;  %v4148_v55 = vadd.f32 %v4123_v57, %v4094_v29  ;;  %v9301_v16 = vld [vmem:[%s11242_s5 + $0x8] ss:$0 sm:$0xff]  ;;  %v3301_v45 = vadd.f32 %v8608_v34, %v8418_v28  ;;  %v3078_v28 = vld [vmem:[%s11129_s3 + $0x418] sm:$0xff] }
 0x3ff   : > { %v4587_v38 = vld [vmem:[%s11236_s27 + $0x30] sm:$0xff] }
 0x400   : > { %v9257_v41 = vpop.f32.mrf.mxu2  ;;  %v3965_v15 = vadd.f32 %v3940_v31, %v3889_v23  ;;  %v3574_v23 = vadd.f32 %v9176_v10, %v3482_v32  ;;  %v4588_v10 = vld [vmem:[%s11236_s27 + $0x38] sm:$0xff] }
 0x401   : > { %v3662_v48 = vpop.f32.mrf.mxu3 }
 0x402   : > { %v3663_v22 = vadd.f32 %v3662_v48, %v3571_v60  ;;  %v3789_v60 = vld [vmem:[#allocation2 + $0x18] sm:$0xff]  ;;  %v4041_v59 = vadd.f32 %v4016_v0, %v3965_v15  ;;  %v3814_v0 = vmul.f32 %v9179_v25, %v3788_v43  ;;  %v3095_v15 = vld [vmem:[%s11129_s3 + $0x4a0] sm:$0x7]  ;;  %v3393_v43 = vadd.f32 %v8771_v27, %v3301_v45 }
 0x403   : > { %v4173_v56 = vld [vmem:[#allocation2 + $0x1e] sm:$0xff]  ;;  %4618 = vperm.xlu0 %6732, %v4583_v63   ;;  %v3915_v63 = vld [vmem:[#allocation2 + $0x12] sm:$0xff]  ;;  %v4070_v29 = vmul.f32 %v9250_v12, %v3789_v60 }
 0x404   : > { %3761 = vst.msk [vmem:[#allocation2 + $0x28] sm:$0xff] %vm3728_vm6, %v3663_v22  ;;  %v3840_v18 = vld [vmem:[#allocation2 + $0x19] sm:$0xff]  ;;  %v4199_v7 = vmul.f32 %v9274_v20, %v4173_v56  ;;  %4643 = vperm.xlu1 %6733, %v4588_v10   ;;  %4638 = vperm.xlu2 %6734, %v4587_v38   ;;  %v3890_v21 = vadd.f32 %v3865_v13, %v3814_v0 }
 0x405   : > { %3629 = vmatmul.f32.gmra.mxu2 %v3089_v30  ;;  %v3991_v48 = vld [vmem:[#allocation2 + $0x1f] sm:$0xff]  ;;  %v4124_v57 = vmul.f32 %v9253_v17, %v3840_v18  ;;  %v3941_v38 = vmul.f32 %v9209_v33, %v3915_v63 }
 0x406   : > { %6522 = vmatmul.msk.f32.gmra.mxu3 %vm3097_vm5, %v3072_v35  ;;  %v4224_v39 = vadd.f32 %v4199_v7, %v4148_v55  ;;  %v9303_v22 = vld [vmem:[#allocation2 + $0x20] sm:$0xff]  ;;  %v4253_v31 = vmul.f32 %v9289_v51, %v3991_v48  ;;  %v4095_v55 = vadd.f32 %v4070_v29, %v4041_v59  ;;  %v9330_v9 = vpop.f32.mrf.mxu1  ;;  %v4017_v27 = vmul.f32 %v9222_v6, %v3991_v48 }
 0x407   : > { %v4581_v56 = vld [vmem:[%s11236_s27] sm:$0xff]  ;;  %v4307_v10 = vmul.f32 %v9301_v16, %v9303_v22  ;;  %v3866_v29 = vmul.f32 %v9182_v50, %v3840_v18 }
 0x408   : > { %v9296_v30 = vpop.f32.mrf.mxu2  ;;  %v4278_v7 = vadd.f32 %v4253_v31, %v4224_v39  ;;  %v4149_v59 = vadd.f32 %v4124_v57, %v4095_v55  ;;  %v9344_v57 = vld [vmem:[%s11243_s6] ss:$0 sm:$0xff]  ;;  %v4602_v55 = vld [vmem:[%s11236_s27 + $0xa8] sm:$0xff] }
 0x409   : > { %v3665_v35 = vpop.f32.mrf.mxu3 }
 0x40a   : > { %v3666_v32 = vadd.f32 %v3665_v35, %v3574_v23  ;;  %v3485_v23 = vadd.f32 %v9038_v40, %v3393_v43  ;;  %v4332_v0 = vadd.f32 %v4307_v10, %v4278_v7  ;;  %v3815_v40 = vmul.f32 %v9179_v25, %v3789_v60  ;;  %v11244_v7 = vld [vmem:[#allocation19_spill] sm:$0xff] }
 0x40b   : > { %v3992_v34 = vld [vmem:[#allocation2 + $0x27] sm:$0xff]  ;;  %4608 = vperm.xlu0 %6732, %v4581_v56   ;;  %v3916_v56 = vld [vmem:[#allocation2 + $0x1a] sm:$0xff]  ;;  %v3304_v60 = vadd.f32 %v8625_v62, %v11244_v7 }
 0x40c   : > { %v4174_v44 = vld [vmem:[#allocation2 + $0x26] sm:$0xff]  ;;  %3762 = vst.msk [vmem:[#allocation2 + $0x30] sm:$0xff] %vm3728_vm6, %v3666_v32  ;;  %v4254_v31 = vmul.f32 %v9289_v51, %v3992_v34  ;;  %v3577_v35 = vadd.f32 %v9215_v58, %v3485_v23  ;;  %v4071_v58 = vmul.f32 %v9250_v12, %v9303_v22  ;;  %4713 = vperm.xlu2 %6734, %v4602_v55  }
 0x40d   : > { %3632 = vmatmul.f32.gmra.mxu2 %v3095_v15  ;;  %v4200_v13 = vmul.f32 %v9274_v20, %v4174_v44  ;;  %v9336_v39 = vld [vmem:[#allocation2 + $0x28] sm:$0xff]  ;;  %v3966_v44 = vadd.f32 %v3941_v38, %v3890_v21  ;;  %v3942_v62 = vmul.f32 %v9209_v33, %v3916_v56 }
 0x40e   : > { %6523 = vmatmul.msk.f32.gmra.mxu3 %vm3097_vm5, %v3078_v28  ;;  %v3841_v48 = vld [vmem:[#allocation2 + $0x21] sm:$0xff]  ;;  %v4308_v15 = vmul.f32 %v9301_v16, %v9336_v39  ;;  %v3891_v28 = vadd.f32 %v3866_v29, %v3815_v40  ;;  %v4018_v29 = vmul.f32 %v9222_v6, %v3992_v34 }
 0x40f   : > { %v4225_v63 = vadd.f32 %v4200_v13, %v4149_v59  ;;  %v4042_v32 = vadd.f32 %v4017_v27, %v3966_v44  ;;  %v4586_v21 = vld [vmem:[%s11236_s27 + $0x28] sm:$0xff]  ;;  %v4361_v59 = vadd.f32 %v9344_v57, %v4332_v0  ;;  %v4125_v13 = vmul.f32 %v9253_v17, %v3841_v48 }
 0x410   : > { %v9346_v45 = vpop.f32.mrf.mxu2  ;;  %4633 = vperm.xlu1 %6733, %v4586_v21   ;;  %v3396_v27 = vadd.f32 %v8787_v1, %v3304_v60  ;;  %v3084_v23 = vld [vmem:[%s11129_s3 + $0x448] sm:$0xff]  ;;  %v3867_v40 = vmul.f32 %v9182_v50, %v3841_v48  ;;  %v9374_v1 = vpop.f32.mrf.mxu1  ;;  %v3816_v48 = vmul.f32 %v9179_v25, %v9303_v22  ;;  %v11245_v22 = vld [vmem:[#allocation15_spill] sm:$0xff] }
 0x411   : > { %v4279_v18 = vadd.f32 %v4254_v31, %v4225_v63  ;;  %v3668_v43 = vpop.f32.mrf.mxu3  ;;  %v4096_v31 = vadd.f32 %v4071_v58, %v4042_v32  ;;  %v4601_v58 = vld [vmem:[%s11236_s27 + $0xa0] sm:$0xff] }
 0x412   : > { %v3669_v10 = vadd.f32 %v3668_v43, %v3577_v35  ;;  %v3488_v0 = vadd.f32 %v9085_v47, %v3396_v27  ;;  %v3967_v35 = vadd.f32 %v3942_v62, %v3891_v28  ;;  %v4604_v28 = vld [vmem:[%s11236_s27 + $0xb8] sm:$0xff]  ;;  %v3307_v27 = vadd.f32 %v8644_v37, %v11245_v22 }
 0x413   : > { %v4333_v38 = vadd.f32 %v4308_v15, %v4279_v18  ;;  %v4175_v44 = vld [vmem:[#allocation2 + $0x2e] sm:$0xff]  ;;  %v4386_v18 = vmax.f32 %v4361_v59, 0.0  ;;  %v4150_v34 = vadd.f32 %v4125_v13, %v4096_v31  ;;  %v4072_v59 = vmul.f32 %v9250_v12, %v9336_v39 }
 0x414   : > { %3763 = vst.msk [vmem:[#allocation2 + $0x38] sm:$0xff] %vm3728_vm6, %v3669_v10  ;;  %v3842_v56 = vld [vmem:[#allocation2 + $0x29] sm:$0xff]  ;;  %v4201_v21 = vmul.f32 %v9274_v20, %v4175_v44  ;;  %v4043_v32 = vadd.f32 %v4018_v29, %v3967_v35  ;;  %v3580_v60 = vadd.f32 %v9257_v41, %v3488_v0  ;;  %4723 = vperm.xlu2 %6734, %v4604_v28  }
 0x415   : > { %v4362_v63 = vadd.f32 %v9344_v57, %v4333_v38  ;;  %v3993_v55 = vld [vmem:[#allocation2 + $0x2f] sm:$0xff]  ;;  %v3917_v38 = vld [vmem:[#allocation2 + $0x22] sm:$0xff]  ;;  %v4126_v41 = vmul.f32 %v9253_v17, %v3842_v56  ;;  %v3892_v29 = vadd.f32 %v3867_v40, %v3816_v48  ;;  %v3399_v0 = vadd.f32 %v8802_v46, %v3307_v27 }
 0x416   : > { %6524 = vmatmul.msk.f32.gmra.mxu3 %vm3097_vm5, %v3084_v23  ;;  %v4226_v43 = vadd.f32 %v4201_v21, %v4150_v34  ;;  %v4255_v13 = vmul.f32 %v9289_v51, %v3993_v55  ;;  %v9396_v62 = vld [vmem:[#allocation2 + $0x30] sm:$0xff]  ;;  %v4097_v31 = vadd.f32 %v4072_v59, %v4043_v32  ;;  %v3943_v35 = vmul.f32 %v9209_v33, %v3917_v38 }
 0x417   : > { %v4387_v15 = vmax.f32 %v4362_v63, 0.0  ;;  %v3090_v63 = vld [vmem:[%s11129_s3 + $0x478] sm:$0xff]  ;;  %v4019_v37 = vmul.f32 %v9222_v6, %v3993_v55  ;;  %v3868_v34 = vmul.f32 %v9182_v50, %v3842_v56  ;;  %v3491_v32 = vadd.f32 %v9129_v42, %v3399_v0  ;;  %v3918_v42 = vld [vmem:[#allocation2 + $0x2a] sm:$0xff] }
 0x418   : > { %v9378_v7 = vpop.f32.mrf.mxu2  ;;  %4708 = vperm.xlu1 %6733, %v4601_v58   ;;  %v4280_v44 = vadd.f32 %v4255_v13, %v4226_v43  ;;  %v4151_v21 = vadd.f32 %v4126_v41, %v4097_v31  ;;  %v3817_v55 = vmul.f32 %v9179_v25, %v9336_v39  ;;  %v4600_v41 = vld [vmem:[%s11236_s27 + $0x98] sm:$0xff]  ;;  %v4073_v31 = vmul.f32 %v9250_v12, %v9396_v62  ;;  %v3096_v0 = vld [vmem:[%s11129_s3 + $0x4a8] sm:$0x7] }
 0x419   : > { %v4411_v47 = vpack.c.bf16 %v4387_v15, %v4386_v18  ;;  %v3671_v10 = vpop.f32.mrf.mxu3  ;;  %v3583_v38 = vadd.f32 %v9296_v30, %v3491_v32  ;;  %v4584_v13 = vld [vmem:[%s11236_s27 + $0x18] sm:$0xff] }
 0x41a   : > { %v3672_v23 = vadd.f32 %v3671_v10, %v3580_v60  ;;  %v4309_v60 = vmul.f32 %v9301_v16, %v9396_v62  ;;  %v9418_v10 = vpop.f32.mrf.mxu1  ;;  %v3893_v22 = vadd.f32 %v3868_v34, %v3817_v55 }
 0x41b   : > { %6535 = vmatmul.msk.bf16.vlgmr.msra.gmra.mxu1 %vm3728_vm6, %v4411_v47  ;;  %v3994_v18 = vld [vmem:[#allocation2 + $0x37] sm:$0xff]  ;;  %v3968_v47 = vadd.f32 %v3943_v35, %v3892_v29  ;;  %v11246_v29 = vld [vmem:[#allocation17_spill] sm:$0xff]  ;;  %v3944_v35 = vmul.f32 %v9209_v33, %v3918_v42 }
 0x41c   : > { %3764 = vst.msk [vmem:[#allocation2 + $0x40] sm:$0xff] %vm3728_vm6, %v3672_v23  ;;  %v4176_v15 = vld [vmem:[#allocation2 + $0x36] sm:$0xff]  ;;  %v4256_v28 = vmul.f32 %v9289_v51, %v3994_v18  ;;  %v4334_v58 = vadd.f32 %v4309_v60, %v4280_v44  ;;  %4703 = vperm.xlu2 %6734, %v4600_v41   ;;  %v3310_v30 = vadd.f32 %v8693_v3, %v11246_v29 }
 0x41d   : > { %v4202_v40 = vmul.f32 %v9274_v20, %v4176_v15  ;;  %v9411_v46 = vld [vmem:[#allocation2 + $0x38] sm:$0xff]  ;;  %v4044_v59 = vadd.f32 %v4019_v37, %v3968_v47  ;;  %v4020_v37 = vmul.f32 %v9222_v6, %v3994_v18  ;;  %v3969_v60 = vadd.f32 %v3944_v35, %v3893_v22 }
 0x41e   : > { %6525 = vmatmul.msk.f32.gmra.mxu3 %vm3097_vm5, %v3090_v63  ;;  %v3843_v43 = vld [vmem:[#allocation2 + $0x31] sm:$0xff]  ;;  %v4310_v23 = vmul.f32 %v9301_v16, %v9411_v46  ;;  %v4363_v34 = vadd.f32 %v9344_v57, %v4334_v58  ;;  %v4074_v22 = vmul.f32 %v9250_v12, %v9411_v46 }
 0x41f   : > { %v4227_v56 = vadd.f32 %v4202_v40, %v4151_v21  ;;  %v4127_v44 = vmul.f32 %v9253_v17, %v3843_v43  ;;  %v3402_v21 = vadd.f32 %v8813_v53, %v3310_v30  ;;  %v4098_v3 = vadd.f32 %v4073_v31, %v4044_v59 }
 0x420   : > { %v9413_v48 = vpop.f32.mrf.mxu2  ;;  %4623 = vperm.xlu1 %6733, %v4584_v13   ;;  %v4045_v53 = vadd.f32 %v4020_v37, %v3969_v60  ;;  %v4388_v42 = vmax.f32 %v4363_v34, 0.0  ;;  %v3818_v13 = vmul.f32 %v9179_v25, %v9396_v62 }
 0x421   : > { %v3674_v39 = vpop.f32.mrf.mxu3  ;;  %v4281_v27 = vadd.f32 %v4256_v28, %v4227_v56  ;;  %v3494_v47 = vadd.f32 %v9171_v52, %v3402_v21  ;;  %v3869_v56 = vmul.f32 %v9182_v50, %v3843_v43  ;;  %v4152_v28 = vadd.f32 %v4127_v44, %v4098_v3 }
 0x422   : > { %v3675_v63 = vadd.f32 %v3674_v39, %v3583_v38  ;;  %v4582_v39 = vld [vmem:[%s11236_s27 + $0x8] sm:$0xff]  ;;  %v9461_v62 = vpop.f32.mrf.mxu1 }
 0x423   : > { %v4335_v15 = vadd.f32 %v4310_v23, %v4281_v27  ;;  %v4177_v40 = vld [vmem:[#allocation2 + $0x3e] sm:$0xff]  ;;  %v3586_v41 = vadd.f32 %v9346_v45, %v3494_v47  ;;  %v3919_v23 = vld [vmem:[#allocation2 + $0x32] sm:$0xff]  ;;  %v3313_v45 = vadd.f32 %v8721_v49, %v8546_v24  ;;  %v3894_v31 = vadd.f32 %v3869_v56, %v3818_v13 }
 0x424   : > { %3765 = vst.msk [vmem:[#allocation2 + $0x48] sm:$0xff] %vm3728_vm6, %v3675_v63  ;;  %v3844_v55 = vld [vmem:[#allocation2 + $0x39] sm:$0xff]  ;;  %v4203_v58 = vmul.f32 %v9274_v20, %v4177_v40  ;;  %4613 = vperm.xlu2 %6734, %v4582_v39   ;;  %v3819_v56 = vmul.f32 %v9179_v25, %v9411_v46  ;;  %v3316_v46 = vadd.f32 %v8745_v11, %v8589_v14 }
 0x425   : > { %v4364_v32 = vadd.f32 %v9344_v57, %v4335_v15  ;;  %v3995_v18 = vld [vmem:[#allocation2 + $0x3f] sm:$0xff]  ;;  %v4128_v29 = vmul.f32 %v9253_v17, %v3844_v55  ;;  %v3405_v37 = vadd.f32 %v8829_v5, %v3313_v45  ;;  %v3945_v15 = vmul.f32 %v9209_v33, %v3919_v23 }
 0x426   : > { %6526 = vmatmul.msk.f32.gmra.mxu3 %vm3097_vm5, %v3096_v0  ;;  %v4228_v52 = vadd.f32 %v4203_v58, %v4152_v28  ;;  %v4257_v30 = vmul.f32 %v9289_v51, %v3995_v18  ;;  %v3794_v44 = vld [vmem:[#allocation2 + $0x40] sm:$0xff]  ;;  %v4099_v0 = vadd.f32 %v4074_v22, %v4045_v53  ;;  %v4021_v21 = vmul.f32 %v9222_v6, %v3995_v18 }
 0x427   : > { %v4389_v59 = vmax.f32 %v4364_v32, 0.0  ;;  %v3870_v24 = vmul.f32 %v9182_v50, %v3844_v55  ;;  %v4311_v60 = vmul.f32 %v9301_v16, %v3794_v44  ;;  %v3497_v32 = vadd.f32 %v9225_v26, %v3405_v37 }
 0x428   : > { %v9447_v38 = vpop.f32.mrf.mxu2  ;;  %v4282_v35 = vadd.f32 %v4257_v30, %v4228_v52  ;;  %v4153_v49 = vadd.f32 %v4128_v29, %v4099_v0  ;;  %v3970_v5 = vadd.f32 %v3945_v15, %v3894_v31  ;;  %v4075_v22 = vmul.f32 %v9250_v12, %v3794_v44 }
 0x429   : > { %v3677_v43 = vpop.f32.mrf.mxu3  ;;  %v4412_v27 = vpack.c.bf16 %v4389_v59, %v4388_v42  ;;  %v3589_v42 = vadd.f32 %v9378_v7, %v3497_v32  ;;  %v3920_v59 = vld [vmem:[#allocation2 + $0x3a] sm:$0xff]  ;;  %v3895_v13 = vadd.f32 %v3870_v24, %v3819_v56  ;;  %v3408_v45 = vadd.f32 %v8845_v8, %v3316_v46 }
 0x42a   : > { %v3678_v63 = vadd.f32 %v3677_v43, %v3586_v41  ;;  %v4336_v55 = vadd.f32 %v4311_v60, %v4282_v35  ;;  %v4046_v41 = vadd.f32 %v4021_v21, %v3970_v5  ;;  %v3946_v23 = vmul.f32 %v9209_v33, %v3920_v59 }
 0x42b   : > { %6536 = vmatmul.msk.bf16.gmra.mxu1 %vm3728_vm6, %v4412_v27  ;;  %v3996_v34 = vld [vmem:[#allocation2 + $0x47] sm:$0xff]  ;;  %v3500_v35 = vadd.f32 %v9279_v2, %v3408_v45  ;;  %v3820_v32 = vmul.f32 %v9179_v25, %v3794_v44 }
 0x42c   : > { %3766 = vst.msk [vmem:[#allocation2 + $0x50] sm:$0xff] %vm3728_vm6, %v3678_v63  ;;  %v4178_v3 = vld [vmem:[#allocation2 + $0x46] sm:$0xff]  ;;  %v4258_v53 = vmul.f32 %v9289_v51, %v3996_v34  ;;  %v4022_v7 = vmul.f32 %v9222_v6, %v3996_v34  ;;  %v4365_v30 = vadd.f32 %v9344_v57, %v4336_v55  ;;  %v9490_v63 = vpop.f32.mrf.mxu1  ;;  %v4100_v31 = vadd.f32 %v4075_v22, %v4046_v41 }
 0x42d   : > { %v4204_v40 = vmul.f32 %v9274_v20, %v4178_v3  ;;  %v9472_v47 = vld [vmem:[#allocation2 + $0x48] sm:$0xff]  ;;  %v3971_v11 = vadd.f32 %v3946_v23, %v3895_v13  ;;  %v3592_v60 = vadd.f32 %v9413_v48, %v3500_v35 }
 0x42e   : > { %v3845_v58 = vld [vmem:[#allocation2 + $0x41] sm:$0xff]  ;;  %v4312_v39 = vmul.f32 %v9301_v16, %v9472_v47  ;;  %v4076_v2 = vmul.f32 %v9250_v12, %v9472_v47 }
 0x42f   : > { %v4229_v18 = vadd.f32 %v4204_v40, %v4153_v49  ;;  %v4129_v27 = vmul.f32 %v9253_v17, %v3845_v58  ;;  %v3871_v15 = vmul.f32 %v9182_v50, %v3845_v58  ;;  %v4047_v8 = vadd.f32 %v4022_v7, %v3971_v11  ;;  %v3921_v58 = vld [vmem:[#allocation2 + $0x42] sm:$0xff] }
 0x430   : > { %v9476_v28 = vpop.f32.mrf.mxu2  ;;  %v4390_v49 = vmax.f32 %v4365_v30, 0.0 }
 0x431   : > { %v3680_v52 = vpop.f32.mrf.mxu3  ;;  %v4283_v26 = vadd.f32 %v4258_v53, %v4229_v18  ;;  %v4154_v21 = vadd.f32 %v4129_v27, %v4100_v31  ;;  %v3896_v13 = vadd.f32 %v3871_v15, %v3820_v32  ;;  %v4101_v48 = vadd.f32 %v4076_v2, %v4047_v8 }
 0x432   : > { %v3681_v43 = vadd.f32 %v3680_v52, %v3589_v42  ;;  %v11247_v42 = vld [vmem:[#allocation14_spill] sm:$0xff]  ;;  %v3821_v31 = vmul.f32 %v9179_v25, %v9472_v47 }
 0x433   : > { %v4337_v29 = vadd.f32 %v4312_v39, %v4283_v26  ;;  %v4179_v14 = vld [vmem:[#allocation2 + $0x4e] sm:$0xff]  ;;  %v3319_v59 = vadd.f32 %v8766_v54, %v11247_v42  ;;  %v3947_v39 = vmul.f32 %v9209_v33, %v3921_v58 }
 0x434   : > { %3767 = vst.msk [vmem:[#allocation2 + $0x58] sm:$0xff] %vm3728_vm6, %v3681_v43  ;;  %v3846_v37 = vld [vmem:[#allocation2 + $0x49] sm:$0xff]  ;;  %v4205_v3 = vmul.f32 %v9274_v20, %v4179_v14  ;;  %v9516_v30 = vpop.f32.mrf.mxu1 }
 0x435   : > { %v4366_v0 = vadd.f32 %v9344_v57, %v4337_v29  ;;  %v3997_v34 = vld [vmem:[#allocation2 + $0x4f] sm:$0xff]  ;;  %v4130_v53 = vmul.f32 %v9253_v17, %v3846_v37  ;;  %v3411_v26 = vadd.f32 %v8861_v19, %v3319_v59  ;;  %v3872_v27 = vmul.f32 %v9182_v50, %v3846_v37 }
 0x436   : > { %v4230_v5 = vadd.f32 %v4205_v3, %v4154_v21  ;;  %v4259_v55 = vmul.f32 %v9289_v51, %v3997_v34  ;;  %v3796_v52 = vld [vmem:[#allocation2 + $0x50] sm:$0xff]  ;;  %v4023_v43 = vmul.f32 %v9222_v6, %v3997_v34  ;;  %v3972_v45 = vadd.f32 %v3947_v39, %v3896_v13 }
 0x437   : > { %v4391_v40 = vmax.f32 %v4366_v0, 0.0  ;;  %v4155_v54 = vadd.f32 %v4130_v53, %v4101_v48  ;;  %v4313_v7 = vmul.f32 %v9301_v16, %v3796_v52  ;;  %v3503_v29 = vadd.f32 %v9330_v9, %v3411_v26  ;;  %v3922_v15 = vld [vmem:[#allocation2 + $0x4a] sm:$0xff] }
 0x438   : > { %v9497_v24 = vpop.f32.mrf.mxu2  ;;  %v4284_v44 = vadd.f32 %v4259_v55, %v4230_v5  ;;  %v4048_v34 = vadd.f32 %v4023_v43, %v3972_v45  ;;  %v3897_v21 = vadd.f32 %v3872_v27, %v3821_v31  ;;  %v4077_v32 = vmul.f32 %v9250_v12, %v3796_v52 }
 0x439   : > { %v3683_v56 = vpop.f32.mrf.mxu3  ;;  %v4413_v18 = vpack.c.bf16 %v4391_v40, %v4390_v49  ;;  %v3595_v37 = vadd.f32 %v9447_v38, %v3503_v29  ;;  %v11248_v40 = vld [vmem:[#allocation18_spill] sm:$0xff]  ;;  %v3948_v38 = vmul.f32 %v9209_v33, %v3922_v15  ;;  %v3822_v27 = vmul.f32 %v9179_v25, %v3796_v52 }
 0x43a   : > { %v3684_v41 = vadd.f32 %v3683_v56, %v3592_v60  ;;  %v4338_v35 = vadd.f32 %v4313_v7, %v4284_v44  ;;  %v3322_v47 = vadd.f32 %v8783_v36, %v11248_v40  ;;  %v4102_v53 = vadd.f32 %v4077_v32, %v4048_v34 }
 0x43b   : > { %6537 = vmatmul.msk.bf16.gmra.mxu1 %vm3728_vm6, %v4413_v18  ;;  %v3998_v46 = vld [vmem:[#allocation2 + $0x57] sm:$0xff]  ;;  %v3973_v42 = vadd.f32 %v3948_v38, %v3897_v21  ;;  %v11250_v21 = vld [vmem:[#allocation32_spill] sm:$0xff] }
 0x43c   : > { %3768 = vst.msk [vmem:[#allocation2 + $0x60] sm:$0xff] %vm3728_vm6, %v3684_v41  ;;  %v4180_v22 = vld [vmem:[#allocation2 + $0x56] sm:$0xff]  ;;  %v4260_v0 = vmul.f32 %v9289_v51, %v3998_v46  ;;  %v4024_v56 = vmul.f32 %v9222_v6, %v3998_v46  ;;  %v4367_v18 = vadd.f32 %v9344_v57, %v4338_v35  ;;  %v3414_v58 = vadd.f32 %v8877_v4, %v3322_v47  ;;  %v9541_v4 = vpop.f32.mrf.mxu1 }
 0x43d   : > { %v4206_v23 = vmul.f32 %v9274_v20, %v4180_v22  ;;  %v9518_v19 = vld [vmem:[#allocation2 + $0x58] sm:$0xff] }
 0x43e   : > { %v3847_v14 = vld [vmem:[#allocation2 + $0x51] sm:$0xff]  ;;  %v4314_v49 = vmul.f32 %v9301_v16, %v9518_v19  ;;  %v3506_v59 = vadd.f32 %v9374_v1, %v3414_v58  ;;  %v4049_v39 = vadd.f32 %v4024_v56, %v3973_v42  ;;  %v4392_v46 = vmax.f32 %v4367_v18, 0.0 }
 0x43f   : > { %v4231_v11 = vadd.f32 %v4206_v23, %v4155_v54  ;;  %v4131_v5 = vmul.f32 %v9253_v17, %v3847_v14  ;;  %v3873_v13 = vmul.f32 %v9182_v50, %v3847_v14  ;;  %v4078_v1 = vmul.f32 %v9250_v12, %v9518_v19  ;;  %v3923_v29 = vld [vmem:[#allocation2 + $0x52] sm:$0xff]  ;;  %v9549_v14 = vpop.permute.xlu0 %4673 }
 0x440   : > { %v9524_v3 = vpop.f32.mrf.mxu2  ;;  %v3598_v22 = vadd.f32 %v9476_v28, %v3506_v59  ;;  %v3823_v18 = vmul.f32 %v9179_v25, %v9518_v19 }
 0x441   : > { %v3686_v9 = vpop.f32.mrf.mxu3  ;;  %v4285_v8 = vadd.f32 %v4260_v0, %v4231_v11  ;;  %v4156_v44 = vadd.f32 %v4131_v5, %v4102_v53  ;;  %v11249_v11 = vld [vmem:[#allocation16_spill] sm:$0xff]  ;;  %v3898_v28 = vadd.f32 %v3873_v13, %v3822_v27  ;;  %v4103_v15 = vadd.f32 %v4078_v1, %v4049_v39 }
 0x442   : > { %v3687_v60 = vadd.f32 %v3686_v9, %v3595_v37  ;;  %v3325_v0 = vadd.f32 %v8798_v61, %v11249_v11  ;;  %v11252_v39 = vld [vmem:[#allocation24_spill] sm:$0xff] }
 0x443   : > { %v4339_v2 = vadd.f32 %v4314_v49, %v4285_v8  ;;  %v4181_v55 = vld [vmem:[#allocation2 + $0x5e] sm:$0xff]  ;;  %v3949_v8 = vmul.f32 %v9209_v33, %v3923_v29 }
 0x444   : > { %3769 = vst.msk [vmem:[#allocation2 + $0x68] sm:$0xff] %vm3728_vm6, %v3687_v60  ;;  %v3848_v41 = vld [vmem:[#allocation2 + $0x59] sm:$0xff]  ;;  %v4207_v26 = vmul.f32 %v9274_v20, %v4181_v55  ;;  %v3417_v9 = vadd.f32 %v11250_v21, %v3325_v0 }
 0x445   : > { %v4368_v36 = vadd.f32 %v9344_v57, %v4339_v2  ;;  %v3999_v48 = vld [vmem:[#allocation2 + $0x5f] sm:$0xff]  ;;  %v4132_v45 = vmul.f32 %v9253_v17, %v3848_v41  ;;  %v3874_v61 = vmul.f32 %v9182_v50, %v3848_v41  ;;  %v3974_v2 = vadd.f32 %v3949_v8, %v3898_v28 }
 0x446   : > { %v4232_v54 = vadd.f32 %v4207_v26, %v4156_v44  ;;  %v4261_v31 = vmul.f32 %v9289_v51, %v3999_v48  ;;  %v3798_v37 = vld [vmem:[#allocation2 + $0x60] sm:$0xff]  ;;  %v4025_v40 = vmul.f32 %v9222_v6, %v3999_v48  ;;  %v3509_v38 = vadd.f32 %v9418_v10, %v3417_v9  ;;  %v11251_v26 = vld [vmem:[#allocation13_spill] sm:$0xff] }
 0x447   : > { %v4393_v43 = vmax.f32 %v4368_v36, 0.0  ;;  %v4157_v60 = vadd.f32 %v4132_v45, %v4103_v15  ;;  %v4315_v5 = vmul.f32 %v9301_v16, %v3798_v37  ;;  %v3924_v59 = vld [vmem:[#allocation2 + $0x5a] sm:$0xff]  ;;  %v3899_v13 = vadd.f32 %v3874_v61, %v3823_v18 }
 0x448   : > { %v9553_v52 = vpop.f32.mrf.mxu2  ;;  %v4286_v34 = vadd.f32 %v4261_v31, %v4232_v54  ;;  %v3601_v36 = vadd.f32 %v9497_v24, %v3509_v38  ;;  %v4050_v41 = vadd.f32 %v4025_v40, %v3974_v2  ;;  %v3950_v24 = vmul.f32 %v9209_v33, %v3924_v59  ;;  %v11253_v29 = vld [vmem:[#allocation35_spill] sm:$0xff] }
 0x449   : > { %v3689_v23 = vpop.f32.mrf.mxu3  ;;  %v4414_v7 = vpack.c.bf16 %v4393_v43, %v4392_v46  ;;  %v3328_v46 = vadd.f32 %v11252_v39, %v11251_v26  ;;  %v9574_v43 = vpop.f32.mrf.mxu1  ;;  %v3824_v21 = vmul.f32 %v9179_v25, %v3798_v37  ;;  %v11256_v26 = vld [vmem:[#allocation37_spill] sm:$0xff] }
 0x44a   : > { %v3690_v35 = vadd.f32 %v3689_v23, %v3598_v22  ;;  %v4340_v42 = vadd.f32 %v4315_v5, %v4286_v34  ;;  %v4079_v22 = vmul.f32 %v9250_v12, %v3798_v37  ;;  %v3975_v28 = vadd.f32 %v3950_v24, %v3899_v13 }
 0x44b   : > { %6538 = vmatmul.msk.bf16.gmra.mxu1 %vm3728_vm6, %v4414_v7  ;;  %v4000_v49 = vld [vmem:[#allocation2 + $0x67] sm:$0xff]  ;;  %v9581_v7 = vpop.permute.xlu0 %4678  ;;  %v3420_v45 = vadd.f32 %v11253_v29, %v3328_v46 }
 0x44c   : > { %3770 = vst.msk [vmem:[#allocation2 + $0x70] sm:$0xff] %vm3728_vm6, %v3690_v35  ;;  %v4182_v47 = vld [vmem:[#allocation2 + $0x66] sm:$0xff]  ;;  %v4262_v55 = vmul.f32 %v9289_v51, %v4000_v49  ;;  %v4026_v54 = vmul.f32 %v9222_v6, %v4000_v49  ;;  %v4369_v1 = vadd.f32 %v9344_v57, %v4340_v42  ;;  %v4104_v11 = vadd.f32 %v4079_v22, %v4050_v41  ;;  %v11255_v42 = vld [vmem:[#allocation27_spill] sm:$0xff] }
 0x44d   : > { %v4208_v32 = vmul.f32 %v9274_v20, %v4182_v47  ;;  %v9564_v56 = vld [vmem:[#allocation2 + $0x68] sm:$0xff]  ;;  %v3512_v34 = vadd.f32 %v9461_v62, %v3420_v45 }
 0x44e   : > { %v3849_v58 = vld [vmem:[#allocation2 + $0x61] sm:$0xff]  ;;  %v4316_v10 = vmul.f32 %v9301_v16, %v9564_v56  ;;  %v4051_v47 = vadd.f32 %v4026_v54, %v3975_v28  ;;  %v4394_v61 = vmax.f32 %v4369_v1, 0.0 }
 0x44f   : > { %v4233_v53 = vadd.f32 %v4208_v32, %v4157_v60  ;;  %v4133_v27 = vmul.f32 %v9253_v17, %v3849_v58  ;;  %v3875_v31 = vmul.f32 %v9182_v50, %v3849_v58  ;;  %v3925_v32 = vld [vmem:[#allocation2 + $0x62] sm:$0xff]  ;;  %v3604_v5 = vadd.f32 %v9524_v3, %v3512_v34 }
 0x450   : > { %v9586_v35 = vpop.f32.mrf.mxu2  ;;  %v4080_v58 = vmul.f32 %v9250_v12, %v9564_v56  ;;  %v3951_v13 = vmul.f32 %v9209_v33, %v3925_v32  ;;  %v11257_v32 = vld [vmem:[#allocation21_spill] sm:$0xff] }
 0x451   : > { %v3692_v48 = vpop.f32.mrf.mxu3  ;;  %v4287_v44 = vadd.f32 %v4262_v55, %v4233_v53  ;;  %v4158_v49 = vadd.f32 %v4133_v27, %v4104_v11  ;;  %v3900_v38 = vadd.f32 %v3875_v31, %v3824_v21  ;;  %v11254_v55 = vld [vmem:[#allocation22_spill] sm:$0xff]  ;;  %v9605_v46 = vpop.f32.mrf.mxu1  ;;  %v3825_v31 = vmul.f32 %v9179_v25, %v9564_v56 }
 0x452   : > { %v3693_v19 = vadd.f32 %v3692_v48, %v3601_v36  ;;  %v3331_v36 = vadd.f32 %v11255_v42, %v11254_v55  ;;  %v4105_v48 = vadd.f32 %v4080_v58, %v4051_v47 }
 0x453   : > { %v4341_v23 = vadd.f32 %v4316_v10, %v4287_v44  ;;  %v4183_v0 = vld [vmem:[#allocation2 + $0x6e] sm:$0xff]  ;;  %v9602_v10 = vpop.permute.xlu2 %4683  ;;  %v9611_v29 = vpop.permute.xlu0 %4653 }
 0x454   : > { %3771 = vst.msk [vmem:[#allocation2 + $0x78] sm:$0xff] %vm3728_vm6, %v3693_v19  ;;  %v3850_v9 = vld [vmem:[#allocation2 + $0x69] sm:$0xff]  ;;  %v4209_v40 = vmul.f32 %v9274_v20, %v4183_v0  ;;  %v3423_v39 = vadd.f32 %v11256_v26, %v3331_v36  ;;  %v3976_v19 = vadd.f32 %v3951_v13, %v3900_v38 }
 0x455   : > { %v4370_v15 = vadd.f32 %v9344_v57, %v4341_v23  ;;  %v4001_v8 = vld [vmem:[#allocation2 + $0x6f] sm:$0xff]  ;;  %v4134_v37 = vmul.f32 %v9253_v17, %v3850_v9  ;;  %v3876_v24 = vmul.f32 %v9182_v50, %v3850_v9 }
 0x456   : > { %v4234_v2 = vadd.f32 %v4209_v40, %v4158_v49  ;;  %v4263_v53 = vmul.f32 %v9289_v51, %v4001_v8  ;;  %v3800_v41 = vld [vmem:[#allocation2 + $0x70] sm:$0xff]  ;;  %v4027_v3 = vmul.f32 %v9222_v6, %v4001_v8  ;;  %v3515_v45 = vadd.f32 %v9490_v63, %v3423_v39 }
 0x457   : > { %v4395_v60 = vmax.f32 %v4370_v15, 0.0  ;;  %v4159_v54 = vadd.f32 %v4134_v37, %v4105_v48  ;;  %v4317_v1 = vmul.f32 %v9301_v16, %v3800_v41  ;;  %v3926_v15 = vld [vmem:[#allocation2 + $0x6a] sm:$0xff]  ;;  %v4081_v40 = vmul.f32 %v9250_v12, %v3800_v41 }
 0x458   : > { %v4288_v44 = vadd.f32 %v4263_v53, %v4234_v2  ;;  %v9618_v28 = vpop.f32.mrf.mxu2  ;;  %v4052_v34 = vadd.f32 %v4027_v3, %v3976_v19  ;;  %v3607_v49 = vadd.f32 %v9553_v52, %v3515_v45  ;;  %v3901_v47 = vadd.f32 %v3876_v24, %v3825_v31  ;;  %v11259_v53 = vld [vmem:[#allocation39_spill] sm:$0xff] }
 0x459   : > { %v3695_v18 = vpop.f32.mrf.mxu3  ;;  %v4415_v62 = vpack.c.bf16 %v4395_v60, %v4394_v61  ;;  %v9639_v39 = vpop.f32.mrf.mxu1  ;;  %v3826_v19 = vmul.f32 %v9179_v25, %v3800_v41 }
 0x45a   : > { %v3696_v59 = vadd.f32 %v3695_v18, %v3604_v5  ;;  %v4342_v8 = vadd.f32 %v4317_v1, %v4288_v44  ;;  %v11258_v5 = vld [vmem:[#allocation28_spill] sm:$0xff]  ;;  %v3952_v18 = vmul.f32 %v9209_v33, %v3926_v15  ;;  %v4106_v37 = vadd.f32 %v4081_v40, %v4052_v34  ;;  %v11261_v40 = vld [vmem:[#allocation30_spill] sm:$0xff] }
 0x45b   : > { %6539 = vmatmul.msk.bf16.gmra.mxu1 %vm3728_vm6, %v4415_v62  ;;  %v4002_v22 = vld [vmem:[#allocation2 + $0x77] sm:$0xff]  ;;  %v3334_v38 = vadd.f32 %v11258_v5, %v11257_v32  ;;  %v9635_v3 = vpop.permute.xlu2 %4658  ;;  %v9642_v1 = vpop.permute.xlu0 %4693  ;;  %v11262_v5 = vld [vmem:[#allocation41_spill] sm:$0xff] }
 0x45c   : > { %3772 = vst.msk [vmem:[#allocation2 + $0x80] sm:$0xff] %vm3728_vm6, %v3696_v59  ;;  %v4184_v27 = vld [vmem:[#allocation2 + $0x76] sm:$0xff]  ;;  %v4264_v9 = vmul.f32 %v9289_v51, %v4002_v22  ;;  %v4028_v58 = vmul.f32 %v9222_v6, %v4002_v22  ;;  %v4371_v52 = vadd.f32 %v9344_v57, %v4342_v8  ;;  %v3977_v59 = vadd.f32 %v3952_v18, %v3901_v47 }
 0x45d   : > { %v4210_v23 = vmul.f32 %v9274_v20, %v4184_v27  ;;  %v9616_v11 = vld [vmem:[#allocation2 + $0x78] sm:$0xff]  ;;  %v3426_v55 = vadd.f32 %v11259_v53, %v3334_v38 }
 0x45e   : > { %v3851_v0 = vld [vmem:[#allocation2 + $0x71] sm:$0xff]  ;;  %v4318_v56 = vmul.f32 %v9301_v16, %v9616_v11  ;;  %v4053_v24 = vadd.f32 %v4028_v58, %v3977_v59 }
 0x45f   : > { %v4235_v21 = vadd.f32 %v4210_v23, %v4159_v54  ;;  %v4135_v60 = vmul.f32 %v9253_v17, %v3851_v0  ;;  %v3877_v42 = vmul.f32 %v9182_v50, %v3851_v0  ;;  %v3518_v26 = vadd.f32 %v9516_v30, %v3426_v55  ;;  %v3927_v45 = vld [vmem:[#allocation2 + $0x72] sm:$0xff] }
 0x460   : > { %v4396_v54 = vmax.f32 %v4371_v52, 0.0  ;;  %v9645_v34 = vpop.f32.mrf.mxu2  ;;  %v4082_v30 = vmul.f32 %v9250_v12, %v9616_v11 }
 0x461   : > { %v3698_v63 = vpop.f32.mrf.mxu3  ;;  %v4289_v61 = vadd.f32 %v4264_v9, %v4235_v21  ;;  %v4160_v48 = vadd.f32 %v4135_v60, %v4106_v37  ;;  %v3610_v0 = vadd.f32 %v9586_v35, %v3518_v26  ;;  %v3902_v15 = vadd.f32 %v3877_v42, %v3826_v19 }
 0x462   : > { %v3699_v2 = vadd.f32 %v3698_v63, %v3607_v49  ;;  %v11260_v49 = vld [vmem:[#allocation20_spill] sm:$0xff]  ;;  %v4107_v60 = vadd.f32 %v4082_v30, %v4053_v24  ;;  %v3827_v42 = vmul.f32 %v9179_v25, %v9616_v11 }
 0x463   : > { %v4343_v62 = vadd.f32 %v4318_v56, %v4289_v61  ;;  %v4185_v36 = vld [vmem:[#allocation2 + $0x7e] sm:$0xff]  ;;  %v3337_v47 = vadd.f32 %v11261_v40, %v11260_v49  ;;  %v3953_v56 = vmul.f32 %v9209_v33, %v3927_v45 }
 0x464   : > { %3773 = vst.msk [vmem:[#allocation2 + $0x88] sm:$0xff] %vm3728_vm6, %v3699_v2  ;;  %v4211_v44 = vmul.f32 %v9274_v20, %v4185_v36  ;;  %v3852_v22 = vld [vmem:[#allocation2 + $0x79] sm:$0xff] }
 0x465   : > { %v4372_v13 = vadd.f32 %v9344_v57, %v4343_v62  ;;  %v4003_v27 = vld [vmem:[#allocation2 + $0x7f] sm:$0xff]  ;;  %v4136_v41 = vmul.f32 %v9253_v17, %v3852_v22  ;;  %v3429_v38 = vadd.f32 %v11262_v5, %v3337_v47  ;;  %v3978_v2 = vadd.f32 %v3953_v56, %v3902_v15  ;;  %v11264_v15 = vld [vmem:[#allocation26_spill] sm:$0xff] }
 0x466   : > { %v4236_v31 = vadd.f32 %v4211_v44, %v4160_v48  ;;  %v4265_v8 = vmul.f32 %v9289_v51, %v4003_v27  ;;  %v3802_v61 = vld [vmem:[#allocation2 + $0x80] sm:$0xff]  ;;  %v4029_v35 = vmul.f32 %v9222_v6, %v4003_v27  ;;  %v3878_v62 = vmul.f32 %v9182_v50, %v3852_v22  ;;  %v9667_v22 = vpop.permute.xlu2 %4648  ;;  %v9669_v27 = vpop.f32.mrf.mxu1 }
 0x467   : > { %v4397_v23 = vmax.f32 %v4372_v13, 0.0  ;;  %v4161_v52 = vadd.f32 %v4136_v41, %v4107_v60  ;;  %v4319_v53 = vmul.f32 %v9301_v16, %v3802_v61  ;;  %v3521_v55 = vadd.f32 %v9541_v4, %v3429_v38  ;;  %v3928_v13 = vld [vmem:[#allocation2 + $0x7a] sm:$0xff] }
 0x468   : > { %v4290_v32 = vadd.f32 %v4265_v8, %v4236_v31  ;;  %v4054_v48 = vadd.f32 %v4029_v35, %v3978_v2  ;;  %v4083_v4 = vmul.f32 %v9250_v12, %v3802_v61  ;;  %v9675_v31 = vpop.permute.xlu0 %4718  ;;  %v3954_v41 = vmul.f32 %v9209_v33, %v3928_v13  ;;  %v9681_v8 = vpop.f32.mrf.mxu2 }
 0x469   : > { %v3701_v21 = vpop.f32.mrf.mxu3  ;;  %v4416_v9 = vpack.c.bf16 %v4397_v23, %v4396_v54  ;;  %v3613_v24 = vadd.f32 %v9618_v28, %v3521_v55  ;;  %v3903_v54 = vadd.f32 %v3878_v62, %v3827_v42  ;;  %11263 = vst [vmem:[#allocation19_spill] sm:$0xff] %v9675_v31  ;;  %v9692_v62 = vpop.permute.xlu1 %4668 }
 0x46a   : > { %v3702_v63 = vadd.f32 %v3701_v21, %v3610_v0  ;;  %v4344_v19 = vadd.f32 %v4319_v53, %v4290_v32  ;;  %v11265_v21 = vld [vmem:[#allocation33_spill] sm:$0xff]  ;;  %v4108_v47 = vadd.f32 %v4083_v4, %v4054_v48  ;;  %v11268_v4 = vld [vmem:[#allocation36_spill] sm:$0xff] }
 0x46b   : > { %6540 = vmatmul.msk.bf16.gmra.mxu1 %vm3728_vm6, %v4416_v9  ;;  %v4004_v18 = vld [vmem:[#allocation2 + $0x87] sm:$0xff]  ;;  %v3340_v30 = vadd.f32 %v11265_v21, %v11264_v15  ;;  %v3979_v60 = vadd.f32 %v3954_v41, %v3903_v54 }
 0x46c   : > { %3774 = vst.msk [vmem:[#allocation2 + $0x90] sm:$0xff] %vm3728_vm6, %v3702_v63  ;;  %v4186_v58 = vld [vmem:[#allocation2 + $0x86] sm:$0xff]  ;;  %v4266_v26 = vmul.f32 %v9289_v51, %v4004_v18  ;;  %v4030_v28 = vmul.f32 %v9222_v6, %v4004_v18  ;;  %v4373_v40 = vadd.f32 %v9344_v57, %v4344_v19  ;;  %v11266_v63 = vld [vmem:[#allocation42_spill] sm:$0xff]  ;;  %v3828_v18 = vmul.f32 %v9179_v25, %v3802_v61 }
 0x46d   : > { %v4212_v37 = vmul.f32 %v9274_v20, %v4186_v58  ;;  %v9664_v36 = vld [vmem:[#allocation2 + $0x88] sm:$0xff] }
 0x46e   : > { %v3853_v59 = vld [vmem:[#allocation2 + $0x81] sm:$0xff]  ;;  %v4320_v45 = vmul.f32 %v9301_v16, %v9664_v36  ;;  %v3432_v16 = vadd.f32 %v11266_v63, %v3340_v30  ;;  %v4398_v53 = vmax.f32 %v4373_v40, 0.0  ;;  %v9712_v15 = vpop.f32.mrf.mxu1 }
 0x46f   : > { %v4237_v44 = vadd.f32 %v4212_v37, %v4161_v52  ;;  %v4137_v0 = vmul.f32 %v9253_v17, %v3853_v59  ;;  %v3879_v56 = vmul.f32 %v9182_v50, %v3853_v59  ;;  %v4055_v37 = vadd.f32 %v4030_v28, %v3979_v60  ;;  %v3929_v42 = vld [vmem:[#allocation2 + $0x82] sm:$0xff] }
 0x470   : > { %v3524_v2 = vadd.f32 %v9574_v43, %v3432_v16  ;;  %v9697_v43 = vpop.permute.xlu2 %4638  ;;  %v9715_v21 = vpop.permute.xlu0 %4628  ;;  %v11271_v41 = vld [vmem:[#allocation44_spill] sm:$0xff] }
 0x471   : > { %v3704_v23 = vpop.f32.mrf.mxu3  ;;  %v4291_v11 = vadd.f32 %v4266_v26, %v4237_v44  ;;  %v4162_v5 = vadd.f32 %v4137_v0, %v4108_v47  ;;  %v3904_v48 = vadd.f32 %v3879_v56, %v3828_v18  ;;  %v4084_v44 = vmul.f32 %v9250_v12, %v9664_v36  ;;  %v9710_v0 = vld [vmem:[%s11269_s1 + $0x10] sm:$0xff]  ;;  %v9721_v16 = vpop.f32.mrf.mxu2  ;;  %v9727_v60 = vld [vmem:[%s11242_s5 + $0x8] ss:$0 sm:$0xff]  ;;  %s6174_s1 = sshll.u32 %s621_s0, 4  ;;  %s6176_s5 = sshll.u32 %s6172_s28, 4  ;;  %s6175_s1 = int_to_ptr.vmem [resolvable:$true] %s6174_s1  ;;  %s6177_s5 = int_to_ptr.hbm [resolvable:$true] %s6176_s5 }
 0x472   : > { %v3705_v9 = vadd.f32 %v3704_v23, %v3613_v24  ;;  %v3616_v13 = vadd.f32 %v9645_v34, %v3524_v2  ;;  %v11267_v24 = vld [vmem:[#allocation23_spill] sm:$0xff]  ;;  %v3955_v34 = vmul.f32 %v9209_v33, %v3929_v42  ;;  %5675 = vperm.xlu0 %6732, %v9710_v0   ;;  %s6763_s7 = sshra.s32 %s6177_s5, 4  ;;  %s6764_s7 = int_to_ptr.hbm [resolvable:$true] %s6763_s7 }
 0x473   : > { %v4345_v49 = vadd.f32 %v4320_v45, %v4291_v11  ;;  %v4187_v35 = vld [vmem:[#allocation2 + $0x8e] sm:$0xff]  ;;  %v3343_v54 = vadd.f32 %v11268_v4, %v11267_v24  ;;  %v4109_v30 = vadd.f32 %v4084_v44, %v4055_v37  ;;  %p6770_p0 = scmp.lt.s32.totalorder %s6764_s7, %s11060_s20 }
 0x474   : > { %3775 = vst.msk [vmem:[#allocation2 + $0x98] sm:$0xff] %vm3728_vm6, %v3705_v9  ;;  %v4213_v38 = vmul.f32 %v9274_v20, %v4187_v35  ;;  %v3854_v58 = vld [vmem:[#allocation2 + $0x89] sm:$0xff]  ;;  %v3980_v40 = vadd.f32 %v3955_v34, %v3904_v48 }
 0x475   : > { %v4374_v32 = vadd.f32 %v9344_v57, %v4345_v49  ;;  %v4005_v52 = vld [vmem:[#allocation2 + $0x8f] sm:$0xff]  ;;  %v4138_v61 = vmul.f32 %v9253_v17, %v3854_v58  ;;  %v3435_v28 = vadd.f32 %v11271_v41, %v3343_v54  ;;  %v3880_v49 = vmul.f32 %v9182_v50, %v3854_v58 }
 0x476   : > { %v4238_v59 = vadd.f32 %v4213_v38, %v4162_v5  ;;  %v4267_v19 = vmul.f32 %v9289_v51, %v4005_v52  ;;  %v9703_v11 = vld [vmem:[#allocation2 + $0x90] sm:$0xff]  ;;  %v4031_v45 = vmul.f32 %v9222_v6, %v4005_v52  ;;  %v3829_v38 = vmul.f32 %v9179_v25, %v9664_v36  ;;  %v9762_v34 = vld [vmem:[%s11270_s29 + $0x28] sm:$0xff] }
 0x477   : > { %v4399_v55 = vmax.f32 %v4374_v32, 0.0  ;;  %v4163_v56 = vadd.f32 %v4138_v61, %v4109_v30  ;;  %v4321_v32 = vmul.f32 %v9727_v60, %v9703_v11  ;;  %v3527_v5 = vadd.f32 %v9605_v46, %v3435_v28  ;;  %v3930_v52 = vld [vmem:[#allocation2 + $0x8a] sm:$0xff]  ;;  %v9740_v46 = vpop.permute.xlu1 %4663 }
 0x478   : > { %v4292_v9 = vadd.f32 %v4267_v19, %v4238_v59  ;;  %v4056_v58 = vadd.f32 %v4031_v45, %v3980_v40  ;;  %v3905_v59 = vadd.f32 %v3880_v49, %v3829_v38  ;;  %v9742_v48 = vld [vmem:[#allocation4] sm:$0xff]  ;;  %v3956_v54 = vmul.f32 %v9209_v33, %v3930_v52  ;;  %v9771_v28 = vpop.permute.xlu2 %4713 }
 0x479   : > { %v3707_v57 = vpop.f32.mrf.mxu3  ;;  %v4417_v26 = vpack.c.bf16 %v4399_v55, %v4398_v53  ;;  %v3619_v42 = vadd.f32 %v9681_v8, %v3527_v5  ;;  %4759 = vst.msk [vmem:[#allocation3 + $0x10] sm:$0xff] %vm4756_vm7, %v9742_v48  ;;  %v4599_v36 = vld [vmem:[%s11236_s27 + $0x90] sm:$0xff]  ;;  %v9782_v5 = vpop.permute.xlu0 %4728 }
 0x47a   : > { %v3708_v23 = vadd.f32 %v3707_v57, %v3616_v13  ;;  %v4346_v55 = vadd.f32 %v4321_v32, %v4292_v9  ;;  %v4085_v13 = vmul.f32 %v9250_v12, %v9703_v11  ;;  %4757 = vst.msk [vmem:[#allocation3] sm:$0xff] %vm4756_vm7, %v9742_v48  ;;  %4698 = vperm.xlu1 %6733, %v4599_v36   ;;  %v11272_v61 = vld [vmem:[#allocation25_spill] sm:$0xff]  ;;  %v11273_v19 = vld [vmem:[#allocation38_spill] sm:$0xff]  ;;  %v9768_v9 = vld [vmem:[%s11243_s6] ss:$0 sm:$0xff]  ;;  %s6164_s6 = scalar_lea.sflag [#allocation6], %s620_s23 }
 0x47b   : > { %6541 = vmatmul.msk.bf16.gmra.mxu1 %vm3728_vm6, %v4417_v26  ;;  %v4006_v47 = vld [vmem:[#allocation2 + $0x97] sm:$0xff]  ;;  %v3346_v24 = vadd.f32 %v11273_v19, %v11272_v61  ;;  %4758 = vst.msk [vmem:[#allocation3 + $0x8] sm:$0xff] %vm4756_vm7, %v9742_v48  ;;  %5690 = vperm.xlu0 %6732, %v9762_v34  }
 0x47c   : > { %3776 = vst.msk [vmem:[#allocation2 + $0xa0] sm:$0xff] %vm3728_vm6, %v3708_v23  ;;  %v4188_v63 = vld [vmem:[#allocation2 + $0x96] sm:$0xff]  ;;  %v4268_v53 = vmul.f32 %v9289_v51, %v4006_v47  ;;  %v4110_v23 = vadd.f32 %v4085_v13, %v4056_v58  ;;  %v4032_v45 = vmul.f32 %v9222_v6, %v4006_v47  ;;  %v4375_v41 = vadd.f32 %v9768_v9, %v4346_v55  ;;  %v3624_v55 = vpop.f32.mrf.mxu2 }
 0x47d   : > { %v4214_v35 = vmul.f32 %v9274_v20, %v4188_v63  ;;  %v9734_v2 = vld [vmem:[#allocation2 + $0x98] sm:$0xff]  ;;  %11274 = vst [vmem:[#allocation15_spill] sm:$0xff] %v9771_v28 }
 0x47e   : > { %v3855_v18 = vld [vmem:[#allocation2 + $0x91] sm:$0xff]  ;;  %v4322_v8 = vmul.f32 %v9727_v60, %v9734_v2  ;;  %4760 = vst.msk [vmem:[#allocation3 + $0x18] sm:$0xff] %vm4756_vm7, %v9742_v48 }
 0x47f   : > { %v4239_v37 = vadd.f32 %v4214_v35, %v4163_v56  ;;  %v4139_v26 = vmul.f32 %v9253_v17, %v3855_v18  ;;  %v11275_v49 = vld [vmem:[#allocation46_spill] sm:$0xff]  ;;  %v3881_v47 = vmul.f32 %v9182_v50, %v3855_v18  ;;  %v9779_v56 = vpop.f32.mrf.mxu1  ;;  %v3981_v35 = vadd.f32 %v3956_v54, %v3905_v59  ;;  %11276 = vst [vmem:[#allocation17_spill] sm:$0xff] %v9782_v5 }
 0x480   : > { %v3438_v40 = vadd.f32 %v11275_v49, %v3346_v24  ;;  %4761 = vst.msk [vmem:[#allocation3 + $0x20] sm:$0xff] %vm4756_vm7, %v9742_v48  ;;  %v4400_v59 = vmax.f32 %v4375_v41, 0.0  ;;  %v3931_v36 = vld [vmem:[#allocation2 + $0x92] sm:$0xff] }
 0x481   : > { %v3710_v57 = vpop.f32.mrf.mxu3  ;;  %v4293_v44 = vadd.f32 %v4268_v53, %v4239_v37  ;;  %v4164_v38 = vadd.f32 %v4139_v26, %v4110_v23  ;;  %v3830_v37 = vmul.f32 %v9179_v25, %v9703_v11  ;;  %4762 = vst.msk [vmem:[#allocation3 + $0x28] sm:$0xff] %vm4756_vm7, %v9742_v48  ;;  %v4086_v11 = vmul.f32 %v9250_v12, %v9734_v2 }
 0x482   : > { %v3711_v4 = vadd.f32 %v3710_v57, %v3619_v42  ;;  %v3530_v52 = vadd.f32 %v9639_v39, %v3438_v40  ;;  %v4057_v42 = vadd.f32 %v4032_v45, %v3981_v35  ;;  %4763 = vst.msk [vmem:[#allocation3 + $0x30] sm:$0xff] %vm4756_vm7, %v9742_v48  ;;  %v9808_v45 = vpop.permute.xlu1 %4688  ;;  %v3957_v41 = vmul.f32 %v9209_v33, %v3931_v36 }
 0x483   : > { %v4347_v30 = vadd.f32 %v4322_v8, %v4293_v44  ;;  %v4189_v63 = vld [vmem:[#allocation2 + $0x9e] sm:$0xff]  ;;  %v3906_v39 = vadd.f32 %v3881_v47, %v3830_v37  ;;  %4764 = vst.msk [vmem:[#allocation3 + $0x38] sm:$0xff] %vm4756_vm7, %v9742_v48  ;;  %v9822_v37 = vpop.permute.xlu2 %4723  ;;  %v3831_v36 = vmul.f32 %v9179_v25, %v9734_v2 }
 0x484   : > { %3777 = vst.msk [vmem:[#allocation2 + $0xa8] sm:$0xff] %vm3728_vm6, %v3711_v4  ;;  %v4215_v58 = vmul.f32 %v9274_v20, %v4189_v63  ;;  %v3856_v18 = vld [vmem:[#allocation2 + $0x99] sm:$0xff]  ;;  %v3622_v44 = vadd.f32 %v9721_v16, %v3530_v52  ;;  %v11277_v16 = vld [vmem:[#allocation29_spill] sm:$0xff]  ;;  %v11278_v4 = vld [vmem:[#allocation40_spill] sm:$0xff]  ;;  %v4111_v40 = vadd.f32 %v4086_v11, %v4057_v42  ;;  %v9838_v11 = vpop.permute.xlu0 %4618 }
 0x485   : > { %v4376_v32 = vadd.f32 %v9768_v9, %v4347_v30  ;;  %v4007_v53 = vld [vmem:[#allocation2 + $0x9f] sm:$0xff]  ;;  %v4140_v19 = vmul.f32 %v9253_v17, %v3856_v18  ;;  %4765 = vst.msk [vmem:[#allocation3 + $0x40] sm:$0xff] %vm4756_vm7, %v9742_v48  ;;  %v3349_v54 = vadd.f32 %v11278_v4, %v11277_v16  ;;  %v3627_v4 = vpop.f32.mrf.mxu2 }
 0x486   : > { %v4240_v57 = vadd.f32 %v4215_v58, %v4164_v38  ;;  %v6054_v8 = vld [vmem:[%s11270_s29] sm:$0xff]  ;;  %v4269_v24 = vmul.f32 %v9289_v51, %v4007_v53  ;;  %v4033_v49 = vmul.f32 %v9222_v6, %v4007_v53  ;;  %4766 = vst.msk [vmem:[#allocation3 + $0x48] sm:$0xff] %vm4756_vm7, %v9742_v48  ;;  %v3982_v38 = vadd.f32 %v3957_v41, %v3906_v39  ;;  %v6057_v16 = vld [vmem:[%s11270_s29 + $0x18] sm:$0xff] }
 0x487   : > { %v4401_v13 = vmax.f32 %v4376_v32, 0.0  ;;  %5665 = vperm.xlu1 %6733, %v6054_v8   ;;  %v9810_v30 = vld [vmem:[#allocation2 + $0xa0] sm:$0xff]  ;;  %4767 = vst.msk [vmem:[#allocation3 + $0x50] sm:$0xff] %vm4756_vm7, %v9742_v48  ;;  %6064 = vperm.xlu0 %6732, %v6054_v8   ;;  %v3882_v32 = vmul.f32 %v9182_v50, %v3856_v18  ;;  %v4165_v53 = vadd.f32 %v4140_v19, %v4111_v40  ;;  %v9836_v39 = vpop.f32.mrf.mxu1 }
 0x488   : > { %v4294_v47 = vadd.f32 %v4269_v24, %v4240_v57  ;;  %v11279_v63 = vld [vmem:[#allocation47_spill] sm:$0xff]  ;;  %11280 = vst [vmem:[#allocation14_spill] sm:$0xff] %v9822_v37  ;;  %v4323_v42 = vmul.f32 %v9727_v60, %v9810_v30  ;;  %v4087_v24 = vmul.f32 %v9250_v12, %v9810_v30 }
 0x489   : > { %v3713_v26 = vpop.f32.mrf.mxu3  ;;  %v4418_v61 = vpack.c.bf16 %v4401_v13, %v4400_v59  ;;  %v3441_v35 = vadd.f32 %v11279_v63, %v3349_v54  ;;  %4768 = vst.msk [vmem:[#allocation3 + $0x58] sm:$0xff] %vm4756_vm7, %v9742_v48  ;;  %v3932_v8 = vld [vmem:[#allocation2 + $0x9a] sm:$0xff]  ;;  %v3907_v2 = vadd.f32 %v3882_v32, %v3831_v36 }
 0x48a   : > { %v3714_v23 = vadd.f32 %v3713_v26, %v3622_v44  ;;  %v4058_v44 = vadd.f32 %v4033_v49, %v3982_v38  ;;  %4769 = vst.msk [vmem:[#allocation3 + $0x60] sm:$0xff] %vm4756_vm7, %v9742_v48  ;;  %v4348_v19 = vadd.f32 %v4323_v42, %v4294_v47  ;;  %v11281_v49 = vld [vmem:[#allocation31_spill] sm:$0xff] }
 0x48b   : > { %6542 = vmatmul.msk.bf16.gmra.mxu1 %vm3728_vm6, %v4418_v61  ;;  %v4008_v58 = vld [vmem:[#allocation2 + $0xa7] sm:$0xff]  ;;  %v3533_v13 = vadd.f32 %v9669_v27, %v3441_v35  ;;  %4770 = vst.msk [vmem:[#allocation3 + $0x68] sm:$0xff] %vm4756_vm7, %v9742_v48  ;;  %v11282_v40 = vld [vmem:[#allocation43_spill] sm:$0xff]  ;;  %v3958_v35 = vmul.f32 %v9209_v33, %v3932_v8 }
 0x48c   : > { %3778 = vst.msk [vmem:[#allocation2 + $0xb0] sm:$0xff] %vm3728_vm6, %v3714_v23  ;;  %v4190_v52 = vld [vmem:[#allocation2 + $0xa6] sm:$0xff]  ;;  %v4270_v61 = vmul.f32 %v9289_v51, %v4008_v58  ;;  %v3352_v47 = vadd.f32 %v11282_v40, %v11281_v49  ;;  %v4112_v32 = vadd.f32 %v4087_v24, %v4058_v44  ;;  %v4034_v38 = vmul.f32 %v9222_v6, %v4008_v58  ;;  %v9872_v44 = vpop.permute.xlu1 %4643 }
 0x48d   : > { %v4216_v59 = vmul.f32 %v9274_v20, %v4190_v52  ;;  %v9832_v18 = vld [vmem:[#allocation2 + $0xa8] sm:$0xff]  ;;  %v3625_v27 = vadd.f32 %v3624_v55, %v3533_v13  ;;  %4771 = vst.msk [vmem:[#allocation3 + $0x70] sm:$0xff] %vm4756_vm7, %v9742_v48  ;;  %v9869_v13 = vld [vmem:[%s11284_s8] ss:$0 sm:$0xff]  ;;  %v3983_v8 = vadd.f32 %v3958_v35, %v3907_v2 }
 0x48e   : > { %v3857_v57 = vld [vmem:[#allocation2 + $0xa1] sm:$0xff]  ;;  %v4324_v41 = vmul.f32 %v9727_v60, %v9832_v18  ;;  %4772 = vst.msk [vmem:[#allocation3 + $0x78] sm:$0xff] %vm4756_vm7, %v9742_v48  ;;  %v11286_v24 = vld [vmem:[#allocation45_spill] sm:$0xff] }
 0x48f   : > { %v4241_v26 = vadd.f32 %v4216_v59, %v4165_v53  ;;  %v4141_v55 = vmul.f32 %v9253_v17, %v3857_v57  ;;  %5680 = vperm.xlu1 %6733, %v6057_v16   ;;  %4773 = vst.msk [vmem:[#allocation3 + $0x80] sm:$0xff] %vm4756_vm7, %v9742_v48  ;;  %v4377_v53 = vadd.f32 %v9768_v9, %v4348_v19  ;;  %v11283_v59 = vld [vmem:[#allocation48_spill] sm:$0xff] }
 0x490   : > { %4774 = vst.msk [vmem:[#allocation3 + $0x88] sm:$0xff] %vm4756_vm7, %v9742_v48  ;;  %6079 = vperm.xlu0 %6732, %v6057_v16   ;;  %v3444_v42 = vadd.f32 %v11283_v59, %v3352_v47  ;;  %v3883_v36 = vmul.f32 %v9182_v50, %v3857_v57  ;;  %v3832_v57 = vmul.f32 %v9179_v25, %v9810_v30 }
 0x491   : > { %v3716_v54 = vpop.f32.mrf.mxu3  ;;  %v4295_v23 = vadd.f32 %v4270_v61, %v4241_v26  ;;  %4775 = vst.msk [vmem:[#allocation3 + $0x90] sm:$0xff] %vm4756_vm7, %v9742_v48  ;;  %v4166_v61 = vadd.f32 %v4141_v55, %v4112_v32  ;;  %v4059_v49 = vadd.f32 %v4034_v38, %v3983_v8  ;;  %v4402_v40 = vmax.f32 %v4377_v53, 0.0  ;;  %v9885_v55 = vpop.permute.xlu2 %4703  ;;  %v6060_v38 = vld [vmem:[%s11270_s29 + $0x30] sm:$0xff] }
 0x492   : > { %v3717_v63 = vadd.f32 %v3716_v54, %v3625_v27  ;;  %v11285_v27 = vld [vmem:[#allocation34_spill] sm:$0xff]  ;;  %v3536_v54 = vadd.f32 %v9712_v15, %v3444_v42  ;;  %4776 = vst.msk [vmem:[#allocation3 + $0x98] sm:$0xff] %vm4756_vm7, %v9742_v48  ;;  %v3908_v30 = vadd.f32 %v3883_v36, %v3832_v57  ;;  %v4609_v42 = vpop.permute.xlu0 %4608 }
 0x493   : > { %v4349_v52 = vadd.f32 %v4324_v41, %v4295_v23  ;;  %v4191_v58 = vld [vmem:[#allocation2 + $0xae] sm:$0xff]  ;;  %v3355_v16 = vadd.f32 %v11286_v24, %v11285_v27  ;;  %4777 = vst.msk [vmem:[#allocation3 + $0xa0] sm:$0xff] %vm4756_vm7, %v9742_v48  ;;  %v3630_v24 = vpop.f32.mrf.mxu2 }
 0x494   : > { %3779 = vst.msk [vmem:[#allocation2 + $0xb8] sm:$0xff] %vm3728_vm6, %v3717_v63  ;;  %v4217_v19 = vmul.f32 %v9274_v20, %v4191_v58  ;;  %v3858_v23 = vld [vmem:[#allocation2 + $0xa9] sm:$0xff]  ;;  %v3628_v15 = vadd.f32 %v3627_v4, %v3536_v54 }
 0x495   : > { %v4378_v26 = vadd.f32 %v9768_v9, %v4349_v52  ;;  %v4009_v2 = vld [vmem:[#allocation2 + $0xaf] sm:$0xff]  ;;  %v3933_v63 = vld [vmem:[#allocation2 + $0xa2] sm:$0xff]  ;;  %v4088_v52 = vmul.f32 %v9250_v12, %v9832_v18  ;;  %4778 = vst.msk [vmem:[#allocation3 + $0xa8] sm:$0xff] %vm4756_vm7, %v9742_v48  ;;  %v4142_v4 = vmul.f32 %v9253_v17, %v3858_v23 }
 0x496   : > { %v4242_v35 = vadd.f32 %v4217_v19, %v4166_v61  ;;  %4779 = vst.msk [vmem:[#allocation3 + $0xb0] sm:$0xff] %vm4756_vm7, %v9742_v48  ;;  %v4271_v36 = vmul.f32 %v9289_v51, %v4009_v2  ;;  %v11287_v58 = vld [vmem:[#allocation49_spill] sm:$0xff]  ;;  %v3959_v27 = vmul.f32 %v9209_v33, %v3933_v63  ;;  %v4035_v54 = vmul.f32 %v9222_v6, %v4009_v2 }
 0x497   : > { %v4403_v47 = vmax.f32 %v4378_v26, 0.0  ;;  %5695 = vperm.xlu1 %6733, %v6060_v38   ;;  %v3447_v8 = vadd.f32 %v11287_v58, %v3355_v16  ;;  %4780 = vst.msk [vmem:[#allocation3 + $0xb8] sm:$0xff] %vm4756_vm7, %v9742_v48  ;;  %v9904_v19 = vld [vmem:[#allocation2 + $0xb0] sm:$0xff]  ;;  %v4113_v57 = vadd.f32 %v4088_v52, %v4059_v49 }
 0x498   : > { %v4492_v41 = vpop.f32.mrf.mxu1  ;;  %4781 = vst.msk [vmem:[#allocation3 + $0xc0] sm:$0xff] %vm4756_vm7, %v9742_v48  ;;  %6094 = vperm.xlu0 %6732, %v6060_v38   ;;  %v4325_v2 = vmul.f32 %v9727_v60, %v9904_v19  ;;  %v3934_v38 = vld [vmem:[#allocation2 + $0xaa] sm:$0xff] }
 0x499   : > { %v4493_v32 = vadd.f32 %v9869_v13, %v4492_v41  ;;  %v3719_v53 = vpop.f32.mrf.mxu3  ;;  %v4419_v59 = vpack.c.bf16 %v4403_v47, %v4402_v40  ;;  %v4296_v41 = vadd.f32 %v4271_v36, %v4242_v35  ;;  %v3539_v16 = vadd.f32 %v9779_v56, %v3447_v8  ;;  %4782 = vst.msk [vmem:[#allocation3 + $0xc8] sm:$0xff] %vm4756_vm7, %v9742_v48 }
 0x49a   : > { %v3720_v61 = vadd.f32 %v3719_v53, %v3628_v15  ;;  %v3884_v40 = vmul.f32 %v9182_v50, %v3858_v23  ;;  %v4167_v53 = vadd.f32 %v4142_v4, %v4113_v57  ;;  %v3833_v56 = vmul.f32 %v9179_v25, %v9832_v18  ;;  %v9922_v23 = vpop.permute.xlu1 %4633  ;;  %4783 = vst.msk [vmem:[#allocation3 + $0xd0] sm:$0xff] %vm4756_vm7, %v9742_v48  ;;  %v5656_v18 = vld [vmem:[%s11270_s29 + $0x8] sm:$0xff] }
 0x49b   : > { %v4556_v26 = vmax.f32 %v4493_v32, 0.0  ;;  %6543 = vmatmul.msk.bf16.gmra.mxu1 %vm3728_vm6, %v4419_v59  ;;  %v4010_v15 = vld [vmem:[#allocation2 + $0xb7] sm:$0xff]  ;;  %v3984_v32 = vadd.f32 %v3959_v27, %v3908_v30  ;;  %v3631_v49 = vadd.f32 %v3630_v24, %v3539_v16  ;;  %v4350_v58 = vadd.f32 %v4325_v2, %v4296_v41  ;;  %4784 = vst.msk [vmem:[#allocation3 + $0xd8] sm:$0xff] %vm4756_vm7, %v9742_v48  ;;  %v4614_v24 = vpop.permute.xlu2 %4613 }
 0x49c   : > { %3780 = vst.msk [vmem:[#allocation2 + $0xc0] sm:$0xff] %vm3728_vm6, %v3720_v61  ;;  %v4192_v63 = vld [vmem:[#allocation2 + $0xb6] sm:$0xff]  ;;  %v4272_v36 = vmul.f32 %v9289_v51, %v4010_v15  ;;  %v3909_v8 = vadd.f32 %v3884_v40, %v3833_v56  ;;  %v4089_v61 = vmul.f32 %v9250_v12, %v9904_v19  ;;  %5670 = vperm.xlu2 %6734, %v5656_v18  }
 0x49d   : > { %v4731_v47 = vmul.f32 %v4609_v42, %v4556_v26  ;;  %v4218_v59 = vmul.f32 %v9274_v20, %v4192_v63  ;;  %v3809_v35 = vld [vmem:[#allocation2 + $0xb8] sm:$0xff]  ;;  %v4060_v42 = vadd.f32 %v4035_v54, %v3984_v32  ;;  %4785 = vst.msk [vmem:[#allocation3 + $0xe0] sm:$0xff] %vm4756_vm7, %v9742_v48  ;;  %v4036_v63 = vmul.f32 %v9222_v6, %v4010_v15 }
 0x49e   : > { %v3859_v52 = vld [vmem:[#allocation2 + $0xb1] sm:$0xff]  ;;  %v4326_v57 = vmul.f32 %v9727_v60, %v3809_v35 }
 0x49f   : > { %4786 = vst.msk [vmem:[#allocation3 + $0x10] sm:$0xff] %vm4756_vm7, %v4731_v47  ;;  %v4243_v4 = vadd.f32 %v4218_v59, %v4167_v53  ;;  %v4143_v41 = vmul.f32 %v9253_v17, %v3859_v52  ;;  %6069 = vperm.xlu1 %6733, %v5656_v18   ;;  %v3960_v47 = vmul.f32 %v9209_v33, %v3934_v38 }
 0x4a0   : > { %v4494_v30 = vpop.f32.mrf.mxu1  ;;  %v4379_v59 = vadd.f32 %v9768_v9, %v4350_v58  ;;  %v4114_v2 = vadd.f32 %v4089_v61, %v4060_v42  ;;  %v3885_v56 = vmul.f32 %v9182_v50, %v3859_v52  ;;  %v3834_v52 = vmul.f32 %v9179_v25, %v9904_v19 }
 0x4a1   : > { %v4495_v26 = vadd.f32 %v9869_v13, %v4494_v30  ;;  %v3722_v27 = vpop.f32.mrf.mxu3  ;;  %v4297_v54 = vadd.f32 %v4272_v36, %v4243_v4  ;;  %v3985_v30 = vadd.f32 %v3960_v47, %v3909_v8  ;;  %v3633_v36 = vpop.f32.mrf.mxu2  ;;  %v3835_v8 = vmul.f32 %v9179_v25, %v3809_v35  ;;  %v3935_v47 = vld [vmem:[#allocation2 + $0xb2] sm:$0xff] }
 0x4a2   : > { %v3723_v40 = vadd.f32 %v3722_v27, %v3631_v49  ;;  %v11288_v27 = vld [vmem:[#allocation50_spill] sm:$0xff]  ;;  %v4404_v61 = vmax.f32 %v4379_v59, 0.0 }
 0x4a3   : > { %v4557_v16 = vmax.f32 %v4495_v26, 0.0  ;;  %v3860_v32 = vld [vmem:[#allocation2 + $0xb9] sm:$0xff]  ;;  %v4351_v53 = vadd.f32 %v4326_v57, %v4297_v54  ;;  %v4168_v26 = vadd.f32 %v4143_v41, %v4114_v2  ;;  %v3542_v58 = vadd.f32 %v9836_v39, %v11288_v27 }
 0x4a4   : > { %3781 = vst.msk [vmem:[#allocation2 + $0xc8] sm:$0xff] %vm3728_vm6, %v3723_v40  ;;  %v4193_v4 = vld [vmem:[#allocation2 + $0xbe] sm:$0xff]  ;;  %v3886_v18 = vmul.f32 %v9182_v50, %v3860_v32  ;;  %v4061_v42 = vadd.f32 %v4036_v63, %v3985_v30  ;;  %v4090_v39 = vmul.f32 %v9250_v12, %v3809_v35  ;;  %v9957_v40 = vpop.permute.xlu1 %4708  ;;  %v4144_v19 = vmul.f32 %v9253_v17, %v3860_v32 }
 0x4a5   : > { %v4732_v48 = vmul.f32 %v4614_v24, %v4557_v16  ;;  %v4380_v49 = vadd.f32 %v9768_v9, %v4351_v53  ;;  %v4011_v38 = vld [vmem:[#allocation2 + $0xbf] sm:$0xff]  ;;  %v4219_v15 = vmul.f32 %v9274_v20, %v4193_v4  ;;  %v3634_v41 = vadd.f32 %v3633_v36, %v3542_v58  ;;  %11289 = vst [vmem:[#allocation18_spill] sm:$0xff] %v9957_v40 }
 0x4a6   : > { %v5659_v57 = vld [vmem:[%s11270_s29 + $0x20] sm:$0xff]  ;;  %v4273_v63 = vmul.f32 %v9289_v51, %v4011_v38  ;;  %v3911_v30 = vadd.f32 %v3886_v18, %v3835_v8  ;;  %v3961_v27 = vmul.f32 %v9209_v33, %v3935_v47  ;;  %v4037_v5 = vmul.f32 %v9222_v6, %v4011_v38 }
 0x4a7   : > { %4787 = vst.msk [vmem:[#allocation3 + $0x18] sm:$0xff] %vm4756_vm7, %v4732_v48  ;;  %v4405_v24 = vmax.f32 %v4380_v49, 0.0  ;;  %v4244_v54 = vadd.f32 %v4219_v15, %v4168_v26  ;;  %v3936_v53 = vld [vmem:[#allocation2 + $0xba] sm:$0xff]  ;;  %5685 = vperm.xlu2 %6734, %v5659_v57   ;;  %v3910_v48 = vadd.f32 %v3885_v56, %v3834_v52  ;;  %6084 = vperm.xlu1 %6733, %v5659_v57  }
 0x4a8   : > { %v4497_v16 = vpop.f32.mrf.mxu1  ;;  %v4065_v49 = vld [vmem:[#allocation2 + $0xc0] sm:$0xff]  ;;  %v4115_v26 = vadd.f32 %v4090_v39, %v4061_v42  ;;  %v3962_v32 = vmul.f32 %v9209_v33, %v3936_v53 }
 0x4a9   : > { %v4498_v59 = vadd.f32 %v9869_v13, %v4497_v16  ;;  %v3725_v2 = vpop.f32.mrf.mxu3  ;;  %v4420_v4 = vpack.c.bf16 %v4405_v24, %v4404_v61  ;;  %v4298_v35 = vadd.f32 %v4273_v63, %v4244_v54  ;;  %v4327_v42 = vmul.f32 %v9727_v60, %v4065_v49  ;;  %v3810_v8 = vld [vmem:[#allocation2 + $0xc0] sm:$0x7] }
 0x4aa   : > { %v3726_v36 = vadd.f32 %v3725_v2, %v3634_v41  ;;  %v4169_v18 = vadd.f32 %v4144_v19, %v4115_v26  ;;  %v3861_v61 = vld [vmem:[#allocation2 + $0xc1] sm:$0x7]  ;;  %v3986_v54 = vadd.f32 %v3961_v27, %v3910_v48  ;;  %v3987_v57 = vadd.f32 %v3962_v32, %v3911_v30 }
 0x4ab   : > { %v4558_v15 = vmax.f32 %v4498_v59, 0.0  ;;  %6544 = vmatmul.msk.bf16.gmra.mxu1 %vm3728_vm6, %v4420_v4  ;;  %v4012_v58 = vld [vmem:[#allocation2 + $0xc7] sm:$0xff]  ;;  %v4352_v47 = vadd.f32 %v4327_v42, %v4298_v35  ;;  %v5662_v59 = vld [vmem:[%s11270_s29 + $0x38] sm:$0x7f]  ;;  %v3836_v2 = vmul.f32 %v9179_v25, %v3810_v8  ;;  %v4091_v26 = vmul.f32 %v9250_v12, %v4065_v49 }
 0x4ac   : > { %v4194_v16 = vld [vmem:[#allocation2 + $0xc6] sm:$0xff]  ;;  %3783 = vst.msk [vmem:[#allocation2 + $0xd0] sm:$0x7] %vm3782_vm8, %v3726_v36  ;;  %v4038_v56 = vmul.f32 %v9222_v6, %v4012_v58  ;;  %v4274_v38 = vmul.f32 %v9289_v51, %v4012_v58  ;;  %v4062_v63 = vadd.f32 %v4037_v5, %v3986_v54  ;;  %v6061_v36 = vld [vmem:[%s11270_s29 + $0x38] sm:$0x7f] }
 0x4ad   : > { %v4220_v52 = vmul.f32 %v9274_v20, %v4194_v16  ;;  %v4733_v24 = vmul.f32 %v9838_v11, %v4558_v15  ;;  %v4066_v41 = vld [vmem:[#allocation2 + $0xc8] sm:$0xff]  ;;  %v3887_v11 = vmul.f32 %v9182_v50, %v3861_v61  ;;  %v4196_v25 = vld [vmem:[#allocation2 + $0xd6] sm:$0xff]  ;;  %v4624_v50 = vpop.permute.xlu1 %4623  ;;  %v4381_v32 = vadd.f32 %v9768_v9, %v4352_v47  ;;  %v3937_v58 = vld [vmem:[#allocation2 + $0xc2] sm:$0x7] }
 0x4ae   : > { %v4119_v53 = vld [vmem:[#allocation2 + $0xc1] sm:$0xff]  ;;  %v4063_v19 = vadd.f32 %v4038_v56, %v3987_v57  ;;  %v4328_v4 = vmul.f32 %v9727_v60, %v4066_v41  ;;  %v4092_v35 = vmul.f32 %v9250_v12, %v4066_v41  ;;  %v4116_v56 = vadd.f32 %v4091_v26, %v4062_v63  ;;  %v4250_v8 = vld [vmem:[#allocation2 + $0xd7] sm:$0xff] }
 0x4af   : > { %v4245_v39 = vadd.f32 %v4220_v52, %v4169_v18  ;;  %4788 = vst.msk [vmem:[#allocation3 + $0x20] sm:$0xff] %vm4756_vm7, %v4733_v24  ;;  %5700 = vperm.xlu2 %6734, %v5662_v59   ;;  %v4145_v15 = vmul.f32 %v9253_v17, %v4119_v53  ;;  %6099 = vperm.xlu1 %6733, %v6061_v36   ;;  %v4406_v63 = vmax.f32 %v4381_v32, 0.0 }
 0x4b0   : > { %v4499_v48 = vpop.f32.mrf.mxu1  ;;  %v4117_v18 = vadd.f32 %v4092_v35, %v4063_v19  ;;  %v3912_v61 = vadd.f32 %v3887_v11, %v3836_v2  ;;  %v4222_v57 = vmul.f32 %v9274_v20, %v4196_v25  ;;  %v3963_v47 = vmul.f32 %v9209_v33, %v3937_v58  ;;  %v4304_v11 = vld [vmem:[#allocation2 + $0xd8] sm:$0xff] }
 0x4b1   : > { %v4299_v30 = vadd.f32 %v4274_v38, %v4245_v39  ;;  %v4500_v5 = vadd.f32 %v9869_v13, %v4499_v48  ;;  %v4170_v38 = vadd.f32 %v4145_v15, %v4116_v56  ;;  %v4276_v2 = vmul.f32 %v9289_v51, %v4250_v8  ;;  %v4197_v8 = vld [vmem:[#allocation2 + $0xde] sm:$0x7] }
 0x4b2   : > { %v4330_v15 = vmul.f32 %v9727_v60, %v4304_v11 }
 0x4b3   : > { %v4353_v27 = vadd.f32 %v4328_v4, %v4299_v30  ;;  %v4559_v16 = vmax.f32 %v4500_v5, 0.0  ;;  %v4120_v52 = vld [vmem:[#allocation2 + $0xc9] sm:$0xff]  ;;  %v3988_v4 = vadd.f32 %v3963_v47, %v3912_v61  ;;  %v4121_v56 = vld [vmem:[#allocation2 + $0xd1] sm:$0x7] }
 0x4b4   : > { %v4195_v42 = vld [vmem:[#allocation2 + $0xce] sm:$0xff]  ;;  %v4146_v24 = vmul.f32 %v9253_v17, %v4120_v52 }
 0x4b5   : > { %v4382_v49 = vadd.f32 %v9768_v9, %v4353_v27  ;;  %v4221_v54 = vmul.f32 %v9274_v20, %v4195_v42  ;;  %v4013_v41 = vld [vmem:[#allocation2 + $0xcf] sm:$0x7]  ;;  %v4734_v39 = vmul.f32 %v4624_v50, %v4559_v16 }
 0x4b6   : > { %v4039_v53 = vmul.f32 %v9222_v6, %v4013_v41  ;;  %v4171_v59 = vadd.f32 %v4146_v24, %v4117_v18  ;;  %v4249_v48 = vld [vmem:[#allocation2 + $0xcf] sm:$0xff]  ;;  %v4251_v41 = vld [vmem:[#allocation2 + $0xdf] sm:$0x7] }
 0x4b7   : > { %v4407_v19 = vmax.f32 %v4382_v49, 0.0  ;;  %4789 = vst.msk [vmem:[#allocation3 + $0x28] sm:$0xff] %vm4756_vm7, %v4734_v39  ;;  %v4246_v30 = vadd.f32 %v4221_v54, %v4170_v38  ;;  %6074 = vperm.xlu2 %6734, %v9710_v0   ;;  %v4067_v35 = vld [vmem:[#allocation2 + $0xd0] sm:$0x7]  ;;  %v4275_v6 = vmul.f32 %v9289_v51, %v4249_v48  ;;  %v4147_v49 = vmul.f32 %v9253_v17, %v4121_v56  ;;  %v10033_v56 = vld [vmem:[%s11049_s9] sm:$0xff] }
 0x4b8   : > { %v4502_v36 = vpop.f32.mrf.mxu1  ;;  %v4247_v26 = vadd.f32 %v4222_v57, %v4171_v59  ;;  %v4064_v25 = vadd.f32 %v4039_v53, %v3988_v4  ;;  %v4303_v27 = vld [vmem:[#allocation2 + $0xd0] sm:$0xff]  ;;  %v4093_v16 = vmul.f32 %v9250_v12, %v4067_v35  ;;  %v4277_v17 = vmul.f32 %v9289_v51, %v4251_v41 }
 0x4b9   : > { %v4421_v5 = vpack.c.bf16 %v4407_v19, %v4406_v63  ;;  %v4503_v33 = vadd.f32 %v9869_v13, %v4502_v36  ;;  %v4300_v58 = vadd.f32 %v4275_v6, %v4246_v30  ;;  %v4329_v0 = vmul.f32 %v9727_v60, %v4303_v27  ;;  %v4305_v19 = vld [vmem:[#allocation2 + $0xe0] sm:$0x7] }
 0x4ba   : > { %v4301_v50 = vadd.f32 %v4276_v2, %v4247_v26  ;;  %v4118_v42 = vadd.f32 %v4093_v16, %v4064_v25 }
 0x4bb   : > { %v4560_v32 = vmax.f32 %v4503_v33, 0.0  ;;  %6545 = vmatmul.msk.bf16.gmra.mxu1 %vm3728_vm6, %v4421_v5  ;;  %v4354_v61 = vadd.f32 %v4329_v0, %v4300_v58  ;;  %v10040_v0 = vperm.slane %v10033_v56, 1 }
 0x4bc   : > { %v4355_v52 = vadd.f32 %v4330_v15, %v4301_v50  ;;  %v4172_v57 = vadd.f32 %v4147_v49, %v4118_v42 }
 0x4bd   : > { %v4735_v18 = vmul.f32 %v9715_v21, %v4560_v32  ;;  %v4223_v21 = vmul.f32 %v9274_v20, %v4197_v8  ;;  %v4383_v38 = vadd.f32 %v9768_v9, %v4354_v61  ;;  %v4331_v20 = vmul.f32 %v9727_v60, %v4305_v19  ;;  %v10045_v61 = vld [vmem:[#allocation3 + $0x10] sm:$0xff] }
 0x4be   : > { %v4384_v12 = vadd.f32 %v9768_v9, %v4355_v52  ;;  %v4866_v52 = vld [vmem:[#allocation3 + $0x9] sm:$0xff]  ;;  %v10043_v8 = vperm.slane %v10033_v56, 0 }
 0x4bf   : > { %4790 = vst.msk [vmem:[#allocation3 + $0x30] sm:$0xff] %vm4756_vm7, %v4735_v18  ;;  %6089 = vperm.xlu2 %6734, %v9762_v34   ;;  %v4248_v63 = vadd.f32 %v4223_v21, %v4172_v57  ;;  %v4408_v34 = vmax.f32 %v4383_v38, 0.0  ;;  %v10036_v18 = vld [vmem:[#allocation3 + $0x11] sm:$0xff]  ;;  %v4892_v21 = vmul.f32 %v10040_v0, %v4866_v52 }
 0x4c0   : > { %v4504_v24 = vpop.f32.mrf.mxu1  ;;  %v4409_v53 = vmax.f32 %v4384_v12, 0.0  ;;  %v4865_v12 = vld [vmem:[#allocation3 + $0x1] sm:$0xff]  ;;  %v4817_v38 = vld [vmem:[#allocation3 + $0x18] sm:$0xff] }
 0x4c1   : > { %v4505_v54 = vadd.f32 %v9869_v13, %v4504_v24  ;;  %v4302_v11 = vadd.f32 %v4277_v17, %v4248_v63  ;;  %v10048_v24 = vld [vmem:[#allocation3 + $0x19] sm:$0xff] }
 0x4c2   : > { %v4422_v2 = vpack.c.bf16 %v4409_v53, %v4408_v34  ;;  %v4894_v53 = vmul.f32 %v10040_v0, %v10048_v24  ;;  %v4943_v63 = vld [vmem:[#allocation3 + $0x12] sm:$0xff]  ;;  %v10061_v17 = vld [vmem:[#allocation3 + $0x1f] sm:$0xff]  ;;  %v4891_v34 = vmul.f32 %v10040_v0, %v4865_v12 }
 0x4c3   : > { %v4561_v39 = vmax.f32 %v4505_v54, 0.0  ;;  %v4356_v4 = vadd.f32 %v4331_v20, %v4302_v11  ;;  %v4814_v54 = vld [vmem:[#allocation3] sm:$0xff]  ;;  %11290 = vst [vmem:[#allocation16_spill] sm:$0xff] %v10061_v17  ;;  %v4942_v20 = vld [vmem:[#allocation3 + $0xa] sm:$0xff] }
 0x4c4   : > { %v4840_v19 = vmul.f32 %v10043_v8, %v4814_v54  ;;  %v4945_v12 = vld [vmem:[#allocation3 + $0x22] sm:$0xff] }
 0x4c5   : > { %v4736_v47 = vmul.f32 %v9922_v23, %v4561_v39  ;;  %v4385_v5 = vadd.f32 %v9768_v9, %v4356_v4  ;;  %v10055_v39 = vperm.slane %v10033_v56, 2  ;;  %v4843_v4 = vmul.f32 %v10043_v8, %v4817_v38 }
 0x4c6   : > { %v4870_v54 = vld [vmem:[#allocation3 + $0x29] sm:$0xff] }
 0x4c7   : > { %4791 = vst.msk [vmem:[#allocation3 + $0x38] sm:$0xff] %vm4756_vm7, %v4736_v47  ;;  %v4410_v33 = vmax.f32 %v4385_v5, 0.0  ;;  %v4842_v47 = vmul.f32 %v10043_v8, %v10045_v61  ;;  %v10071_v5 = vld [vmem:[#allocation3 + $0x27] sm:$0xff] }
 0x4c8   : > { %v4507_v59 = vpop.f32.mrf.mxu1  ;;  %11291 = vst [vmem:[#allocation32_spill] sm:$0xff] %v10071_v5 }
 0x4c9   : > { %v4508_v48 = vadd.f32 %v9869_v13, %v4507_v59  ;;  %v4423_v15 = vpack.c.bf16 %v4410_v33, %v4410_v33  ;;  %v4941_v59 = vld [vmem:[#allocation3 + $0x2] sm:$0xff] }
 0x4cb   : > { %v4562_v30 = vmax.f32 %v4508_v48, 0.0  ;;  %6546 = vmatmul.msk.bf16.gmra.mxu1 %vm3728_vm6, %v4422_v2  ;;  %v10067_v2 = vperm.slane %v10033_v56, 3 }
 0x4cd   : > { %v4737_v23 = vmul.f32 %v9697_v43, %v4562_v30  ;;  %v5018_v30 = vld [vmem:[#allocation3 + $0x17] sm:$0xff] }
 0x4cf   : > { %4792 = vst.msk [vmem:[#allocation3 + $0x40] sm:$0xff] %vm4756_vm7, %v4737_v23  ;;  %v4869_v23 = vld [vmem:[#allocation3 + $0x21] sm:$0xff] }
 0x4d0   : > { %v4509_v51 = vpop.f32.mrf.mxu1 }
 0x4d1   : > { %v4510_v36 = vadd.f32 %v9869_v13, %v4509_v51 }
 0x4d3   : > { %v4563_v26 = vmax.f32 %v4510_v36, 0.0  ;;  %v4944_v36 = vld [vmem:[#allocation3 + $0x1a] sm:$0xff] }
 0x4d5   : > { %v4738_v35 = vmul.f32 %v9872_v44, %v4563_v26  ;;  %v4969_v26 = vmul.f32 %v10055_v39, %v4943_v63 }
 0x4d7   : > { %4793 = vst.msk [vmem:[#allocation3 + $0x48] sm:$0xff] %vm4756_vm7, %v4738_v35  ;;  %v4967_v35 = vmul.f32 %v10055_v39, %v4941_v59 }
 0x4d8   : > { %v4512_v60 = vpop.f32.mrf.mxu1 }
 0x4d9   : > { %v4513_v6 = vadd.f32 %v9869_v13, %v4512_v60  ;;  %v10077_v60 = vld [vmem:[#allocation3 + $0x20] sm:$0xff] }
 0x4da   : > { %11292 = vst [vmem:[#allocation13_spill] sm:$0xff] %v10077_v60 }
 0x4db   : > { %v4564_v25 = vmax.f32 %v4513_v6, 0.0  ;;  %6547 = vmatmul.msk.bf16.gmra.mxu1 %vm3728_vm6, %v4423_v15  ;;  %v4919_v6 = vadd.f32 %v4894_v53, %v4843_v4  ;;  %v4968_v15 = vmul.f32 %v10055_v39, %v4942_v20  ;;  %v10107_v20 = vperm.slane %v10033_v56, 7 }
 0x4dd   : > { %v4739_v43 = vmul.f32 %v9667_v22, %v4564_v25  ;;  %v5044_v25 = vmul.f32 %v10067_v2, %v5018_v30 }
 0x4df   : > { %4794 = vst.msk [vmem:[#allocation3 + $0x50] sm:$0xff] %vm4756_vm7, %v4739_v43  ;;  %v4916_v43 = vadd.f32 %v4891_v34, %v4840_v19  ;;  %v10101_v19 = vld [vmem:[#allocation3 + $0x28] sm:$0xff] }
 0x4e0   : > { %v4514_v50 = vpop.f32.mrf.mxu1  ;;  %11294 = vst [vmem:[#allocation35_spill] sm:$0xff] %v10101_v19 }
 0x4e1   : > { %v4515_v9 = vadd.f32 %v9869_v13, %v4514_v50 }
 0x4e3   : > { %v4565_v27 = vmax.f32 %v4515_v9, 0.0  ;;  %v10083_v9 = vperm.slane %v10033_v56, 4 }
 0x4e5   : > { %v4740_v44 = vmul.f32 %v9611_v29, %v4565_v27  ;;  %v4815_v29 = vld [vmem:[#allocation3 + $0x8] sm:$0xff]  ;;  %v4895_v27 = vmul.f32 %v10040_v0, %v4869_v23  ;;  %v5099_v59 = vmul.f32 %v10083_v9, %v10077_v60  ;;  %v5098_v4 = vmul.f32 %v10083_v9, %v4817_v38 }
 0x4e6   : > { %v4841_v57 = vmul.f32 %v10043_v8, %v4815_v29  ;;  %v10200_v37 = vld [vmem:[#allocation3 + $0x4f] sm:$0xff] }
 0x4e7   : > { %4795 = vst.msk [vmem:[#allocation3 + $0x58] sm:$0xff] %vm4756_vm7, %v4740_v44 }
 0x4e8   : > { %v4517_v32 = vpop.f32.mrf.mxu1  ;;  %v4917_v51 = vadd.f32 %v4892_v21, %v4841_v57  ;;  %v10097_v57 = vld [vmem:[#allocation3 + $0x2f] sm:$0xff]  ;;  %11311 = vst [vmem:[#allocation38_spill] sm:$0xff] %v10200_v37 }
 0x4e9   : > { %v4518_v58 = vadd.f32 %v9869_v13, %v4517_v32  ;;  %v5017_v32 = vld [vmem:[#allocation3 + $0xf] sm:$0xff]  ;;  %11293 = vst [vmem:[#allocation24_spill] sm:$0xff] %v10097_v57 }
 0x4ea   : > { %v4993_v29 = vadd.f32 %v4968_v15, %v4917_v51  ;;  %v5043_v53 = vmul.f32 %v10067_v2, %v5017_v32  ;;  %v10123_v15 = vld [vmem:[#allocation3 + $0x39] sm:$0xff]  ;;  %v4946_v32 = vld [vmem:[#allocation3 + $0x2a] sm:$0xff] }
 0x4eb   : > { %v4566_v16 = vmax.f32 %v4518_v58, 0.0  ;;  %v10087_v58 = vperm.slane %v10033_v56, 5 }
 0x4ed   : > { %v4741_v22 = vmul.f32 %v9635_v3, %v4566_v16  ;;  %v4893_v3 = vmul.f32 %v10040_v0, %v10036_v18  ;;  %v4970_v16 = vmul.f32 %v10055_v39, %v4944_v36  ;;  %v5152_v51 = vmul.f32 %v10087_v58, %v10048_v24 }
 0x4ee   : > { %v4896_v36 = vmul.f32 %v10040_v0, %v4870_v54 }
 0x4ef   : > { %4796 = vst.msk [vmem:[#allocation3 + $0x60] sm:$0xff] %vm4756_vm7, %v4741_v22  ;;  %v4918_v11 = vadd.f32 %v4893_v3, %v4842_v47  ;;  %v5046_v22 = vmul.f32 %v10067_v2, %v10071_v5  ;;  %v4995_v21 = vadd.f32 %v4970_v16, %v4919_v6  ;;  %v4992_v47 = vadd.f32 %v4967_v35, %v4916_v43 }
 0x4f0   : > { %v4519_v42 = vpop.f32.mrf.mxu1  ;;  %v4845_v43 = vmul.f32 %v10043_v8, %v10101_v19 }
 0x4f1   : > { %v4520_v49 = vadd.f32 %v9869_v13, %v4519_v42  ;;  %v4994_v44 = vadd.f32 %v4969_v26, %v4918_v11  ;;  %v10093_v42 = vperm.slane %v10033_v56, 6  ;;  %v5202_v11 = vld [vmem:[#allocation3 + $0x26] sm:$0xff]  ;;  %v5071_v30 = vadd.f32 %v5046_v22, %v4995_v21 }
 0x4f2   : > { %v4971_v26 = vmul.f32 %v10055_v39, %v4945_v12  ;;  %v5100_v56 = vmul.f32 %v10083_v9, %v10101_v19  ;;  %v10120_v6 = vadd.f32 %v5043_v53, %v4992_v47  ;;  %v5154_v22 = vmul.f32 %v10087_v58, %v4870_v54  ;;  %v10204_v19 = vld [vmem:[#allocation3 + $0x57] sm:$0xff] }
 0x4f3   : > { %v4567_v41 = vmax.f32 %v4520_v49, 0.0  ;;  %v4844_v49 = vmul.f32 %v10043_v8, %v10077_v60  ;;  %v5228_v38 = vmul.f32 %v10093_v42, %v5202_v11  ;;  %v4921_v12 = vadd.f32 %v4896_v36, %v4845_v43  ;;  %v4873_v11 = vld [vmem:[#allocation3 + $0x41] sm:$0xff]  ;;  %v4950_v60 = vld [vmem:[#allocation3 + $0x4a] sm:$0xff]  ;;  %11313 = vst [vmem:[#allocation29_spill] sm:$0xff] %v10204_v19 }
 0x4f4   : > { %11295 = vst [vmem:[#allocation22_spill] sm:$0xff] %v10120_v6  ;;  %v5125_v16 = vadd.f32 %v5100_v56, %v5071_v30  ;;  %v10137_v47 = vmul.f32 %v10083_v9, %v10045_v61  ;;  %v4898_v53 = vmul.f32 %v10040_v0, %v10123_v15  ;;  %v4947_v30 = vld [vmem:[#allocation3 + $0x32] sm:$0xff]  ;;  %v10152_v61 = vld [vmem:[#allocation3 + $0x3f] sm:$0xff] }
 0x4f5   : > { %v4742_v48 = vmul.f32 %v9740_v46, %v4567_v41  ;;  %v5045_v46 = vmul.f32 %v10067_v2, %v10061_v17  ;;  %v5069_v41 = vadd.f32 %v5044_v25, %v4993_v29  ;;  %v4920_v34 = vadd.f32 %v4895_v27, %v4844_v49  ;;  %v10125_v25 = vld [vmem:[#allocation3 + $0x30] sm:$0xff]  ;;  %11303 = vst [vmem:[#allocation41_spill] sm:$0xff] %v10152_v61  ;;  %v10170_v56 = vld [vmem:[#allocation3 + $0x40] sm:$0xff] }
 0x4f6   : > { %11296 = vst [vmem:[#allocation27_spill] sm:$0xff] %v10125_v25 }
 0x4f7   : > { %4797 = vst.msk [vmem:[#allocation3 + $0x68] sm:$0xff] %vm4756_vm7, %v4742_v48  ;;  %v5070_v3 = vadd.f32 %v5045_v46, %v4994_v44  ;;  %v5153_v48 = vmul.f32 %v10087_v58, %v4869_v23  ;;  %v5047_v23 = vmul.f32 %v10067_v2, %v10097_v57 }
 0x4f8   : > { %v4522_v33 = vpop.f32.mrf.mxu1  ;;  %11299 = vst [vmem:[#allocation28_spill] sm:$0xff] %v10137_v47 }
 0x4f9   : > { %v4523_v50 = vadd.f32 %v9869_v13, %v4522_v33  ;;  %v5124_v46 = vadd.f32 %v5099_v59, %v5070_v3  ;;  %v5123_v33 = vadd.f32 %v5098_v4, %v5069_v41  ;;  %v10133_v3 = vld [vmem:[#allocation3 + $0x38] sm:$0xff]  ;;  %v5203_v41 = vld [vmem:[#allocation3 + $0x2e] sm:$0xff]  ;;  %v10149_v59 = vmul.f32 %v10087_v58, %v10036_v18  ;;  %11307 = vst [vmem:[#allocation23_spill] sm:$0xff] %v10170_v56 }
 0x4fa   : > { %11298 = vst [vmem:[#allocation21_spill] sm:$0xff] %v10133_v3  ;;  %v4972_v4 = vmul.f32 %v10055_v39, %v4946_v32  ;;  %v4847_v18 = vmul.f32 %v10043_v8, %v10133_v3 }
 0x4fb   : > { %v4568_v52 = vmax.f32 %v4523_v50, 0.0  ;;  %v4996_v50 = vadd.f32 %v4971_v26, %v4920_v34  ;;  %v10129_v27 = vadd.f32 %v5153_v48, %v5124_v46  ;;  %v5177_v29 = vadd.f32 %v5152_v51, %v5123_v33  ;;  %v10143_v34 = vld [vmem:[#allocation3 + $0x37] sm:$0xff]  ;;  %11302 = vst [vmem:[#allocation30_spill] sm:$0xff] %v10149_v59  ;;  %v10160_v26 = vld [vmem:[#allocation3 + $0x49] sm:$0xff] }
 0x4fc   : > { %11300 = vst [vmem:[#allocation39_spill] sm:$0xff] %v10143_v34  ;;  %v5101_v51 = vmul.f32 %v10083_v9, %v10125_v25  ;;  %v10164_v46 = vadd.f32 %v5154_v22, %v5125_v16  ;;  %v4948_v33 = vld [vmem:[#allocation3 + $0x3a] sm:$0xff]  ;;  %v5048_v43 = vmul.f32 %v10067_v2, %v10143_v34  ;;  %v10177_v16 = vld [vmem:[#allocation3 + $0x48] sm:$0xff]  ;;  %v4899_v22 = vmul.f32 %v10040_v0, %v4873_v11 }
 0x4fd   : > { %v4743_v63 = vmul.f32 %v9692_v62, %v4568_v52  ;;  %v4871_v62 = vld [vmem:[#allocation3 + $0x31] sm:$0xff]  ;;  %11297 = vst [vmem:[#allocation37_spill] sm:$0xff] %v10129_v27  ;;  %v5201_v52 = vld [vmem:[#allocation3 + $0x1e] sm:$0xff]  ;;  %v5072_v21 = vadd.f32 %v5047_v23, %v4996_v50  ;;  %v10145_v54 = vadd.f32 %v5228_v38, %v5177_v29  ;;  %v10172_v38 = vld [vmem:[#allocation3 + $0x47] sm:$0xff]  ;;  %v4923_v29 = vadd.f32 %v4898_v53, %v4847_v18 }
 0x4fe   : > { %v4897_v44 = vmul.f32 %v10040_v0, %v4871_v62  ;;  %v10158_v36 = vmul.f32 %v10093_v42, %v5201_v52  ;;  %11305 = vst [vmem:[#allocation33_spill] sm:$0xff] %v10164_v46  ;;  %v4973_v52 = vmul.f32 %v10055_v39, %v4947_v30  ;;  %v4949_v53 = vld [vmem:[#allocation3 + $0x42] sm:$0xff]  ;;  %v5050_v30 = vmul.f32 %v10067_v2, %v10172_v38  ;;  %v10196_v18 = vld [vmem:[#allocation3 + $0x51] sm:$0xff] }
 0x4ff   : > { %4798 = vst.msk [vmem:[#allocation3 + $0x70] sm:$0xff] %vm4756_vm7, %v4743_v63  ;;  %v4846_v63 = vmul.f32 %v10043_v8, %v10125_v25  ;;  %v5126_v50 = vadd.f32 %v5101_v51, %v5072_v21  ;;  %v5102_v21 = vmul.f32 %v10083_v9, %v10133_v3  ;;  %v10209_v25 = vld [vmem:[#allocation3 + $0x50] sm:$0xff]  ;;  %v4975_v5 = vmul.f32 %v10055_v39, %v4949_v53  ;;  %v4876_v53 = vld [vmem:[#allocation3 + $0x59] sm:$0xff]  ;;  %v10284_v59 = vld [vmem:[#allocation3 + $0x68] sm:$0xff] }
 0x500   : > { %v4524_v35 = vpop.f32.mrf.mxu1  ;;  %11301 = vst [vmem:[#allocation20_spill] sm:$0xff] %v10145_v54  ;;  %v10240_v3 = vld [vmem:[#allocation3 + $0x58] sm:$0xff] }
 0x501   : > { %v4525_v24 = vadd.f32 %v9869_v13, %v4524_v35  ;;  %11304 = vst [vmem:[#allocation26_spill] sm:$0xff] %v10158_v36  ;;  %v4922_v23 = vadd.f32 %v4897_v44, %v4846_v63  ;;  %v10167_v35 = vmul.f32 %v10093_v42, %v5203_v41  ;;  %v5155_v44 = vmul.f32 %v10087_v58, %v4871_v62 }
 0x502   : > { %11308 = vst [vmem:[#allocation36_spill] sm:$0xff] %v10172_v38  ;;  %v4848_v63 = vmul.f32 %v10043_v8, %v10170_v56 }
 0x503   : > { %v4569_v49 = vmax.f32 %v4525_v24, 0.0  ;;  %11306 = vst [vmem:[#allocation42_spill] sm:$0xff] %v10167_v35  ;;  %v4997_v24 = vadd.f32 %v4972_v4, %v4921_v12  ;;  %v4900_v12 = vmul.f32 %v10040_v0, %v10160_v26  ;;  %v4998_v4 = vadd.f32 %v4973_v52, %v4922_v23  ;;  %v5205_v52 = vld [vmem:[#allocation3 + $0x3e] sm:$0xff] }
 0x504   : > { %11309 = vst [vmem:[#allocation44_spill] sm:$0xff] %v10177_v16  ;;  %v10202_v31 = vadd.f32 %v5155_v44, %v5126_v50  ;;  %v4924_v17 = vadd.f32 %v4899_v22, %v4848_v63  ;;  %v5103_v23 = vmul.f32 %v10083_v9, %v10170_v56  ;;  %v5051_v50 = vmul.f32 %v10067_v2, %v10200_v37 }
 0x505   : > { %v4744_v48 = vmul.f32 %v9549_v14, %v4569_v49  ;;  %v5204_v14 = vld [vmem:[#allocation3 + $0x36] sm:$0xff]  ;;  %v5049_v49 = vmul.f32 %v10067_v2, %v10152_v61  ;;  %11314 = vst [vmem:[#allocation40_spill] sm:$0xff] %v10209_v25  ;;  %v5157_v22 = vmul.f32 %v10087_v58, %v4873_v11  ;;  %v5104_v11 = vmul.f32 %v10083_v9, %v10177_v16 }
 0x506   : > { %v10189_v62 = vmul.f32 %v10093_v42, %v5204_v14  ;;  %v5073_v14 = vadd.f32 %v5048_v43, %v4997_v24  ;;  %11312 = vst [vmem:[#allocation46_spill] sm:$0xff] %v10202_v31  ;;  %v5156_v24 = vmul.f32 %v10087_v58, %v10123_v15  ;;  %v4901_v43 = vmul.f32 %v10040_v0, %v10196_v18  ;;  %v5210_v31 = vld [vmem:[#allocation3 + $0x66] sm:$0xff] }
 0x507   : > { %4799 = vst.msk [vmem:[#allocation3 + $0x78] sm:$0xff] %vm4756_vm7, %v4744_v48  ;;  %v4974_v48 = vmul.f32 %v10055_v39, %v4948_v33  ;;  %v5074_v54 = vadd.f32 %v5049_v49, %v4998_v4  ;;  %v5052_v49 = vmul.f32 %v10067_v2, %v10204_v19  ;;  %v10224_v15 = vmul.f32 %v10093_v42, %v5205_v52 }
 0x508   : > { %v4527_v32 = vpop.f32.mrf.mxu1  ;;  %11310 = vst [vmem:[#allocation25_spill] sm:$0xff] %v10189_v62  ;;  %v4954_v62 = vld [vmem:[#allocation3 + $0x6a] sm:$0xff] }
 0x509   : > { %v4528_v41 = vadd.f32 %v9869_v13, %v4527_v32  ;;  %v4849_v32 = vmul.f32 %v10043_v8, %v10177_v16  ;;  %v4999_v33 = vadd.f32 %v4974_v48, %v4923_v29  ;;  %v5206_v29 = vld [vmem:[#allocation3 + $0x46] sm:$0xff]  ;;  %11315 = vst [vmem:[#allocation47_spill] sm:$0xff] %v10224_v15  ;;  %v4850_v48 = vmul.f32 %v10043_v8, %v10209_v25 }
 0x50a   : > { %v5128_v4 = vadd.f32 %v5103_v23, %v5074_v54  ;;  %v10236_v52 = vmul.f32 %v10093_v42, %v5206_v29  ;;  %11318 = vst [vmem:[#allocation48_spill] sm:$0xff] %v10240_v3  ;;  %v4853_v16 = vmul.f32 %v10043_v8, %v10284_v59 }
 0x50b   : > { %v4570_v51 = vmax.f32 %v4528_v41, 0.0  ;;  %v4925_v36 = vadd.f32 %v4900_v12, %v4849_v32  ;;  %v5075_v44 = vadd.f32 %v5050_v30, %v4999_v33  ;;  %v5127_v12 = vadd.f32 %v5102_v21, %v5073_v14  ;;  %v10231_v32 = vld [vmem:[#allocation3 + $0x5f] sm:$0xff]  ;;  %v5207_v21 = vld [vmem:[#allocation3 + $0x4e] sm:$0xff]  ;;  %11322 = vst [vmem:[#allocation50_spill] sm:$0xff] %v10284_v59 }
 0x50c   : > { %v5000_v30 = vadd.f32 %v4975_v5, %v4924_v17  ;;  %11317 = vst [vmem:[#allocation43_spill] sm:$0xff] %v10236_v52  ;;  %v4926_v17 = vadd.f32 %v4901_v43, %v4850_v48  ;;  %v10244_v54 = vadd.f32 %v5157_v22, %v5128_v4  ;;  %v10256_v43 = vmul.f32 %v10087_v58, %v10160_v26  ;;  %v10264_v48 = vld [vmem:[#allocation3 + $0x69] sm:$0xff]  ;;  %v4952_v4 = vld [vmem:[#allocation3 + $0x5a] sm:$0xff] }
 0x50d   : > { %v4745_v41 = vmul.f32 %v9581_v7, %v4570_v51  ;;  %v4976_v7 = vmul.f32 %v10055_v39, %v4950_v60  ;;  %v4951_v60 = vld [vmem:[#allocation3 + $0x52] sm:$0xff]  ;;  %v10233_v14 = vadd.f32 %v5156_v24, %v5127_v12  ;;  %v10242_v28 = vadd.f32 %v5104_v11, %v5075_v44 }
 0x50e   : > { %v5076_v5 = vadd.f32 %v5051_v50, %v5000_v30  ;;  %11319 = vst [vmem:[#allocation34_spill] sm:$0xff] %v10244_v54  ;;  %v5105_v24 = vmul.f32 %v10083_v9, %v10209_v25  ;;  %v4977_v29 = vmul.f32 %v10055_v39, %v4951_v60  ;;  %v5053_v12 = vmul.f32 %v10067_v2, %v10231_v32  ;;  %v5208_v50 = vld [vmem:[#allocation3 + $0x56] sm:$0xff] }
 0x50f   : > { %4800 = vst.msk [vmem:[#allocation3 + $0x80] sm:$0xff] %vm4756_vm7, %v4745_v41  ;;  %v5001_v33 = vadd.f32 %v4976_v7, %v4925_v36  ;;  %v10238_v41 = vld [vmem:[#allocation3 + $0x61] sm:$0xff]  ;;  %v10259_v44 = vmul.f32 %v10093_v42, %v5207_v21  ;;  %v4851_v11 = vmul.f32 %v10043_v8, %v10240_v3  ;;  %v5106_v26 = vmul.f32 %v10083_v9, %v10240_v3  ;;  %v10326_v38 = vld [vmem:[#allocation3 + $0x78] sm:$0xff] }
 0x510   : > { %v4529_v63 = vpop.f32.mrf.mxu1  ;;  %11316 = vst [vmem:[#allocation31_spill] sm:$0xff] %v10233_v14  ;;  %v10249_v7 = vld [vmem:[#allocation3 + $0x60] sm:$0xff]  ;;  %v4903_v30 = vmul.f32 %v10040_v0, %v10238_v41  ;;  %v5002_v60 = vadd.f32 %v4977_v29, %v4926_v17  ;;  %v10279_v21 = vmul.f32 %v10087_v58, %v10196_v18  ;;  %v4978_v6 = vmul.f32 %v10055_v39, %v4952_v4  ;;  %v10314_v4 = vld [vmem:[#allocation3 + $0x77] sm:$0xff] }
 0x511   : > { %v4530_v51 = vadd.f32 %v9869_v13, %v4529_v63  ;;  %v4902_v63 = vmul.f32 %v10040_v0, %v4876_v53  ;;  %v5077_v36 = vadd.f32 %v5052_v49, %v5001_v33  ;;  %11320 = vst [vmem:[#allocation45_spill] sm:$0xff] %v10249_v7  ;;  %v10262_v49 = vld [vmem:[#allocation3 + $0x71] sm:$0xff]  ;;  %v5160_v33 = vmul.f32 %v10087_v58, %v4876_v53  ;;  %v5209_v17 = vld [vmem:[#allocation3 + $0x5e] sm:$0xff] }
 0x512   : > { %11321 = vst [vmem:[#allocation49_spill] sm:$0xff] %v10259_v44  ;;  %v4852_v57 = vmul.f32 %v10043_v8, %v10249_v7  ;;  %v10289_v53 = vmul.f32 %v10093_v42, %v5208_v50  ;;  %v4905_v18 = vmul.f32 %v10040_v0, %v10262_v49  ;;  %v4953_v29 = vld [vmem:[#allocation3 + $0x62] sm:$0xff]  ;;  %v5078_v34 = vadd.f32 %v5053_v12, %v5002_v60  ;;  %v5212_v14 = vld [vmem:[#allocation3 + $0x76] sm:$0xff] }
 0x513   : > { %v4571_v23 = vmax.f32 %v4530_v51, 0.0  ;;  %v10272_v51 = vld [vmem:[#allocation3 + $0x67] sm:$0xff]  ;;  %v4927_v56 = vadd.f32 %v4902_v63, %v4851_v11  ;;  %v5131_v47 = vadd.f32 %v5106_v26, %v5077_v36  ;;  %v5107_v11 = vmul.f32 %v10083_v9, %v10249_v7 }
 0x514   : > { %v4928_v36 = vadd.f32 %v4903_v30, %v4852_v57  ;;  %v5054_v50 = vmul.f32 %v10067_v2, %v10272_v51  ;;  %v10310_v12 = vmul.f32 %v10093_v42, %v5209_v17  ;;  %v4955_v57 = vld [vmem:[#allocation3 + $0x72] sm:$0xff]  ;;  %v4979_v60 = vmul.f32 %v10055_v39, %v4953_v29 }
 0x515   : > { %v4746_v22 = vmul.f32 %v9602_v10, %v4571_v23  ;;  %v10275_v10 = vadd.f32 %v5105_v24, %v5076_v5  ;;  %v10282_v23 = vld [vmem:[#allocation3 + $0x70] sm:$0xff]  ;;  %v4904_v24 = vmul.f32 %v10040_v0, %v10264_v48  ;;  %v10307_v46 = vadd.f32 %v5160_v33, %v5131_v47 }
 0x516   : > { %v4854_v26 = vmul.f32 %v10043_v8, %v10282_v23  ;;  %v10312_v30 = vld [vmem:[#allocation3 + $0x7f] sm:$0xff]  ;;  %v5003_v61 = vadd.f32 %v4978_v6, %v4927_v56  ;;  %v5132_v35 = vadd.f32 %v5107_v11, %v5078_v34  ;;  %v5161_v17 = vmul.f32 %v10087_v58, %v10238_v41 }
 0x517   : > { %4801 = vst.msk [vmem:[#allocation3 + $0x88] sm:$0xff] %vm4756_vm7, %v4746_v22  ;;  %v10295_v22 = vld [vmem:[#allocation3 + $0x6f] sm:$0xff]  ;;  %v4880_v25 = vld [vmem:[#allocation3 + $0x79] sm:$0xff]  ;;  %v4929_v33 = vadd.f32 %v4904_v24, %v4853_v16  ;;  %v5004_v27 = vadd.f32 %v4979_v60, %v4928_v36  ;;  %v5108_v29 = vmul.f32 %v10083_v9, %v10284_v59  ;;  %v4981_v56 = vmul.f32 %v10055_v39, %v4955_v57  ;;  %v10347_v57 = vld [vmem:[%s11284_s8] ss:$0 sm:$0xff]  ;;  %s6765_s8 = scalar_lea.hbm %s6764_s7, 1 }
 0x518   : > { %v4532_v5 = vpop.f32.mrf.mxu1  ;;  %v10319_v3 = vld [vmem:[#allocation3 + $0x80] sm:$0xff]  ;;  %v4930_v47 = vadd.f32 %v4905_v18, %v4854_v26  ;;  %v5079_v15 = vadd.f32 %v5054_v50, %v5003_v61  ;;  %v5057_v16 = vmul.f32 %v10067_v2, %v10312_v30  ;;  %v4980_v34 = vmul.f32 %v10055_v39, %v4954_v62  ;;  %p6766_p11 = scmp.ne.s32.totalorder %s6764_s7, %s6765_s8  ;;  %p6771_p1 = scmp.lt.s32.totalorder %s6769_s26, %s6765_s8 }
 0x519   : > { %v4533_v63 = vadd.f32 %v9869_v13, %v4532_v5  ;;  %v5055_v5 = vmul.f32 %v10067_v2, %v10295_v22  ;;  %v5056_v41 = vmul.f32 %v10067_v2, %v10314_v4  ;;  %v4856_v61 = vmul.f32 %v10043_v8, %v10319_v3  ;;  %v5213_v44 = vld [vmem:[#allocation3 + $0x7e] sm:$0xff] }
 0x51a   : > { %v5006_v50 = vadd.f32 %v4981_v56, %v4930_v47  ;;  %v5005_v11 = vadd.f32 %v4980_v34, %v4929_v33  ;;  %v10339_v26 = vadd.f32 %v5161_v17, %v5132_v35  ;;  %v10342_v62 = vmul.f32 %v10093_v42, %v5210_v31  ;;  %v4956_v35 = vld [vmem:[#allocation3 + $0x7a] sm:$0xff]  ;;  %p6767_p12 = pnand %p6766_p11, %p6959_p5  ;;  %p6772_p2 = por %p6771_p1, %p6770_p0 }
 0x51b   : > { %v4572_v13 = vmax.f32 %v4533_v63, 0.0  ;;  %v5080_v24 = vadd.f32 %v5055_v5, %v5004_v27  ;;  %v5109_v5 = vmul.f32 %v10083_v9, %v10282_v23  ;;  %v5133_v56 = vadd.f32 %v5108_v29, %v5079_v15 }
 0x51c   : > { %v5082_v31 = vadd.f32 %v5057_v16, %v5006_v50  ;;  %v5081_v17 = vadd.f32 %v5056_v41, %v5005_v11  ;;  %v5162_v34 = vmul.f32 %v10087_v58, %v10264_v48  ;;  %v5110_v7 = vmul.f32 %v10083_v9, %v10326_v38  ;;  %p6768_p13 = pneg %p6767_p12 }
 0x51d   : > { %v4747_v63 = vmul.f32 %v9808_v45, %v4572_v13  ;;  %v4906_v45 = vmul.f32 %v10040_v0, %v4880_v25  ;;  %v5211_v13 = vld [vmem:[#allocation3 + $0x6e] sm:$0xff]  ;;  %v5163_v15 = vmul.f32 %v10087_v58, %v10262_v49  ;;  %v4982_v16 = vmul.f32 %v10055_v39, %v4956_v35 }
 0x51e   : > { %v4881_v6 = vld [vmem:[#allocation3 + $0x81] sm:$0xff]  ;;  %v5237_v37 = vmul.f32 %v10093_v42, %v5211_v13  ;;  %v5164_v49 = vmul.f32 %v10087_v58, %v4880_v25  ;;  %p6773_p3 = pnand %p6772_p2, %p6768_p13 }
 0x51f   : > { %4802 = vst.msk [vmem:[#allocation3 + $0x90] sm:$0xff] %vm4756_vm7, %v4747_v63  ;;  %v4907_v18 = vmul.f32 %v10040_v0, %v4881_v6  ;;  %v4855_v63 = vmul.f32 %v10043_v8, %v10326_v38  ;;  %v10354_v47 = vld [vmem:[#allocation3 + $0x87] sm:$0xff] }
 0x520   : > { %v4534_v36 = vpop.f32.mrf.mxu1  ;;  %v4957_v33 = vld [vmem:[#allocation3 + $0x82] sm:$0xff]  ;;  %v5058_v41 = vmul.f32 %v10067_v2, %v10354_v47 }
 0x521   : > { %v4535_v60 = vadd.f32 %v10347_v57, %v4534_v36  ;;  %v4932_v27 = vadd.f32 %v4907_v18, %v4856_v61  ;;  %v4931_v52 = vadd.f32 %v4906_v45, %v4855_v63  ;;  %v5134_v36 = vadd.f32 %v5109_v5, %v5080_v24  ;;  %v10367_v48 = vld [vmem:[#allocation3 + $0x88] sm:$0xff] }
 0x522   : > { %v5111_v61 = vmul.f32 %v10083_v9, %v10319_v3  ;;  %v5165_v18 = vmul.f32 %v10087_v58, %v4881_v6  ;;  %v4983_v45 = vmul.f32 %v10055_v39, %v4957_v33  ;;  %v5214_v24 = vld [vmem:[#allocation3 + $0x86] sm:$0xff]  ;;  %v4857_v25 = vmul.f32 %v10043_v8, %v10367_v48 }
 0x523   : > { %v4573_v40 = vmax.f32 %v4535_v60, 0.0  ;;  %v5135_v60 = vadd.f32 %v5110_v7, %v5081_v17  ;;  %v5007_v63 = vadd.f32 %v4982_v16, %v4931_v52  ;;  %v5240_v7 = vmul.f32 %v10093_v42, %v5214_v24 }
 0x524   : > { %v5136_v13 = vadd.f32 %v5111_v61, %v5082_v31  ;;  %v5008_v5 = vadd.f32 %v4983_v45, %v4932_v27  ;;  %v5112_v24 = vmul.f32 %v10083_v9, %v10367_v48 }
 0x525   : > { %v4748_v29 = vmul.f32 %v9642_v1, %v4573_v40  ;;  %v5238_v1 = vmul.f32 %v10093_v42, %v5212_v14  ;;  %v5083_v31 = vadd.f32 %v5058_v41, %v5007_v63  ;;  %v5189_v61 = vadd.f32 %v5164_v49, %v5135_v60 }
 0x526   : > { %v4882_v50 = vld [vmem:[#allocation3 + $0x89] sm:$0xff]  ;;  %v5190_v19 = vadd.f32 %v5165_v18, %v5136_v13  ;;  %v5262_v60 = vadd.f32 %v5237_v37, %v10339_v26 }
 0x527   : > { %v10373_v6 = vld [vmem:[#allocation3 + $0x90] sm:$0xff]  ;;  %4803 = vst.msk [vmem:[#allocation3 + $0x98] sm:$0xff] %vm4756_vm7, %v4748_v29  ;;  %v4908_v40 = vmul.f32 %v10040_v0, %v4882_v50  ;;  %v5239_v29 = vmul.f32 %v10093_v42, %v5213_v44  ;;  %v5166_v13 = vmul.f32 %v10087_v58, %v4882_v50  ;;  %v5265_v63 = vadd.f32 %v5240_v7, %v5189_v61  ;;  %v10397_v44 = vld [vmem:[%s11049_s9 + $0x8] ss:$0 sm:$0xff] }
 0x528   : > { %v5033_v11 = vld [vmem:[#allocation3 + $0x8f] sm:$0xff]  ;;  %v4537_v54 = vpop.f32.mrf.mxu1  ;;  %v5113_v52 = vmul.f32 %v10083_v9, %v10373_v6 }
 0x529   : > { %v5059_v35 = vmul.f32 %v10067_v2, %v5033_v11  ;;  %v5215_v33 = vld [vmem:[#allocation3 + $0x8e] sm:$0xff]  ;;  %v4538_v14 = vadd.f32 %v10347_v57, %v4537_v54  ;;  %v4933_v16 = vadd.f32 %v4908_v40, %v4857_v25  ;;  %v4699_v54 = vpop.permute.xlu1 %4698  ;;  %v5295_v41 = vmul.f32 %v10107_v20, %v5033_v11 }
 0x52a   : > { %v5241_v59 = vmul.f32 %v10093_v42, %v5215_v33  ;;  %v4958_v18 = vld [vmem:[#allocation3 + $0x8a] sm:$0xff] }
 0x52b   : > { %v5084_v17 = vadd.f32 %v5059_v35, %v5008_v5  ;;  %v4574_v45 = vmax.f32 %v4538_v14, 0.0  ;;  %v5188_v5 = vadd.f32 %v5163_v15, %v5134_v36  ;;  %v5187_v35 = vadd.f32 %v5162_v34, %v5133_v56 }
 0x52c   : > { %v5266_v27 = vadd.f32 %v5241_v59, %v5190_v19  ;;  %v5137_v59 = vadd.f32 %v5112_v24, %v5083_v31  ;;  %v4984_v49 = vmul.f32 %v10055_v39, %v4958_v18  ;;  %v5294_v36 = vmul.f32 %v10107_v20, %v10354_v47 }
 0x52d   : > { %v10391_v33 = vadd.f32 %v5113_v52, %v5084_v17  ;;  %v4749_v19 = vmul.f32 %v4699_v54, %v4574_v45  ;;  %v5264_v56 = vadd.f32 %v5239_v29, %v5188_v5  ;;  %v5263_v34 = vadd.f32 %v5238_v1, %v5187_v35 }
 0x52e   : > { %v10401_v50 = vld [vmem:[#allocation3 + $0x98] sm:$0xff]  ;;  %v5320_v14 = vadd.f32 %v5295_v41, %v5266_v27  ;;  %v5191_v11 = vadd.f32 %v5166_v13, %v5137_v59  ;;  %v5009_v37 = vadd.f32 %v4984_v49, %v4933_v16  ;;  %v5349_v17 = vmul.f32 %v10397_v44, %v10373_v6 }
 0x52f   : > { %v5034_v40 = vld [vmem:[#allocation3 + $0x97] sm:$0xff]  ;;  %4804 = vst.msk [vmem:[#allocation3 + $0xa0] sm:$0xff] %vm4756_vm7, %v4749_v19  ;;  %v5319_v52 = vadd.f32 %v5294_v36, %v5265_v63  ;;  %v5293_v47 = vmul.f32 %v10107_v20, %v10312_v30  ;;  %v5114_v29 = vmul.f32 %v10083_v9, %v10401_v50  ;;  %v5348_v16 = vmul.f32 %v10397_v44, %v10367_v48 }
 0x530   : > { %v5216_v25 = vld [vmem:[#allocation3 + $0x96] sm:$0xff]  ;;  %v5060_v15 = vmul.f32 %v10067_v2, %v5034_v40  ;;  %v4539_v26 = vpop.f32.mrf.mxu1  ;;  %v5296_v31 = vmul.f32 %v10107_v20, %v5034_v40  ;;  %v5374_v18 = vadd.f32 %v5349_v17, %v5320_v14  ;;  %v5292_v24 = vmul.f32 %v10107_v20, %v10314_v4 }
 0x531   : > { %v5242_v7 = vmul.f32 %v10093_v42, %v5216_v25  ;;  %v4540_v1 = vadd.f32 %v10347_v57, %v4539_v26  ;;  %v5318_v45 = vadd.f32 %v5293_v47, %v5264_v56  ;;  %v5350_v30 = vmul.f32 %v10397_v44, %v10401_v50  ;;  %v10434_v59 = vld [vmem:[%s11050_s10] ss:$0 sm:$0xff]  ;;  %v11326_v26 = vld [vmem:[#allocation49_spill] sm:$0xff] }
 0x532   : > { %v5085_v61 = vadd.f32 %v5060_v15, %v5009_v37  ;;  %v5317_v63 = vadd.f32 %v5292_v24, %v5263_v34  ;;  %v5291_v5 = vmul.f32 %v10107_v20, %v10295_v22  ;;  %v5261_v35 = vadd.f32 %v10342_v62, %v10307_v46  ;;  %v11323_v15 = vld [vmem:[#allocation50_spill] sm:$0xff]  ;;  %v11327_v47 = vld [vmem:[#allocation45_spill] sm:$0xff] }
 0x533   : > { %v5267_v27 = vadd.f32 %v5242_v7, %v5191_v11  ;;  %v4575_v13 = vmax.f32 %v4540_v1, 0.0  ;;  %v5184_v48 = vadd.f32 %v10279_v21, %v10275_v10  ;;  %v5373_v49 = vadd.f32 %v5348_v16, %v5319_v52  ;;  %v11324_v7 = vld [vmem:[#allocation29_spill] sm:$0xff]  ;;  %v11330_v16 = vld [vmem:[#allocation43_spill] sm:$0xff]  ;;  %v11331_v24 = vld [vmem:[#allocation18_spill] sm:$0xff] }
 0x534   : > { %v10422_v41 = vadd.f32 %v5114_v29, %v5085_v61  ;;  %v5347_v40 = vmul.f32 %v10397_v44, %v10319_v3  ;;  %v5316_v25 = vadd.f32 %v5291_v5, %v5262_v60  ;;  %v5290_v22 = vmul.f32 %v10107_v20, %v10272_v51  ;;  %v11328_v61 = vld [vmem:[#allocation38_spill] sm:$0xff] }
 0x535   : > { %v5321_v54 = vadd.f32 %v5296_v31, %v5267_v27  ;;  %v4750_v19 = vmul.f32 %v9885_v55, %v4575_v13  ;;  %v5260_v46 = vadd.f32 %v10310_v12, %v5184_v48  ;;  %v5183_v10 = vadd.f32 %v10256_v43, %v10242_v28 }
 0x536   : > { %v5403_v21 = vadd.f32 %v10434_v59, %v5374_v18  ;;  %v5372_v62 = vadd.f32 %v5347_v40, %v5318_v45  ;;  %v5346_v14 = vmul.f32 %v10397_v44, %v10326_v38  ;;  %v5345_v60 = vmul.f32 %v10397_v44, %v10282_v23  ;;  %v11325_v23 = vld [vmem:[#allocation34_spill] sm:$0xff]  ;;  %v11329_v18 = vld [vmem:[#allocation31_spill] sm:$0xff]  ;;  %v11335_v40 = vld [vmem:[#allocation37_spill] sm:$0xff] }
 0x537   : > { %v5375_v4 = vadd.f32 %v5350_v30, %v5321_v54  ;;  %4805 = vst.msk [vmem:[#allocation3 + $0xa8] sm:$0xff] %vm4756_vm7, %v4750_v19  ;;  %v5315_v51 = vadd.f32 %v5290_v22, %v5261_v35  ;;  %v5289_v12 = vmul.f32 %v10107_v20, %v10231_v32  ;;  %v5259_v28 = vadd.f32 %v10289_v53, %v5183_v10  ;;  %v11332_v35 = vld [vmem:[#allocation36_spill] sm:$0xff]  ;;  %v11333_v19 = vld [vmem:[#allocation46_spill] sm:$0xff] }
 0x538   : > { %v4542_v3 = vpop.f32.mrf.mxu1  ;;  %v5402_v56 = vadd.f32 %v10434_v59, %v5373_v49  ;;  %v5371_v34 = vadd.f32 %v5346_v14, %v5317_v63  ;;  %v5344_v11 = vmul.f32 %v10397_v44, %v11323_v15  ;;  %v5288_v37 = vmul.f32 %v10107_v20, %v11324_v7  ;;  %v11342_v7 = vld [vmem:[#allocation44_spill] sm:$0xff] }
 0x539   : > { %v5404_v55 = vadd.f32 %v10434_v59, %v5375_v4  ;;  %v4543_v43 = vadd.f32 %v10347_v57, %v4542_v3  ;;  %v5314_v38 = vadd.f32 %v5289_v12, %v5260_v46  ;;  %v5258_v31 = vadd.f32 %v11326_v26, %v11325_v23  ;;  %v11334_v4 = vld [vmem:[#allocation47_spill] sm:$0xff]  ;;  %v11338_v3 = vld [vmem:[#allocation40_spill] sm:$0xff]  ;;  %v11339_v12 = vld [vmem:[#allocation41_spill] sm:$0xff] }
 0x53a   : > { %v5428_v32 = vmax.f32 %v5403_v21, 0.0  ;;  %v5401_v53 = vadd.f32 %v10434_v59, %v5372_v62  ;;  %v5370_v52 = vadd.f32 %v5345_v60, %v5316_v25  ;;  %v5343_v1 = vmul.f32 %v10397_v44, %v11327_v47  ;;  %v11336_v25 = vld [vmem:[#allocation42_spill] sm:$0xff]  ;;  %v11337_v21 = vld [vmem:[#allocation48_spill] sm:$0xff]  ;;  %v11343_v26 = vld [vmem:[#allocation39_spill] sm:$0xff] }
 0x53b   : > { %v5429_v36 = vmax.f32 %v5404_v55, 0.0  ;;  %v4576_v17 = vmax.f32 %v4543_v43, 0.0  ;;  %v5313_v27 = vadd.f32 %v5288_v37, %v5259_v28  ;;  %v5287_v29 = vmul.f32 %v10107_v20, %v11328_v61  ;;  %v11340_v43 = vld [vmem:[#allocation33_spill] sm:$0xff] }
 0x53c   : > { %v5257_v45 = vadd.f32 %v11330_v16, %v11329_v18  ;;  %v5427_v54 = vmax.f32 %v5402_v56, 0.0  ;;  %v5400_v30 = vadd.f32 %v10434_v59, %v5371_v34  ;;  %v5369_v63 = vadd.f32 %v5344_v11, %v5315_v51  ;;  %v11347_v16 = vld [vmem:[#allocation24_spill] sm:$0xff] }
 0x53d   : > { %5484 = vmatpush.msrb.mxu2 %v5429_v36  ;;  %v4751_v13 = vmul.f32 %v11331_v24, %v4576_v17  ;;  %v5312_v5 = vadd.f32 %v5287_v29, %v5258_v31  ;;  %v5286_v48 = vmul.f32 %v10107_v20, %v11332_v35  ;;  %v5256_v49 = vadd.f32 %v11334_v4, %v11333_v19  ;;  %v11341_v36 = vld [vmem:[#allocation25_spill] sm:$0xff]  ;;  %v11344_v17 = vld [vmem:[#allocation22_spill] sm:$0xff]  ;;  %v11346_v29 = vld [vmem:[#allocation23_spill] sm:$0xff] }
 0x53e   : > { %v5254_v22 = vadd.f32 %v11336_v25, %v11335_v40  ;;  %v5426_v46 = vmax.f32 %v5401_v53, 0.0  ;;  %v5399_v10 = vadd.f32 %v10434_v59, %v5370_v52  ;;  %v5368_v55 = vadd.f32 %v5343_v1, %v5314_v38  ;;  %v11348_v24 = vld [vmem:[#allocation30_spill] sm:$0xff]  ;;  %v11350_v19 = vld [vmem:[#allocation21_spill] sm:$0xff] }
 0x53f   : > { %5485 = vmatpush.msrb.mxu2 %v5428_v32  ;;  %4806 = vst.msk [vmem:[#allocation3 + $0xb0] sm:$0xff] %vm4756_vm7, %v4751_v13  ;;  %v5342_v62 = vmul.f32 %v10397_v44, %v11337_v21  ;;  %v5341_v60 = vmul.f32 %v10397_v44, %v11338_v3  ;;  %v5311_v51 = vadd.f32 %v5286_v48, %v5257_v45  ;;  %v5425_v15 = vmax.f32 %v5400_v30, 0.0  ;;  %v11345_v32 = vld [vmem:[#allocation28_spill] sm:$0xff] }
 0x540   : > { %v4544_v14 = vpop.f32.mrf.mxu1  ;;  %v5285_v28 = vmul.f32 %v10107_v20, %v11339_v12  ;;  %v5255_v56 = vadd.f32 %v11341_v36, %v11340_v43  ;;  %v5398_v11 = vadd.f32 %v10434_v59, %v5369_v63  ;;  %v5340_v37 = vmul.f32 %v10397_v44, %v11342_v7  ;;  %v11355_v12 = vld [vmem:[#allocation16_spill] sm:$0xff] }
 0x541   : > { %5486 = vmatpush.msrb.mxu2 %v5427_v54  ;;  %v4545_v34 = vadd.f32 %v10347_v57, %v4544_v14  ;;  %v5367_v38 = vadd.f32 %v5342_v62, %v5313_v27  ;;  %v5284_v31 = vmul.f32 %v10107_v20, %v11343_v26  ;;  %v5122_v53 = vadd.f32 %v11345_v32, %v11344_v17  ;;  %v11349_v54 = vld [vmem:[#allocation15_spill] sm:$0xff]  ;;  %v11357_v26 = vld [vmem:[#allocation13_spill] sm:$0xff] }
 0x542   : > { %v5310_v23 = vadd.f32 %v5285_v28, %v5256_v49  ;;  %v5424_v47 = vmax.f32 %v5399_v10, 0.0  ;;  %v5397_v1 = vadd.f32 %v10434_v59, %v5368_v55  ;;  %v5366_v61 = vadd.f32 %v5341_v60, %v5312_v5  ;;  %v11351_v49 = vld [vmem:[#allocation32_spill] sm:$0xff]  ;;  %v11352_v55 = vld [vmem:[#allocation26_spill] sm:$0xff]  ;;  %v11353_v14 = vld [vmem:[#allocation27_spill] sm:$0xff] }
 0x543   : > { %5487 = vmatpush.msrb.mxu2 %v5426_v46  ;;  %v4577_v52 = vmax.f32 %v4545_v34, 0.0  ;;  %v5339_v18 = vmul.f32 %v10397_v44, %v11346_v29  ;;  %v5309_v27 = vadd.f32 %v5284_v31, %v5255_v56  ;;  %v5283_v45 = vmul.f32 %v10107_v20, %v11347_v16  ;;  %v11354_v60 = vld [vmem:[#allocation20_spill] sm:$0xff]  ;;  %v10521_v17 = vld [vmem:[#allocation3 + $0x91] sm:$0xff] }
 0x544   : > { %v5176_v13 = vadd.f32 %v11348_v24, %v5122_v53  ;;  %v5423_v63 = vmax.f32 %v5398_v11, 0.0  ;;  %v5396_v35 = vadd.f32 %v10434_v59, %v5367_v38  ;;  %v5365_v48 = vadd.f32 %v5340_v37, %v5311_v51  ;;  %v11358_v32 = vld [vmem:[#allocation19_spill] sm:$0xff] }
 0x545   : > { %5488 = vmatpush.msrb.mxu2 %v5425_v15  ;;  %v4752_v30 = vmul.f32 %v11349_v54, %v4577_v52  ;;  %v5338_v4 = vmul.f32 %v10397_v44, %v11350_v19  ;;  %v5308_v5 = vadd.f32 %v5283_v45, %v5254_v22  ;;  %v5282_v40 = vmul.f32 %v10107_v20, %v11351_v49  ;;  %v11356_v15 = vld [vmem:[#allocation35_spill] sm:$0xff]  ;;  %v10538_v49 = vld [vmem:[#allocation3 + $0x9f] sm:$0xff] }
 0x546   : > { %v5422_v25 = vmax.f32 %v5397_v1, 0.0  ;;  %v5395_v46 = vadd.f32 %v10434_v59, %v5366_v61  ;;  %v5364_v10 = vadd.f32 %v5339_v18, %v5310_v23  ;;  %v5252_v21 = vadd.f32 %v11352_v55, %v5176_v13  ;;  %v10545_v55 = vld [vmem:[#allocation3 + $0xa1] sm:$0xff] }
 0x547   : > { %5489 = vmatpush.msrb.mxu2 %v5424_v47  ;;  %4807 = vst.msk [vmem:[#allocation3 + $0xb8] sm:$0xff] %vm4756_vm7, %v4752_v30  ;;  %v5337_v3 = vmul.f32 %v10397_v44, %v11353_v14  ;;  %v5307_v51 = vadd.f32 %v5282_v40, %v11354_v60  ;;  %v5281_v22 = vmul.f32 %v10107_v20, %v11355_v12  ;;  %v5421_v43 = vmax.f32 %v5396_v35, 0.0  ;;  %v4959_v35 = vld [vmem:[#allocation3 + $0x92] sm:$0xff]  ;;  %v4960_v14 = vld [vmem:[#allocation3 + $0x9a] sm:$0xff]  ;;  %v10555_v12 = vld [vmem:[#allocation3 + $0xa8] sm:$0xff] }
 0x548   : > { %v4547_v62 = vpop.f32.mrf.mxu1  ;;  %v5394_v36 = vadd.f32 %v10434_v59, %v5365_v48  ;;  %v5363_v56 = vadd.f32 %v5338_v4, %v5309_v27  ;;  %v5336_v11 = vmul.f32 %v10397_v44, %v11356_v15  ;;  %v5420_v7 = vmax.f32 %v5395_v46, 0.0  ;;  %v10527_v27 = vld [vmem:[#allocation3 + $0x99] sm:$0xff] }
 0x549   : > { %5490 = vmatpush.msrb.mxu2 %v5423_v63  ;;  %v4548_v28 = vadd.f32 %v10347_v57, %v4547_v62  ;;  %v5362_v34 = vadd.f32 %v5337_v3, %v5308_v5  ;;  %v5393_v37 = vadd.f32 %v10434_v59, %v5364_v10  ;;  %v5306_v23 = vadd.f32 %v5281_v22, %v5252_v21  ;;  %v10550_v3 = vld [vmem:[#allocation3 + $0xa7] sm:$0xff] }
 0x54a   : > { %v5335_v31 = vmul.f32 %v10397_v44, %v11357_v26  ;;  %v5419_v52 = vmax.f32 %v5394_v36, 0.0  ;;  %v5392_v47 = vadd.f32 %v10434_v59, %v5363_v56  ;;  %v5361_v1 = vadd.f32 %v5336_v11, %v5307_v51  ;;  %v10557_v22 = vld [vmem:[#allocation3 + $0xa0] sm:$0xff]  ;;  %v10561_v56 = vld [vmem:[#allocation3 + $0xb0] sm:$0xff] }
 0x54b   : > { %5491 = vmatpush.msrb.mxu2 %v5422_v25  ;;  %v4578_v38 = vmax.f32 %v4548_v28, 0.0  ;;  %v5418_v61 = vmax.f32 %v5393_v37, 0.0  ;;  %v5391_v29 = vadd.f32 %v10434_v59, %v5362_v34  ;;  %v4909_v16 = vmul.f32 %v10040_v0, %v10521_v17  ;;  %v11359_v25 = vld [vmem:[#allocation14_spill] sm:$0xff] }
 0x54c   : > { %v5360_v18 = vadd.f32 %v5335_v31, %v5306_v23  ;;  %v5417_v13 = vmax.f32 %v5392_v47, 0.0  ;;  %v5390_v54 = vadd.f32 %v10434_v59, %v5361_v1  ;;  %v4858_v30 = vmul.f32 %v10043_v8, %v10373_v6  ;;  %v10543_v6 = vld [vmem:[#allocation3 + $0xa9] sm:$0xff] }
 0x54d   : > { %5492 = vmatpush.msrb.mxu2 %v5421_v43  ;;  %v4753_v53 = vmul.f32 %v11358_v32, %v4578_v38  ;;  %v4910_v63 = vmul.f32 %v10040_v0, %v10527_v27  ;;  %v5416_v19 = vmax.f32 %v5391_v29, 0.0  ;;  %v4859_v40 = vmul.f32 %v10043_v8, %v10401_v50  ;;  %v4962_v32 = vld [vmem:[#allocation3 + $0xaa] sm:$0xff] }
 0x54e   : > { %v5389_v4 = vadd.f32 %v10434_v59, %v5360_v18  ;;  %v4934_v5 = vadd.f32 %v4909_v16, %v4858_v30  ;;  %v5415_v10 = vmax.f32 %v5390_v54, 0.0  ;;  %v4985_v21 = vmul.f32 %v10055_v39, %v4959_v35  ;;  %v10548_v62 = vld [vmem:[#allocation3 + $0xb1] sm:$0xff]  ;;  %v11360_v35 = vld [vmem:[#allocation17_spill] sm:$0xff] }
 0x54f   : > { %5493 = vmatpush.msrb.mxu2 %v5420_v7  ;;  %4808 = vst.msk [vmem:[#allocation3 + $0xc0] sm:$0xff] %vm4756_vm7, %v4753_v53  ;;  %v4935_v60 = vadd.f32 %v4910_v63, %v4859_v40  ;;  %v5061_v28 = vmul.f32 %v10067_v2, %v10538_v49  ;;  %v4912_v34 = vmul.f32 %v10040_v0, %v10543_v6  ;;  %v10568_v38 = vld [vmem:[#allocation3 + $0xb8] sm:$0xff]  ;;  %v4961_v53 = vld [vmem:[#allocation3 + $0xa2] sm:$0xff]  ;;  %v10585_v29 = vld [vmem:[#allocation3 + $0xaf] sm:$0xff] }
 0x550   : > { %v4549_v45 = vpop.f32.mrf.mxu1  ;;  %v5414_v50 = vmax.f32 %v5389_v4, 0.0  ;;  %v5010_v43 = vadd.f32 %v4985_v21, %v4934_v5  ;;  %v4911_v15 = vmul.f32 %v10040_v0, %v10545_v55  ;;  %v4913_v7 = vmul.f32 %v10040_v0, %v10548_v62  ;;  %v4963_v1 = vld [vmem:[#allocation3 + $0xb2] sm:$0xff] }
 0x551   : > { %5494 = vmatpush.msrb.mxu2 %v5419_v52  ;;  %v4550_v24 = vadd.f32 %v10347_v57, %v4549_v45  ;;  %v4986_v37 = vmul.f32 %v10055_v39, %v4960_v14  ;;  %v5062_v23 = vmul.f32 %v10067_v2, %v10550_v3  ;;  %v4861_v31 = vmul.f32 %v10043_v8, %v10555_v12 }
 0x552   : > { %v4862_v47 = vmul.f32 %v10043_v8, %v10561_v56  ;;  %v5086_v16 = vadd.f32 %v5061_v28, %v5010_v43  ;;  %v4987_v5 = vmul.f32 %v10055_v39, %v4961_v53  ;;  %v5063_v14 = vmul.f32 %v10067_v2, %v10585_v29 }
 0x553   : > { %5495 = vmatpush.msrb.mxu2 %v5418_v61  ;;  %v4579_v48 = vmax.f32 %v4550_v24, 0.0  ;;  %v10583_v61 = vld [vmem:[#allocation3 + $0xb7] sm:$0xff]  ;;  %v5011_v18 = vadd.f32 %v4986_v37, %v4935_v60  ;;  %v4937_v30 = vadd.f32 %v4912_v34, %v4861_v31  ;;  %v4989_v28 = vmul.f32 %v10055_v39, %v4963_v1 }
 0x554   : > { %v4938_v4 = vadd.f32 %v4913_v7, %v4862_v47  ;;  %v5064_v21 = vmul.f32 %v10067_v2, %v10583_v61  ;;  %v5116_v47 = vmul.f32 %v10083_v9, %v10555_v12 }
 0x555   : > { %5496 = vmatpush.msrb.mxu2 %v5417_v13  ;;  %v4754_v46 = vmul.f32 %v11359_v25, %v4579_v48  ;;  %v4863_v13 = vmul.f32 %v10043_v8, %v10568_v38  ;;  %v5087_v40 = vadd.f32 %v5062_v23, %v5011_v18  ;;  %v5115_v23 = vmul.f32 %v10083_v9, %v10557_v22 }
 0x556   : > { %v10553_v51 = vld [vmem:[#allocation3 + $0xb9] sm:$0xff]  ;;  %v4889_v24 = vld [vmem:[#allocation3 + $0xc1] sm:$0x7]  ;;  %v5014_v37 = vadd.f32 %v4989_v28, %v4938_v4 }
 0x557   : > { %5497 = vmatpush.msrb.mxu2 %v5416_v19  ;;  %4809 = vst.msk [vmem:[#allocation3 + $0xc8] sm:$0xff] %vm4756_vm7, %v4754_v46  ;;  %v4914_v26 = vmul.f32 %v10040_v0, %v10553_v51  ;;  %v4838_v45 = vld [vmem:[#allocation3 + $0xc0] sm:$0x7] }
 0x558   : > { %v4552_v36 = vpop.f32.mrf.mxu1  ;;  %v10589_v54 = vld [vmem:[#allocation3 + $0xbf] sm:$0xff]  ;;  %v4864_v60 = vmul.f32 %v10043_v8, %v4838_v45 }
 0x559   : > { %5498 = vmatpush.msrb.mxu2 %v5415_v10  ;;  %v4553_v11 = vadd.f32 %v10347_v57, %v4552_v36  ;;  %v4860_v57 = vmul.f32 %v10043_v8, %v10557_v22  ;;  %v4964_v19 = vld [vmem:[#allocation3 + $0xba] sm:$0xff]  ;;  %v4939_v25 = vadd.f32 %v4914_v26, %v4863_v13  ;;  %v4988_v10 = vmul.f32 %v10055_v39, %v4962_v32  ;;  %v4965_v26 = vld [vmem:[#allocation3 + $0xc2] sm:$0x7] }
 0x55a   : > { %v5065_v43 = vmul.f32 %v10067_v2, %v10589_v54  ;;  %v4990_v34 = vmul.f32 %v10055_v39, %v4964_v19  ;;  %v10617_v8 = vmul.f32 %v10087_v58, %v10521_v17  ;;  %v10619_v32 = vld [vmem:[#allocation3 + $0xc0] sm:$0xff]  ;;  %v10629_v17 = vmul.f32 %v10087_v58, %v10545_v55  ;;  %v5224_v19 = vld [vmem:[#allocation3 + $0xd6] sm:$0xff] }
 0x55b   : > { %5499 = vmatpush.msrb.mxu2 %v5414_v50  ;;  %v4580_v52 = vmax.f32 %v4553_v11, 0.0  ;;  %v4936_v63 = vadd.f32 %v4911_v15, %v4860_v57  ;;  %v4915_v50 = vmul.f32 %v10040_v0, %v4889_v24  ;;  %v5013_v11 = vadd.f32 %v4988_v10, %v4937_v30 }
 0x55c   : > { %v10613_v0 = vmul.f32 %v10087_v58, %v10527_v27  ;;  %v5015_v31 = vadd.f32 %v4990_v34, %v4939_v25  ;;  %v5090_v45 = vadd.f32 %v5065_v43, %v5014_v37  ;;  %v10625_v27 = vadd.f32 %v5115_v23, %v5086_v16 }
 0x55d   : > { %v4755_v48 = vmul.f32 %v11360_v35, %v4580_v52  ;;  %v5012_v7 = vadd.f32 %v4987_v5, %v4936_v63  ;;  %v5089_v53 = vadd.f32 %v5064_v21, %v5013_v11  ;;  %v4940_v1 = vadd.f32 %v4915_v50, %v4864_v60  ;;  %v5221_v5 = vld [vmem:[#allocation3 + $0xbe] sm:$0xff] }
 0x55e   : > { %v10593_v46 = vld [vmem:[#allocation3 + $0xc7] sm:$0xff]  ;;  %v5118_v13 = vmul.f32 %v10083_v9, %v10568_v38  ;;  %v5117_v30 = vmul.f32 %v10083_v9, %v10561_v56  ;;  %v5141_v63 = vadd.f32 %v5116_v47, %v5087_v40  ;;  %v4991_v35 = vmul.f32 %v10055_v39, %v4965_v26 }
 0x55f   : > { %4811 = vst.msk [vmem:[#allocation3 + $0xd0] sm:$0x7] %vm4810_vm9, %v4755_v48  ;;  %v5066_v15 = vmul.f32 %v10067_v2, %v10593_v46  ;;  %v5147_v57 = vld [vmem:[#allocation3 + $0xc1] sm:$0xff]  ;;  %v5088_v52 = vadd.f32 %v5063_v14, %v5012_v7  ;;  %v5225_v48 = vld [vmem:[#allocation3 + $0xde] sm:$0x7]  ;;  %v5119_v16 = vmul.f32 %v10083_v9, %v10619_v32  ;;  %v5170_v55 = vmul.f32 %v10087_v58, %v10543_v6 }
 0x560   : > { %v4554_v36 = vpop.f32.mrf.mxu1  ;;  %v10623_v18 = vld [vmem:[#allocation3 + $0xc8] sm:$0xff]  ;;  %v5173_v4 = vmul.f32 %v10087_v58, %v5147_v57  ;;  %v5143_v14 = vadd.f32 %v5118_v13, %v5089_v53  ;;  %v5171_v39 = vmul.f32 %v10087_v58, %v10548_v62  ;;  %v5016_v50 = vadd.f32 %v4991_v35, %v4940_v1  ;;  %v5279_v57 = vld [vmem:[#allocation3 + $0xdf] sm:$0x7] }
 0x561   : > { %v5091_v24 = vadd.f32 %v5066_v15, %v5015_v31  ;;  %v5120_v21 = vmul.f32 %v10083_v9, %v10623_v18  ;;  %v5222_v40 = vld [vmem:[#allocation3 + $0xc6] sm:$0xff]  ;;  %v5142_v60 = vadd.f32 %v5117_v30, %v5088_v52  ;;  %v5278_v36 = vld [vmem:[#allocation3 + $0xd7] sm:$0xff]  ;;  %v5144_v34 = vadd.f32 %v5119_v16, %v5090_v45 }
 0x562   : > { %v5172_v6 = vmul.f32 %v10087_v58, %v10553_v51  ;;  %v5250_v23 = vmul.f32 %v10093_v42, %v5224_v19  ;;  %v5248_v53 = vmul.f32 %v10093_v42, %v5222_v40  ;;  %v5220_v52 = vld [vmem:[#allocation3 + $0xb6] sm:$0xff]  ;;  %v5251_v47 = vmul.f32 %v10093_v42, %v5225_v48  ;;  %v5333_v19 = vld [vmem:[#allocation3 + $0xe0] sm:$0x7] }
 0x563   : > { %v5145_v7 = vadd.f32 %v5120_v21, %v5091_v24  ;;  %v5439_v51 = vld [vmem:[%s11051_s11] sm:$0xff]  ;;  %v5304_v45 = vmul.f32 %v10107_v20, %v5278_v36  ;;  %v5247_v30 = vmul.f32 %v10093_v42, %v5221_v5  ;;  %v5196_v40 = vadd.f32 %v5171_v39, %v5142_v60  ;;  %v5218_v36 = vld [vmem:[#allocation3 + $0xa6] sm:$0xff] }
 0x564   : > { %v5332_v24 = vld [vmem:[#allocation3 + $0xd8] sm:$0xff]  ;;  %5500 = vmatmul.f32.vlgmr.msrb.gmra.mxu2 %v5439_v51  ;;  %v5246_v48 = vmul.f32 %v10093_v42, %v5220_v52  ;;  %v5302_v60 = vmul.f32 %v10107_v20, %v10593_v46  ;;  %v5193_v51 = vadd.f32 %v10613_v0, %v10422_v41  ;;  %v5355_v0 = vmul.f32 %v10397_v44, %v10619_v32 }
 0x565   : > { %v5272_v39 = vadd.f32 %v5247_v30, %v5196_v40  ;;  %v5297_v32 = vmul.f32 %v10107_v20, %v10538_v49 }
 0x566   : > { %v5041_v25 = vld [vmem:[#allocation3 + $0xcf] sm:$0x7] }
 0x567   : > { %v5095_v10 = vld [vmem:[#allocation3 + $0xd0] sm:$0x7]  ;;  %v5067_v28 = vmul.f32 %v10067_v2, %v5041_v25  ;;  %v5198_v2 = vadd.f32 %v5173_v4, %v5144_v34  ;;  %v5197_v4 = vadd.f32 %v5172_v6, %v5143_v14  ;;  %v5359_v34 = vmul.f32 %v10397_v44, %v5333_v19 }
 0x568   : > { %v5148_v43 = vld [vmem:[#allocation3 + $0xc9] sm:$0xff]  ;;  %v5149_v11 = vld [vmem:[#allocation3 + $0xd1] sm:$0x7]  ;;  %v5121_v62 = vmul.f32 %v10083_v9, %v5095_v10  ;;  %v5305_v10 = vmul.f32 %v10107_v20, %v5279_v57 }
 0x569   : > { %v5223_v15 = vld [vmem:[#allocation3 + $0xce] sm:$0xff]  ;;  %v5174_v37 = vmul.f32 %v10087_v58, %v5148_v43  ;;  %v5092_v31 = vadd.f32 %v5067_v28, %v5016_v50  ;;  %v5175_v35 = vmul.f32 %v10087_v58, %v5149_v11  ;;  %v5358_v28 = vmul.f32 %v10397_v44, %v5332_v24 }
 0x56a   : > { %v5249_v26 = vmul.f32 %v10093_v42, %v5223_v15  ;;  %v5277_v13 = vld [vmem:[#allocation3 + $0xcf] sm:$0xff]  ;;  %v5273_v5 = vadd.f32 %v5248_v53, %v5197_v4  ;;  %v5195_v11 = vadd.f32 %v5170_v55, %v5141_v63  ;;  %v5194_v63 = vadd.f32 %v10629_v17, %v10625_v27 }
 0x56b   : > { %v5199_v1 = vadd.f32 %v5174_v37, %v5145_v7  ;;  %v5146_v9 = vadd.f32 %v5121_v62, %v5092_v31  ;;  %v5219_v25 = vld [vmem:[#allocation3 + $0xae] sm:$0xff]  ;;  %v5303_v43 = vmul.f32 %v10107_v20, %v5277_v13  ;;  %v5217_v37 = vld [vmem:[#allocation3 + $0x9e] sm:$0xff]  ;;  %v5244_v55 = vmul.f32 %v10093_v42, %v5218_v36 }
 0x56c   : > { %v5274_v16 = vadd.f32 %v5249_v26, %v5198_v2  ;;  %v5331_v15 = vld [vmem:[#allocation3 + $0xd0] sm:$0xff]  ;;  %v5245_v14 = vmul.f32 %v10093_v42, %v5219_v25  ;;  %v5301_v26 = vmul.f32 %v10107_v20, %v10589_v54  ;;  %v5271_v31 = vadd.f32 %v5246_v48, %v5195_v11 }
 0x56d   : > { %v5275_v21 = vadd.f32 %v5250_v23, %v5199_v1  ;;  %v5200_v50 = vadd.f32 %v5175_v35, %v5146_v9  ;;  %v5441_v23 = vld [vmem:[%s11051_s11 + $0x10] sm:$0xff]  ;;  %v5357_v2 = vmul.f32 %v10397_v44, %v5331_v15  ;;  %v5327_v46 = vadd.f32 %v5302_v60, %v5273_v5 }
 0x56e   : > { %v5328_v7 = vadd.f32 %v5303_v43, %v5274_v16  ;;  %v5300_v53 = vmul.f32 %v10107_v20, %v10583_v61  ;;  %v5270_v52 = vadd.f32 %v5245_v14, %v5194_v63  ;;  %v5243_v54 = vmul.f32 %v10093_v42, %v5217_v37  ;;  %5503 = vmatmul.f32.gmra.mxu2 %v5441_v23  ;;  %v5449_v60 = vld [vmem:[%s11051_s11 + $0x50] sm:$0xff]  ;;  %v5451_v37 = vld [vmem:[%s11051_s11 + $0x60] sm:$0xff]  ;;  %v5446_v23 = vld [vmem:[%s11051_s11 + $0x38] sm:$0xff] }
 0x56f   : > { %v5329_v58 = vadd.f32 %v5304_v45, %v5275_v21  ;;  %v5276_v6 = vadd.f32 %v5251_v47, %v5200_v50  ;;  %v5356_v27 = vmul.f32 %v10397_v44, %v10623_v18  ;;  %v5326_v17 = vadd.f32 %v5301_v26, %v5272_v39  ;;  %v5444_v39 = vld [vmem:[%s11051_s11 + $0x28] sm:$0xff]  ;;  %v5453_v26 = vld [vmem:[%s11051_s11 + $0x70] sm:$0x7f] }
 0x570   : > { %v5382_v1 = vadd.f32 %v5357_v2, %v5328_v7  ;;  %v5325_v45 = vadd.f32 %v5300_v53, %v5271_v31  ;;  %v5299_v24 = vmul.f32 %v10107_v20, %v10585_v29  ;;  %v5269_v13 = vadd.f32 %v5244_v55, %v5193_v51  ;;  %v5447_v7 = vld [vmem:[%s11051_s11 + $0x40] sm:$0xff]  ;;  %v6670_v31 = vld [vmem:[%s11052_s12 + $0x18] sm:$0xff]  ;;  %v5448_v63 = vld [vmem:[%s11051_s11 + $0x48] sm:$0xff] }
 0x571   : > { %v5330_v62 = vadd.f32 %v5305_v10, %v5276_v6  ;;  %v5383_v57 = vadd.f32 %v5358_v28, %v5329_v58  ;;  %v5192_v61 = vadd.f32 %v10617_v8, %v10391_v33  ;;  %v5381_v42 = vadd.f32 %v5356_v27, %v5327_v46  ;;  %v5443_v8 = vld [vmem:[%s11051_s11 + $0x20] sm:$0xff]  ;;  %v5445_v58 = vld [vmem:[%s11051_s11 + $0x30] sm:$0xff]  ;;  %v5440_v6 = vld [vmem:[%s11051_s11 + $0x8] sm:$0xff]  ;;  %5622 = vmatpush.bf16.msra.mxu2 %v6670_v31 }
 0x572   : > { %v5324_v9 = vadd.f32 %v5299_v24, %v5270_v52  ;;  %v5298_v18 = vmul.f32 %v10107_v20, %v10550_v3  ;;  %v5411_v29 = vadd.f32 %v10434_v59, %v5382_v1  ;;  %v5380_v16 = vadd.f32 %v5355_v0, %v5326_v17  ;;  %v5450_v55 = vld [vmem:[%s11051_s11 + $0x58] sm:$0xff]  ;;  %v6669_v2 = vld [vmem:[%s11052_s12 + $0x10] sm:$0xff]  ;;  %v6668_v46 = vld [vmem:[%s11052_s12 + $0x8] sm:$0xff] }
 0x573   : > { %v5384_v47 = vadd.f32 %v5359_v34, %v5330_v62  ;;  %v5412_v41 = vadd.f32 %v10434_v59, %v5383_v57  ;;  %v5268_v35 = vadd.f32 %v5243_v54, %v5192_v61  ;;  %v5354_v33 = vmul.f32 %v10397_v44, %v10568_v38  ;;  %v5452_v62 = vld [vmem:[%s11051_s11 + $0x68] sm:$0xff]  ;;  %v5454_v57 = vld [vmem:[%s11051_s11 + $0x78] sm:$0x7f]  ;;  %v6667_v53 = vld [vmem:[%s11052_s12] sm:$0xff] }
 0x574   : > { %v5323_v4 = vadd.f32 %v5298_v18, %v5269_v13  ;;  %v5410_v3 = vadd.f32 %v10434_v59, %v5381_v42  ;;  %v5353_v21 = vmul.f32 %v10397_v44, %v10561_v56  ;;  %v5436_v38 = vmax.f32 %v5411_v29, 0.0 }
 0x575   : > { %v5413_v30 = vadd.f32 %v10434_v59, %v5384_v47  ;;  %v5437_v25 = vmax.f32 %v5412_v41, 0.0  ;;  %v5379_v10 = vadd.f32 %v5354_v33, %v5325_v45  ;;  %v5322_v40 = vadd.f32 %v5297_v32, %v5268_v35  ;;  %5623 = vmatpush.bf16.msra.mxu2 %v6669_v2  ;;  %v6672_v2 = vld [vmem:[%s11056_s16 + $0x8] sm:$0xff] }
 0x576   : > { %5506 = vmatmul.f32.gmra.mxu2 %v5443_v8  ;;  %v5409_v48 = vadd.f32 %v10434_v59, %v5380_v16  ;;  %v5378_v50 = vadd.f32 %v5353_v21, %v5324_v9  ;;  %v5352_v28 = vmul.f32 %v10397_v44, %v10555_v12  ;;  %v5435_v20 = vmax.f32 %v5410_v3, 0.0  ;;  %v6678_v21 = vld [vmem:[%s11056_s16 + $0x38] sm:$0xff] }
 0x577   : > { %v5438_v19 = vmax.f32 %v5413_v30, 0.0  ;;  %v5408_v49 = vadd.f32 %v10434_v59, %v5379_v10  ;;  %v5351_v5 = vmul.f32 %v10397_v44, %v10557_v22 }
 0x578   : > { %v5377_v43 = vadd.f32 %v5352_v28, %v5323_v4  ;;  %v5434_v56 = vmax.f32 %v5409_v48, 0.0  ;;  %v5407_v36 = vadd.f32 %v10434_v59, %v5378_v50  ;;  %v6676_v28 = vld [vmem:[%s11056_s16 + $0x28] sm:$0xff] }
 0x579   : > { %6548 = vmatpush.msk.msrb.mxu3 %vm5480_vm10, %v5438_v19  ;;  %v5376_v34 = vadd.f32 %v5351_v5, %v5322_v40  ;;  %v5433_v15 = vmax.f32 %v5408_v49, 0.0  ;;  %5624 = vmatpush.bf16.msra.mxu2 %v6668_v46  ;;  %v10783_v40 = vld [vmem:[%s11053_s13] ss:$0 sm:$0xff]  ;;  %v5666_v49 = vpop.permute.xlu1 %5665 }
 0x57a   : > { %v5406_v12 = vadd.f32 %v10434_v59, %v5377_v43  ;;  %v5432_v11 = vmax.f32 %v5407_v36, 0.0  ;;  %v6675_v5 = vld [vmem:[%s11056_s16 + $0x20] sm:$0xff] }
 0x57b   : > { %5533 = vmatpush.msrb.mxu3 %v5437_v25  ;;  %v5405_v14 = vadd.f32 %v10434_v59, %v5376_v34  ;;  %v5442_v59 = vld [vmem:[%s11051_s11 + $0x18] sm:$0xff]  ;;  %v5730_v36 = vld [vmem:[%s11054_s14] sm:$0xff] }
 0x57c   : > { %v5431_v44 = vmax.f32 %v5406_v12, 0.0  ;;  %v10804_v12 = vperm.slane %v5730_v36, 1 }
 0x57d   : > { %5534 = vmatpush.msrb.mxu3 %v5436_v38  ;;  %v5430_v22 = vmax.f32 %v5405_v14, 0.0  ;;  %5625 = vmatpush.bf16.msra.mxu2 %v6667_v53  ;;  %v6677_v38 = vld [vmem:[%s11056_s16 + $0x30] sm:$0xff] }
 0x57e   : > { %5509 = vmatmul.f32.gmra.mxu2 %v5445_v58  ;;  %v6674_v58 = vld [vmem:[%s11056_s16 + $0x18] sm:$0xff] }
 0x57f   : > { %5535 = vmatpush.msrb.mxu3 %v5435_v20 }
 0x581   : > { %5536 = vmatpush.msrb.mxu3 %v5434_v56 }
 0x583   : > { %5537 = vmatpush.msrb.mxu3 %v5433_v15  ;;  %v10802_v15 = vperm.slane %v5730_v36, 0 }
 0x585   : > { %5538 = vmatpush.msrb.mxu3 %v5432_v11  ;;  %v5749_v11 = vld [vmem:[#allocation4 + $0x1] sm:$0xff] }
 0x586   : > { %5512 = vmatmul.f32.gmra.mxu2 %v5447_v7  ;;  %v5671_v7 = vpop.permute.xlu2 %5670 }
 0x587   : > { %5539 = vmatpush.msrb.mxu3 %v5431_v44  ;;  %v6748_v44 = vld [vmem:[#allocation4] sm:$0xff] }
 0x589   : > { %5540 = vmatpush.msrb.mxu3 %v5430_v22  ;;  %v5741_v22 = vmul.f32 %v6748_v44, %v10802_v15 }
 0x58a   : > { %6549 = vmatmul.msk.f32.vlgmr.msrb.gmra.mxu3 %vm5455_vm11, %v5440_v6  ;;  %v5758_v6 = vmul.f32 %v10804_v12, %v5749_v11 }
 0x58b   : > { %6017 = vmatpush.bf16.msra.mxu3 %v6678_v21 }
 0x58e   : > { %5515 = vmatmul.f32.gmra.mxu2 %v5449_v60 }
 0x58f   : > { %6018 = vmatpush.bf16.msra.mxu3 %v6677_v38 }
 0x592   : > { %6550 = vmatmul.msk.f32.gmra.mxu3 %vm5455_vm11, %v5442_v59  ;;  %v5774_v59 = vld [vmem:[#allocation4 + $0x2] sm:$0xff] }
 0x593   : > { %6019 = vmatpush.bf16.msra.mxu3 %v6676_v28 }
 0x596   : > { %5518 = vmatmul.f32.gmra.mxu2 %v5451_v37  ;;  %v6673_v37 = vld [vmem:[%s11056_s16 + $0x10] sm:$0xff] }
 0x597   : > { %6020 = vmatpush.bf16.msra.mxu3 %v6675_v5 }
 0x59a   : > { %6551 = vmatmul.msk.f32.gmra.mxu3 %vm5455_vm11, %v5444_v39  ;;  %v10810_v39 = vperm.slane %v5730_v36, 2 }
 0x59b   : > { %6021 = vmatpush.bf16.msra.mxu3 %v6674_v58 }
 0x59c   : > { %v5783_v31 = vmul.f32 %v10810_v39, %v5774_v59 }
 0x59e   : > { %5521 = vmatmul.f32.gmra.mxu2 %v5453_v26  ;;  %v5766_v26 = vadd.f32 %v5758_v6, %v5741_v22 }
 0x59f   : > { %6022 = vmatpush.bf16.msra.mxu3 %v6673_v37 }
 0x5a2   : > { %6552 = vmatmul.msk.f32.gmra.mxu3 %vm5455_vm11, %v5446_v23 }
 0x5a3   : > { %6023 = vmatpush.bf16.msra.mxu3 %v6672_v2 }
 0x5aa   : > { %6553 = vmatmul.msk.f32.gmra.mxu3 %vm5455_vm11, %v5448_v63  ;;  %v10817_v63 = vperm.slane %v5730_v36, 3 }
 0x5b2   : > { %6554 = vmatmul.msk.f32.gmra.mxu3 %vm5455_vm11, %v5450_v55 }
 0x5ba   : > { %6555 = vmatmul.msk.f32.gmra.mxu3 %vm5455_vm11, %v5452_v62 }
 0x5c2   : > { %6556 = vmatmul.msk.f32.gmra.mxu3 %vm5455_vm11, %v5454_v57 }
 0x5e7   : > { %v5501_v52 = vpop.f32.mrf.mxu2 }
 0x5f1   : > { %v5504_v51 = vpop.f32.mrf.mxu2 }
 0x5f9   : > { %v5507_v47 = vpop.f32.mrf.mxu2 }
 0x601   : > { %v5510_v24 = vpop.f32.mrf.mxu2 }
 0x609   : > { %v5513_v30 = vpop.f32.mrf.mxu2 }
 0x60d   : > { %v5542_v54 = vpop.f32.mrf.mxu3 }
 0x60e   : > { %v5543_v27 = vadd.f32 %v5542_v54, %v5501_v52 }
 0x611   : > { %v5516_v18 = vpop.f32.mrf.mxu2 }
 0x615   : > { %v5545_v1 = vpop.f32.mrf.mxu3 }
 0x616   : > { %v5546_v17 = vadd.f32 %v5545_v1, %v5504_v51  ;;  %v5791_v51 = vadd.f32 %v5783_v31, %v5766_v26  ;;  %v5686_v31 = vpop.permute.xlu2 %5685 }
 0x618   : > { %v5566_v45 = vpack.c.bf16 %v5546_v17, %v5543_v27  ;;  %v10828_v27 = vperm.slane %v5730_v36, 4  ;;  %v10830_v17 = vperm.slane %v5730_v36, 5 }
 0x619   : > { %v5519_v33 = vpop.f32.mrf.mxu2 }
 0x61a   : > { %6573 = vmatmul.msk.bf16.vlgmr.msra.gmra.mxu2 %vm4756_vm7, %v5566_v45 }
 0x61d   : > { %v5548_v13 = vpop.f32.mrf.mxu3 }
 0x61e   : > { %v5549_v41 = vadd.f32 %v5548_v13, %v5507_v47  ;;  %v5676_v47 = vpop.permute.xlu0 %5675  ;;  %v6671_v13 = vld [vmem:[%s11056_s16] sm:$0xff] }
 0x61f   : > { %6024 = vmatpush.bf16.msra.mxu3 %v6671_v13 }
 0x621   : > { %v5522_v4 = vpop.f32.mrf.mxu2 }
 0x625   : > { %v5551_v61 = vpop.f32.mrf.mxu3 }
 0x626   : > { %v5552_v42 = vadd.f32 %v5551_v61, %v5510_v24 }
 0x628   : > { %v5567_v0 = vpack.c.bf16 %v5552_v42, %v5549_v41 }
 0x62a   : > { %6574 = vmatmul.msk.bf16.gmra.mxu2 %vm4756_vm7, %v5567_v0 }
 0x62d   : > { %v5554_v9 = vpop.f32.mrf.mxu3 }
 0x62e   : > { %v5555_v19 = vadd.f32 %v5554_v9, %v5513_v30 }
 0x635   : > { %v5557_v35 = vpop.f32.mrf.mxu3 }
 0x636   : > { %v5558_v29 = vadd.f32 %v5557_v35, %v5516_v18 }
 0x638   : > { %v5568_v16 = vpack.c.bf16 %v5558_v29, %v5555_v19  ;;  %v10841_v29 = vperm.slane %v5730_v36, 6 }
 0x63a   : > { %6575 = vmatmul.msk.bf16.gmra.mxu2 %vm4756_vm7, %v5568_v16 }
 0x63d   : > { %v5560_v8 = vpop.f32.mrf.mxu3 }
 0x63e   : > { %v5561_v25 = vadd.f32 %v5560_v8, %v5519_v33 }
 0x645   : > { %v5563_v32 = vpop.f32.mrf.mxu3 }
 0x646   : > { %v5564_v3 = vadd.f32 %v5563_v32, %v5522_v4  ;;  %v10843_v4 = vperm.slane %v5730_v36, 7  ;;  %v5681_v32 = vpop.permute.xlu1 %5680 }
 0x648   : > { %v5569_v10 = vpack.c.bf16 %v5564_v3, %v5561_v25 }
 0x64a   : > { %6576 = vmatmul.msk.bf16.gmra.mxu2 %vm4756_vm7, %v5569_v10 }
 0x69d   : > { %v5627_v48 = vpop.f32.mrf.mxu2 }
 0x69e   : > { %v5628_v50 = vadd.f32 %v10783_v40, %v5627_v48 }
 0x6a0   : > { %v5647_v20 = vmax.f32 %v5628_v50, 0.0 }
 0x6a2   : > { %v5703_v43 = vmul.f32 %v5666_v49, %v5647_v20 }
 0x6a4   : > { %5722 = vst [vmem:[#allocation4 + $0xa] sm:$0xff] %v5703_v43  ;;  %v5784_v42 = vmul.f32 %v10810_v39, %v5703_v43  ;;  %v5821_v18 = vmul.f32 %v10828_v27, %v5703_v43 }
 0x6a5   : > { %v5629_v56 = vpop.f32.mrf.mxu2 }
 0x6a6   : > { %v5630_v34 = vadd.f32 %v10783_v40, %v5629_v56 }
 0x6a8   : > { %v5648_v14 = vmax.f32 %v5630_v34, 0.0 }
 0x6aa   : > { %v10808_v60 = vmul.f32 %v5671_v7, %v5648_v14  ;;  %v10860_v14 = vld [vmem:[%s11054_s14 + $0x8] ss:$0 sm:$0xff] }
 0x6ab   : > { %v5733_v23 = vld [vmem:[#allocation4 + $0x8] sm:$0xff] }
 0x6ac   : > { %5723 = vst [vmem:[#allocation4 + $0x12] sm:$0xff] %v10808_v60  ;;  %v5750_v62 = vld [vmem:[#allocation4 + $0x9] sm:$0xff]  ;;  %v5742_v46 = vmul.f32 %v10802_v15, %v5733_v23  ;;  %v5822_v50 = vmul.f32 %v10828_v27, %v10808_v60  ;;  %v5865_v20 = vmul.f32 %v10841_v29, %v10808_v60  ;;  %v5785_v6 = vmul.f32 %v10810_v39, %v10808_v60 }
 0x6ad   : > { %v5632_v55 = vpop.f32.mrf.mxu2  ;;  %v5759_v52 = vmul.f32 %v10804_v12, %v5750_v62  ;;  %v5802_v54 = vmul.f32 %v10817_v63, %v5750_v62 }
 0x6ae   : > { %v5633_v57 = vadd.f32 %v10783_v40, %v5632_v55 }
 0x6af   : > { %v5767_v61 = vadd.f32 %v5759_v52, %v5742_v46  ;;  %v5810_v30 = vadd.f32 %v5802_v54, %v5791_v51 }
 0x6b0   : > { %v5649_v53 = vmax.f32 %v5633_v57, 0.0 }
 0x6b1   : > { %v5792_v33 = vadd.f32 %v5784_v42, %v5767_v61  ;;  %v5829_v8 = vadd.f32 %v5821_v18, %v5810_v30 }
 0x6b2   : > { %v10826_v1 = vmul.f32 %v5676_v47, %v5649_v53 }
 0x6b3   : > { %v5751_v45 = vld [vmem:[#allocation4 + $0x11] sm:$0xff] }
 0x6b4   : > { %v5837_v24 = vld [vmem:[#allocation4 + $0xb] sm:$0xff]  ;;  %5724 = vst [vmem:[#allocation4 + $0x1a] sm:$0xff] %v10826_v1  ;;  %v5803_v9 = vmul.f32 %v10817_v63, %v5751_v45  ;;  %v5760_v3 = vmul.f32 %v10804_v12, %v5751_v45  ;;  %v5866_v57 = vmul.f32 %v10841_v29, %v10826_v1  ;;  %v5786_v61 = vmul.f32 %v10810_v39, %v10826_v1 }
 0x6b5   : > { %v5634_v41 = vpop.f32.mrf.mxu2  ;;  %v5846_v35 = vmul.f32 %v10830_v17, %v5837_v24  ;;  %v5734_v19 = vld [vmem:[#allocation4 + $0x10] sm:$0xff]  ;;  %v5823_v30 = vmul.f32 %v10828_v27, %v10826_v1 }
 0x6b6   : > { %v5635_v0 = vadd.f32 %v10783_v40, %v5634_v41  ;;  %v5743_v25 = vmul.f32 %v10802_v15, %v5734_v19  ;;  %v5811_v21 = vadd.f32 %v5803_v9, %v5792_v33  ;;  %v10877_v45 = vld [vmem:[%s11055_s15] ss:$0 sm:$0xff] }
 0x6b7   : > { %v5854_v38 = vadd.f32 %v5846_v35, %v5829_v8 }
 0x6b8   : > { %v5650_v16 = vmax.f32 %v5635_v0, 0.0  ;;  %v5768_v36 = vadd.f32 %v5760_v3, %v5743_v25  ;;  %v5830_v58 = vadd.f32 %v5822_v50, %v5811_v21  ;;  %v5691_v25 = vpop.permute.xlu0 %5690 }
 0x6b9   : > { %v5873_v11 = vadd.f32 %v5865_v20, %v5854_v38 }
 0x6ba   : > { %v10847_v10 = vmul.f32 %v5681_v32, %v5650_v16  ;;  %v5793_v55 = vadd.f32 %v5785_v6, %v5768_v36 }
 0x6bb   : > { %v5838_v48 = vld [vmem:[#allocation4 + $0x13] sm:$0xff] }
 0x6bc   : > { %5725 = vst [vmem:[#allocation4 + $0x22] sm:$0xff] %v10847_v10  ;;  %v5847_v28 = vmul.f32 %v10830_v17, %v5838_v48  ;;  %v5884_v49 = vmul.f32 %v10843_v4, %v5838_v48  ;;  %v5735_v43 = vld [vmem:[#allocation4 + $0x18] sm:$0xff] }
 0x6bd   : > { %v5752_v5 = vld [vmem:[#allocation4 + $0x19] sm:$0xff]  ;;  %v5637_v56 = vpop.f32.mrf.mxu2  ;;  %v5744_v22 = vmul.f32 %v10802_v15, %v5735_v43 }
 0x6be   : > { %v5638_v34 = vadd.f32 %v10783_v40, %v5637_v56  ;;  %v5900_v44 = vld [vmem:[#allocation4 + $0x14] sm:$0xff]  ;;  %v5804_v7 = vmul.f32 %v10817_v63, %v5752_v5  ;;  %v5855_v37 = vadd.f32 %v5847_v28, %v5830_v58  ;;  %v5892_v23 = vadd.f32 %v5884_v49, %v5873_v11 }
 0x6bf   : > { %v5761_v26 = vmul.f32 %v10804_v12, %v5752_v5  ;;  %v5909_v2 = vmul.f32 %v10860_v14, %v5900_v44  ;;  %v5824_v28 = vmul.f32 %v10828_v27, %v10847_v10  ;;  %v5867_v49 = vmul.f32 %v10841_v29, %v10847_v10 }
 0x6c0   : > { %v5651_v59 = vmax.f32 %v5638_v34, 0.0  ;;  %v5812_v60 = vadd.f32 %v5804_v7, %v5793_v55  ;;  %v5874_v51 = vadd.f32 %v5866_v57, %v5855_v37 }
 0x6c1   : > { %v5917_v47 = vadd.f32 %v5909_v2, %v5892_v23  ;;  %v5769_v24 = vadd.f32 %v5761_v26, %v5744_v22 }
 0x6c2   : > { %v10867_v62 = vmul.f32 %v5686_v31, %v5651_v59  ;;  %v5831_v19 = vadd.f32 %v5823_v30, %v5812_v60  ;;  %v5787_v59 = vmul.f32 %v10810_v39, %v10847_v10 }
 0x6c3   : > { %v5839_v46 = vld [vmem:[#allocation4 + $0x1b] sm:$0xff]  ;;  %v5929_v8 = vadd.f32 %v10877_v45, %v5917_v47  ;;  %v5794_v32 = vadd.f32 %v5786_v61, %v5769_v24 }
 0x6c4   : > { %v5901_v53 = vld [vmem:[#allocation4 + $0x1c] sm:$0xff]  ;;  %5726 = vst [vmem:[#allocation4 + $0x2a] sm:$0xff] %v10867_v62  ;;  %v5885_v54 = vmul.f32 %v10843_v4, %v5839_v46  ;;  %v5848_v41 = vmul.f32 %v10830_v17, %v5839_v46  ;;  %v5868_v10 = vmul.f32 %v10841_v29, %v10867_v62 }
 0x6c5   : > { %v5753_v52 = vld [vmem:[#allocation4 + $0x21] sm:$0xff]  ;;  %v5639_v13 = vpop.f32.mrf.mxu2  ;;  %v5910_v9 = vmul.f32 %v10860_v14, %v5901_v53  ;;  %v5937_v43 = vmax.f32 %v5929_v8, 0.0  ;;  %v5696_v53 = vpop.permute.xlu1 %5695 }
 0x6c6   : > { %v5640_v42 = vadd.f32 %v10783_v40, %v5639_v13  ;;  %v5893_v0 = vadd.f32 %v5885_v54, %v5874_v51  ;;  %v5805_v18 = vmul.f32 %v10817_v63, %v5753_v52  ;;  %v5736_v35 = vld [vmem:[#allocation4 + $0x20] sm:$0xff]  ;;  %v5762_v3 = vmul.f32 %v10804_v12, %v5753_v52 }
 0x6c7   : > { %v5856_v1 = vadd.f32 %v5848_v41, %v5831_v19  ;;  %v5745_v21 = vmul.f32 %v10802_v15, %v5736_v35  ;;  %v5825_v35 = vmul.f32 %v10828_v27, %v10867_v62 }
 0x6c8   : > { %v5652_v16 = vmax.f32 %v5640_v42, 0.0  ;;  %v5918_v33 = vadd.f32 %v5910_v9, %v5893_v0  ;;  %v5813_v50 = vadd.f32 %v5805_v18, %v5794_v32  ;;  %v5788_v9 = vmul.f32 %v10810_v39, %v10867_v62 }
 0x6c9   : > { %v5875_v44 = vadd.f32 %v5867_v49, %v5856_v1  ;;  %v5770_v22 = vadd.f32 %v5762_v3, %v5745_v21 }
 0x6ca   : > { %v10890_v38 = vmul.f32 %v5691_v25, %v5652_v16  ;;  %v5930_v48 = vadd.f32 %v10877_v45, %v5918_v33  ;;  %v5832_v37 = vadd.f32 %v5824_v28, %v5813_v50 }
 0x6cb   : > { %v5840_v20 = vld [vmem:[#allocation4 + $0x23] sm:$0xff]  ;;  %v5795_v60 = vadd.f32 %v5787_v59, %v5770_v22 }
 0x6cc   : > { %5727 = vst [vmem:[#allocation4 + $0x32] sm:$0xff] %v10890_v38  ;;  %v5938_v5 = vmax.f32 %v5930_v48, 0.0  ;;  %v5849_v56 = vmul.f32 %v10830_v17, %v5840_v20  ;;  %v5886_v36 = vmul.f32 %v10843_v4, %v5840_v20  ;;  %v5737_v34 = vld [vmem:[#allocation4 + $0x28] sm:$0xff]  ;;  %v5701_v20 = vpop.permute.xlu2 %5700 }
 0x6cd   : > { %v5754_v58 = vld [vmem:[#allocation4 + $0x29] sm:$0xff]  ;;  %v5642_v11 = vpop.f32.mrf.mxu2  ;;  %v5746_v31 = vmul.f32 %v10802_v15, %v5737_v34  ;;  %v5869_v34 = vmul.f32 %v10841_v29, %v10890_v38 }
 0x6ce   : > { %v5643_v6 = vadd.f32 %v10783_v40, %v5642_v11  ;;  %v5945_v7 = vpack.c.bf16 %v5938_v5, %v5937_v43  ;;  %v5902_v23 = vld [vmem:[#allocation4 + $0x24] sm:$0xff]  ;;  %v5894_v26 = vadd.f32 %v5886_v36, %v5875_v44  ;;  %v5763_v55 = vmul.f32 %v10804_v12, %v5754_v58 }
 0x6cf   : > { %v5806_v57 = vmul.f32 %v10817_v63, %v5754_v58  ;;  %v5857_v46 = vadd.f32 %v5849_v56, %v5832_v37  ;;  %v5911_v52 = vmul.f32 %v10860_v14, %v5902_v23  ;;  %v5826_v56 = vmul.f32 %v10828_v27, %v10890_v38 }
 0x6d0   : > { %v5653_v2 = vmax.f32 %v5643_v6, 0.0  ;;  %6025 = vmatmul.bf16.vlgmr.msra.gmra.mxu3 %v5945_v7  ;;  %v5771_v61 = vadd.f32 %v5763_v55, %v5746_v31  ;;  %v5789_v37 = vmul.f32 %v10810_v39, %v10890_v38 }
 0x6d1   : > { %v5919_v24 = vadd.f32 %v5911_v52, %v5894_v26  ;;  %v5814_v30 = vadd.f32 %v5806_v57, %v5795_v60  ;;  %v5876_v41 = vadd.f32 %v5868_v10, %v5857_v46 }
 0x6d2   : > { %v5709_v51 = vmul.f32 %v5696_v53, %v5653_v2  ;;  %v5796_v3 = vadd.f32 %v5788_v9, %v5771_v61 }
 0x6d3   : > { %v5841_v54 = vld [vmem:[#allocation4 + $0x2b] sm:$0xff]  ;;  %v5931_v25 = vadd.f32 %v10877_v45, %v5919_v24  ;;  %v5833_v1 = vadd.f32 %v5825_v35, %v5814_v30 }
 0x6d4   : > { %v5903_v47 = vld [vmem:[#allocation4 + $0x2c] sm:$0xff]  ;;  %5728 = vst [vmem:[#allocation4 + $0x3a] sm:$0xff] %v5709_v51  ;;  %v5887_v42 = vmul.f32 %v10843_v4, %v5841_v54  ;;  %v5850_v18 = vmul.f32 %v10830_v17, %v5841_v54 }
 0x6d5   : > { %v5755_v13 = vld [vmem:[#allocation4 + $0x31] sm:$0xff]  ;;  %v5644_v0 = vpop.f32.mrf.mxu2  ;;  %v5912_v8 = vmul.f32 %v10860_v14, %v5903_v47  ;;  %v5939_v5 = vmax.f32 %v5931_v25, 0.0  ;;  %v5870_v47 = vmul.f32 %v10841_v29, %v5709_v51 }
 0x6d6   : > { %v5738_v19 = vld [vmem:[#allocation4 + $0x30] sm:$0xff]  ;;  %v5645_v16 = vadd.f32 %v10783_v40, %v5644_v0  ;;  %v5895_v33 = vadd.f32 %v5887_v42, %v5876_v41  ;;  %v5807_v32 = vmul.f32 %v10817_v63, %v5755_v13  ;;  %v5764_v50 = vmul.f32 %v10804_v12, %v5755_v13 }
 0x6d7   : > { %v5747_v28 = vmul.f32 %v10802_v15, %v5738_v19  ;;  %v5858_v43 = vadd.f32 %v5850_v18, %v5833_v1 }
 0x6d8   : > { %v5654_v21 = vmax.f32 %v5645_v16, 0.0  ;;  %v5920_v48 = vadd.f32 %v5912_v8, %v5895_v33  ;;  %v5815_v40 = vadd.f32 %v5807_v32, %v5796_v3  ;;  %v5863_v32 = vld [vmem:[#allocation4 + $0x4a] sm:$0x7f] }
 0x6d9   : > { %v5772_v7 = vadd.f32 %v5764_v50, %v5747_v28  ;;  %v5877_v57 = vadd.f32 %v5869_v34, %v5858_v43  ;;  %v5882_v50 = vld [vmem:[#allocation4 + $0x4b] sm:$0x7f] }
 0x6da   : > { %v5710_v62 = vmul.f32 %v5701_v20, %v5654_v21  ;;  %v5932_v49 = vadd.f32 %v10877_v45, %v5920_v48  ;;  %v5834_v55 = vadd.f32 %v5826_v56, %v5815_v40 }
 0x6db   : > { %v5842_v36 = vld [vmem:[#allocation4 + $0x33] sm:$0xff]  ;;  %v5797_v10 = vadd.f32 %v5789_v37, %v5772_v7 }
 0x6dc   : > { %v5739_v58 = vld [vmem:[#allocation4 + $0x38] sm:$0x7f]  ;;  %5729 = vst [vmem:[#allocation4 + $0x42] sm:$0x7f] %v5710_v62  ;;  %v5940_v11 = vmax.f32 %v5932_v49, 0.0  ;;  %v5851_v44 = vmul.f32 %v10830_v17, %v5842_v36  ;;  %v5888_v22 = vmul.f32 %v10843_v4, %v5842_v36 }
 0x6dd   : > { %v5756_v6 = vld [vmem:[#allocation4 + $0x39] sm:$0x7f]  ;;  %v5748_v23 = vmul.f32 %v10802_v15, %v5739_v58  ;;  %v5827_v15 = vmul.f32 %v10828_v27, %v5709_v51 }
 0x6de   : > { %v5799_v59 = vld [vmem:[#allocation4 + $0x39] sm:$0xff]  ;;  %v5765_v26 = vmul.f32 %v10804_v12, %v5756_v6  ;;  %v5946_v31 = vpack.c.bf16 %v5940_v11, %v5939_v5  ;;  %v5859_v53 = vadd.f32 %v5851_v44, %v5834_v55  ;;  %v5896_v52 = vadd.f32 %v5888_v22, %v5877_v57 }
 0x6df   : > { %v5808_v2 = vmul.f32 %v10817_v63, %v5799_v59  ;;  %v5904_v46 = vld [vmem:[#allocation4 + $0x34] sm:$0xff]  ;;  %v5891_v5 = vmul.f32 %v10843_v4, %v5882_v50  ;;  %v6132_v50 = vld [vmem:[%s11058_s18 + $0x38] sm:$0xff] }
 0x6e0   : > { %6030 = vmatmul.bf16.gmra.mxu3 %v5946_v31  ;;  %v5781_v60 = vld [vmem:[#allocation4 + $0x3a] sm:$0x7f]  ;;  %v5773_v54 = vadd.f32 %v5765_v26, %v5748_v23  ;;  %v5913_v38 = vmul.f32 %v10860_v14, %v5904_v46  ;;  %v5878_v42 = vadd.f32 %v5870_v47, %v5859_v53  ;;  %v6140_v53 = vld [vmem:[%s11058_s18 + $0x78] sm:$0xff]  ;;  %v6743_v47 = vld [vmem:[%s11057_s17] ss:$0 sm:$0xff] }
 0x6e1   : > { %v5816_v24 = vadd.f32 %v5808_v2, %v5797_v10  ;;  %v5790_v61 = vmul.f32 %v10810_v39, %v5781_v60  ;;  %6142 = vmatpush.msrb.mxu2 %v6140_v53  ;;  %v6137_v60 = vld [vmem:[%s11058_s18 + $0x60] sm:$0xff] }
 0x6e2   : > { %v5921_v9 = vadd.f32 %v5913_v38, %v5896_v52  ;;  %v6070_v38 = vpop.permute.xlu1 %6069 }
 0x6e3   : > { %v5843_v12 = vld [vmem:[#allocation4 + $0x3b] sm:$0xff]  ;;  %v5798_v35 = vadd.f32 %v5790_v61, %v5773_v54  ;;  %v5835_v8 = vadd.f32 %v5827_v15, %v5816_v24  ;;  %v5844_v51 = vld [vmem:[#allocation4 + $0x43] sm:$0x7f]  ;;  %v6065_v54 = vpop.permute.xlu0 %6064 }
 0x6e4   : > { %v5905_v13 = vld [vmem:[#allocation4 + $0x3c] sm:$0xff]  ;;  %v5852_v41 = vmul.f32 %v10830_v17, %v5843_v12  ;;  %v5889_v0 = vmul.f32 %v10843_v4, %v5843_v12  ;;  %v5933_v21 = vadd.f32 %v10877_v45, %v5921_v9  ;;  %v5853_v20 = vmul.f32 %v10830_v17, %v5844_v51  ;;  %v5906_v6 = vld [vmem:[#allocation4 + $0x44] sm:$0xff] }
 0x6e5   : > { %v5800_v30 = vld [vmem:[#allocation4 + $0x41] sm:$0x7f]  ;;  %v5914_v33 = vmul.f32 %v10860_v14, %v5905_v13 }
 0x6e6   : > { %v5819_v18 = vld [vmem:[#allocation4 + $0x42] sm:$0x7f]  ;;  %v5809_v19 = vmul.f32 %v10817_v63, %v5800_v30  ;;  %v5897_v16 = vadd.f32 %v5889_v0, %v5878_v42  ;;  %v5860_v48 = vadd.f32 %v5852_v41, %v5835_v8  ;;  %v5872_v63 = vmul.f32 %v10841_v29, %v5863_v32  ;;  %v6075_v0 = vpop.permute.xlu2 %6074 }
 0x6e7   : > { %v5828_v39 = vmul.f32 %v10828_v27, %v5819_v18  ;;  %v5862_v3 = vld [vmem:[#allocation4 + $0x42] sm:$0xff]  ;;  %v5907_v27 = vld [vmem:[#allocation4 + $0x4c] sm:$0x7f]  ;;  %v5941_v56 = vmax.f32 %v5933_v21, 0.0 }
 0x6e8   : > { %v5817_v25 = vadd.f32 %v5809_v19, %v5798_v35  ;;  %v5922_v1 = vadd.f32 %v5914_v33, %v5897_v16  ;;  %v5871_v49 = vmul.f32 %v10841_v29, %v5862_v3  ;;  %v5881_v43 = vld [vmem:[#allocation4 + $0x43] sm:$0xff]  ;;  %v5916_v17 = vmul.f32 %v10860_v14, %v5907_v27  ;;  %v6134_v19 = vld [vmem:[%s11058_s18 + $0x48] sm:$0xff] }
 0x6e9   : > { %v5890_v44 = vmul.f32 %v10843_v4, %v5881_v43  ;;  %v5915_v29 = vmul.f32 %v10860_v14, %v5906_v6  ;;  %v6139_v14 = vld [vmem:[%s11058_s18 + $0x70] sm:$0xff]  ;;  %v6136_v41 = vld [vmem:[%s11058_s18 + $0x58] sm:$0xff] }
 0x6ea   : > { %v5836_v28 = vadd.f32 %v5828_v39, %v5817_v25  ;;  %v5934_v62 = vadd.f32 %v10877_v45, %v5922_v1  ;;  %v5879_v34 = vadd.f32 %v5871_v49, %v5860_v48  ;;  %6143 = vmatpush.msrb.mxu2 %v6139_v14  ;;  %v6135_v42 = vld [vmem:[%s11058_s18 + $0x50] sm:$0xff]  ;;  %v6133_v25 = vld [vmem:[%s11058_s18 + $0x40] sm:$0xff]  ;;  %v6085_v39 = vpop.permute.xlu1 %6084  ;;  %v6128_v6 = vld [vmem:[%s11058_s18 + $0x18] sm:$0xff] }
 0x6eb   : > { %v6080_v16 = vpop.permute.xlu0 %6079 }
 0x6ec   : > { %v5861_v40 = vadd.f32 %v5853_v20, %v5836_v28  ;;  %v5942_v36 = vmax.f32 %v5934_v62, 0.0  ;;  %v5898_v7 = vadd.f32 %v5890_v44, %v5879_v34  ;;  %v6131_v62 = vld [vmem:[%s11058_s18 + $0x30] sm:$0xff] }
 0x6ee   : > { %v5880_v58 = vadd.f32 %v5872_v63, %v5861_v40  ;;  %v5947_v11 = vpack.c.bf16 %v5942_v36, %v5941_v56  ;;  %v5923_v37 = vadd.f32 %v5915_v29, %v5898_v7  ;;  %v6090_v27 = vpop.permute.xlu2 %6089 }
 0x6f0   : > { %v5899_v22 = vadd.f32 %v5891_v5, %v5880_v58  ;;  %6035 = vmatmul.bf16.gmra.mxu3 %v5947_v11  ;;  %v5935_v26 = vadd.f32 %v10877_v45, %v5923_v37  ;;  %v6130_v5 = vld [vmem:[%s11058_s18 + $0x28] sm:$0xff]  ;;  %v6129_v58 = vld [vmem:[%s11058_s18 + $0x20] sm:$0xff]  ;;  %v6127_v37 = vld [vmem:[%s11058_s18 + $0x10] sm:$0xff] }
 0x6f2   : > { %v5924_v59 = vadd.f32 %v5916_v17, %v5899_v22  ;;  %v5943_v55 = vmax.f32 %v5935_v26, 0.0  ;;  %v6100_v29 = vpop.permute.xlu1 %6099 }
 0x6f3   : > { %v6095_v11 = vpop.permute.xlu0 %6094 }
 0x6f4   : > { %v5936_v23 = vadd.f32 %v10877_v45, %v5924_v59  ;;  %v6138_v45 = vld [vmem:[%s11058_s18 + $0x68] sm:$0xff] }
 0x6f5   : > { %6144 = vmatpush.msrb.mxu2 %v6138_v45 }
 0x6f6   : > { %v5944_v31 = vmax.f32 %v5936_v23, 0.0 }
 0x6f7   : > { %6145 = vmatpush.msrb.mxu2 %v6137_v60 }
 0x6f8   : > { %v5948_v57 = vpack.c.bf16 %v5944_v31, %v5943_v55  ;;  %v6126_v31 = vld [vmem:[%s11058_s18 + $0x8] sm:$0xff] }
 0x6f9   : > { %6146 = vmatpush.msrb.mxu2 %v6136_v41 }
 0x6fb   : > { %6147 = vmatpush.msrb.mxu2 %v6135_v42 }
 0x6fd   : > { %6148 = vmatpush.msrb.mxu2 %v6134_v19 }
 0x6ff   : > { %6149 = vmatpush.msrb.mxu2 %v6133_v25 }
 0x700   : > { %6040 = vmatmul.bf16.gmra.mxu3 %v5948_v57 }
 0x701   : > { %6150 = vmatpush.msrb.mxu2 %v6132_v50 }
 0x703   : > { %6151 = vmatpush.msrb.mxu2 %v6131_v62 }
 0x705   : > { %6152 = vmatpush.msrb.mxu2 %v6130_v5 }
 0x707   : > { %6153 = vmatpush.msrb.mxu2 %v6129_v58 }
 0x709   : > { %6154 = vmatpush.msrb.mxu2 %v6128_v6 }
 0x70b   : > { %6155 = vmatpush.msrb.mxu2 %v6127_v37 }
 0x70d   : > { %6156 = vmatpush.msrb.mxu2 %v6126_v31 }
 0x753   : > { %v6026_v2 = vpop.f32.mrf.mxu3 }
 0x754   : > { %v6027_v12 = vadd.f32 %v6743_v47, %v6026_v2  ;;  %v6125_v2 = vld [vmem:[%s11058_s18] sm:$0xff] }
 0x755   : > { %6157 = vmatpush.msrb.mxu2 %v6125_v2 }
 0x756   : > { %v6046_v9 = vmax.f32 %v6027_v12, 0.0 }
 0x758   : > { %v6102_v3 = vmul.f32 %v6065_v54, %v6046_v9 }
 0x75b   : > { %v6028_v4 = vpop.f32.mrf.mxu3 }
 0x75c   : > { %v6029_v24 = vadd.f32 %v6743_v47, %v6028_v4 }
 0x75e   : > { %v6047_v61 = vmax.f32 %v6029_v24, 0.0 }
 0x760   : > { %v6103_v33 = vmul.f32 %v6070_v38, %v6047_v61 }
 0x762   : > { %v6110_v28 = vadd.f32 %v6103_v33, %v6102_v3 }
 0x763   : > { %v6031_v46 = vpop.f32.mrf.mxu3 }
 0x764   : > { %v6032_v13 = vadd.f32 %v6743_v47, %v6031_v46 }
 0x766   : > { %v6048_v18 = vmax.f32 %v6032_v13, 0.0 }
 0x768   : > { %v6104_v1 = vmul.f32 %v6075_v0, %v6048_v18 }
 0x76a   : > { %v6111_v49 = vadd.f32 %v6110_v28, %v6104_v1 }
 0x76b   : > { %v6033_v52 = vpop.f32.mrf.mxu3 }
 0x76c   : > { %v6034_v30 = vadd.f32 %v6743_v47, %v6033_v52 }
 0x76e   : > { %v6049_v8 = vmax.f32 %v6034_v30, 0.0 }
 0x770   : > { %v6105_v20 = vmul.f32 %v6080_v16, %v6049_v8 }
 0x772   : > { %v6112_v56 = vadd.f32 %v6111_v49, %v6105_v20 }
 0x773   : > { %v6036_v10 = vpop.f32.mrf.mxu3 }
 0x774   : > { %v6037_v35 = vadd.f32 %v6743_v47, %v6036_v10  ;;  %v6141_v10 = vld [vmem:[%s11059_s19] sm:$0x1] }
 0x776   : > { %v6050_v21 = vmax.f32 %v6037_v35, 0.0 }
 0x778   : > { %v6106_v40 = vmul.f32 %v6085_v39, %v6050_v21 }
 0x77a   : > { %v6113_v17 = vadd.f32 %v6112_v56, %v6106_v40 }
 0x77b   : > { %v6038_v15 = vpop.f32.mrf.mxu3 }
 0x77c   : > { %v6039_v51 = vadd.f32 %v6743_v47, %v6038_v15 }
 0x77e   : > { %v6051_v63 = vmax.f32 %v6039_v51, 0.0 }
 0x780   : > { %v6107_v36 = vmul.f32 %v6090_v27, %v6051_v63 }
 0x782   : > { %v6114_v59 = vadd.f32 %v6113_v17, %v6107_v36 }
 0x783   : > { %v6041_v32 = vpop.f32.mrf.mxu3 }
 0x784   : > { %v6042_v48 = vadd.f32 %v6743_v47, %v6041_v32 }
 0x786   : > { %v6052_v43 = vmax.f32 %v6042_v48, 0.0 }
 0x788   : > { %v6108_v22 = vmul.f32 %v6095_v11, %v6052_v43 }
 0x78a   : > { %v6115_v26 = vadd.f32 %v6114_v59, %v6108_v22 }
 0x78b   : > { %v6043_v34 = vpop.f32.mrf.mxu3 }
 0x78c   : > { %v6044_v44 = vadd.f32 %v6743_v47, %v6043_v34 }
 0x78e   : > { %v6053_v7 = vmax.f32 %v6044_v44, 0.0 }
 0x790   : > { %v6109_v23 = vmul.f32 %v6100_v29, %v6053_v7 }
 0x792   : > { %v6116_v55 = vsel %vm1615_vm3, %v6109_v23, 0.0 }
 0x793   : > { %v6117_v57 = vadd.f32 %v6116_v55, %v6115_v26 }
 0x795   : > { %v6118_v4 = vrot.slane %v6117_v57, 4 }
 0x797   : > { %v6119_v46 = vadd.f32 %v6118_v4, %v6117_v57 }
 0x799   : > { %v6120_v53 = vrot.slane %v6119_v46, 2 }
 0x79b   : > { %v6121_v14 = vadd.f32 %v6120_v53, %v6119_v46 }
 0x79d   : > { %v6122_v52 = vrot.slane %v6121_v14, 1 }
 0x79f   : > { %v6123_v45 = vadd.f32 %v6122_v52, %v6121_v14 }
 0x7a1   : > { %v6124_v60 = vmul.f32 0.020408163, %v6123_v45 }
 0x7a3   : > { %6158 = vmatmul.f32.vlgmr.msrb.gmra.mxu2 %v6124_v60 }
 0x826   : > { %v6159_v54 = vpop.f32.mrf.mxu2 }
 0x827   : > { %v6160_v47 = vadd.f32 %v6159_v54, %v6141_v10 }
 0x829   : > { %6162 = vst [vmem:[%s621_s0] sm:$0x1] %v6160_v47 }
 0x82a   : > { %6776 = shalt.err (!%p6773_p3)
}
 0x82b   : > { %6690 = dma.vmem_to_hbm [thread:$0]  (%p6959_p5), %s6175_s1, 16, %s6177_s5, %s6164_s6  }
 0x82c PF: > { %s11361_s23 = sld [smem:[#allocation8_spill]]  ;;  %p6696_p4 = scmp.ge.s32.totalorder %s6811_s24, 2 }
 0x82e   : > { %p6693_p7 = pnand %p6696_p4, %p6963_p6 }
 0x830   : > { %p6694_p8 = pneg %p6693_p7 }
 0x832   : > { %s6188_s0 = sand.u32 1, %s11361_s23  }
 0x833   : > { %s6189_s2 = scalar_lea.sflag [#allocation6], %s6188_s0 }
 0x834   : > { %6794 = dma.done.wait (%p6694_p8), %s6189_s2, 16  }
 0x835   : > { %6796 = vsyncadd (%p6694_p8), %s6189_s2, 4294967280  ;;  %s11363_s24 = sld [smem:[#allocation10_spill]]  ;;  %s11366_s1 = smov %s6803_s22 }
 0x836   : > { %s11364_s7 = sld [smem:[#allocation9_spill]] }
 0x837   : > { %s11365_s23 = sld [smem:[#allocation11_spill]] }
 0x83b   : > { %p30_p9 = scmp.ge.s32.totalorder %s11363_s24, 4  }
 0x83c   : > { %s11367_s22 = smov %s11364_s7 }
 0x83d   :  { %32 = sbr.rel (!%p30_p9) target bundleno = 13 (0xd), region = 135 }
 0x842   :  { %6194 = vsyncpa [#allocation6], 1 }
 0x843   :  { %6196 = vsyncpa [#allocation6 + $0x1], 1 }

</bundles_post_ra>
